<compile_context>
chip_gen: v5e
topology: v5e:2x2
jax: 0.10.0
libtpu: 0.0.40
codegen_flags: <defaults>
</compile_context>

<pallas_src>
import math

import jax
import jax.numpy as jnp
import numpy as np
from jax.experimental import pallas as pl
from jax.experimental.pallas import tpu as pltpu


# ---------------------------------------------------------------------------
# Offline parameter packing: PyTorch layout -> fused-kernel layout
# ---------------------------------------------------------------------------
def prepare_params(w1, b1, w2, b2, wl, bl):
    """w1:(32,1,5,5) b1:(32,)  w2:(64,32,5,5) b2:(64,)  wl:(10,3136) bl:(10,)."""
    w1 = np.asarray(w1, np.float32)
    b1 = np.asarray(b1, np.float32)
    w2 = np.asarray(w2, np.float32)
    b2 = np.asarray(b2, np.float32)
    wl = np.asarray(wl, np.float32)
    bl = np.asarray(bl, np.float32)

    def split_even_odd_pad(band_kxc):
        # (K, n_x, cout) -> (K, 1024) columns [even x | 64 zeros | odd x | 64 zeros]
        K = band_kxc.shape[0]
        even = band_kxc[:, 0::2, :].reshape(K, 448)
        odd = band_kxc[:, 1::2, :].reshape(K, 448)
        z = np.zeros((K, 64), np.float32)
        return np.concatenate([even, z, odd, z], axis=1)

    def tile_bias(b, n_half_pos):
        half = np.tile(b, n_half_pos)                        # (448,)
        z = np.zeros(64, np.float32)
        return np.concatenate([half, z, half, z])[None, :]   # (1, 1024)

    # conv1 band: rows K = dy*32 + s (s = padded input column, width 32),
    # columns = (x_out, cout) with the even/odd-x permutation above.
    w1t = w1.transpose(2, 3, 1, 0)[:, :, 0, :]               # (dy, dx, 32)
    band1 = np.zeros((5, 32, 28, 32), np.float32)            # (dy, s, xo, cout)
    for dy in range(5):
        for dx in range(5):
            for xo in range(28):
                band1[dy, xo + dx, xo, :] = w1t[dy, dx]
    w1b = split_even_odd_pad(band1.reshape(160, 28, 32))     # (160, 1024)
    b1t = tile_bias(b1, 14)

    # conv2: one (448, 1024) band per vertical tap t; rows = xp*32 + cin over
    # the pooled conv1 column layout; out-of-range horizontal taps are simply
    # omitted (equivalent to zero padding), so no padded staging buffer.
    w2t = w2.transpose(2, 3, 1, 0)                           # (dy, dx, 32, 64)
    band2 = np.zeros((5, 14, 32, 14, 64), np.float32)        # (t, xp, c, xo, co)
    for t in range(5):
        for dx in range(5):
            for xo in range(14):
                xp = xo + dx - 2
                if 0 <= xp < 14:
                    band2[t, xp, :, xo, :] = w2t[t, dx]
    w2b = np.stack([split_even_odd_pad(band2[t].reshape(448, 14, 64))
                    for t in range(5)], axis=0)              # (5, 448, 1024)
    b2t = tile_bias(b2, 7)

    # Linear: fold the torch (C,H,W) flatten order into a (7, 448, 128) weight
    # so the FC is 7 accumulated (chunk,448)@(448,128) matmuls; pad 10 -> 128.
    wl4 = wl.reshape(10, 64, 7, 7).transpose(2, 3, 1, 0)     # (hp, wp, c, o)
    wlk = np.zeros((7, 448, 128), np.float32)
    wlk[:, :, :10] = wl4.reshape(7, 448, 10)
    blk = np.zeros((1, 128), np.float32)
    blk[0, :10] = bl

    return {
        "w1b": jnp.asarray(w1b, jnp.bfloat16),
        "b1t": jnp.asarray(b1t, jnp.float32),
        "w2b": jnp.asarray(w2b, jnp.bfloat16),
        "b2t": jnp.asarray(b2t, jnp.float32),
        "wl":  jnp.asarray(wlk, jnp.bfloat16),
        "bl":  jnp.asarray(blk, jnp.float32),
    }


# ---------------------------------------------------------------------------
# Fused forward kernel: conv1+pool -> conv2+pool -> linear (+ReLU)
# ---------------------------------------------------------------------------
def mnist_fused_kernel(x1_ref, w1_ref, b1_ref, w2_ref, b2_ref, wl_ref, bl_ref,
                       o_ref):
    chunk = o_ref.shape[1]
    m14 = 14 * chunk

    # ---- conv1: ONE batched banded MXU matmul over the whole chunk ------
    y1 = jnp.dot(x1_ref[0], w1_ref[...], preferred_element_type=jnp.float32)
    y1 = jnp.maximum(y1 + b1_ref[...], 0.0)                  # (28*chunk, 1024)
    # 2x2 max-pool: W via the [even|pad|odd|pad] column layout (aligned lane
    # slices), H via the (parity, row, image) row ordering (contiguous halves).
    y1 = jnp.maximum(y1[:, 0:448], y1[:, 512:960])           # (28*chunk, 448)
    y1p = jnp.maximum(y1[:m14, :], y1[m14:, :]).astype(jnp.bfloat16)  # (14*chunk, 448)

    # ---- conv2: 5 accumulated matmuls, one per vertical tap --------------
    # Rows are h-major (h*chunk + image), so a vertical tap shift is a plain
    # row shift with zero fill -- no per-image boundary masking needed.
    zeros2 = jnp.zeros((2 * chunk, 448), jnp.bfloat16)

    def vshift(dt):
        if dt == 0:
            return y1p
        k = dt * chunk
        if dt > 0:
            return jnp.concatenate([y1p[k:, :], zeros2[:k, :]], axis=0)
        return jnp.concatenate([zeros2[:-k, :], y1p[:k, :]], axis=0)

    y2 = b2_ref[...]                                         # (1,1024) broadcasts
    for t in range(5):
        y2 = y2 + jnp.dot(vshift(t - 2), w2_ref[t],
                          preferred_element_type=jnp.float32)
    y2 = jnp.maximum(y2, 0.0)                                # (14*chunk, 1024)
    y2 = jnp.maximum(y2[:, 0:448], y2[:, 512:960])           # W-pool (14*chunk, 448)

    # ---- H-pool + Linear: 7 accumulated (chunk,448)@(448,128) matmuls ----
    out = bl_ref[...]                                        # (1,128) broadcasts
    for hp in range(7):
        top = y2[(2 * hp) * chunk:(2 * hp + 1) * chunk, :]
        bot = y2[(2 * hp + 1) * chunk:(2 * hp + 2) * chunk, :]
        plane = jnp.maximum(top, bot).astype(jnp.bfloat16)   # (chunk, 448)
        out = out + jnp.dot(plane, wl_ref[hp],
                            preferred_element_type=jnp.float32)
    o_ref[0] = jnp.maximum(out, 0.0)                         # (chunk, 128)


def net_forward(x_nchw, kp):
    """x_nchw: (B, 1, 28, 28) float32 (PyTorch layout) -> (B, 10) float32."""
    B = x_nchw.shape[0]
    assert x_nchw.shape[1:] == (1, 28, 28)

    # conv1 matmul M = 28*chunk, conv2 M = 14*chunk; keep >=2 grid steps for
    # small batches (v7x megacore), cap chunk so intermediates stay modest.
    chunk = max(1, min(16, B // 2))
    g = -(-B // chunk)
    bp = g * chunk

    x = x_nchw.reshape(B, 28, 28).astype(jnp.float32)
    if bp != B:
        x = jnp.pad(x, ((0, bp - B), (0, 0), (0, 0)))

    # conv1 im2col in XLA (K = dy*32 + padded column), cast to bf16, and
    # reorder rows per block to (pool-parity, out-row, image) so the kernel's
    # H-pool and conv2 vertical shifts are contiguous row slices.
    xpad = jnp.pad(x, ((0, 0), (2, 2), (2, 2)))                          # (bp,32,32)
    x1 = jnp.concatenate([xpad[:, dy:dy + 28, :] for dy in range(5)], axis=-1)
    x1 = x1.reshape(g, chunk, 14, 2, 160)
    x1 = jnp.transpose(x1, (0, 3, 2, 1, 4)).reshape(g, chunk * 28, 160)
    x1 = x1.astype(jnp.bfloat16)

    out = pl.pallas_call(
        mnist_fused_kernel,
        out_shape=jax.ShapeDtypeStruct((g, chunk, 128), jnp.float32),
        grid=(g,),
        in_specs=[
            pl.BlockSpec((1, chunk * 28, 160), lambda j: (j, 0, 0)),
            pl.BlockSpec((160, 1024), lambda j: (0, 0)),
            pl.BlockSpec((1, 1024), lambda j: (0, 0)),
            pl.BlockSpec((5, 448, 1024), lambda j: (0, 0, 0)),
            pl.BlockSpec((1, 1024), lambda j: (0, 0)),
            pl.BlockSpec((7, 448, 128), lambda j: (0, 0, 0)),
            pl.BlockSpec((1, 128), lambda j: (0, 0)),
        ],
        out_specs=pl.BlockSpec((1, chunk, 128), lambda j: (j, 0, 0)),
        compiler_params=pltpu.CompilerParams(
            dimension_semantics=("parallel",),
            vmem_limit_bytes=32 * 1024 * 1024),
    )(x1, kp["w1b"], kp["b1t"], kp["w2b"], kp["b2t"], kp["wl"], kp["bl"])

    return out.reshape(bp, 128)[:B, :10]


# ---------------------------------------------------------------------------
# Pure-JAX reference (f32) for a correctness check
# ---------------------------------------------------------------------------
def reference_forward(x, w1, b1, w2, b2, wl, bl):
    dn = ("NCHW", "OIHW", "NCHW")
    y = jax.lax.conv_general_dilated(x, w1, (1, 1), [(2, 2), (2, 2)],
                                     dimension_numbers=dn)
    y = jnp.maximum(y + b1[None, :, None, None], 0.0)
    y = jax.lax.reduce_window(y, -jnp.inf, jax.lax.max,
                              (1, 1, 2, 2), (1, 1, 2, 2), "VALID")
    y = jax.lax.conv_general_dilated(y, w2, (1, 1), [(2, 2), (2, 2)],
                                     dimension_numbers=dn)
    y = jnp.maximum(y + b2[None, :, None, None], 0.0)
    y = jax.lax.reduce_window(y, -jnp.inf, jax.lax.max,
                              (1, 1, 2, 2), (1, 1, 2, 2), "VALID")
    y = y.reshape(y.shape[0], -1)
    return jnp.maximum(y @ wl.T + bl[None, :], 0.0)


if __name__ == "__main__":
    key = jax.random.PRNGKey(0)
    ks = jax.random.split(key, 7)

    def uinit(k, shape, fan_in):
        bound = 1.0 / math.sqrt(fan_in)
        return jax.random.uniform(k, shape, jnp.float32, -bound, bound)

    # Parameters in PyTorch shapes (as nn.Conv2d / nn.Linear default init).
    w1 = uinit(ks[0], (32, 1, 5, 5), 1 * 25)
    b1 = uinit(ks[1], (32,), 1 * 25)
    w2 = uinit(ks[2], (64, 32, 5, 5), 32 * 25)
    b2 = uinit(ks[3], (64,), 32 * 25)
    wl = uinit(ks[4], (10, 7 * 7 * 64), 7 * 7 * 64)
    bl = uinit(ks[5], (10,), 7 * 7 * 64)

    kp = prepare_params(w1, b1, w2, b2, wl, bl)

    # MNIST-shaped input (28x28 is required by the 7*7*64 flatten), batch=2.
    x = jax.random.normal(ks[6], (2, 1, 28, 28), jnp.float32)

    out = jax.jit(net_forward)(x, kp)
    out = jax.block_until_ready(out)

    assert out.shape == (2, 10) and out.dtype == jnp.float32
    assert bool(jnp.all(out >= 0.0))                    # final ReLU

    ref = reference_forward(x, w1, b1, w2, b2, wl, bl)
    max_err = float(jnp.max(jnp.abs(out - ref)))
    assert max_err < 5e-2, f"mismatch vs reference: max_err={max_err}"

    print("KERNEL_OK")
</pallas_src>

<mosaic_0001>
module attributes {stable_mosaic.version = 11 : i64} {
  func.func @mnist_fused_kernel(%arg0: i32, %arg1: memref<1x28x160xbf16, #tpu.memory_space<vmem>>, %arg2: memref<160x1024xbf16, #tpu.memory_space<vmem>>, %arg3: memref<1x1024xf32, #tpu.memory_space<vmem>>, %arg4: memref<5x448x1024xbf16, #tpu.memory_space<vmem>>, %arg5: memref<1x1024xf32, #tpu.memory_space<vmem>>, %arg6: memref<7x448x128xbf16, #tpu.memory_space<vmem>>, %arg7: memref<1x128xf32, #tpu.memory_space<vmem>>, %arg8: memref<1x1x128xf32, #tpu.memory_space<vmem>>) attributes {dimension_semantics = [#tpu.dimension_semantics<parallel>], iteration_bounds = array<i64: 2>, scalar_prefetch = 0 : i64, scratch_operands = 0 : i64, tpu.core_type = #tpu.core_type<tc>, window_params = [{transform_indices = @transform_0, window_bounds = array<i64: 1, 28, 160>}, {pipeline_mode = #tpu.pipeline_mode<synchronous>, transform_indices = @transform_1, window_bounds = array<i64: 160, 1024>}, {pipeline_mode = #tpu.pipeline_mode<synchronous>, transform_indices = @transform_2, window_bounds = array<i64: 1, 1024>}, {pipeline_mode = #tpu.pipeline_mode<synchronous>, transform_indices = @transform_3, window_bounds = array<i64: 5, 448, 1024>}, {pipeline_mode = #tpu.pipeline_mode<synchronous>, transform_indices = @transform_4, window_bounds = array<i64: 1, 1024>}, {pipeline_mode = #tpu.pipeline_mode<synchronous>, transform_indices = @transform_5, window_bounds = array<i64: 7, 448, 128>}, {pipeline_mode = #tpu.pipeline_mode<synchronous>, transform_indices = @transform_6, window_bounds = array<i64: 1, 128>}, {transform_indices = @transform_7, window_bounds = array<i64: 1, 1, 128>}]} {
    %c0 = arith.constant 0 : index
    %c0_0 = arith.constant 0 : index
    %c0_1 = arith.constant 0 : index
    %0 = vector.load %arg1[%c0, %c0_0, %c0_1] : memref<1x28x160xbf16, #tpu.memory_space<vmem>>, vector<1x28x160xbf16>
    %1 = vector.shape_cast %0 : vector<1x28x160xbf16> to vector<28x160xbf16>
    %c0_2 = arith.constant 0 : index
    %c0_3 = arith.constant 0 : index
    %2 = vector.load %arg2[%c0_2, %c0_3] : memref<160x1024xbf16, #tpu.memory_space<vmem>>, vector<160x1024xbf16>
    %cst = arith.constant dense<0.000000e+00> : vector<28x1024xf32>
    %3 = tpu.matmul %1, %2, %cst {dimension_numbers = #tpu.dot_dimension_numbers<[1], [0], [0], [1], [0, 0, 1, 1], [], []>} : vector<28x160xbf16>, vector<160x1024xbf16>, vector<28x1024xf32> -> vector<28x1024xf32>
    %c0_4 = arith.constant 0 : index
    %c0_5 = arith.constant 0 : index
    %4 = vector.load %arg3[%c0_4, %c0_5] : memref<1x1024xf32, #tpu.memory_space<vmem>>, vector<1x1024xf32>
    %5 = vector.broadcast %4 : vector<1x1024xf32> to vector<28x1024xf32>
    %6 = arith.addf %3, %5 : vector<28x1024xf32>
    %cst_6 = arith.constant 0.000000e+00 : f32
    %7 = vector.broadcast %cst_6 : f32 to vector<28x1024xf32>
    %8 = arith.maximumf %6, %7 : vector<28x1024xf32>
    %9 = vector.extract_strided_slice %8 {offsets = [0, 0], sizes = [28, 448], strides = [1, 1]} : vector<28x1024xf32> to vector<28x448xf32>
    %10 = vector.extract_strided_slice %8 {offsets = [0, 512], sizes = [28, 448], strides = [1, 1]} : vector<28x1024xf32> to vector<28x448xf32>
    %11 = arith.maximumf %9, %10 : vector<28x448xf32>
    %12 = vector.extract_strided_slice %11 {offsets = [0, 0], sizes = [14, 448], strides = [1, 1]} : vector<28x448xf32> to vector<14x448xf32>
    %13 = vector.extract_strided_slice %11 {offsets = [14, 0], sizes = [14, 448], strides = [1, 1]} : vector<28x448xf32> to vector<14x448xf32>
    %14 = arith.maximumf %12, %13 : vector<14x448xf32>
    %15 = arith.truncf %14 : vector<14x448xf32> to vector<14x448xbf16>
    %cst_7 = arith.constant 0.000000e+00 : bf16
    %16 = vector.broadcast %cst_7 : bf16 to vector<2x448xbf16>
    %c0_8 = arith.constant 0 : index
    %c0_9 = arith.constant 0 : index
    %17 = vector.load %arg5[%c0_8, %c0_9] : memref<1x1024xf32, #tpu.memory_space<vmem>>, vector<1x1024xf32>
    %18 = vector.extract_strided_slice %15 {offsets = [0, 0], sizes = [12, 448], strides = [1, 1]} : vector<14x448xbf16> to vector<12x448xbf16>
    %19 = tpu.concatenate %16, %18 in 0 : vector<2x448xbf16>, vector<12x448xbf16> -> vector<14x448xbf16>
    %c0_10 = arith.constant 0 : index
    %c0_11 = arith.constant 0 : index
    %c0_12 = arith.constant 0 : index
    %20 = vector.load %arg4[%c0_10, %c0_11, %c0_12] : memref<5x448x1024xbf16, #tpu.memory_space<vmem>>, vector<1x448x1024xbf16>
    %21 = vector.shape_cast %20 : vector<1x448x1024xbf16> to vector<448x1024xbf16>
    %cst_13 = arith.constant dense<0.000000e+00> : vector<14x1024xf32>
    %22 = tpu.matmul %19, %21, %cst_13 {dimension_numbers = #tpu.dot_dimension_numbers<[1], [0], [0], [1], [0, 0, 1, 1], [], []>} : vector<14x448xbf16>, vector<448x1024xbf16>, vector<14x1024xf32> -> vector<14x1024xf32>
    %23 = vector.broadcast %17 : vector<1x1024xf32> to vector<14x1024xf32>
    %24 = arith.addf %23, %22 : vector<14x1024xf32>
    %25 = vector.extract_strided_slice %16 {offsets = [0, 0], sizes = [1, 448], strides = [1, 1]} : vector<2x448xbf16> to vector<1x448xbf16>
    %26 = vector.extract_strided_slice %15 {offsets = [0, 0], sizes = [13, 448], strides = [1, 1]} : vector<14x448xbf16> to vector<13x448xbf16>
    %27 = tpu.concatenate %25, %26 in 0 : vector<1x448xbf16>, vector<13x448xbf16> -> vector<14x448xbf16>
    %c1 = arith.constant 1 : index
    %c0_14 = arith.constant 0 : index
    %c0_15 = arith.constant 0 : index
    %28 = vector.load %arg4[%c1, %c0_14, %c0_15] : memref<5x448x1024xbf16, #tpu.memory_space<vmem>>, vector<1x448x1024xbf16>
    %29 = vector.shape_cast %28 : vector<1x448x1024xbf16> to vector<448x1024xbf16>
    %cst_16 = arith.constant dense<0.000000e+00> : vector<14x1024xf32>
    %30 = tpu.matmul %27, %29, %cst_16 {dimension_numbers = #tpu.dot_dimension_numbers<[1], [0], [0], [1], [0, 0, 1, 1], [], []>} : vector<14x448xbf16>, vector<448x1024xbf16>, vector<14x1024xf32> -> vector<14x1024xf32>
    %31 = arith.addf %24, %30 : vector<14x1024xf32>
    %c2 = arith.constant 2 : index
    %c0_17 = arith.constant 0 : index
    %c0_18 = arith.constant 0 : index
    %32 = vector.load %arg4[%c2, %c0_17, %c0_18] : memref<5x448x1024xbf16, #tpu.memory_space<vmem>>, vector<1x448x1024xbf16>
    %33 = vector.shape_cast %32 : vector<1x448x1024xbf16> to vector<448x1024xbf16>
    %cst_19 = arith.constant dense<0.000000e+00> : vector<14x1024xf32>
    %34 = tpu.matmul %15, %33, %cst_19 {dimension_numbers = #tpu.dot_dimension_numbers<[1], [0], [0], [1], [0, 0, 1, 1], [], []>} : vector<14x448xbf16>, vector<448x1024xbf16>, vector<14x1024xf32> -> vector<14x1024xf32>
    %35 = arith.addf %31, %34 : vector<14x1024xf32>
    %36 = vector.extract_strided_slice %15 {offsets = [1, 0], sizes = [13, 448], strides = [1, 1]} : vector<14x448xbf16> to vector<13x448xbf16>
    %37 = vector.extract_strided_slice %16 {offsets = [0, 0], sizes = [1, 448], strides = [1, 1]} : vector<2x448xbf16> to vector<1x448xbf16>
    %38 = tpu.concatenate %36, %37 in 0 : vector<13x448xbf16>, vector<1x448xbf16> -> vector<14x448xbf16>
    %c3 = arith.constant 3 : index
    %c0_20 = arith.constant 0 : index
    %c0_21 = arith.constant 0 : index
    %39 = vector.load %arg4[%c3, %c0_20, %c0_21] : memref<5x448x1024xbf16, #tpu.memory_space<vmem>>, vector<1x448x1024xbf16>
    %40 = vector.shape_cast %39 : vector<1x448x1024xbf16> to vector<448x1024xbf16>
    %cst_22 = arith.constant dense<0.000000e+00> : vector<14x1024xf32>
    %41 = tpu.matmul %38, %40, %cst_22 {dimension_numbers = #tpu.dot_dimension_numbers<[1], [0], [0], [1], [0, 0, 1, 1], [], []>} : vector<14x448xbf16>, vector<448x1024xbf16>, vector<14x1024xf32> -> vector<14x1024xf32>
    %42 = arith.addf %35, %41 : vector<14x1024xf32>
    %43 = vector.extract_strided_slice %15 {offsets = [2, 0], sizes = [12, 448], strides = [1, 1]} : vector<14x448xbf16> to vector<12x448xbf16>
    %44 = tpu.concatenate %43, %16 in 0 : vector<12x448xbf16>, vector<2x448xbf16> -> vector<14x448xbf16>
    %c4 = arith.constant 4 : index
    %c0_23 = arith.constant 0 : index
    %c0_24 = arith.constant 0 : index
    %45 = vector.load %arg4[%c4, %c0_23, %c0_24] : memref<5x448x1024xbf16, #tpu.memory_space<vmem>>, vector<1x448x1024xbf16>
    %46 = vector.shape_cast %45 : vector<1x448x1024xbf16> to vector<448x1024xbf16>
    %cst_25 = arith.constant dense<0.000000e+00> : vector<14x1024xf32>
    %47 = tpu.matmul %44, %46, %cst_25 {dimension_numbers = #tpu.dot_dimension_numbers<[1], [0], [0], [1], [0, 0, 1, 1], [], []>} : vector<14x448xbf16>, vector<448x1024xbf16>, vector<14x1024xf32> -> vector<14x1024xf32>
    %48 = arith.addf %42, %47 : vector<14x1024xf32>
    %cst_26 = arith.constant 0.000000e+00 : f32
    %49 = vector.broadcast %cst_26 : f32 to vector<14x1024xf32>
    %50 = arith.maximumf %48, %49 : vector<14x1024xf32>
    %51 = vector.extract_strided_slice %50 {offsets = [0, 0], sizes = [14, 448], strides = [1, 1]} : vector<14x1024xf32> to vector<14x448xf32>
    %52 = vector.extract_strided_slice %50 {offsets = [0, 512], sizes = [14, 448], strides = [1, 1]} : vector<14x1024xf32> to vector<14x448xf32>
    %53 = arith.maximumf %51, %52 : vector<14x448xf32>
    %c0_27 = arith.constant 0 : index
    %c0_28 = arith.constant 0 : index
    %54 = vector.load %arg7[%c0_27, %c0_28] : memref<1x128xf32, #tpu.memory_space<vmem>>, vector<1x128xf32>
    %55 = vector.extract_strided_slice %53 {offsets = [0, 0], sizes = [1, 448], strides = [1, 1]} : vector<14x448xf32> to vector<1x448xf32>
    %56 = vector.extract_strided_slice %53 {offsets = [1, 0], sizes = [1, 448], strides = [1, 1]} : vector<14x448xf32> to vector<1x448xf32>
    %57 = arith.maximumf %55, %56 : vector<1x448xf32>
    %58 = arith.truncf %57 : vector<1x448xf32> to vector<1x448xbf16>
    %c0_29 = arith.constant 0 : index
    %c0_30 = arith.constant 0 : index
    %c0_31 = arith.constant 0 : index
    %59 = vector.load %arg6[%c0_29, %c0_30, %c0_31] : memref<7x448x128xbf16, #tpu.memory_space<vmem>>, vector<1x448x128xbf16>
    %60 = vector.shape_cast %59 : vector<1x448x128xbf16> to vector<448x128xbf16>
    %cst_32 = arith.constant dense<0.000000e+00> : vector<1x128xf32>
    %61 = tpu.matmul %58, %60, %cst_32 {dimension_numbers = #tpu.dot_dimension_numbers<[1], [0], [0], [1], [0, 0, 1, 1], [], []>} : vector<1x448xbf16>, vector<448x128xbf16>, vector<1x128xf32> -> vector<1x128xf32>
    %62 = arith.addf %54, %61 : vector<1x128xf32>
    %63 = vector.extract_strided_slice %53 {offsets = [2, 0], sizes = [1, 448], strides = [1, 1]} : vector<14x448xf32> to vector<1x448xf32>
    %64 = vector.extract_strided_slice %53 {offsets = [3, 0], sizes = [1, 448], strides = [1, 1]} : vector<14x448xf32> to vector<1x448xf32>
    %65 = arith.maximumf %63, %64 : vector<1x448xf32>
    %66 = arith.truncf %65 : vector<1x448xf32> to vector<1x448xbf16>
    %c1_33 = arith.constant 1 : index
    %c0_34 = arith.constant 0 : index
    %c0_35 = arith.constant 0 : index
    %67 = vector.load %arg6[%c1_33, %c0_34, %c0_35] : memref<7x448x128xbf16, #tpu.memory_space<vmem>>, vector<1x448x128xbf16>
    %68 = vector.shape_cast %67 : vector<1x448x128xbf16> to vector<448x128xbf16>
    %cst_36 = arith.constant dense<0.000000e+00> : vector<1x128xf32>
    %69 = tpu.matmul %66, %68, %cst_36 {dimension_numbers = #tpu.dot_dimension_numbers<[1], [0], [0], [1], [0, 0, 1, 1], [], []>} : vector<1x448xbf16>, vector<448x128xbf16>, vector<1x128xf32> -> vector<1x128xf32>
    %70 = arith.addf %62, %69 : vector<1x128xf32>
    %71 = vector.extract_strided_slice %53 {offsets = [4, 0], sizes = [1, 448], strides = [1, 1]} : vector<14x448xf32> to vector<1x448xf32>
    %72 = vector.extract_strided_slice %53 {offsets = [5, 0], sizes = [1, 448], strides = [1, 1]} : vector<14x448xf32> to vector<1x448xf32>
    %73 = arith.maximumf %71, %72 : vector<1x448xf32>
    %74 = arith.truncf %73 : vector<1x448xf32> to vector<1x448xbf16>
    %c2_37 = arith.constant 2 : index
    %c0_38 = arith.constant 0 : index
    %c0_39 = arith.constant 0 : index
    %75 = vector.load %arg6[%c2_37, %c0_38, %c0_39] : memref<7x448x128xbf16, #tpu.memory_space<vmem>>, vector<1x448x128xbf16>
    %76 = vector.shape_cast %75 : vector<1x448x128xbf16> to vector<448x128xbf16>
    %cst_40 = arith.constant dense<0.000000e+00> : vector<1x128xf32>
    %77 = tpu.matmul %74, %76, %cst_40 {dimension_numbers = #tpu.dot_dimension_numbers<[1], [0], [0], [1], [0, 0, 1, 1], [], []>} : vector<1x448xbf16>, vector<448x128xbf16>, vector<1x128xf32> -> vector<1x128xf32>
    %78 = arith.addf %70, %77 : vector<1x128xf32>
    %79 = vector.extract_strided_slice %53 {offsets = [6, 0], sizes = [1, 448], strides = [1, 1]} : vector<14x448xf32> to vector<1x448xf32>
    %80 = vector.extract_strided_slice %53 {offsets = [7, 0], sizes = [1, 448], strides = [1, 1]} : vector<14x448xf32> to vector<1x448xf32>
    %81 = arith.maximumf %79, %80 : vector<1x448xf32>
    %82 = arith.truncf %81 : vector<1x448xf32> to vector<1x448xbf16>
    %c3_41 = arith.constant 3 : index
    %c0_42 = arith.constant 0 : index
    %c0_43 = arith.constant 0 : index
    %83 = vector.load %arg6[%c3_41, %c0_42, %c0_43] : memref<7x448x128xbf16, #tpu.memory_space<vmem>>, vector<1x448x128xbf16>
    %84 = vector.shape_cast %83 : vector<1x448x128xbf16> to vector<448x128xbf16>
    %cst_44 = arith.constant dense<0.000000e+00> : vector<1x128xf32>
    %85 = tpu.matmul %82, %84, %cst_44 {dimension_numbers = #tpu.dot_dimension_numbers<[1], [0], [0], [1], [0, 0, 1, 1], [], []>} : vector<1x448xbf16>, vector<448x128xbf16>, vector<1x128xf32> -> vector<1x128xf32>
    %86 = arith.addf %78, %85 : vector<1x128xf32>
    %87 = vector.extract_strided_slice %53 {offsets = [8, 0], sizes = [1, 448], strides = [1, 1]} : vector<14x448xf32> to vector<1x448xf32>
    %88 = vector.extract_strided_slice %53 {offsets = [9, 0], sizes = [1, 448], strides = [1, 1]} : vector<14x448xf32> to vector<1x448xf32>
    %89 = arith.maximumf %87, %88 : vector<1x448xf32>
    %90 = arith.truncf %89 : vector<1x448xf32> to vector<1x448xbf16>
    %c4_45 = arith.constant 4 : index
    %c0_46 = arith.constant 0 : index
    %c0_47 = arith.constant 0 : index
    %91 = vector.load %arg6[%c4_45, %c0_46, %c0_47] : memref<7x448x128xbf16, #tpu.memory_space<vmem>>, vector<1x448x128xbf16>
    %92 = vector.shape_cast %91 : vector<1x448x128xbf16> to vector<448x128xbf16>
    %cst_48 = arith.constant dense<0.000000e+00> : vector<1x128xf32>
    %93 = tpu.matmul %90, %92, %cst_48 {dimension_numbers = #tpu.dot_dimension_numbers<[1], [0], [0], [1], [0, 0, 1, 1], [], []>} : vector<1x448xbf16>, vector<448x128xbf16>, vector<1x128xf32> -> vector<1x128xf32>
    %94 = arith.addf %86, %93 : vector<1x128xf32>
    %95 = vector.extract_strided_slice %53 {offsets = [10, 0], sizes = [1, 448], strides = [1, 1]} : vector<14x448xf32> to vector<1x448xf32>
    %96 = vector.extract_strided_slice %53 {offsets = [11, 0], sizes = [1, 448], strides = [1, 1]} : vector<14x448xf32> to vector<1x448xf32>
    %97 = arith.maximumf %95, %96 : vector<1x448xf32>
    %98 = arith.truncf %97 : vector<1x448xf32> to vector<1x448xbf16>
    %c5 = arith.constant 5 : index
    %c0_49 = arith.constant 0 : index
    %c0_50 = arith.constant 0 : index
    %99 = vector.load %arg6[%c5, %c0_49, %c0_50] : memref<7x448x128xbf16, #tpu.memory_space<vmem>>, vector<1x448x128xbf16>
    %100 = vector.shape_cast %99 : vector<1x448x128xbf16> to vector<448x128xbf16>
    %cst_51 = arith.constant dense<0.000000e+00> : vector<1x128xf32>
    %101 = tpu.matmul %98, %100, %cst_51 {dimension_numbers = #tpu.dot_dimension_numbers<[1], [0], [0], [1], [0, 0, 1, 1], [], []>} : vector<1x448xbf16>, vector<448x128xbf16>, vector<1x128xf32> -> vector<1x128xf32>
    %102 = arith.addf %94, %101 : vector<1x128xf32>
    %103 = vector.extract_strided_slice %53 {offsets = [12, 0], sizes = [1, 448], strides = [1, 1]} : vector<14x448xf32> to vector<1x448xf32>
    %104 = vector.extract_strided_slice %53 {offsets = [13, 0], sizes = [1, 448], strides = [1, 1]} : vector<14x448xf32> to vector<1x448xf32>
    %105 = arith.maximumf %103, %104 : vector<1x448xf32>
    %106 = arith.truncf %105 : vector<1x448xf32> to vector<1x448xbf16>
    %c6 = arith.constant 6 : index
    %c0_52 = arith.constant 0 : index
    %c0_53 = arith.constant 0 : index
    %107 = vector.load %arg6[%c6, %c0_52, %c0_53] : memref<7x448x128xbf16, #tpu.memory_space<vmem>>, vector<1x448x128xbf16>
    %108 = vector.shape_cast %107 : vector<1x448x128xbf16> to vector<448x128xbf16>
    %cst_54 = arith.constant dense<0.000000e+00> : vector<1x128xf32>
    %109 = tpu.matmul %106, %108, %cst_54 {dimension_numbers = #tpu.dot_dimension_numbers<[1], [0], [0], [1], [0, 0, 1, 1], [], []>} : vector<1x448xbf16>, vector<448x128xbf16>, vector<1x128xf32> -> vector<1x128xf32>
    %110 = arith.addf %102, %109 : vector<1x128xf32>
    %cst_55 = arith.constant 0.000000e+00 : f32
    %111 = vector.broadcast %cst_55 : f32 to vector<1x128xf32>
    %112 = arith.maximumf %110, %111 : vector<1x128xf32>
    %c0_56 = arith.constant 0 : index
    %c0_57 = arith.constant 0 : index
    %c0_58 = arith.constant 0 : index
    %113 = vector.load %arg8[%c0_56, %c0_57, %c0_58] : memref<1x1x128xf32, #tpu.memory_space<vmem>>, vector<1x1x128xf32>
    %114 = vector.shape_cast %113 : vector<1x1x128xf32> to vector<1x128xf32>
    %115 = vector.shape_cast %112 : vector<1x128xf32> to vector<1x1x128xf32>
    tpu.vector_store %arg8[%c0_56, %c0_57, %c0_58], %115 {strides = array<i32>} : memref<1x1x128xf32, #tpu.memory_space<vmem>>, vector<1x1x128xf32>,
    return
  }
  func.func @transform_0(%arg0: i32) -> (i32, i32, i32) {
    %c0_i32 = arith.constant 0 : i32
    %c0_i32_0 = arith.constant 0 : i32
    %c0_i32_1 = arith.constant 0 : i32
    return %arg0, %c0_i32, %c0_i32_0 : i32, i32, i32
  }
  func.func @transform_1(%arg0: i32) -> (i32, i32) {
    %c0_i32 = arith.constant 0 : i32
    %c0_i32_0 = arith.constant 0 : i32
    %c0_i32_1 = arith.constant 0 : i32
    return %c0_i32, %c0_i32_0 : i32, i32
  }
  func.func @transform_2(%arg0: i32) -> (i32, i32) {
    %c0_i32 = arith.constant 0 : i32
    %c0_i32_0 = arith.constant 0 : i32
    %c0_i32_1 = arith.constant 0 : i32
    return %c0_i32, %c0_i32_0 : i32, i32
  }
  func.func @transform_3(%arg0: i32) -> (i32, i32, i32) {
    %c0_i32 = arith.constant 0 : i32
    %c0_i32_0 = arith.constant 0 : i32
    %c0_i32_1 = arith.constant 0 : i32
    %c0_i32_2 = arith.constant 0 : i32
    return %c0_i32, %c0_i32_0, %c0_i32_1 : i32, i32, i32
  }
  func.func @transform_4(%arg0: i32) -> (i32, i32) {
    %c0_i32 = arith.constant 0 : i32
    %c0_i32_0 = arith.constant 0 : i32
    %c0_i32_1 = arith.constant 0 : i32
    return %c0_i32, %c0_i32_0 : i32, i32
  }
  func.func @transform_5(%arg0: i32) -> (i32, i32, i32) {
    %c0_i32 = arith.constant 0 : i32
    %c0_i32_0 = arith.constant 0 : i32
    %c0_i32_1 = arith.constant 0 : i32
    %c0_i32_2 = arith.constant 0 : i32
    return %c0_i32, %c0_i32_0, %c0_i32_1 : i32, i32, i32
  }
  func.func @transform_6(%arg0: i32) -> (i32, i32) {
    %c0_i32 = arith.constant 0 : i32
    %c0_i32_0 = arith.constant 0 : i32
    %c0_i32_1 = arith.constant 0 : i32
    return %c0_i32, %c0_i32_0 : i32, i32
  }
  func.func @transform_7(%arg0: i32) -> (i32, i32, i32) {
    %c0_i32 = arith.constant 0 : i32
    %c0_i32_0 = arith.constant 0 : i32
    %c0_i32_1 = arith.constant 0 : i32
    return %arg0, %c0_i32, %c0_i32_0 : i32, i32, i32
  }
}

</mosaic_0001>

<bundles_post_ra>
// kernel: net_forward.1
= control target key start
LH: loop header
LB: loop body
LE: loop exit
PB: predicated region body
PF: predicated region fallthrough
CT: control target
= control target key end

     0   :  { %s21763_s0 = inlined_call_operand.vmem [shape: bf16[2,28,160], index: 0, kind: input, shape index: {}]   ;;  %s21764_s1 = inlined_call_operand.hbm [shape: bf16[160,1024], index: 1, kind: input, shape index: {}]   ;;  %s21765_s2 = inlined_call_operand.hbm [shape: f32[1,1024], index: 2, kind: input, shape index: {}]   ;;  %s21766_s3 = inlined_call_operand.hbm [shape: bf16[5,448,1024], index: 3, kind: input, shape index: {}]   ;;  %s21767_s4 = inlined_call_operand.hbm [shape: f32[1,1024], index: 4, kind: input, shape index: {}]   ;;  %s21768_s5 = inlined_call_operand.hbm [shape: bf16[7,448,128], index: 5, kind: input, shape index: {}]   ;;  %s21769_s6 = inlined_call_operand.hbm [shape: f32[1,128], index: 6, kind: input, shape index: {}]   ;;  %s21770_s7 = inlined_call_operand.hbm [shape: f32[2,1,128], index: 7, kind: output, shape index: {}]  }
   0x1   :  { %21781 = sst [smem:[#allocation123_spill]] %s21764_s1 }
   0x2   :  { %21782 = sst [smem:[#allocation124_spill]] %s21765_s2 }
   0x3   :  { %21783 = sst [smem:[#allocation125_spill]] %s21767_s4 }
   0x4   :  { %12 = vsyncpa [#allocation3], 0 }
   0x5   :  { %13 = vsyncpa [#allocation6], 0 }
   0x6   :  { %14 = vsyncpa [#allocation9], 0 }
   0x7   :  { %15 = vsyncpa [#allocation12], 0 }
   0x8   :  { %16 = vsyncpa [#allocation4], 0 }
   0x9   :  { %18 = vsyncpa [#allocation4 + $0x1], 0  ;;  %s20263_s24 = smov 0   ;;  %s20265_s25 = smov 0  }
   0xa   :  { %s20267_s26 = smov 0   ;;  %s20269_s27 = smov 0  }
   0xb LB: > { %s20284_s28 = sadd.s32 4294967295, %s20211_s27   ;;  %s12692_s29 = sadd.s32 4294967294, %s20211_s27   ;;  %s20211_s27 = sphi %s20269_s27, %s22016_s27   ;;  %s20207_s26 = sphi %s20267_s26, %s22015_s26   ;;  %s20203_s25 = sphi %s20265_s25, %s22014_s25   ;;  %s20199_s24 = sphi %s20263_s24, %s22013_s24  }
   0xc   : > { %s20288_s30 = sadd.s32 1, %s20211_s27   ;;  %s183_s8 = sadd.s32 1, %s20207_s26 }
   0xd   : > { %s180_s9 = ssub.s32 %s20211_s27, %s20288_s30  ;;  %p193_p0 = scmp.ne.s32.totalorder %s20207_s26, %s20203_s25 }
   0xe   : > { %p181_p1 = scmp.eq.s32.totalorder %s180_s9, 0  ;;  %p194_p2 = scmp.eq.s32.totalorder %s20284_s28, 1 }
   0xf   : > { %p199_p3 = scmp.ne.s32.totalorder %s20203_s25, %s20199_s24  ;;  %p200_p4 = scmp.eq.s32.totalorder %s12692_s29, 1 }
  0x10   : > { %s20299_s10 = scalar_select %p181_p1, %s20207_s26, %s183_s8  }
  0x11   : > { %p20301_p5 = por %p194_p2, %p193_p0  ;;  %p20305_p6 = por %p200_p4, %p199_p3 }
  0x12   : > { %p12693_p7 = scmp.ge.s32.totalorder %s20211_s27, 1  ;;  %p207_p8 = scmp.lt.s32.totalorder %s20211_s27, 3 }
  0x13   : > { %p19897_p9 = scmp.eq.s32.totalorder %s20284_s28, 0  ;;  %s21787_s2 = sld [smem:[#allocation124_spill]] }
  0x14   : > { %p20312_p10 = pnand %p12693_p7, %p207_p8  ;;  %s20213_s17 = smov [#allocation5]  }
  0x15   : > { %s235_s18 = sshll.u32 %s20213_s17, 4  ;;  %s21788_s4 = sld [smem:[#allocation125_spill]]  ;;  %s236_s18 = int_to_ptr.vmem [resolvable:$true] %s235_s18 }
  0x16   : > { %p19874_p11 = pneg %p20312_p10  ;;  %s21790_s1 = sld [smem:[#allocation123_spill]] }
  0x17   : > { %s20214_s9 = smov [#allocation8]   ;;  %s20215_s15 = smov [#allocation2]  }
  0x18   : > { %p20326_p12 = pnand %p19897_p9, %p19874_p11  ;;  %s261_s14 = sshll.u32 %s20214_s9, 4  ;;  %s262_s14 = int_to_ptr.vmem [resolvable:$true] %s261_s14 }
  0x19   : > { %s233_s16 = sshll.u32 %s21787_s2, 4  ;;  %s220_s17 = sshll.u32 %s20215_s15, 4  ;;  %s234_s16 = int_to_ptr.hbm [resolvable:$true] %s233_s16  ;;  %s221_s17 = int_to_ptr.vmem [resolvable:$true] %s220_s17 }
  0x1a   : > { %19880 = dma.hbm_to_vmem [thread:$0]  (!%p20326_p12), %s234_s16, 128, %s236_s18, [#allocation6]  }
  0x1b   : > { %s259_s21 = sshll.u32 %s21788_s4, 4  ;;  %s244_s2 = sshll.u32 %s21766_s3, 4  ;;  %s260_s21 = int_to_ptr.hbm [resolvable:$true] %s259_s21  ;;  %s245_s2 = int_to_ptr.hbm [resolvable:$true] %s244_s2 }
  0x1c   : > { %s218_s8 = sshll.u32 %s21790_s1, 4  ;;  %s20216_s4 = smov 512   ;;  %s219_s8 = int_to_ptr.hbm [resolvable:$true] %s218_s8 }
  0x1d   : > { %19886 = dma.hbm_to_vmem [thread:$0]  (!%p20326_p12), %s260_s21, 128, %s262_s14, [#allocation9]  }
  0x1e   : > { %s20217_s23 = smov 32   ;;  %s20218_s29 = smov [#allocation7]  }
  0x1f   : > { %19877 = dma.hbm_to_vmem [thread:$0]  (!%p20326_p12), %s219_s8, 10240, %s221_s17, [#allocation3], %s20216_s4, %s20216_s4, %s20217_s23  }
  0x20   : > { %s246_s16 = sshll.u32 %s20218_s29, 4  ;;  %s270_s21 = sshll.u32 %s21768_s5, 4  ;;  %s247_s16 = int_to_ptr.vmem [resolvable:$true] %s246_s16  ;;  %s271_s21 = int_to_ptr.hbm [resolvable:$true] %s270_s21 }
  0x21   : > { %19883 = dma.hbm_to_vmem [thread:$0]  (!%p20326_p12), %s245_s2, 143360, %s247_s16, [#allocation6], %s20216_s4, %s20216_s4, %s20217_s23  }
  0x22   : > { %s20219_s14 = smov [#allocation10]   ;;  %s285_s1 = sshll.u32 %s21769_s6, 4  ;;  %s286_s1 = int_to_ptr.hbm [resolvable:$true] %s285_s1 }
  0x23   : > { %s272_s15 = sshll.u32 %s20219_s14, 4  ;;  %s20220_s8 = smov 64   ;;  %s273_s15 = int_to_ptr.vmem [resolvable:$true] %s272_s15 }
  0x24   : > { %s20221_s17 = smov 4   ;;  %s20222_s29 = smov [#allocation11]  }
  0x25   : > { %19889 = dma.hbm_to_vmem [thread:$0]  (!%p20326_p12), %s271_s21, 25088, %s273_s15, [#allocation9], %s20220_s8, %s20220_s8, %s20221_s17  }
  0x26   : > { %s287_s18 = sshll.u32 %s20222_s29, 4  ;;  %308 = sbr.rel (%p20312_p10) target bundleno = 1850 (0x73a), region = 48  ;;  %s288_s18 = int_to_ptr.vmem [resolvable:$true] %s287_s18 }
  0x27   : > { %19892 = dma.hbm_to_vmem [thread:$0]  (!%p20326_p12), %s286_s1, 16, %s288_s18, [#allocation12]  }
  0x2b   : > { %20178 = dma.done.wait (%p19897_p9), [#allocation3], 10240  }
  0x2c   : > { %20180 = vsyncadd (%p19897_p9), [#allocation3], 4294957056 }
  0x2d   : > { %20182 = dma.done.wait (%p19897_p9), [#allocation6], 143488  }
  0x2e   : > { %20184 = vsyncadd (%p19897_p9), [#allocation6], 4294823808 }
  0x2f   : > { %20186 = dma.done.wait (%p19897_p9), [#allocation9], 25216  }
  0x30   : > { %20188 = vsyncadd (%p19897_p9), [#allocation9], 4294942080 }
  0x31   : > { %20190 = dma.done.wait (%p19897_p9), [#allocation12], 16  }
  0x32   : > { %20192 = vsyncadd (%p19897_p9), [#allocation12], 4294967280  ;;  %p365_p13 = scmp.lt.s32.totalorder %s20284_s28, 1  ;;  %v12952_v0 = vld [vmem:[#allocation2 + $0x1c0] sm:$0xf]  ;;  %vm891_vm0 = vcmask 261120   ;;  %s12573_s21 = scalar_lea.hbm %s21770_s7, %s20284_s28 }
  0x33   : > { %v18512_v1 = vld [vmem:[#allocation2 + $0x1dc] sm:$0xf0]  ;;  %v18508_v2 = vld [vmem:[#allocation2 + $0x1c4] sm:$0xf]  ;;  %v12960_v35 = vld [vmem:[#allocation2 + $0x1c8] sm:$0xf] }
  0x34   : > { %s366_s1 = scalar_select %p365_p13, %s20284_s28, 1  ;;  %v12953_v3 = vor.u32 %v18512_v1, %v12952_v0  ;;  %v12954_v4 = vld [vmem:[#allocation2 + $0x1e0] sm:$0xf0]  ;;  %v12920_v9 = vld [vmem:[#allocation2 + $0x180] sm:$0xf]  ;;  %vm1262_vm1 = vcmask 1041408  }
  0x35   : > { %v18524_v5 = vld [vmem:[#allocation2 + $0x244] sm:$0xf]  ;;  %v12957_v7 = vor.u32 %v18508_v2, %v12954_v4  ;;  %v18504_v10 = vld [vmem:[#allocation2 + $0x19c] sm:$0xf0]  ;;  %v18513_v38 = vld [vmem:[#allocation2 + $0x1e4] sm:$0xf0] }
  0x36   : > { %s18447_s2 = sshll.u32 %s366_s1, 5  ;;  %v13018_v6 = vld [vmem:[#allocation2 + $0x260] sm:$0xf0]  ;;  %v13016_v11 = vld [vmem:[#allocation2 + $0x240] sm:$0xf]  ;;  %898 = vmatpush.bf16.msra.mxu0 %v12953_v3  ;;  %v12921_v12 = vor.u32 %v18504_v10, %v12920_v9  ;;  %v12961_v39 = vor.u32 %v18513_v38, %v12960_v35  ;;  %vm1324_vm2 = vcmask 1040384  }
  0x37   : > { %s20377_s22 = scalar_lea.vmem %s21763_s0, %s18447_s2  ;;  %v13021_v8 = vor.u32 %v18524_v5, %v13018_v6  ;;  %v18528_v13 = vld [vmem:[#allocation2 + $0x25c] sm:$0xf0]  ;;  %v18500_v14 = vld [vmem:[#allocation2 + $0x184] sm:$0xf]  ;;  %936 = vmatpush.bf16.msra.mxu2 %v12957_v7  ;;  %v12928_v40 = vld [vmem:[#allocation2 + $0x188] sm:$0xf] }
  0x38   : > { %v12922_v15 = vld [vmem:[#allocation2 + $0x1a0] sm:$0xf0]  ;;  %v13017_v16 = vor.u32 %v18528_v13, %v13016_v11  ;;  %v12714_v22 = vld [vmem:[%s20377_s22 + $0x8] sm:$0xf0]  ;;  %v12888_v23 = vld [vmem:[#allocation2 + $0x140] sm:$0xf] }
  0x39   : > { %961 = vmatpush.bf16.msra.mxu3 %v13021_v8  ;;  %v12925_v17 = vor.u32 %v18500_v14, %v12922_v15  ;;  %v18516_v18 = vld [vmem:[#allocation2 + $0x204] sm:$0xf]  ;;  %v18496_v24 = vld [vmem:[#allocation2 + $0x15c] sm:$0xf0]  ;;  %v18505_v42 = vld [vmem:[#allocation2 + $0x1a4] sm:$0xf0] }
  0x3a   : > { %v12986_v19 = vld [vmem:[#allocation2 + $0x220] sm:$0xf0]  ;;  %923 = vmatpush.bf16.msra.mxu1 %v13017_v16  ;;  %v12984_v25 = vld [vmem:[#allocation2 + $0x200] sm:$0xf]  ;;  %899 = vmatpush.bf16.msra.mxu0 %v12921_v12  ;;  %v12889_v29 = vor.u32 %v18496_v24, %v12888_v23  ;;  %v12929_v47 = vor.u32 %v18505_v42, %v12928_v40  ;;  %v12896_v49 = vld [vmem:[#allocation2 + $0x148] sm:$0xf] }
  0x3b   : > { %v18448_v20 = vld [vmem:[%s20377_s22 + $0x4] sm:$0xf]  ;;  %v12989_v21 = vor.u32 %v18516_v18, %v12986_v19  ;;  %v18520_v26 = vld [vmem:[#allocation2 + $0x21c] sm:$0xf0]  ;;  %937 = vmatpush.bf16.msra.mxu2 %v12925_v17  ;;  %v18497_v50 = vld [vmem:[#allocation2 + $0x164] sm:$0xf0] }
  0x3c   : > { %v18492_v27 = vld [vmem:[#allocation2 + $0x144] sm:$0xf]  ;;  %v20381_v28 = vor.u32 %v18448_v20, %v12714_v22  ;;  %v12985_v30 = vor.u32 %v18520_v26, %v12984_v25  ;;  %v12856_v33 = vld [vmem:[#allocation2 + $0x100] sm:$0xf]  ;;  %v12897_v56 = vor.u32 %v18497_v50, %v12896_v49  ;;  %v12864_v58 = vld [vmem:[#allocation2 + $0x108] sm:$0xf] }
  0x3d   : > { %v12890_v31 = vld [vmem:[#allocation2 + $0x160] sm:$0xf0]  ;;  %962 = vmatpush.bf16.msra.mxu3 %v12989_v21  ;;  %v18488_v34 = vld [vmem:[#allocation2 + $0x11c] sm:$0xf0]  ;;  %v18489_v59 = vld [vmem:[#allocation2 + $0x124] sm:$0xf0] }
  0x3e   : > { %v12893_v32 = vor.u32 %v18492_v27, %v12890_v31  ;;  %v18484_v36 = vld [vmem:[#allocation2 + $0x104] sm:$0xf]  ;;  %924 = vmatpush.bf16.msra.mxu1 %v12985_v30  ;;  %900 = vmatpush.bf16.msra.mxu0 %v12889_v29  ;;  %v12857_v41 = vor.u32 %v18488_v34, %v12856_v33  ;;  %v12824_v44 = vld [vmem:[#allocation2 + $0xc0] sm:$0xf]  ;;  %v18450_v60 = vld [vmem:[%s20377_s22 + $0x14] sm:$0xf]  ;;  %v12865_v6 = vor.u32 %v18489_v59, %v12864_v58 }
  0x3f   : > { %v12858_v37 = vld [vmem:[#allocation2 + $0x120] sm:$0xf0]  ;;  %v18480_v45 = vld [vmem:[#allocation2 + $0xdc] sm:$0xf0]  ;;  %v12722_v61 = vld [vmem:[%s20377_s22 + $0x18] sm:$0x30] }
  0x40   : > { %13048 = vmatmul.msk.bf16.vlgmr.msra.gmra.mxu3 %vm891_vm0, %v20381_v28  ;;  %938 = vmatpush.bf16.msra.mxu2 %v12893_v32  ;;  %v12861_v43 = vor.u32 %v18484_v36, %v12858_v37  ;;  %v18476_v46 = vld [vmem:[#allocation2 + $0xc4] sm:$0xf]  ;;  %v12825_v51 = vor.u32 %v18480_v45, %v12824_v44  ;;  %v12792_v53 = vld [vmem:[#allocation2 + $0x80] sm:$0xf]  ;;  %v13024_v1 = vld [vmem:[#allocation2 + $0x248] sm:$0xf]  ;;  %v20389_v13 = vor.u32 %v18450_v60, %v12722_v61 }
  0x41   : > { %13046 = vmatmul.msk.bf16.vlgmr.msra.gmra.mxu1 %vm891_vm0, %v20381_v28  ;;  %v12826_v48 = vld [vmem:[#allocation2 + $0xe0] sm:$0xf0]  ;;  %v18472_v54 = vld [vmem:[#allocation2 + $0x9c] sm:$0xf0]  ;;  %v18529_v2 = vld [vmem:[#allocation2 + $0x264] sm:$0xf0] }
  0x42   : > { %974 = vmatpush.bf16.msrb.mxu1 %v12961_v39  ;;  %901 = vmatpush.bf16.msra.mxu0 %v12857_v41  ;;  %v12829_v52 = vor.u32 %v18476_v46, %v12826_v48  ;;  %v18468_v55 = vld [vmem:[#allocation2 + $0x84] sm:$0xf]  ;;  %v12760_v62 = vld [vmem:[#allocation2 + $0x40] sm:$0xf]  ;;  %v12793_v63 = vor.u32 %v18472_v54, %v12792_v53  ;;  %v12832_v7 = vld [vmem:[#allocation2 + $0xc8] sm:$0xf]  ;;  %v13025_v8 = vor.u32 %v18529_v2, %v13024_v1 }
  0x43   : > { %v12794_v57 = vld [vmem:[#allocation2 + $0xa0] sm:$0xf0]  ;;  %v18464_v0 = vld [vmem:[#allocation2 + $0x5c] sm:$0xf0]  ;;  %v18481_v9 = vld [vmem:[#allocation2 + $0xe4] sm:$0xf0] }
  0x44   : > { %939 = vmatpush.bf16.msra.mxu2 %v12861_v43  ;;  %v12797_v3 = vor.u32 %v18468_v55, %v12794_v57  ;;  %v18460_v4 = vld [vmem:[#allocation2 + $0x44] sm:$0xf]  ;;  %v12992_v10 = vld [vmem:[#allocation2 + $0x208] sm:$0xf]  ;;  %999 = vmatpush.bf16.msrb.mxu3 %v13025_v8  ;;  %v12761_v14 = vor.u32 %v18464_v0, %v12760_v62  ;;  %v12728_v16 = vld [vmem:[#allocation2] sm:$0xf]  ;;  %v12833_v19 = vor.u32 %v18481_v9, %v12832_v7 }
  0x45   : > { %v12762_v5 = vld [vmem:[#allocation2 + $0x60] sm:$0xf0]  ;;  %v18521_v11 = vld [vmem:[#allocation2 + $0x224] sm:$0xf0]  ;;  %v18456_v17 = vld [vmem:[#allocation2 + $0x1c] sm:$0xf0] }
  0x46   : > { %975 = vmatpush.bf16.msrb.mxu1 %v12929_v47  ;;  %902 = vmatpush.bf16.msra.mxu0 %v12825_v51  ;;  %v12993_v12 = vor.u32 %v18521_v11, %v12992_v10  ;;  %v12765_v15 = vor.u32 %v18460_v4, %v12762_v5  ;;  %v18452_v18 = vld [vmem:[#allocation2 + $0x4] sm:$0xf]  ;;  %v12800_v21 = vld [vmem:[#allocation2 + $0x88] sm:$0xf]  ;;  %v18509_v23 = vld [vmem:[#allocation2 + $0x1cc] sm:$0xf]  ;;  %v12729_v25 = vor.u32 %v18456_v17, %v12728_v16 }
  0x47   : > { %v12730_v20 = vld [vmem:[#allocation2 + $0x20] sm:$0xf0]  ;;  %v18473_v22 = vld [vmem:[#allocation2 + $0xa4] sm:$0xf0]  ;;  %v12962_v24 = vld [vmem:[#allocation2 + $0x1e8] sm:$0xf0] }
  0x48   : > { %940 = vmatpush.bf16.msra.mxu2 %v12829_v52  ;;  %1000 = vmatpush.bf16.msrb.mxu3 %v12993_v12  ;;  %v12712_v26 = vld [vmem:[%s20377_s22] sm:$0xf]  ;;  %v18449_v27 = vld [vmem:[%s20377_s22 + $0x4] sm:$0xf0]  ;;  %v12733_v29 = vor.u32 %v18452_v18, %v12730_v20  ;;  %v12801_v30 = vor.u32 %v18473_v22, %v12800_v21  ;;  %v12965_v32 = vor.u32 %v18509_v23, %v12962_v24  ;;  %v18525_v34 = vld [vmem:[#allocation2 + $0x24c] sm:$0xf] }
  0x49   : > { %v12768_v31 = vld [vmem:[#allocation2 + $0x48] sm:$0xf]  ;;  %v13026_v35 = vld [vmem:[#allocation2 + $0x268] sm:$0xf0]  ;;  %v20397_v36 = vor.u32 %v18449_v27, %v12712_v26  ;;  %v13032_v49 = vld [vmem:[#allocation2 + $0x250] sm:$0xf] }
  0x4a   : > { %976 = vmatpush.bf16.msrb.mxu1 %v12897_v56  ;;  %903 = vmatpush.bf16.msra.mxu0 %v12793_v63  ;;  %v18465_v33 = vld [vmem:[#allocation2 + $0x64] sm:$0xf0]  ;;  %v18501_v37 = vld [vmem:[#allocation2 + $0x18c] sm:$0xf]  ;;  %v13029_v39 = vor.u32 %v18525_v34, %v13026_v35  ;;  %v12968_v50 = vld [vmem:[#allocation2 + $0x1d0] sm:$0xf] }
  0x4b   : > { %v12930_v38 = vld [vmem:[#allocation2 + $0x1a8] sm:$0xf0]  ;;  %v12769_v42 = vor.u32 %v18465_v33, %v12768_v31  ;;  %v12736_v43 = vld [vmem:[#allocation2 + $0x8] sm:$0xf]  ;;  %v18514_v51 = vld [vmem:[#allocation2 + $0x1ec] sm:$0xf0] }
  0x4c   : > { %941 = vmatpush.bf16.msra.mxu2 %v12797_v3  ;;  %v18517_v40 = vld [vmem:[#allocation2 + $0x20c] sm:$0xf]  ;;  %v18457_v44 = vld [vmem:[#allocation2 + $0x24] sm:$0xf0]  ;;  %v12933_v45 = vor.u32 %v18501_v37, %v12930_v38  ;;  %v18530_v52 = vld [vmem:[#allocation2 + $0x26c] sm:$0xf0]  ;;  %v12969_v58 = vor.u32 %v18514_v51, %v12968_v50 }
  0x4d   : > { %v12994_v41 = vld [vmem:[#allocation2 + $0x228] sm:$0xf0]  ;;  %v13033_v53 = vor.u32 %v18530_v52, %v13032_v49  ;;  %v13000_v54 = vld [vmem:[#allocation2 + $0x210] sm:$0xf]  ;;  %v12737_v55 = vor.u32 %v18457_v44, %v12736_v43  ;;  %v18451_v5 = vld [vmem:[%s20377_s22 + $0x14] sm:$0x30] }
  0x4e   : > { %977 = vmatpush.bf16.msrb.mxu1 %v12865_v6  ;;  %904 = vmatpush.bf16.msra.mxu0 %v12761_v14  ;;  %v18493_v46 = vld [vmem:[#allocation2 + $0x14c] sm:$0xf]  ;;  %v12997_v48 = vor.u32 %v18517_v40, %v12994_v41  ;;  %v18522_v56 = vld [vmem:[#allocation2 + $0x22c] sm:$0xf0]  ;;  %v13034_v35 = vld [vmem:[#allocation2 + $0x270] sm:$0xf0] }
  0x4f   : > { %v12898_v47 = vld [vmem:[#allocation2 + $0x168] sm:$0xf0]  ;;  %1075 = vmatpush.bf16.msra.mxu3 %v13033_v53  ;;  %v13001_v61 = vor.u32 %v18522_v56, %v13000_v54  ;;  %v12936_v62 = vld [vmem:[#allocation2 + $0x190] sm:$0xf]  ;;  %v18502_v40 = vld [vmem:[#allocation2 + $0x194] sm:$0xf] }
  0x50   : > { %13049 = vmatmul.msk.bf16.gmra.mxu3 %vm891_vm0, %v20389_v13  ;;  %942 = vmatpush.bf16.msra.mxu2 %v12765_v15  ;;  %v12901_v57 = vor.u32 %v18493_v46, %v12898_v47  ;;  %v18485_v59 = vld [vmem:[#allocation2 + $0x10c] sm:$0xf]  ;;  %v18506_v63 = vld [vmem:[#allocation2 + $0x1ac] sm:$0xf0]  ;;  %v12938_v41 = vld [vmem:[#allocation2 + $0x1b0] sm:$0xf0] }
  0x51   : > { %13047 = vmatmul.msk.bf16.gmra.mxu1 %vm891_vm0, %v20389_v13  ;;  %v12866_v60 = vld [vmem:[#allocation2 + $0x128] sm:$0xf0]  ;;  %v12720_v1 = vld [vmem:[%s20377_s22 + $0x10] sm:$0xf]  ;;  %v12937_v4 = vor.u32 %v18506_v63, %v12936_v62  ;;  %v13002_v44 = vld [vmem:[#allocation2 + $0x230] sm:$0xf0] }
  0x52   : > { %978 = vmatpush.bf16.msrb.mxu1 %v12833_v19  ;;  %905 = vmatpush.bf16.msra.mxu0 %v12729_v25  ;;  %v12869_v0 = vor.u32 %v18485_v59, %v12866_v60  ;;  %v18477_v2 = vld [vmem:[#allocation2 + $0xcc] sm:$0xf]  ;;  %v12904_v6 = vld [vmem:[#allocation2 + $0x150] sm:$0xf]  ;;  %v20406_v9 = vor.u32 %v18451_v5, %v12720_v1  ;;  %v12906_v49 = vld [vmem:[#allocation2 + $0x170] sm:$0xf0] }
  0x53   : > { %v12834_v3 = vld [vmem:[#allocation2 + $0xe8] sm:$0xf0]  ;;  %1076 = vmatpush.bf16.msra.mxu3 %v13001_v61  ;;  %v18498_v7 = vld [vmem:[#allocation2 + $0x16c] sm:$0xf0]  ;;  %v12976_v50 = vld [vmem:[#allocation2 + $0x1d8] sm:$0xf] }
  0x54   : > { %943 = vmatpush.bf16.msra.mxu2 %v12733_v29  ;;  %v12837_v8 = vor.u32 %v18477_v2, %v12834_v3  ;;  %v18469_v10 = vld [vmem:[#allocation2 + $0x8c] sm:$0xf]  ;;  %v12905_v12 = vor.u32 %v18498_v7, %v12904_v6  ;;  %v12872_v14 = vld [vmem:[#allocation2 + $0x110] sm:$0xf]  ;;  %v18510_v29 = vld [vmem:[#allocation2 + $0x1d4] sm:$0xf] }
  0x55   : > { %906 = vmatmul.bf16.vlgmr.msra.gmra.mxu0 %v20397_v36  ;;  %v12802_v11 = vld [vmem:[#allocation2 + $0xa8] sm:$0xf0]  ;;  %v18490_v15 = vld [vmem:[#allocation2 + $0x12c] sm:$0xf0]  ;;  %v18515_v51 = vld [vmem:[#allocation2 + $0x1f4] sm:$0xf0] }
  0x56   : > { %979 = vmatpush.bf16.msrb.mxu1 %v12801_v30  ;;  %1012 = vmatpush.bf16.msrb.mxu0 %v12965_v32  ;;  %v12805_v16 = vor.u32 %v18469_v10, %v12802_v11  ;;  %v18461_v17 = vld [vmem:[#allocation2 + $0x4c] sm:$0xf]  ;;  %v12873_v19 = vor.u32 %v18490_v15, %v12872_v14  ;;  %v12840_v20 = vld [vmem:[#allocation2 + $0xd0] sm:$0xf]  ;;  %v12970_v30 = vld [vmem:[#allocation2 + $0x1f0] sm:$0xf0] }
  0x57   : > { %944 = vmatmul.bf16.vlgmr.msra.gmra.mxu2 %v20397_v36  ;;  %v12770_v18 = vld [vmem:[#allocation2 + $0x68] sm:$0xf0]  ;;  %v18482_v21 = vld [vmem:[#allocation2 + $0xec] sm:$0xf0]  ;;  %v18526_v32 = vld [vmem:[#allocation2 + $0x254] sm:$0xf]  ;;  %v12973_v34 = vor.u32 %v18510_v29, %v12970_v30 }
  0x58   : > { %1037 = vmatpush.bf16.msrb.mxu2 %v13029_v39  ;;  %v12773_v22 = vor.u32 %v18461_v17, %v12770_v18  ;;  %v18453_v23 = vld [vmem:[#allocation2 + $0xc] sm:$0xf]  ;;  %v12841_v25 = vor.u32 %v18482_v21, %v12840_v20  ;;  %v12808_v26 = vld [vmem:[#allocation2 + $0x90] sm:$0xf]  ;;  %v13037_v39 = vor.u32 %v18526_v32, %v13034_v35  ;;  %v13040_v53 = vld [vmem:[#allocation2 + $0x258] sm:$0xf] }
  0x59   : > { %v12738_v24 = vld [vmem:[#allocation2 + $0x28] sm:$0xf0]  ;;  %v18474_v27 = vld [vmem:[#allocation2 + $0xac] sm:$0xf0]  ;;  %v13008_v59 = vld [vmem:[#allocation2 + $0x218] sm:$0xf] }
  0x5a   : > { %980 = vmatpush.bf16.msrb.mxu1 %v12769_v42  ;;  %1013 = vmatpush.bf16.msrb.mxu0 %v12933_v45  ;;  %v12741_v31 = vor.u32 %v18453_v23, %v12738_v24  ;;  %v12809_v33 = vor.u32 %v18474_v27, %v12808_v26  ;;  %v12776_v37 = vld [vmem:[#allocation2 + $0x50] sm:$0xf]  ;;  %v18518_v42 = vld [vmem:[#allocation2 + $0x214] sm:$0xf]  ;;  %v12941_v45 = vor.u32 %v18502_v40, %v12938_v41  ;;  %v18523_v62 = vld [vmem:[#allocation2 + $0x234] sm:$0xf0] }
  0x5b   : > { %v18466_v38 = vld [vmem:[#allocation2 + $0x6c] sm:$0xf0]  ;;  %v13005_v52 = vor.u32 %v18518_v42, %v13002_v44  ;;  %v18486_v60 = vld [vmem:[#allocation2 + $0x114] sm:$0xf]  ;;  %v12944_v63 = vld [vmem:[#allocation2 + $0x198] sm:$0xf]  ;;  %v13009_v1 = vor.u32 %v18523_v62, %v13008_v59 }
  0x5c   : > { %1038 = vmatpush.bf16.msrb.mxu2 %v12997_v48  ;;  %v12777_v43 = vor.u32 %v18466_v38, %v12776_v37  ;;  %v12744_v46 = vld [vmem:[#allocation2 + $0x10] sm:$0xf]  ;;  %v18494_v48 = vld [vmem:[#allocation2 + $0x154] sm:$0xf]  ;;  %v12912_v6 = vld [vmem:[#allocation2 + $0x158] sm:$0xf] }
  0x5d   : > { %v18458_v47 = vld [vmem:[#allocation2 + $0x2c] sm:$0xf0]  ;;  %v12909_v56 = vor.u32 %v18494_v48, %v12906_v49  ;;  %v12874_v61 = vld [vmem:[#allocation2 + $0x130] sm:$0xf0]  ;;  %v18499_v7 = vld [vmem:[#allocation2 + $0x174] sm:$0xf0] }
  0x5e   : > { %981 = vmatpush.bf16.msrb.mxu1 %v12737_v55  ;;  %1014 = vmatpush.bf16.msrb.mxu0 %v12901_v57  ;;  %v12745_v54 = vor.u32 %v18458_v47, %v12744_v46  ;;  %v18531_v55 = vld [vmem:[#allocation2 + $0x274] sm:$0xf0]  ;;  %v12977_v57 = vor.u32 %v18515_v51, %v12976_v50  ;;  %v12877_v2 = vor.u32 %v18486_v60, %v12874_v61  ;;  %v18478_v3 = vld [vmem:[#allocation2 + $0xd4] sm:$0xf]  ;;  %v18511_v29 = vld [vmem:[#allocation2 + $0x1dc] sm:$0xf] }
  0x5f   : > { %v18470_v10 = vld [vmem:[#allocation2 + $0x94] sm:$0xf]  ;;  %v12880_v14 = vld [vmem:[#allocation2 + $0x118] sm:$0xf]  ;;  %v12978_v30 = vld [vmem:[#allocation2 + $0x1f8] sm:$0xf0] }
  0x60   : > { %13050 = vmatmul.msk.bf16.vlgmr.msrb.gmra.mxu3 %vm891_vm0, %v20381_v28  ;;  %1113 = vmatpush.bf16.msra.mxu2 %v13037_v39  ;;  %v12810_v11 = vld [vmem:[#allocation2 + $0xb0] sm:$0xf0]  ;;  %v18491_v15 = vld [vmem:[#allocation2 + $0x134] sm:$0xf0]  ;;  %v18503_v37 = vld [vmem:[#allocation2 + $0x19c] sm:$0xf] }
  0x61   : > { %982 = vmatmul.bf16.vlgmr.msrb.gmra.mxu1 %v20397_v36  ;;  %v18462_v17 = vld [vmem:[#allocation2 + $0x54] sm:$0xf]  ;;  %v12848_v20 = vld [vmem:[#allocation2 + $0xd8] sm:$0xf]  ;;  %v12946_v38 = vld [vmem:[#allocation2 + $0x1b8] sm:$0xf0] }
  0x62   : > { %1050 = vmatpush.bf16.msra.mxu1 %v12969_v58  ;;  %1015 = vmatpush.bf16.msrb.mxu0 %v12869_v0  ;;  %v13041_v58 = vor.u32 %v18531_v55, %v13040_v53  ;;  %v18507_v0 = vld [vmem:[#allocation2 + $0x1b4] sm:$0xf0]  ;;  %v12778_v18 = vld [vmem:[#allocation2 + $0x70] sm:$0xf0]  ;;  %v18527_v39 = vld [vmem:[#allocation2 + $0x25c] sm:$0xf] }
  0x63   : > { %v12945_v5 = vor.u32 %v18507_v0, %v12944_v63  ;;  %v18483_v21 = vld [vmem:[#allocation2 + $0xf4] sm:$0xf0]  ;;  %v18454_v23 = vld [vmem:[#allocation2 + $0x14] sm:$0xf]  ;;  %v13042_v40 = vld [vmem:[#allocation2 + $0x278] sm:$0xf0] }
  0x64   : > { %1114 = vmatpush.bf16.msra.mxu2 %v13005_v52  ;;  %1151 = vmatpush.bf16.msrb.mxu3 %v13041_v58  ;;  %v12746_v24 = vld [vmem:[#allocation2 + $0x30] sm:$0xf0]  ;;  %v12816_v26 = vld [vmem:[#allocation2 + $0x98] sm:$0xf]  ;;  %v13045_v41 = vor.u32 %v18527_v39, %v13042_v40  ;;  %v18495_v46 = vld [vmem:[#allocation2 + $0x15c] sm:$0xf] }
  0x65   : > { %911 = vmatmul.bf16.gmra.mxu0 %v20406_v9  ;;  %v18475_v27 = vld [vmem:[#allocation2 + $0xb4] sm:$0xf0]  ;;  %v12914_v47 = vld [vmem:[#allocation2 + $0x178] sm:$0xf0]  ;;  %vm20636_vm3 = vmneg %vm1324_vm2  ;;  %vm2681_vm4 = vcmask 523264   ;;  %vm6842_vm7 = vcmask 1046528  }
  0x66   : > { %1051 = vmatpush.bf16.msra.mxu1 %v12937_v4  ;;  %1016 = vmatpush.bf16.msrb.mxu0 %v12837_v8  ;;  %v12842_v4 = vld [vmem:[#allocation2 + $0xf0] sm:$0xf0]  ;;  %v12817_v32 = vor.u32 %v18475_v27, %v12816_v26  ;;  %v18467_v35 = vld [vmem:[#allocation2 + $0x74] sm:$0xf0]  ;;  %v18519_v48 = vld [vmem:[#allocation2 + $0x21c] sm:$0xf]  ;;  %v12917_v52 = vor.u32 %v18495_v46, %v12914_v47 }
  0x67   : > { %949 = vmatmul.bf16.gmra.mxu2 %v20406_v9  ;;  %v12845_v8 = vor.u32 %v18478_v3, %v12842_v4  ;;  %v12752_v44 = vld [vmem:[#allocation2 + $0x18] sm:$0xf]  ;;  %v13010_v49 = vld [vmem:[#allocation2 + $0x238] sm:$0xf0]  ;;  %v18580_v47 = vld [vmem:[#allocation7 + $0x184] sm:$0xf] }
  0x68   : > { %1152 = vmatpush.bf16.msrb.mxu3 %v13009_v1  ;;  %v13013_v50 = vor.u32 %v18519_v48, %v13010_v49  ;;  %v18487_v53 = vld [vmem:[#allocation2 + $0x11c] sm:$0xf]  ;;  %v13258_v48 = vld [vmem:[#allocation7 + $0x1a0] sm:$0xf0]  ;;  %vm3198_vm5 = vsmask.f32 256 }
  0x69   : > { %v18471_v59 = vld [vmem:[#allocation2 + $0x9c] sm:$0xf]  ;;  %vm20818_vm6 = vmand %vm1324_vm2, %vm3198_vm5  ;;  %vm6843_vm8 = vsmask.f32 6400  ;;  %vm8665_vm10 = vcmask 1045504   ;;  %s363_s23 = sand.u32 1, %s20203_s25  }
  0x6a   : > { %1052 = vmatpush.bf16.msra.mxu1 %v12905_v12  ;;  %1017 = vmatpush.bf16.msrb.mxu0 %v12805_v16  ;;  %v12913_v12 = vor.u32 %v18499_v7, %v12912_v6  ;;  %v12813_v16 = vor.u32 %v18470_v10, %v12810_v11  ;;  %v12818_v60 = vld [vmem:[#allocation2 + $0xb8] sm:$0xf0]  ;;  %vm21148_vm9 = vmand %vm6842_vm7, %vm6843_vm8  ;;  %s364_s14 = scalar_lea.vmem [#allocation13], %s363_s23  ;;  %s12577_s19 = sshll.u32 %s12573_s21, 4  ;;  %s12578_s19 = int_to_ptr.hbm [resolvable:$true] %s12577_s19 }
  0x6b   : > { %v12821_v61 = vor.u32 %v18471_v59, %v12818_v60  ;;  %v18463_v62 = vld [vmem:[#allocation2 + $0x5c] sm:$0xf]  ;;  %s12575_s15 = sshll.u32 %s364_s14, 4  ;;  %s12565_s20 = scalar_lea.sflag [#allocation4], %s363_s23  ;;  %s12576_s15 = int_to_ptr.vmem [resolvable:$true] %s12575_s15 }
  0x6c   : > { %v12786_v63 = vld [vmem:[#allocation2 + $0x78] sm:$0xf0]  ;;  %s20147_s8 = sshra.s32 %s12578_s19, 4  ;;  %s20153_s18 = scalar_lea.hbm %s21770_s7, 2  ;;  %s20148_s8 = int_to_ptr.hbm [resolvable:$true] %s20147_s8 }
  0x6d   : > { %v12789_v0 = vor.u32 %v18463_v62, %v12786_v63  ;;  %v18455_v1 = vld [vmem:[#allocation2 + $0x1c] sm:$0xf]  ;;  %v13448_v62 = vld [vmem:[#allocation7 + $0x300] sm:$0xf]  ;;  %s20149_s17 = scalar_lea.hbm %s20148_s8, 1  ;;  %p20154_p3 = scmp.lt.s32.totalorder %s20148_s8, %s21770_s7 }
  0x6e   : > { %1053 = vmatpush.bf16.msra.mxu1 %v12873_v19  ;;  %1018 = vmatpush.bf16.msrb.mxu0 %v12773_v22  ;;  %v12881_v19 = vor.u32 %v18491_v15, %v12880_v14  ;;  %v12781_v22 = vor.u32 %v18462_v17, %v12778_v18  ;;  %v18632_v63 = vld [vmem:[#allocation7 + $0x31c] sm:$0xf0]  ;;  %p20150_p0 = scmp.ne.s32.totalorder %s20148_s8, %s20149_s17  ;;  %p20155_p4 = scmp.lt.s32.totalorder %s20153_s18, %s20149_s17 }
  0x70   : > { %13051 = vmatmul.msk.bf16.gmra.mxu3 %vm891_vm0, %v20389_v13  ;;  %p20151_p1 = pnand %p20150_p0, %p20301_p5  ;;  %p20156_p7 = por %p20155_p4, %p20154_p3 }
  0x71   : > { %987 = vmatmul.bf16.gmra.mxu1 %v20406_v9 }
  0x72   : > { %1054 = vmatpush.bf16.msra.mxu1 %v12841_v25  ;;  %1019 = vmatpush.bf16.msrb.mxu0 %v12741_v31  ;;  %v12849_v25 = vor.u32 %v18483_v21, %v12848_v20  ;;  %v12749_v31 = vor.u32 %v18454_v23, %v12746_v24  ;;  %p20152_p2 = pneg %p20151_p1 }
  0x74   : > { %p20157_p8 = pnand %p20156_p7, %p20152_p2 }
  0x75   : > { %1020 = vmatmul.bf16.vlgmr.msrb.gmra.mxu0 %v20397_v36 }
  0x76   : > { %1055 = vmatpush.bf16.msra.mxu1 %v12809_v33  ;;  %1088 = vmatpush.bf16.msra.mxu0 %v12973_v34  ;;  %v12981_v33 = vor.u32 %v18511_v29, %v12978_v30  ;;  %v12784_v34 = vld [vmem:[#allocation2 + $0x58] sm:$0xf] }
  0x77   : > { %13052 = vmatmul.msk.bf16.vlgmr.msrb.gmra.mxu2 %vm891_vm0, %v20381_v28  ;;  %v12785_v42 = vor.u32 %v18467_v35, %v12784_v34 }
  0x78   : > { %1189 = vmatpush.bf16.msrb.mxu2 %v13045_v41 }
  0x7a   : > { %1056 = vmatpush.bf16.msra.mxu1 %v12777_v43  ;;  %1089 = vmatpush.bf16.msra.mxu0 %v12941_v45  ;;  %v12949_v43 = vor.u32 %v18503_v37, %v12946_v38  ;;  %v18459_v45 = vld [vmem:[#allocation2 + $0x34] sm:$0xf0]  ;;  %v13290_v38 = vld [vmem:[#allocation7 + $0x1e0] sm:$0xf0] }
  0x7b   : > { %v12753_v51 = vor.u32 %v18459_v45, %v12752_v44  ;;  %v18648_v44 = vld [vmem:[#allocation7 + $0x39c] sm:$0xf0] }
  0x7c   : > { %1190 = vmatpush.bf16.msrb.mxu2 %v13013_v50  ;;  %v13261_v50 = vor.u32 %v18580_v47, %v13258_v48 }
  0x7e   : > { %1057 = vmatpush.bf16.msra.mxu1 %v12745_v54  ;;  %1090 = vmatpush.bf16.msra.mxu0 %v12909_v56  ;;  %v12882_v54 = vld [vmem:[#allocation2 + $0x138] sm:$0xf0] }
  0x7f   : > { %v12885_v55 = vor.u32 %v18487_v53, %v12882_v54  ;;  %v18479_v56 = vld [vmem:[#allocation2 + $0xdc] sm:$0xf]  ;;  %v18572_v53 = vld [vmem:[#allocation7 + $0x144] sm:$0xf] }
  0x80   : > { %13054 = vmatmul.msk.bf16.vlgmr.msra.gmra.mxu3 %vm891_vm0, %v20381_v28 }
  0x81   : > { %1058 = vmatmul.bf16.vlgmr.msra.gmra.mxu1 %v20397_v36 }
  0x82   : > { %1126 = vmatpush.bf16.msrb.mxu1 %v12977_v57  ;;  %1091 = vmatpush.bf16.msra.mxu0 %v12877_v2  ;;  %v12850_v57 = vld [vmem:[#allocation2 + $0xf8] sm:$0xf0] }
  0x83   : > { %v12853_v58 = vor.u32 %v18479_v56, %v12850_v57  ;;  %v12754_v2 = vld [vmem:[#allocation2 + $0x38] sm:$0xf0]  ;;  %v13226_v57 = vld [vmem:[#allocation7 + $0x160] sm:$0xf0] }
  0x84   : > { %v12757_v3 = vor.u32 %v18455_v1, %v12754_v2  ;;  %v13449_v1 = vor.u32 %v18632_v63, %v13448_v62  ;;  %v18564_v2 = vld [vmem:[#allocation7 + $0x104] sm:$0xf] }
  0x85   : > { %1025 = vmatmul.bf16.gmra.mxu0 %v20406_v9 }
  0x86   : > { %1127 = vmatpush.bf16.msrb.mxu1 %v12945_v5  ;;  %1092 = vmatpush.bf16.msra.mxu0 %v12845_v8  ;;  %v20447_v8 = vld [vmem:[#allocation5] sm:$0xff] }
  0x87   : > { %13053 = vmatmul.msk.bf16.gmra.mxu2 %vm891_vm0, %v20389_v13  ;;  %v20450_v11 = vperm.slane %v20447_v8, 0  ;;  %v20458_v15 = vperm.slane %v20447_v8, 1  ;;  %v20493_v59 = vperm.slane %v20447_v8, 3 }
  0x8a   : > { %1128 = vmatpush.bf16.msrb.mxu1 %v12913_v12  ;;  %1093 = vmatpush.bf16.msra.mxu0 %v12813_v16 }
  0x8e   : > { %1129 = vmatpush.bf16.msrb.mxu1 %v12881_v19  ;;  %1094 = vmatpush.bf16.msra.mxu0 %v12781_v22  ;;  %v20466_v19 = vperm.slane %v20447_v8, 2 }
  0x90   : > { %13055 = vmatmul.msk.bf16.gmra.mxu3 %vm891_vm0, %v20389_v13 }
  0x91   : > { %1063 = vmatmul.bf16.gmra.mxu1 %v20406_v9 }
  0x92   : > { %1130 = vmatpush.bf16.msrb.mxu1 %v12849_v25  ;;  %1095 = vmatpush.bf16.msra.mxu0 %v12749_v31  ;;  %v13544_v31 = vld [vmem:[#allocation7 + $0x3c0] sm:$0xf] }
  0x95   : > { %1096 = vmatmul.bf16.vlgmr.msra.gmra.mxu0 %v20397_v36 }
  0x96   : > { %1131 = vmatpush.bf16.msrb.mxu1 %v12817_v32  ;;  %1164 = vmatpush.bf16.msrb.mxu0 %v12981_v33  ;;  %v18656_v32 = vld [vmem:[#allocation7 + $0x3dc] sm:$0xf0]  ;;  %v18588_v33 = vld [vmem:[#allocation7 + $0x1c4] sm:$0xf] }
  0x97   : > { %13056 = vmatmul.msk.bf16.vlgmr.msra.gmra.mxu2 %vm891_vm0, %v20381_v28  ;;  %v13545_v37 = vor.u32 %v18656_v32, %v13544_v31  ;;  %v13293_v41 = vor.u32 %v18588_v33, %v13290_v38  ;;  %v18616_v31 = vld [vmem:[#allocation7 + $0x29c] sm:$0xf0] }
  0x99   : > { %2698 = vmatpush.bf16.msra.mxu3 %v13545_v37  ;;  %2740 = vmatpush.bf16.msra.mxu2 %v13293_v41  ;;  %v13130_v37 = vld [vmem:[#allocation7 + $0xa0] sm:$0xf0]  ;;  %v18592_v41 = vld [vmem:[#allocation7 + $0x1dc] sm:$0xf0] }
  0x9a   : > { %1132 = vmatpush.bf16.msrb.mxu1 %v12785_v42  ;;  %1165 = vmatpush.bf16.msrb.mxu0 %v12949_v43  ;;  %v13512_v43 = vld [vmem:[#allocation7 + $0x380] sm:$0xf] }
  0x9b   : > { %v13513_v46 = vor.u32 %v18648_v44, %v13512_v43  ;;  %v13352_v44 = vld [vmem:[#allocation7 + $0x240] sm:$0xf] }
  0x9d   : > { %2699 = vmatpush.bf16.msra.mxu3 %v13513_v46  ;;  %2741 = vmatpush.bf16.msra.mxu2 %v13261_v50  ;;  %v18540_v46 = vld [vmem:[#allocation7 + $0x44] sm:$0xf] }
  0x9e   : > { %1133 = vmatpush.bf16.msrb.mxu1 %v12753_v51  ;;  %1166 = vmatpush.bf16.msrb.mxu0 %v12917_v52  ;;  %v13480_v51 = vld [vmem:[#allocation7 + $0x340] sm:$0xf]  ;;  %v13098_v50 = vld [vmem:[#allocation7 + $0x60] sm:$0xf0] }
  0x9f   : > { %v18640_v52 = vld [vmem:[#allocation7 + $0x35c] sm:$0xf0] }
  0xa0   : > { %13058 = vmatmul.msk.bf16.vlgmr.msrb.gmra.mxu3 %vm891_vm0, %v20381_v28  ;;  %v13481_v56 = vor.u32 %v18640_v52, %v13480_v51  ;;  %v13101_v52 = vor.u32 %v18540_v46, %v13098_v50  ;;  %v18585_v46 = vld [vmem:[#allocation7 + $0x1a4] sm:$0xf0]  ;;  %v13192_v50 = vld [vmem:[#allocation7 + $0x100] sm:$0xf] }
  0xa1   : > { %1134 = vmatmul.bf16.vlgmr.msrb.gmra.mxu1 %v20397_v36 }
  0xa2   : > { %1167 = vmatpush.bf16.msrb.mxu0 %v12885_v55  ;;  %2700 = vmatpush.bf16.msra.mxu3 %v13481_v56  ;;  %v20511_v56 = vperm.slane %v20447_v8, 4 }
  0xa5   : > { %1101 = vmatmul.bf16.gmra.mxu0 %v20406_v9 }
  0xa6   : > { %1168 = vmatpush.bf16.msrb.mxu0 %v12853_v58  ;;  %2701 = vmatpush.bf16.msra.mxu3 %v13449_v1  ;;  %v18532_v1 = vld [vmem:[#allocation7 + $0x4] sm:$0xf] }
  0xa7   : > { %13057 = vmatmul.msk.bf16.gmra.mxu2 %vm891_vm0, %v20389_v13 }
  0xaa   : > { %1169 = vmatpush.bf16.msrb.mxu0 %v12821_v61  ;;  %v13229_v61 = vor.u32 %v18572_v53, %v13226_v57  ;;  %v13256_v53 = vld [vmem:[#allocation7 + $0x180] sm:$0xf] }
  0xac   : > { %2742 = vmatpush.bf16.msra.mxu2 %v13229_v61  ;;  %v18600_v61 = vld [vmem:[#allocation7 + $0x21c] sm:$0xf0] }
  0xae   : > { %1170 = vmatpush.bf16.msrb.mxu0 %v12789_v0 }
  0xb0   : > { %13059 = vmatmul.msk.bf16.gmra.mxu3 %vm891_vm0, %v20389_v13 }
  0xb1   : > { %1139 = vmatmul.bf16.gmra.mxu1 %v20406_v9 }
  0xb2   : > { %1171 = vmatpush.bf16.msrb.mxu0 %v12757_v3  ;;  %v13194_v3 = vld [vmem:[#allocation7 + $0x120] sm:$0xf0] }
  0xb5   : > { %1172 = vmatmul.bf16.vlgmr.msrb.gmra.mxu0 %v20397_v36 }
  0xb7   : > { %13060 = vmatmul.msk.bf16.vlgmr.msrb.gmra.mxu2 %vm891_vm0, %v20381_v28 }
  0xbe   : > { %v926_v4 = vpop.f32.mrf.mxu1 }
  0xc3   : > { %v964_v5 = vpop.f32.mrf.mxu3 }
  0xc5   : > { %1177 = vmatmul.bf16.gmra.mxu0 %v20406_v9 }
  0xc6   : > { %v20441_v6 = vpop.f32.mrf.mxu1 }
  0xc7   : > { %13061 = vmatmul.msk.bf16.gmra.mxu2 %vm891_vm0, %v20389_v13 }
  0xcb   : > { %v20445_v7 = vpop.f32.mrf.mxu3 }
  0xce   : > { %v931_v10 = vpop.f32.mrf.mxu1 }
  0xd2   : > { %v907_v12 = vpop.f32.mrf.mxu0 }
  0xd3   : > { %v969_v36 = vpop.f32.mrf.mxu3  ;;  %v908_v28 = vadd.f32 %v907_v12, %v20450_v11  ;;  %v18556_v12 = vld [vmem:[#allocation7 + $0xc4] sm:$0xf] }
  0xd5   : > { %v20453_v14 = vadd.f32 %v926_v4, %v908_v28 }
  0xd6   : > { %v20455_v9 = vpop.f32.mrf.mxu1 }
  0xda   : > { %v945_v13 = vpop.f32.mrf.mxu2  ;;  %v20463_v18 = vpop.f32.mrf.mxu0 }
  0xdb   : > { %v20460_v16 = vpop.f32.mrf.mxu3  ;;  %v946_v17 = vadd.f32 %v945_v13, %v20458_v15 }
  0xdd   : > { %v20468_v20 = vadd.f32 %v964_v5, %v946_v17  ;;  %v13197_v5 = vor.u32 %v18564_v2, %v13194_v3  ;;  %v13066_v2 = vld [vmem:[#allocation7 + $0x20] sm:$0xf0] }
  0xde   : > { %v983_v21 = vpop.f32.mrf.mxu1  ;;  %v18652_v3 = vld [vmem:[#allocation7 + $0x3c4] sm:$0xf] }
  0xdf   : > { %v984_v22 = vadd.f32 %v983_v21, %v20466_v19  ;;  %2743 = vmatpush.bf16.msra.mxu2 %v13197_v5  ;;  %v13162_v21 = vld [vmem:[#allocation7 + $0xe0] sm:$0xf0]  ;;  %v13069_v5 = vor.u32 %v18532_v1, %v13066_v2  ;;  %v18577_v2 = vld [vmem:[#allocation7 + $0x164] sm:$0xf0] }
  0xe2   : > { %v20471_v23 = vpop.f32.mrf.mxu2  ;;  %v912_v26 = vpop.f32.mrf.mxu0 }
  0xe3   : > { %v1002_v24 = vpop.f32.mrf.mxu3  ;;  %v913_v27 = vadd.f32 %v912_v26, %v20450_v11  ;;  %v13165_v26 = vor.u32 %v18556_v12, %v13162_v21  ;;  %v18593_v12 = vld [vmem:[#allocation7 + $0x1e4] sm:$0xf0]  ;;  %v13224_v21 = vld [vmem:[#allocation7 + $0x140] sm:$0xf] }
  0xe4   : > { %v20473_v25 = vadd.f32 %v1002_v24, %v984_v22 }
  0xe5   : > { %v20476_v29 = vadd.f32 %v931_v10, %v913_v27  ;;  %v13416_v10 = vld [vmem:[#allocation7 + $0x2c0] sm:$0xf]  ;;  %2744 = vmatpush.bf16.msra.mxu2 %v13165_v26 }
  0xe6   : > { %v20478_v30 = vpop.f32.mrf.mxu1  ;;  %v13384_v27 = vld [vmem:[#allocation7 + $0x280] sm:$0xf] }
  0xe7   : > { %v13385_v33 = vor.u32 %v18616_v31, %v13384_v27  ;;  %v18576_v26 = vld [vmem:[#allocation7 + $0x15c] sm:$0xf0] }
  0xe8   : > { %v13225_v31 = vor.u32 %v18576_v26, %v13224_v21  ;;  %v13450_v21 = vld [vmem:[#allocation7 + $0x320] sm:$0xf0] }
  0xea   : > { %v950_v34 = vpop.f32.mrf.mxu2  ;;  %v20483_v40 = vpop.f32.mrf.mxu0 }
  0xeb   : > { %v20480_v35 = vpop.f32.mrf.mxu3  ;;  %v951_v39 = vadd.f32 %v950_v34, %v20458_v15  ;;  %v18548_v34 = vld [vmem:[#allocation7 + $0x84] sm:$0xf] }
  0xec   : > { %v13133_v38 = vor.u32 %v18548_v34, %v13130_v37  ;;  %v18644_v37 = vld [vmem:[#allocation7 + $0x384] sm:$0xf] }
  0xed   : > { %v20485_v42 = vadd.f32 %v969_v36, %v951_v39  ;;  %v18624_v36 = vld [vmem:[#allocation7 + $0x2dc] sm:$0xf0] }
  0xee   : > { %v988_v45 = vpop.f32.mrf.mxu1  ;;  %v13417_v17 = vor.u32 %v18624_v36, %v13416_v10  ;;  %v13288_v39 = vld [vmem:[#allocation7 + $0x1c0] sm:$0xf]  ;;  %2745 = vmatpush.bf16.msra.mxu2 %v13133_v38  ;;  %v13546_v10 = vld [vmem:[#allocation7 + $0x3e0] sm:$0xf0]  ;;  %v13296_v36 = vld [vmem:[#allocation7 + $0x1c8] sm:$0xf] }
  0xef   : > { %v989_v49 = vadd.f32 %v988_v45, %v20466_v19  ;;  %v13289_v43 = vor.u32 %v18592_v41, %v13288_v39  ;;  %v18608_v45 = vld [vmem:[#allocation7 + $0x25c] sm:$0xf0]  ;;  %v13514_v38 = vld [vmem:[#allocation7 + $0x3a0] sm:$0xf0]  ;;  %v13264_v39 = vld [vmem:[#allocation7 + $0x188] sm:$0xf]  ;;  %v910_v41 = vadd.f32 %v20463_v18, %v20450_v11 }
  0xf0   : > { %2702 = vmatpush.bf16.msra.mxu3 %v13417_v17  ;;  %v13297_v17 = vor.u32 %v18593_v12, %v13296_v36  ;;  %v13482_v18 = vld [vmem:[#allocation7 + $0x360] sm:$0xf0] }
  0xf1   : > { %2684 = vmatpush.bf16.msra.mxu1 %v13289_v43 }
  0xf2   : > { %v20488_v54 = vpop.f32.mrf.mxu2  ;;  %v1021_v60 = vpop.f32.mrf.mxu0  ;;  %2746 = vmatpush.bf16.msra.mxu2 %v13101_v52 }
  0xf3   : > { %v1007_v55 = vpop.f32.mrf.mxu3  ;;  %v1022_v4 = vadd.f32 %v1021_v60, %v20493_v59  ;;  %v13320_v60 = vld [vmem:[#allocation7 + $0x200] sm:$0xf] }
  0xf4   : > { %v20490_v58 = vadd.f32 %v1007_v55, %v989_v49  ;;  %2703 = vmatpush.bf16.msra.mxu3 %v13385_v33  ;;  %v13353_v49 = vor.u32 %v18608_v45, %v13352_v44  ;;  %v18584_v55 = vld [vmem:[#allocation7 + $0x19c] sm:$0xf0]  ;;  %v13321_v63 = vor.u32 %v18600_v61, %v13320_v60  ;;  %v13517_v45 = vor.u32 %v18644_v37, %v13514_v38  ;;  %v18636_v60 = vld [vmem:[#allocation7 + $0x344] sm:$0xf]  ;;  %v13232_v61 = vld [vmem:[#allocation7 + $0x148] sm:$0xf] }
  0xf5   : > { %v13257_v57 = vor.u32 %v18584_v55, %v13256_v53  ;;  %v13485_v1 = vor.u32 %v18636_v60, %v13482_v18  ;;  %v1218_v37 = vmax.f32 %v20476_v29, 0.0  ;;  %v13128_v38 = vld [vmem:[#allocation7 + $0x80] sm:$0xf]  ;;  %v18561_v29 = vld [vmem:[#allocation7 + $0xe4] sm:$0xf0]  ;;  %v1202_v60 = vmax.f32 %v20453_v14, 0.0 }
  0xf6   : > { %v20495_v0 = vpop.f32.mrf.mxu1  ;;  %2747 = vmatpush.bf16.msra.mxu2 %v13069_v5  ;;  %v18560_v5 = vld [vmem:[#allocation7 + $0xdc] sm:$0xf0]  ;;  %v18612_v14 = vld [vmem:[#allocation7 + $0x284] sm:$0xf] }
  0xf7   : > { %2685 = vmatpush.bf16.msra.mxu1 %v13257_v57 }
  0xf8   : > { %2704 = vmatpush.bf16.msra.mxu3 %v13353_v49  ;;  %v13265_v49 = vor.u32 %v18585_v46, %v13264_v39  ;;  %v18552_v39 = vld [vmem:[#allocation7 + $0x9c] sm:$0xf0] }
  0xfa   : > { %v1040_v13 = vpop.f32.mrf.mxu2  ;;  %v20502_v24 = vpop.f32.mrf.mxu0  ;;  %2796 = vmatpush.bf16.msrb.mxu2 %v13297_v17  ;;  %v18628_v17 = vld [vmem:[#allocation7 + $0x304] sm:$0xf] }
  0xfb   : > { %v20498_v28 = vpop.f32.mrf.mxu3  ;;  %v20500_v22 = vadd.f32 %v1040_v13, %v1022_v4  ;;  %v13549_v13 = vor.u32 %v18652_v3, %v13546_v10  ;;  %2686 = vmatpush.bf16.msra.mxu1 %v13225_v31  ;;  %v13233_v3 = vor.u32 %v18577_v2, %v13232_v61  ;;  %v13096_v61 = vld [vmem:[#allocation7 + $0x40] sm:$0xf] }
  0xfc   : > { %2705 = vmatpush.bf16.msra.mxu3 %v13321_v63 }
  0xfe   : > { %v20504_v32 = vpop.f32.mrf.mxu1  ;;  %2797 = vmatpush.bf16.msrb.mxu2 %v13265_v49  ;;  %v13129_v49 = vor.u32 %v18552_v39, %v13128_v38  ;;  %v13768_v39 = vld [vmem:[#allocation7 + $0x580] sm:$0xf] }
  0xff   : > { %v1060_v52 = vadd.f32 %v20504_v32, %v20511_v56 }
 0x100   : > { %2754 = vmatpush.bf16.msrb.mxu3 %v13549_v13 }
 0x102   : > { %v20506_v47 = vpop.f32.mrf.mxu2  ;;  %v1026_v51 = vpop.f32.mrf.mxu0  ;;  %2798 = vmatpush.bf16.msrb.mxu2 %v13233_v3  ;;  %v13800_v3 = vld [vmem:[#allocation7 + $0x5c0] sm:$0xf] }
 0x103   : > { %v20508_v48 = vpop.f32.mrf.mxu3  ;;  %v1027_v4 = vadd.f32 %v1026_v51, %v20493_v59  ;;  %v18568_v51 = vld [vmem:[#allocation7 + $0x11c] sm:$0xf0] }
 0x104   : > { %v13193_v55 = vor.u32 %v18568_v51, %v13192_v50  ;;  %2755 = vmatpush.bf16.msrb.mxu3 %v13517_v45  ;;  %v1079_v32 = vadd.f32 %v20508_v48, %v1060_v52  ;;  %v18620_v51 = vld [vmem:[#allocation7 + $0x2c4] sm:$0xf] }
 0x105   : > { %v13418_v52 = vld [vmem:[#allocation7 + $0x2e0] sm:$0xf0] }
 0x106   : > { %v1061_v62 = vpop.f32.mrf.mxu1  ;;  %2687 = vmatpush.bf16.msra.mxu1 %v13193_v55 }
 0x107   : > { %v1062_v27 = vadd.f32 %v1061_v62, %v20511_v56  ;;  %v929_v62 = vadd.f32 %v20441_v6, %v910_v41  ;;  %v13200_v6 = vld [vmem:[#allocation7 + $0x108] sm:$0xf]  ;;  %v1206_v41 = vmax.f32 %v1079_v32, 0.0 }
 0x108   : > { %2756 = vmatpush.bf16.msrb.mxu3 %v13485_v1 }
 0x109   : > { %v1210_v26 = vmax.f32 %v929_v62, 0.0  ;;  %v18544_v62 = vld [vmem:[#allocation7 + $0x5c] sm:$0xf0] }
 0x10a   : > { %v1045_v33 = vpop.f32.mrf.mxu2  ;;  %v20519_v44 = vpop.f32.mrf.mxu0  ;;  %v13097_v2 = vor.u32 %v18544_v62, %v13096_v61 }
 0x10b   : > { %v1080_v34 = vpop.f32.mrf.mxu3  ;;  %v20517_v43 = vadd.f32 %v1045_v33, %v1027_v4  ;;  %v13160_v4 = vld [vmem:[#allocation7 + $0xc0] sm:$0xf]  ;;  %v13453_v33 = vor.u32 %v18628_v17, %v13450_v21  ;;  %v13136_v17 = vld [vmem:[#allocation7 + $0x88] sm:$0xf] }
 0x10c   : > { %v1081_v53 = vadd.f32 %v1080_v34, %v1062_v27  ;;  %v13161_v36 = vor.u32 %v18560_v5, %v13160_v4  ;;  %v18569_v34 = vld [vmem:[#allocation7 + $0x124] sm:$0xf0]  ;;  %v18720_v4 = vld [vmem:[#allocation7 + $0x5dc] sm:$0xf0]  ;;  %v20540_v5 = vmax.f32 %v1202_v60, %v1206_v41 }
 0x10d   : > { %v13201_v48 = vor.u32 %v18569_v34, %v13200_v6  ;;  %2757 = vmatpush.bf16.msrb.mxu3 %v13453_v33  ;;  %v18712_v41 = vld [vmem:[#allocation7 + $0x59c] sm:$0xf0]  ;;  %v18545_v60 = vld [vmem:[#allocation7 + $0x64] sm:$0xf0] }
 0x10e   : > { %v1064_v57 = vpop.f32.mrf.mxu1  ;;  %v1214_v10 = vmax.f32 %v1081_v53, 0.0  ;;  %2688 = vmatpush.bf16.msra.mxu1 %v13161_v36  ;;  %v13168_v53 = vld [vmem:[#allocation7 + $0xc8] sm:$0xf]  ;;  %v13801_v36 = vor.u32 %v18720_v4, %v13800_v3  ;;  %v18704_v3 = vld [vmem:[#allocation7 + $0x55c] sm:$0xf0]  ;;  %v948_v4 = vadd.f32 %v20471_v23, %v20458_v15 }
 0x10f   : > { %v1065_v63 = vadd.f32 %v1064_v57, %v20511_v56  ;;  %2799 = vmatpush.bf16.msrb.mxu2 %v13201_v48  ;;  %v13421_v57 = vor.u32 %v18620_v51, %v13418_v52  ;;  %v13169_v18 = vor.u32 %v18561_v29, %v13168_v53  ;;  %v18536_v48 = vld [vmem:[#allocation7 + $0x1c] sm:$0xf0]  ;;  %v18604_v53 = vld [vmem:[#allocation7 + $0x244] sm:$0xf]  ;;  %v13104_v29 = vld [vmem:[#allocation7 + $0x48] sm:$0xf] }
 0x110   : > { %v20531_v45 = vmax.f32 %v1210_v26, %v1214_v10  ;;  %v18553_v26 = vld [vmem:[#allocation7 + $0xa4] sm:$0xf0]  ;;  %2712 = vmatpush.bf16.msra.mxu0 %v13801_v36  ;;  %v13928_v51 = vld [vmem:[#allocation7 + $0x6c0] sm:$0xf]  ;;  %v13105_v62 = vor.u32 %v18545_v60, %v13104_v29  ;;  %v20571_v29 = vperm.slane %v20447_v8, 6 }
 0x111   : > { %2758 = vmatpush.bf16.msrb.mxu3 %v13421_v57  ;;  %v13137_v34 = vor.u32 %v18553_v26, %v13136_v17  ;;  %v18752_v52 = vld [vmem:[#allocation7 + $0x6dc] sm:$0xf0]  ;;  %v13354_v57 = vld [vmem:[#allocation7 + $0x260] sm:$0xf0] }
 0x112   : > { %v20526_v12 = vpop.f32.mrf.mxu2  ;;  %v20528_v31 = vpop.f32.mrf.mxu0  ;;  %2689 = vmatpush.bf16.msra.mxu1 %v13129_v49  ;;  %v13769_v49 = vor.u32 %v18712_v41, %v13768_v39  ;;  %v13357_v61 = vor.u32 %v18604_v53, %v13354_v57  ;;  %v13896_v17 = vld [vmem:[#allocation7 + $0x680] sm:$0xf]  ;;  %v13072_v39 = vld [vmem:[#allocation7 + $0x8] sm:$0xf]  ;;  %v967_v53 = vadd.f32 %v20445_v7, %v948_v4  ;;  %v915_v57 = vadd.f32 %v20483_v40, %v20450_v11 }
 0x113   : > { %v1083_v13 = vpop.f32.mrf.mxu3  ;;  %2800 = vmatpush.bf16.msrb.mxu2 %v13169_v18  ;;  %v13929_v18 = vor.u32 %v18752_v52, %v13928_v51  ;;  %v18744_v26 = vld [vmem:[#allocation7 + $0x69c] sm:$0xf0]  ;;  %v18537_v41 = vld [vmem:[#allocation7 + $0x24] sm:$0xf0] }
 0x114   : > { %v1084_v27 = vadd.f32 %v1083_v13, %v1065_v63  ;;  %v1263_v63 = vrot.slane %v20531_v45, 6  ;;  %v13386_v13 = vld [vmem:[#allocation7 + $0x2a0] sm:$0xf0]  ;;  %2713 = vmatpush.bf16.msra.mxu0 %v13769_v49  ;;  %v13073_v51 = vor.u32 %v18537_v41, %v13072_v39  ;;  %v934_v4 = vadd.f32 %v20455_v9, %v915_v57 }
 0x115   : > { %v13389_v33 = vor.u32 %v18612_v14, %v13386_v13  ;;  %v953_v39 = vadd.f32 %v20488_v54, %v20458_v15  ;;  %v13640_v54 = vld [vmem:[#allocation7 + $0x480] sm:$0xf] }
 0x116   : > { %v1222_v46 = vmax.f32 %v1084_v27, 0.0  ;;  %v20533_v50 = vpop.f32.mrf.mxu1  ;;  %2690 = vmatpush.bf16.msra.mxu1 %v13097_v2  ;;  %v13736_v2 = vld [vmem:[#allocation7 + $0x540] sm:$0xf] }
 0x117   : > { %2759 = vmatpush.bf16.msrb.mxu3 %v13389_v33  ;;  %2801 = vmatpush.bf16.msrb.mxu2 %v13137_v34  ;;  %v13737_v13 = vor.u32 %v18704_v3, %v13736_v2  ;;  %v18596_v33 = vld [vmem:[#allocation7 + $0x204] sm:$0xf]  ;;  %v1067_v23 = vadd.f32 %v20533_v50, %v20511_v56  ;;  %v13704_v50 = vld [vmem:[#allocation7 + $0x500] sm:$0xf]  ;;  %v1211_v3 = vmax.f32 %v967_v53, 0.0 }
 0x118   : > { %v20535_v55 = vmax.f32 %v1218_v37, %v1222_v46  ;;  %v13064_v37 = vld [vmem:[#allocation7] sm:$0xf] }
 0x119   : > { %v13065_v38 = vor.u32 %v18536_v48, %v13064_v37  ;;  %v13897_v48 = vor.u32 %v18744_v26, %v13896_v17  ;;  %2714 = vmatpush.bf16.msra.mxu0 %v13737_v13  ;;  %v18736_v2 = vld [vmem:[#allocation7 + $0x65c] sm:$0xf0]  ;;  %v986_v26 = vadd.f32 %v20478_v30, %v20466_v19  ;;  %v1226_v30 = vmax.f32 %v934_v4, 0.0 }
 0x11a   : > { %v1264_v1 = vrot.slane %v20535_v55, 6  ;;  %v20544_v10 = vpop.f32.mrf.mxu2  ;;  %v1099_v6 = vpop.f32.mrf.mxu0 }
 0x11b   : > { %v20542_v32 = vpop.f32.mrf.mxu3  ;;  %2691 = vmatpush.bf16.msra.mxu1 %v13065_v38  ;;  %2760 = vmatpush.bf16.msrb.mxu3 %v13357_v61  ;;  %v13322_v38 = vld [vmem:[#allocation7 + $0x220] sm:$0xf0]  ;;  %v13864_v61 = vld [vmem:[#allocation7 + $0x640] sm:$0xf] }
 0x11c   : > { %v20549_v21 = vsel %vm1262_vm1, %v1263_v63, %v1264_v1  ;;  %v20556_v63 = vperm.slane %v20447_v8, 5  ;;  %2802 = vmatpush.bf16.msrb.mxu2 %v13105_v62  ;;  %v13325_v49 = vor.u32 %v18596_v33, %v13322_v38  ;;  %v1086_v7 = vadd.f32 %v20542_v32, %v1067_v23  ;;  %v13672_v32 = vld [vmem:[#allocation7 + $0x4c0] sm:$0xf] }
 0x11d   : > { %v1291_v27 = vmax.f32 %v20540_v5, %v20549_v21  ;;  %v1219_v38 = vmax.f32 %v20485_v42, 0.0  ;;  %v1005_v42 = vadd.f32 %v20480_v35, %v986_v26  ;;  %v18672_v26 = vld [vmem:[#allocation7 + $0x45c] sm:$0xf0]  ;;  %v13930_v21 = vld [vmem:[#allocation7 + $0x6e0] sm:$0xf0] }
 0x11e   : > { %v20553_v46 = vpop.f32.mrf.mxu1  ;;  %v1100_v34 = vadd.f32 %v1099_v6, %v20556_v63  ;;  %v1098_v6 = vadd.f32 %v20528_v31, %v20556_v63  ;;  %v13865_v31 = vor.u32 %v18736_v2, %v13864_v61  ;;  %v1230_v9 = vmax.f32 %v1086_v7, 0.0 }
 0x11f   : > { %2730 = vmatpush.bf16.msrb.mxu1 %v13929_v18  ;;  %2761 = vmatpush.bf16.msrb.mxu3 %v13325_v49  ;;  %v18696_v18 = vld [vmem:[#allocation7 + $0x51c] sm:$0xf0]  ;;  %v1136_v57 = vadd.f32 %v20553_v46, %v20571_v29  ;;  %v1212_v4 = vmax.f32 %v1005_v42, 0.0 }
 0x120   : > { %2803 = vmatpush.bf16.msrb.mxu2 %v13073_v51  ;;  %v13705_v62 = vor.u32 %v18696_v18, %v13704_v50  ;;  %v1203_v50 = vmax.f32 %v20468_v20, 0.0  ;;  %v972_v18 = vadd.f32 %v20460_v16, %v953_v39  ;;  %v1246_v61 = vmax.f32 %v1226_v30, %v1230_v9  ;;  %v18748_v30 = vld [vmem:[#allocation7 + $0x6c4] sm:$0xf] }
 0x122   : > { %v1118_v36 = vpop.f32.mrf.mxu2  ;;  %v1102_v37 = vpop.f32.mrf.mxu0  ;;  %2715 = vmatpush.bf16.msra.mxu0 %v13705_v62 }
 0x123   : > { %v20560_v14 = vpop.f32.mrf.mxu3  ;;  %v1119_v52 = vadd.f32 %v1118_v36, %v1100_v34  ;;  %2731 = vmatpush.bf16.msrb.mxu1 %v13897_v48  ;;  %v1103_v56 = vadd.f32 %v1102_v37, %v20556_v63  ;;  %v1117_v36 = vadd.f32 %v20544_v10, %v1098_v6  ;;  %v18688_v37 = vld [vmem:[#allocation7 + $0x4dc] sm:$0xf0] }
 0x124   : > { %v13832_v48 = vld [vmem:[#allocation7 + $0x600] sm:$0xf]  ;;  %v13673_v41 = vor.u32 %v18688_v37, %v13672_v32  ;;  %v1155_v35 = vadd.f32 %v20560_v14, %v1136_v57  ;;  %v1220_v32 = vmax.f32 %v20490_v58, 0.0  ;;  %v1204_v58 = vmax.f32 %v20473_v25, 0.0 }
 0x125   : > { %v1215_v11 = vmax.f32 %v1119_v52, 0.0  ;;  %v18728_v10 = vld [vmem:[#allocation7 + $0x61c] sm:$0xf0]  ;;  %v1207_v53 = vmax.f32 %v1117_v36, 0.0 }
 0x126   : > { %v1137_v60 = vpop.f32.mrf.mxu1  ;;  %v13833_v52 = vor.u32 %v18728_v10, %v13832_v48  ;;  %2716 = vmatpush.bf16.msra.mxu0 %v13673_v41  ;;  %v1208_v39 = vmax.f32 %v1155_v35, 0.0 }
 0x127   : > { %v1138_v40 = vadd.f32 %v1137_v60, %v20571_v29  ;;  %2732 = vmatpush.bf16.msrb.mxu1 %v13865_v31  ;;  %v20583_v23 = vmax.f32 %v1211_v3, %v1215_v11 }
 0x129   : > { %v1266_v62 = vrot.slane %v20583_v23, 6 }
 0x12a   : > { %v1121_v13 = vpop.f32.mrf.mxu2  ;;  %v1104_v34 = vpop.f32.mrf.mxu0 }
 0x12b   : > { %v1156_v17 = vpop.f32.mrf.mxu3  ;;  %v1122_v33 = vadd.f32 %v1121_v13, %v1103_v56  ;;  %2733 = vmatpush.bf16.msrb.mxu1 %v13833_v52  ;;  %v18680_v56 = vld [vmem:[#allocation7 + $0x49c] sm:$0xf0]  ;;  %v1105_v11 = vadd.f32 %v1104_v34, %v20556_v63  ;;  %v1275_v34 = vrot.slane %v1246_v61, 6 }
 0x12c   : > { %v1157_v51 = vadd.f32 %v1156_v17, %v1138_v40  ;;  %v13641_v7 = vor.u32 %v18680_v56, %v13640_v54  ;;  %v1235_v40 = vmax.f32 %v1203_v50, %v1207_v53  ;;  %v13608_v17 = vld [vmem:[#allocation7 + $0x440] sm:$0xf]  ;;  %v18740_v50 = vld [vmem:[#allocation7 + $0x684] sm:$0xf] }
 0x12d   : > { %v1223_v49 = vmax.f32 %v1122_v33, 0.0  ;;  %v1227_v33 = vmax.f32 %v972_v18, 0.0  ;;  %v13609_v63 = vor.u32 %v18672_v26, %v13608_v17  ;;  %v1276_v53 = vsel %vm1262_vm1, %v1264_v1, %v1275_v34  ;;  %v13898_v18 = vld [vmem:[#allocation7 + $0x6a0] sm:$0xf0] }
 0x12e   : > { %v1140_v6 = vpop.f32.mrf.mxu1  ;;  %v1216_v46 = vmax.f32 %v1157_v51, 0.0  ;;  %2717 = vmatpush.bf16.msra.mxu0 %v13641_v7  ;;  %v18664_v51 = vld [vmem:[#allocation7 + $0x41c] sm:$0xf0]  ;;  %v13901_v7 = vor.u32 %v18740_v50, %v13898_v18  ;;  %v18641_v50 = vld [vmem:[#allocation7 + $0x364] sm:$0xf0] }
 0x12f   : > { %v1243_v60 = vmax.f32 %v1219_v38, %v1223_v49  ;;  %v1141_v15 = vadd.f32 %v1140_v6, %v20571_v29  ;;  %v13576_v49 = vld [vmem:[#allocation7 + $0x400] sm:$0xf]  ;;  %v18573_v18 = vld [vmem:[#allocation7 + $0x14c] sm:$0xf] }
 0x130   : > { %v20598_v48 = vmax.f32 %v1212_v4, %v1216_v46  ;;  %v13577_v52 = vor.u32 %v18664_v51, %v13576_v49  ;;  %v18657_v46 = vld [vmem:[#allocation7 + $0x3e4] sm:$0xf0] }
 0x131   : > { %v1267_v2 = vrot.slane %v1243_v60, 6  ;;  %v13933_v60 = vor.u32 %v18748_v30, %v13930_v21  ;;  %v18724_v21 = vld [vmem:[#allocation7 + $0x604] sm:$0xf] }
 0x132   : > { %v1123_v31 = vpop.f32.mrf.mxu2  ;;  %v20595_v16 = vpop.f32.mrf.mxu0  ;;  %2718 = vmatpush.bf16.msra.mxu0 %v13609_v63  ;;  %v1269_v57 = vrot.slane %v20598_v48, 6  ;;  %v18784_v63 = vld [vmem:[#allocation7 + $0x7dc] sm:$0xf0] }
 0x133   : > { %v1159_v3 = vpop.f32.mrf.mxu3  ;;  %v1268_v36 = vsel %vm1262_vm1, %v1266_v62, %v1267_v2  ;;  %v1124_v20 = vadd.f32 %v1123_v31, %v1105_v11  ;;  %v20626_v62 = vperm.slane %v20447_v8, 7  ;;  %v18589_v31 = vld [vmem:[#allocation7 + $0x1cc] sm:$0xf] }
 0x134   : > { %v1160_v13 = vadd.f32 %v1159_v3, %v1141_v15  ;;  %v1292_v37 = vmax.f32 %v1235_v40, %v1268_v36  ;;  %v1295_v15 = vmax.f32 %v20531_v45, %v1276_v53  ;;  %v18732_v3 = vld [vmem:[#allocation7 + $0x644] sm:$0xf] }
 0x135   : > { %v1231_v14 = vmax.f32 %v1124_v20, 0.0  ;;  %v18716_v36 = vld [vmem:[#allocation7 + $0x5c4] sm:$0xf] }
 0x136   : > { %v1224_v38 = vmax.f32 %v1160_v13, 0.0  ;;  %v1299_v9 = vpack.c.bf16 %v1292_v37, %v1291_v27  ;;  %v20611_v27 = vmax.f32 %v1204_v58, %v1208_v39  ;;  %2719 = vmatpush.bf16.msra.mxu0 %v13577_v52  ;;  %v1142_v4 = vpop.f32.mrf.mxu1  ;;  %v13802_v20 = vld [vmem:[#allocation7 + $0x5e0] sm:$0xf0]  ;;  %v18649_v39 = vld [vmem:[#allocation7 + $0x3a4] sm:$0xf0] }
 0x137   : > { %v1247_v41 = vmax.f32 %v1227_v33, %v1231_v14  ;;  %v13866_v13 = vld [vmem:[#allocation7 + $0x660] sm:$0xf0]  ;;  %v13266_v58 = vld [vmem:[#allocation7 + $0x1a8] sm:$0xf0]  ;;  %v13805_v52 = vor.u32 %v18716_v36, %v13802_v20  ;;  %v18633_v36 = vld [vmem:[#allocation7 + $0x324] sm:$0xf0] }
 0x138   : > { %v20603_v10 = vmax.f32 %v1220_v32, %v1224_v38  ;;  %v1308_v11 = vunpack.c.l.b16 %v1299_v9  ;;  %v1309_v40 = vunpack.c.h.b16 %v1299_v9  ;;  %v13869_v33 = vor.u32 %v18732_v3, %v13866_v13  ;;  %v13520_v38 = vld [vmem:[#allocation7 + $0x388] sm:$0xf] }
 0x139   : > { %v1277_v6 = vrot.slane %v1247_v41, 6  ;;  %v1024_v32 = vadd.f32 %v20502_v24, %v20493_v59  ;;  %v1143_v9 = vadd.f32 %v1142_v4, %v20571_v29  ;;  %v18581_v24 = vld [vmem:[#allocation7 + $0x18c] sm:$0xf]  ;;  %v13456_v4 = vld [vmem:[#allocation7 + $0x308] sm:$0xf]  ;;  %v1221_v20 = vmax.f32 %v20517_v43, 0.0 }
 0x13a   : > { %v1270_v5 = vrot.slane %v20603_v10, 6  ;;  %v20613_v42 = vpop.f32.mrf.mxu2  ;;  %v1175_v1 = vpop.f32.mrf.mxu0  ;;  %2786 = vmatpush.bf16.msrb.mxu0 %v13933_v60  ;;  %v991_v60 = vadd.f32 %v20495_v0, %v20466_v19  ;;  %v13521_v19 = vor.u32 %v18649_v39, %v13520_v38  ;;  %v13488_v0 = vld [vmem:[#allocation7 + $0x348] sm:$0xf]  ;;  %v13706_v38 = vld [vmem:[#allocation7 + $0x520] sm:$0xf0]  ;;  %v1205_v43 = vmax.f32 %v20500_v22, 0.0 }
 0x13b   : > { %v1278_v25 = vsel %vm1262_vm1, %v1267_v2, %v1277_v6  ;;  %v13552_v2 = vld [vmem:[#allocation7 + $0x3c8] sm:$0xf]  ;;  %v1176_v37 = vadd.f32 %v1175_v1, %v20626_v62  ;;  %v1161_v30 = vpop.f32.mrf.mxu3  ;;  %v13770_v6 = vld [vmem:[#allocation7 + $0x5a0] sm:$0xf0]  ;;  %v1043_v29 = vadd.f32 %v20506_v47, %v1024_v32  ;;  %v13489_v3 = vor.u32 %v18641_v50, %v13488_v0  ;;  %v13202_v32 = vld [vmem:[#allocation7 + $0x128] sm:$0xf0] }
 0x13c   : > { %v20619_v55 = vsel %vm1262_vm1, %v1269_v57, %v1270_v5  ;;  %v1296_v54 = vmax.f32 %v20583_v23, %v1278_v25  ;;  %v13298_v23 = vld [vmem:[#allocation7 + $0x1e8] sm:$0xf0]  ;;  %v13553_v34 = vor.u32 %v18657_v46, %v13552_v2  ;;  %v18708_v57 = vld [vmem:[#allocation7 + $0x584] sm:$0xf]  ;;  %v1174_v25 = vadd.f32 %v20595_v16, %v20626_v62 }
 0x13d   : > { %v1293_v56 = vmax.f32 %v20611_v27, %v20619_v55  ;;  %v13301_v14 = vor.u32 %v18589_v31, %v13298_v23  ;;  %v13834_v1 = vld [vmem:[#allocation7 + $0x620] sm:$0xf0]  ;;  %v1162_v16 = vadd.f32 %v1161_v30, %v1143_v9  ;;  %v1213_v31 = vmax.f32 %v1043_v29, 0.0 }
 0x13e   : > { %v1301_v61 = vpack.c.bf16 %v1296_v54, %v1295_v15  ;;  %2787 = vmatpush.bf16.msrb.mxu0 %v13901_v7  ;;  %v13837_v47 = vor.u32 %v18724_v21, %v13834_v1  ;;  %v13269_v54 = vor.u32 %v18581_v24, %v13266_v58  ;;  %v13773_v7 = vor.u32 %v18708_v57, %v13770_v6  ;;  %v18700_v46 = vld [vmem:[#allocation7 + $0x544] sm:$0xf]  ;;  %v13170_v21 = vld [vmem:[#allocation7 + $0xe8] sm:$0xf0] }
 0x13f   : > { %v1232_v13 = vmax.f32 %v1162_v16, 0.0  ;;  %v13457_v30 = vor.u32 %v18633_v36, %v13456_v4  ;;  %v18684_v29 = vld [vmem:[#allocation7 + $0x4c4] sm:$0xf] }
 0x140   : > { %v1312_v35 = vunpack.c.l.b16 %v1301_v61  ;;  %v1313_v45 = vunpack.c.h.b16 %v1301_v61  ;;  %v13234_v61 = vld [vmem:[#allocation7 + $0x168] sm:$0xf0]  ;;  %v18668_v55 = vld [vmem:[#allocation7 + $0x444] sm:$0xf] }
 0x142   : > { %v20628_v17 = vpack.c.b16 %v1312_v35, %v1308_v11  ;;  %v20630_v26 = vpack.c.b16 %v1313_v45, %v1309_v40  ;;  %v1194_v8 = vpop.f32.mrf.mxu2  ;;  %v1178_v41 = vpop.f32.mrf.mxu0  ;;  %2788 = vmatpush.bf16.msrb.mxu0 %v13869_v33  ;;  %v13738_v11 = vld [vmem:[#allocation7 + $0x560] sm:$0xf0]  ;;  %v1010_v40 = vadd.f32 %v20498_v28, %v991_v60  ;;  %v1193_v35 = vadd.f32 %v20613_v42, %v1174_v25  ;;  %v18565_v33 = vld [vmem:[#allocation7 + $0x10c] sm:$0xf] }
 0x143   : > { %v1195_v53 = vadd.f32 %v1194_v8, %v1176_v37  ;;  %v1179_v15 = vadd.f32 %v1178_v41, %v20626_v62  ;;  %v13237_v8 = vor.u32 %v18573_v18, %v13234_v61  ;;  %v13741_v37 = vor.u32 %v18700_v46, %v13738_v11  ;;  %v13392_v18 = vld [vmem:[#allocation7 + $0x288] sm:$0xf]  ;;  %v18549_v46 = vld [vmem:[#allocation7 + $0x8c] sm:$0xf] }
 0x144   : > { %v20642_v49 = vrot.slane %v20628_v17, 7  ;;  %v20645_v51 = vrot.slane %v20630_v26, 7  ;;  %v1029_v28 = vadd.f32 %v20519_v44, %v20493_v59  ;;  %v3176_v39 = vshll.u32 %v20630_v26, 16  ;;  %v18625_v59 = vld [vmem:[#allocation7 + $0x2e4] sm:$0xf0] }
 0x145   : > { %v1217_v2 = vmax.f32 %v1195_v53, 0.0  ;;  %v1228_v9 = vmax.f32 %v1010_v40, 0.0  ;;  %v1209_v41 = vmax.f32 %v1193_v35, 0.0  ;;  %v13424_v53 = vld [vmem:[#allocation7 + $0x2c8] sm:$0xf]  ;;  %v13205_v6 = vor.u32 %v18565_v33, %v13202_v32 }
 0x146   : > { %13959 = vmatmul.msk.bf16.vlgmr.msra.gmra.mxu1 %vm20636_vm3, %v20642_v49  ;;  %13961 = vmatmul.msk.bf16.vlgmr.msra.gmra.mxu3 %vm20636_vm3, %v20645_v51  ;;  %v1048_v58 = vadd.f32 %v20526_v12, %v1029_v28  ;;  %v18557_v44 = vld [vmem:[#allocation7 + $0xcc] sm:$0xf]  ;;  %v3173_v22 = vshrl.u32 %v20630_v26, 16  ;;  %v13425_v50 = vor.u32 %v18625_v59, %v13424_v53  ;;  %v18617_v61 = vld [vmem:[#allocation7 + $0x2a4] sm:$0xf0]  ;;  %v3169_v4 = vshll.u32 %v20628_v17, 16 }
 0x147   : > { %13966 = vmatmul.msk.bf16.vlgmr.msra.gmra.mxu2 %vm20636_vm3, %v20642_v49  ;;  %2810 = vmatpush.bf16.msra.mxu3 %v13553_v34  ;;  %v20667_v42 = vmax.f32 %v1213_v31, %v1217_v2  ;;  %v1248_v57 = vmax.f32 %v1228_v9, %v1232_v13  ;;  %v1237_v0 = vmax.f32 %v1205_v43, %v1209_v41  ;;  %v13138_v11 = vld [vmem:[#allocation7 + $0xa8] sm:$0xf0]  ;;  %v18676_v35 = vld [vmem:[#allocation7 + $0x484] sm:$0xf]  ;;  %v18609_v33 = vld [vmem:[#allocation7 + $0x264] sm:$0xf0] }
 0x148   : > { %2852 = vmatpush.bf16.msra.mxu2 %v13301_v14  ;;  %2768 = vmatpush.bf16.msra.mxu1 %v13805_v52  ;;  %v18692_v14 = vld [vmem:[#allocation7 + $0x504] sm:$0xf]  ;;  %v13393_v13 = vor.u32 %v18617_v61, %v13392_v18  ;;  %v13141_v32 = vor.u32 %v18549_v46, %v13138_v11  ;;  %v13106_v28 = vld [vmem:[#allocation7 + $0x68] sm:$0xf0]  ;;  %v6830_v9 = vrot.slane %v3169_v4, 1 }
 0x149   : > { %2789 = vmatpush.bf16.msrb.mxu0 %v13837_v47  ;;  %v13709_v60 = vor.u32 %v18692_v14, %v13706_v38  ;;  %v1272_v25 = vrot.slane %v20667_v42, 6  ;;  %v1279_v31 = vrot.slane %v1248_v57, 6  ;;  %v13610_v14 = vld [vmem:[#allocation7 + $0x460] sm:$0xf0]  ;;  %v3166_v38 = vshrl.u32 %v20628_v17, 16 }
 0x14a   : > { %v1197_v45 = vpop.f32.mrf.mxu2  ;;  %v1180_v24 = vpop.f32.mrf.mxu0  ;;  %v13074_v59 = vld [vmem:[#allocation7 + $0x28] sm:$0xf0] }
 0x14b   : > { %v1198_v23 = vadd.f32 %v1197_v45, %v1179_v15  ;;  %2811 = vmatpush.bf16.msra.mxu3 %v13521_v19  ;;  %v1181_v1 = vadd.f32 %v1180_v24, %v20626_v62  ;;  %v13674_v15 = vld [vmem:[#allocation7 + $0x4e0] sm:$0xf0]  ;;  %v6832_v19 = vrot.slane %v3176_v39, 1  ;;  %v13173_v62 = vor.u32 %v18557_v44, %v13170_v21  ;;  %v18717_v44 = vld [vmem:[#allocation7 + $0x5cc] sm:$0xf] }
 0x14c   : > { %2853 = vmatpush.bf16.msra.mxu2 %v13269_v54  ;;  %2769 = vmatpush.bf16.msra.mxu1 %v13773_v7  ;;  %v13677_v40 = vor.u32 %v18684_v29, %v13674_v15  ;;  %v1229_v45 = vmax.f32 %v1048_v58, 0.0  ;;  %v13328_v58 = vld [vmem:[#allocation7 + $0x208] sm:$0xf]  ;;  %v20704_v10 = vor.u32 %v6830_v9, %v3166_v38  ;;  %v13810_v57 = vld [vmem:[#allocation7 + $0x5e8] sm:$0xf0] }
 0x14d   : > { %v1225_v34 = vmax.f32 %v1198_v23, 0.0  ;;  %v20683_v7 = vor.u32 %v6832_v19, %v3173_v22  ;;  %v13560_v21 = vld [vmem:[#allocation7 + $0x3d0] sm:$0xf]  ;;  %v13813_v19 = vor.u32 %v18717_v44, %v13810_v57  ;;  %v18709_v18 = vld [vmem:[#allocation7 + $0x58c] sm:$0xf] }
 0x14e   : > { %v18658_v29 = vld [vmem:[#allocation7 + $0x3ec] sm:$0xf0]  ;;  %v13778_v61 = vld [vmem:[#allocation7 + $0x5a8] sm:$0xf0]  ;;  %v13744_v9 = vld [vmem:[#allocation7 + $0x548] sm:$0xf] }
 0x14f   : > { %v20672_v52 = vmax.f32 %v1221_v20, %v1225_v34  ;;  %2812 = vmatpush.bf16.msra.mxu3 %v13489_v3  ;;  %v13642_v3 = vld [vmem:[#allocation7 + $0x4a0] sm:$0xf0]  ;;  %v13872_v44 = vld [vmem:[#allocation7 + $0x648] sm:$0xf] }
 0x150   : > { %2854 = vmatpush.bf16.msra.mxu2 %v13237_v8  ;;  %2770 = vmatpush.bf16.msra.mxu1 %v13741_v37  ;;  %v13360_v8 = vld [vmem:[#allocation7 + $0x248] sm:$0xf]  ;;  %v18541_v37 = vld [vmem:[#allocation7 + $0x4c] sm:$0xf]  ;;  %v13645_v27 = vor.u32 %v18676_v35, %v13642_v3 }
 0x151   : > { %v1273_v12 = vrot.slane %v20672_v52, 6  ;;  %v13361_v41 = vor.u32 %v18609_v33, %v13360_v8  ;;  %v13109_v24 = vor.u32 %v18541_v37, %v13106_v28  ;;  %v18601_v52 = vld [vmem:[#allocation7 + $0x224] sm:$0xf0]  ;;  %v18701_v8 = vld [vmem:[#allocation7 + $0x54c] sm:$0xf] }
 0x152   : > { %v1199_v47 = vpop.f32.mrf.mxu2  ;;  %v13936_v35 = vld [vmem:[#allocation7 + $0x6c8] sm:$0xf]  ;;  %v13746_v37 = vld [vmem:[#allocation7 + $0x568] sm:$0xf0]  ;;  %v13496_v28 = vld [vmem:[#allocation7 + $0x350] sm:$0xf] }
 0x153   : > { %v1274_v16 = vsel %vm1262_vm1, %v1272_v25, %v1273_v12  ;;  %v1200_v54 = vadd.f32 %v1199_v47, %v1181_v1  ;;  %2813 = vmatpush.bf16.msra.mxu3 %v13457_v30  ;;  %v18533_v30 = vld [vmem:[#allocation7 + $0xc] sm:$0xf]  ;;  %v18660_v25 = vld [vmem:[#allocation7 + $0x404] sm:$0xf]  ;;  %v13329_v1 = vor.u32 %v18601_v52, %v13328_v58  ;;  %v18737_v57 = vld [vmem:[#allocation7 + $0x664] sm:$0xf0] }
 0x154   : > { %v1294_v2 = vmax.f32 %v1237_v0, %v1274_v16  ;;  %2855 = vmatpush.bf16.msra.mxu2 %v13205_v6  ;;  %2771 = vmatpush.bf16.msra.mxu1 %v13709_v60  ;;  %v13613_v6 = vor.u32 %v18668_v55, %v13610_v14  ;;  %v13077_v15 = vor.u32 %v18533_v30, %v13074_v59  ;;  %v13714_v58 = vld [vmem:[#allocation7 + $0x528] sm:$0xf0] }
 0x155   : > { %v1233_v23 = vmax.f32 %v1200_v54, 0.0  ;;  %v18721_v54 = vld [vmem:[#allocation7 + $0x5e4] sm:$0xf0] }
 0x156   : > { %v1300_v36 = vpack.c.bf16 %v1294_v2, %v1293_v56  ;;  %13968 = vmatmul.msk.bf16.vlgmr.msrb.gmra.mxu3 %vm20636_vm3, %v20645_v51  ;;  %v1280_v56 = vsel %vm1262_vm1, %v1270_v5, %v1279_v31  ;;  %v13528_v2 = vld [vmem:[#allocation7 + $0x390] sm:$0xf] }
 0x157   : > { %v1249_v20 = vmax.f32 %v1229_v45, %v1233_v23  ;;  %13973 = vmatmul.msk.bf16.vlgmr.msrb.gmra.mxu2 %vm20636_vm3, %v20642_v49  ;;  %2814 = vmatpush.bf16.msra.mxu3 %v13425_v50  ;;  %v1297_v5 = vmax.f32 %v20598_v48, %v1280_v56  ;;  %v13561_v50 = vor.u32 %v18658_v29, %v13560_v21  ;;  %v18753_v45 = vld [vmem:[#allocation7 + $0x6e4] sm:$0xf0] }
 0x158   : > { %2856 = vmatpush.bf16.msra.mxu2 %v13173_v62  ;;  %2772 = vmatpush.bf16.msra.mxu1 %v13677_v40  ;;  %v1310_v0 = vunpack.c.l.b16 %v1300_v36  ;;  %v1311_v47 = vunpack.c.h.b16 %v1300_v36  ;;  %v18650_v40 = vld [vmem:[#allocation7 + $0x3ac] sm:$0xf0]  ;;  %v13776_v23 = vld [vmem:[#allocation7 + $0x588] sm:$0xf] }
 0x159   : > { %v1281_v34 = vrot.slane %v1249_v20, 6  ;;  %v13781_v20 = vor.u32 %v18709_v18, %v13778_v61  ;;  %v13529_v33 = vor.u32 %v18650_v40, %v13528_v2  ;;  %v13904_v56 = vld [vmem:[#allocation7 + $0x688] sm:$0xf]  ;;  %v18653_v40 = vld [vmem:[#allocation7 + $0x3cc] sm:$0xf] }
 0x15a   : > { %v13712_v21 = vld [vmem:[#allocation7 + $0x508] sm:$0xf] }
 0x15b   : > { %v1282_v43 = vsel %vm1262_vm1, %v1273_v12, %v1281_v34  ;;  %2815 = vmatpush.bf16.msra.mxu3 %v13393_v13  ;;  %v13578_v12 = vld [vmem:[#allocation7 + $0x420] sm:$0xf0]  ;;  %v18713_v13 = vld [vmem:[#allocation7 + $0x5a4] sm:$0xf0] }
 0x15c   : > { %v1298_v53 = vmax.f32 %v20667_v42, %v1282_v43  ;;  %2857 = vmatpush.bf16.msra.mxu2 %v13141_v32  ;;  %2773 = vmatpush.bf16.msra.mxu1 %v13645_v27  ;;  %v13808_v42 = vld [vmem:[#allocation7 + $0x5c8] sm:$0xf]  ;;  %v13581_v62 = vor.u32 %v18660_v25, %v13578_v12  ;;  %v13937_v32 = vor.u32 %v18753_v45, %v13936_v35  ;;  %v18642_v27 = vld [vmem:[#allocation7 + $0x36c] sm:$0xf0]  ;;  %v18685_v12 = vld [vmem:[#allocation7 + $0x4cc] sm:$0xf] }
 0x15d   : > { %v13809_v31 = vor.u32 %v18721_v54, %v13808_v42  ;;  %v18745_v34 = vld [vmem:[#allocation7 + $0x6a4] sm:$0xf0]  ;;  %v13777_v14 = vor.u32 %v18713_v13, %v13776_v23  ;;  %v13749_v43 = vor.u32 %v18701_v8, %v13746_v37  ;;  %v13497_v52 = vor.u32 %v18642_v27, %v13496_v28  ;;  %v13650_v23 = vld [vmem:[#allocation7 + $0x4a8] sm:$0xf0]  ;;  %v13400_v8 = vld [vmem:[#allocation7 + $0x290] sm:$0xf] }
 0x15e   : > { %v1302_v60 = vpack.c.bf16 %v1298_v53, %v1297_v5  ;;  %v13905_v30 = vor.u32 %v18745_v34, %v13904_v56  ;;  %v13464_v5 = vld [vmem:[#allocation7 + $0x310] sm:$0xf]  ;;  %v18697_v25 = vld [vmem:[#allocation7 + $0x524] sm:$0xf0]  ;;  %v13554_v13 = vld [vmem:[#allocation7 + $0x3e8] sm:$0xf0] }
 0x15f   : > { %2816 = vmatpush.bf16.msra.mxu3 %v13361_v41  ;;  %v18705_v41 = vld [vmem:[#allocation7 + $0x564] sm:$0xf0]  ;;  %v18634_v53 = vld [vmem:[#allocation7 + $0x32c] sm:$0xf0]  ;;  %v13557_v34 = vor.u32 %v18653_v40, %v13554_v13  ;;  %v18749_v40 = vld [vmem:[#allocation7 + $0x6cc] sm:$0xf] }
 0x160   : > { %v1314_v48 = vunpack.c.l.b16 %v1302_v60  ;;  %v1315_v16 = vunpack.c.h.b16 %v1302_v60  ;;  %2858 = vmatpush.bf16.msra.mxu2 %v13109_v24  ;;  %2774 = vmatpush.bf16.msra.mxu1 %v13613_v6  ;;  %v18693_v24 = vld [vmem:[#allocation7 + $0x50c] sm:$0xf]  ;;  %v13745_v6 = vor.u32 %v18705_v41, %v13744_v9  ;;  %v13465_v29 = vor.u32 %v18634_v53, %v13464_v5  ;;  %v13840_v42 = vld [vmem:[#allocation7 + $0x608] sm:$0xf]  ;;  %v13912_v13 = vld [vmem:[#allocation7 + $0x690] sm:$0xf] }
 0x161   : > { %v13717_v60 = vor.u32 %v18693_v24, %v13714_v58  ;;  %v18729_v54 = vld [vmem:[#allocation7 + $0x624] sm:$0xf0]  ;;  %v18645_v9 = vld [vmem:[#allocation7 + $0x38c] sm:$0xf]  ;;  %v13368_v58 = vld [vmem:[#allocation7 + $0x250] sm:$0xf] }
 0x162   : > { %v20708_v46 = vpack.c.b16 %v1314_v48, %v1310_v0  ;;  %v20710_v11 = vpack.c.b16 %v1315_v16, %v1311_v47  ;;  %v18626_v16 = vld [vmem:[#allocation7 + $0x2ec] sm:$0xf0]  ;;  %v13680_v2 = vld [vmem:[#allocation7 + $0x4c8] sm:$0xf]  ;;  %v13841_v45 = vor.u32 %v18729_v54, %v13840_v42  ;;  %v13618_v41 = vld [vmem:[#allocation7 + $0x468] sm:$0xf0] }
 0x163   : > { %2817 = vmatpush.bf16.msra.mxu3 %v13329_v1  ;;  %v13682_v1 = vld [vmem:[#allocation7 + $0x4e8] sm:$0xf0]  ;;  %v13648_v27 = vld [vmem:[#allocation7 + $0x488] sm:$0xf]  ;;  %v13818_v42 = vld [vmem:[#allocation7 + $0x5f0] sm:$0xf0] }
 0x164   : > { %2859 = vmatpush.bf16.msra.mxu2 %v13077_v15  ;;  %v20713_v3 = vrot.slane %v20708_v46, 7  ;;  %v1323_v36 = vrot.slane %v20710_v11, 7  ;;  %2775 = vmatpush.bf16.msra.mxu1 %v13581_v62  ;;  %v3190_v59 = vshll.u32 %v20710_v11, 16  ;;  %v13873_v15 = vor.u32 %v18737_v57, %v13872_v44  ;;  %v18689_v62 = vld [vmem:[#allocation7 + $0x4e4] sm:$0xf0] }
 0x165   : > { %v3187_v0 = vshrl.u32 %v20710_v11, 16  ;;  %v3183_v47 = vshll.u32 %v20708_v46, 16  ;;  %v13685_v61 = vor.u32 %v18685_v12, %v13682_v1  ;;  %v18681_v56 = vld [vmem:[#allocation7 + $0x4a4] sm:$0xf0]  ;;  %v13522_v24 = vld [vmem:[#allocation7 + $0x3a8] sm:$0xf0] }
 0x166   : > { %13963 = vmatmul.msk.bf16.vlgmr.msra.gmra.mxu0 %vm20636_vm3, %v20713_v3  ;;  %13975 = vmatmul.msk.bf16.vlgmr.msra.gmra.mxu3 %vm20636_vm3, %v20645_v51  ;;  %v20723_v55 = vsel %vm1324_vm2, 0, %v1323_v36  ;;  %v6836_v48 = vrot.slane %v3190_v59, 1  ;;  %v3180_v36 = vshrl.u32 %v20708_v46, 16  ;;  %v13616_v53 = vld [vmem:[#allocation7 + $0x448] sm:$0xf] }
 0x167   : > { %2880 = vmatpush.bf16.msrb.mxu3 %v13813_v19  ;;  %2824 = vmatpush.bf16.msra.mxu0 %v13809_v31  ;;  %v13432_v19 = vld [vmem:[#allocation7 + $0x2d0] sm:$0xf]  ;;  %v18677_v31 = vld [vmem:[#allocation7 + $0x48c] sm:$0xf]  ;;  %v18673_v44 = vld [vmem:[#allocation7 + $0x464] sm:$0xf0] }
 0x168   : > { %2922 = vmatpush.bf16.msrb.mxu2 %v13561_v50  ;;  %13964 = vmatmul.msk.bf16.vlgmr.msrb.gmra.mxu1 %vm2681_vm4, %v20723_v55  ;;  %v13713_v50 = vor.u32 %v18697_v25, %v13712_v21  ;;  %v20737_v18 = vor.u32 %v6836_v48, %v3187_v0  ;;  %v13433_v35 = vor.u32 %v18626_v16, %v13432_v19  ;;  %v18637_v57 = vld [vmem:[#allocation7 + $0x34c] sm:$0xf]  ;;  %v13336_v12 = vld [vmem:[#allocation7 + $0x210] sm:$0xf]  ;;  %v18718_v16 = vld [vmem:[#allocation7 + $0x5d4] sm:$0xf] }
 0x169   : > { %13980 = vmatmul.msk.bf16.vlgmr.msra.gmra.mxu2 %vm20636_vm3, %v20642_v49  ;;  %2842 = vmatpush.bf16.msrb.mxu1 %v13937_v32  ;;  %v13681_v32 = vor.u32 %v18689_v62, %v13680_v2  ;;  %v13653_v28 = vor.u32 %v18677_v31, %v13650_v23  ;;  %v13586_v25 = vld [vmem:[#allocation7 + $0x428] sm:$0xf0]  ;;  %v18602_v1 = vld [vmem:[#allocation7 + $0x22c] sm:$0xf0]  ;;  %v13617_v19 = vor.u32 %v18673_v44, %v13616_v53 }
 0x16a   : > { %v18754_v48 = vld [vmem:[#allocation7 + $0x6ec] sm:$0xf0]  ;;  %v13337_v62 = vor.u32 %v18602_v1, %v13336_v12  ;;  %v13821_v31 = vor.u32 %v18718_v16, %v13818_v42  ;;  %v18629_v23 = vld [vmem:[#allocation7 + $0x30c] sm:$0xf]  ;;  %v18590_v16 = vld [vmem:[#allocation7 + $0x1d4] sm:$0xf] }
 0x16b   : > { %2881 = vmatpush.bf16.msrb.mxu3 %v13781_v20  ;;  %2825 = vmatpush.bf16.msra.mxu0 %v13777_v14  ;;  %v6834_v20 = vrot.slane %v3183_v47, 1  ;;  %v13848_v12 = vld [vmem:[#allocation7 + $0x610] sm:$0xf]  ;;  %v13306_v42 = vld [vmem:[#allocation7 + $0x1f0] sm:$0xf0] }
 0x16c   : > { %2923 = vmatpush.bf16.msrb.mxu2 %v13529_v33  ;;  %v18618_v33 = vld [vmem:[#allocation7 + $0x2ac] sm:$0xf0] }
 0x16d   : > { %2843 = vmatpush.bf16.msrb.mxu1 %v13905_v30  ;;  %v20744_v37 = vor.u32 %v6834_v20, %v3180_v36  ;;  %v13401_v14 = vor.u32 %v18618_v33, %v13400_v8  ;;  %v13649_v30 = vor.u32 %v18681_v56, %v13648_v27  ;;  %v13458_v20 = vld [vmem:[#allocation7 + $0x328] sm:$0xf0]  ;;  %v18746_v33 = vld [vmem:[#allocation7 + $0x6ac] sm:$0xf0] }
 0x16e   : > { %v13461_v56 = vor.u32 %v18629_v23, %v13458_v20  ;;  %v18730_v1 = vld [vmem:[#allocation7 + $0x62c] sm:$0xf0]  ;;  %v13309_v23 = vor.u32 %v18590_v16, %v13306_v42  ;;  %v18686_v20 = vld [vmem:[#allocation7 + $0x4d4] sm:$0xf] }
 0x16f   : > { %2882 = vmatpush.bf16.msrb.mxu3 %v13749_v43  ;;  %2826 = vmatpush.bf16.msra.mxu0 %v13745_v6  ;;  %v18669_v43 = vld [vmem:[#allocation7 + $0x44c] sm:$0xf]  ;;  %v13525_v6 = vor.u32 %v18645_v9, %v13522_v24  ;;  %v13913_v9 = vor.u32 %v18746_v33, %v13912_v13  ;;  %v13690_v13 = vld [vmem:[#allocation7 + $0x4f0] sm:$0xf0] }
 0x170   : > { %2924 = vmatpush.bf16.msrb.mxu2 %v13497_v52  ;;  %v18610_v52 = vld [vmem:[#allocation7 + $0x26c] sm:$0xf0]  ;;  %v13621_v5 = vor.u32 %v18669_v43, %v13618_v41  ;;  %v18621_v41 = vld [vmem:[#allocation7 + $0x2cc] sm:$0xf]  ;;  %v18582_v33 = vld [vmem:[#allocation7 + $0x194] sm:$0xf] }
 0x171   : > { %2844 = vmatpush.bf16.msrb.mxu1 %v13873_v15  ;;  %v13369_v21 = vor.u32 %v18610_v52, %v13368_v58  ;;  %v13944_v15 = vld [vmem:[#allocation7 + $0x6d0] sm:$0xf]  ;;  %v13426_v24 = vld [vmem:[#allocation7 + $0x2e8] sm:$0xf0]  ;;  %v13210_v16 = vld [vmem:[#allocation7 + $0x130] sm:$0xf0] }
 0x172   : > { %v13880_v58 = vld [vmem:[#allocation7 + $0x650] sm:$0xf]  ;;  %v13429_v44 = vor.u32 %v18621_v41, %v13426_v24 }
 0x173   : > { %2883 = vmatpush.bf16.msrb.mxu3 %v13717_v60  ;;  %2827 = vmatpush.bf16.msra.mxu0 %v13713_v50  ;;  %v13490_v60 = vld [vmem:[#allocation7 + $0x368] sm:$0xf0]  ;;  %v13584_v50 = vld [vmem:[#allocation7 + $0x408] sm:$0xf]  ;;  %v18738_v52 = vld [vmem:[#allocation7 + $0x66c] sm:$0xf0] }
 0x174   : > { %2925 = vmatpush.bf16.msrb.mxu2 %v13465_v29  ;;  %v18661_v29 = vld [vmem:[#allocation7 + $0x40c] sm:$0xf]  ;;  %v13493_v2 = vor.u32 %v18637_v57, %v13490_v60  ;;  %v13816_v41 = vld [vmem:[#allocation7 + $0x5d0] sm:$0xf] }
 0x175   : > { %2845 = vmatpush.bf16.msrb.mxu1 %v13841_v45  ;;  %v13589_v54 = vor.u32 %v18661_v29, %v13586_v25  ;;  %v13945_v45 = vor.u32 %v18754_v48, %v13944_v15  ;;  %v18733_v57 = vld [vmem:[#allocation7 + $0x64c] sm:$0xf]  ;;  %v18694_v15 = vld [vmem:[#allocation7 + $0x514] sm:$0xf] }
 0x176   : > { %13971 = vmatmul.msk.bf16.vlgmr.msrb.gmra.mxu0 %vm2681_vm4, %v20723_v55  ;;  %v18613_v29 = vld [vmem:[#allocation7 + $0x28c] sm:$0xf] }
 0x177   : > { %2884 = vmatpush.bf16.msrb.mxu3 %v13685_v61  ;;  %2828 = vmatpush.bf16.msra.mxu0 %v13681_v32  ;;  %v18665_v61 = vld [vmem:[#allocation7 + $0x424] sm:$0xf0]  ;;  %v18710_v32 = vld [vmem:[#allocation7 + $0x594] sm:$0xf]  ;;  %v13394_v25 = vld [vmem:[#allocation7 + $0x2a8] sm:$0xf0] }
 0x178   : > { %2926 = vmatpush.bf16.msrb.mxu2 %v13433_v35  ;;  %13970 = vmatmul.msk.bf16.vlgmr.msra.gmra.mxu1 %vm20636_vm3, %v20713_v3  ;;  %v13938_v35 = vld [vmem:[#allocation7 + $0x6e8] sm:$0xf0]  ;;  %v13585_v8 = vor.u32 %v18665_v61, %v13584_v50 }
 0x179   : > { %2866 = vmatpush.bf16.msra.mxu1 %v13557_v34  ;;  %v13941_v27 = vor.u32 %v18749_v40, %v13938_v35  ;;  %v18741_v34 = vld [vmem:[#allocation7 + $0x68c] sm:$0xf] }
 0x17a   : > { %v18605_v50 = vld [vmem:[#allocation7 + $0x24c] sm:$0xf] }
 0x17b   : > { %2885 = vmatpush.bf16.msrb.mxu3 %v13653_v28  ;;  %2829 = vmatpush.bf16.msra.mxu0 %v13649_v30  ;;  %v13786_v28 = vld [vmem:[#allocation7 + $0x5b0] sm:$0xf0]  ;;  %v18725_v61 = vld [vmem:[#allocation7 + $0x60c] sm:$0xf] }
 0x17c   : > { %2927 = vmatpush.bf16.msrb.mxu2 %v13401_v14  ;;  %v13906_v14 = vld [vmem:[#allocation7 + $0x6a8] sm:$0xf0]  ;;  %v13789_v43 = vor.u32 %v18710_v32, %v13786_v28  ;;  %v18702_v30 = vld [vmem:[#allocation7 + $0x554] sm:$0xf] }
 0x17d   : > { %2867 = vmatpush.bf16.msra.mxu1 %v13525_v6  ;;  %v13909_v53 = vor.u32 %v18741_v34, %v13906_v14  ;;  %v13874_v6 = vld [vmem:[#allocation7 + $0x668] sm:$0xf0]  ;;  %v13274_v32 = vld [vmem:[#allocation7 + $0x1b0] sm:$0xf0]  ;;  %v13693_v14 = vor.u32 %v18686_v20, %v13690_v13  ;;  %v13952_v13 = vld [vmem:[#allocation7 + $0x6d8] sm:$0xf] }
 0x17e   : > { %v13877_v48 = vor.u32 %v18733_v57, %v13874_v6  ;;  %v13362_v35 = vld [vmem:[#allocation7 + $0x268] sm:$0xf0]  ;;  %v13277_v24 = vor.u32 %v18582_v33, %v13274_v32  ;;  %v13178_v20 = vld [vmem:[#allocation7 + $0xf0] sm:$0xf0] }
 0x17f   : > { %2886 = vmatpush.bf16.msrb.mxu3 %v13621_v5  ;;  %2830 = vmatpush.bf16.msra.mxu0 %v13617_v19  ;;  %v13754_v5 = vld [vmem:[#allocation7 + $0x570] sm:$0xf0]  ;;  %v13365_v28 = vor.u32 %v18605_v50, %v13362_v35  ;;  %v13330_v34 = vld [vmem:[#allocation7 + $0x228] sm:$0xf0] }
 0x180   : > { %2928 = vmatpush.bf16.msrb.mxu2 %v13369_v21  ;;  %v13881_v21 = vor.u32 %v18738_v52, %v13880_v58  ;;  %v13757_v60 = vor.u32 %v18702_v30, %v13754_v5  ;;  %v13722_v19 = vld [vmem:[#allocation7 + $0x530] sm:$0xf0]  ;;  %v18722_v58 = vld [vmem:[#allocation7 + $0x5ec] sm:$0xf0] }
 0x181   : > { %2868 = vmatpush.bf16.msra.mxu1 %v13493_v2  ;;  %v13842_v2 = vld [vmem:[#allocation7 + $0x628] sm:$0xf0]  ;;  %v13725_v40 = vor.u32 %v18694_v15, %v13722_v19  ;;  %v18678_v52 = vld [vmem:[#allocation7 + $0x494] sm:$0xf]  ;;  %v13817_v6 = vor.u32 %v18722_v58, %v13816_v41  ;;  %v13920_v58 = vld [vmem:[#allocation7 + $0x698] sm:$0xf] }
 0x182   : > { %v13658_v30 = vld [vmem:[#allocation7 + $0x4b0] sm:$0xf0] }
 0x183   : > { %2887 = vmatpush.bf16.msrb.mxu3 %v13589_v54  ;;  %2831 = vmatpush.bf16.msra.mxu0 %v13585_v8  ;;  %v13397_v54 = vor.u32 %v18613_v29, %v13394_v25  ;;  %v13845_v8 = vor.u32 %v18725_v61, %v13842_v2  ;;  %v18574_v5 = vld [vmem:[#allocation7 + $0x154] sm:$0xf]  ;;  %v18578_v29 = vld [vmem:[#allocation7 + $0x16c] sm:$0xf0] }
 0x184   : > { %2929 = vmatpush.bf16.msrb.mxu2 %v13337_v62  ;;  %v13849_v62 = vor.u32 %v18730_v1, %v13848_v12  ;;  %v13784_v25 = vld [vmem:[#allocation7 + $0x590] sm:$0xf]  ;;  %v18670_v15 = vld [vmem:[#allocation7 + $0x454] sm:$0xf] }
 0x185   : > { %2869 = vmatpush.bf16.msra.mxu1 %v13461_v56  ;;  %v18597_v56 = vld [vmem:[#allocation7 + $0x20c] sm:$0xf]  ;;  %v18714_v1 = vld [vmem:[#allocation7 + $0x5ac] sm:$0xf0]  ;;  %v13626_v19 = vld [vmem:[#allocation7 + $0x470] sm:$0xf0] }
 0x186   : > { %13984 = vmatmul.msk.bf16.vlgmr.msrb.gmra.mxu3 %vm20636_vm3, %v20713_v3  ;;  %13977 = vmatmul.msk.bf16.vlgmr.msra.gmra.mxu0 %vm20636_vm3, %v20713_v3  ;;  %v13785_v50 = vor.u32 %v18714_v1, %v13784_v25  ;;  %v13629_v61 = vor.u32 %v18670_v15, %v13626_v19  ;;  %v18570_v2 = vld [vmem:[#allocation7 + $0x12c] sm:$0xf0]  ;;  %v18550_v41 = vld [vmem:[#allocation7 + $0x94] sm:$0xf]  ;;  %v18739_v1 = vld [vmem:[#allocation7 + $0x674] sm:$0xf0] }
 0x187   : > { %2954 = vmatpush.bf16.msra.mxu3 %v13945_v45  ;;  %13989 = vmatmul.msk.bf16.vlgmr.msrb.gmra.mxu2 %vm20636_vm3, %v20645_v51  ;;  %v13304_v45 = vld [vmem:[#allocation7 + $0x1d0] sm:$0xf]  ;;  %v13114_v25 = vld [vmem:[#allocation7 + $0x70] sm:$0xf0] }
 0x188   : > { %2992 = vmatpush.bf16.msra.mxu2 %v13821_v31  ;;  %2898 = vmatpush.bf16.msrb.mxu0 %v13941_v27  ;;  %v18594_v31 = vld [vmem:[#allocation7 + $0x1ec] sm:$0xf0] }
 0x189   : > { %13978 = vmatmul.msk.bf16.vlgmr.msrb.gmra.mxu1 %vm2681_vm4, %v20723_v55  ;;  %v13305_v27 = vor.u32 %v18594_v31, %v13304_v45  ;;  %v18662_v45 = vld [vmem:[#allocation7 + $0x414] sm:$0xf] }
 0x18a   : > { %2870 = vmatpush.bf16.msra.mxu1 %v13429_v44  ;;  %v13333_v44 = vor.u32 %v18597_v56, %v13330_v34  ;;  %v13594_v31 = vld [vmem:[#allocation7 + $0x430] sm:$0xf0]  ;;  %v18562_v56 = vld [vmem:[#allocation7 + $0xec] sm:$0xf0] }
 0x18b   : > { %2955 = vmatpush.bf16.msra.mxu3 %v13913_v9  ;;  %v13272_v9 = vld [vmem:[#allocation7 + $0x190] sm:$0xf] }
 0x18c   : > { %2993 = vmatpush.bf16.msra.mxu2 %v13789_v43  ;;  %2899 = vmatpush.bf16.msrb.mxu0 %v13909_v53  ;;  %v18586_v43 = vld [vmem:[#allocation7 + $0x1ac] sm:$0xf0]  ;;  %v13242_v53 = vld [vmem:[#allocation7 + $0x170] sm:$0xf0] }
 0x18d   : > { %v13273_v57 = vor.u32 %v18586_v43, %v13272_v9  ;;  %v13245_v12 = vor.u32 %v18574_v5, %v13242_v53  ;;  %v13720_v9 = vld [vmem:[#allocation7 + $0x510] sm:$0xf] }
 0x18e   : > { %2871 = vmatpush.bf16.msra.mxu1 %v13397_v54  ;;  %v13208_v54 = vld [vmem:[#allocation7 + $0x110] sm:$0xf] }
 0x18f   : > { %2956 = vmatpush.bf16.msra.mxu3 %v13881_v21  ;;  %v13661_v21 = vor.u32 %v18678_v52, %v13658_v30  ;;  %v13209_v33 = vor.u32 %v18570_v2, %v13208_v54  ;;  %v18698_v43 = vld [vmem:[#allocation7 + $0x52c] sm:$0xf0]  ;;  %v18747_v52 = vld [vmem:[#allocation7 + $0x6b4] sm:$0xf0]  ;;  %v18534_v2 = vld [vmem:[#allocation7 + $0x14] sm:$0xf] }
 0x190   : > { %2994 = vmatpush.bf16.msra.mxu2 %v13757_v60  ;;  %2900 = vmatpush.bf16.msrb.mxu0 %v13877_v48  ;;  %v13240_v60 = vld [vmem:[#allocation7 + $0x150] sm:$0xf]  ;;  %v18566_v48 = vld [vmem:[#allocation7 + $0x114] sm:$0xf]  ;;  %v13721_v5 = vor.u32 %v18698_v43, %v13720_v9 }
 0x191   : > { %v13241_v42 = vor.u32 %v18578_v29, %v13240_v60  ;;  %v13213_v35 = vor.u32 %v18566_v48, %v13210_v16  ;;  %v13144_v53 = vld [vmem:[#allocation7 + $0x90] sm:$0xf]  ;;  %v18542_v29 = vld [vmem:[#allocation7 + $0x54] sm:$0xf] }
 0x192   : > { %2872 = vmatpush.bf16.msra.mxu1 %v13365_v28  ;;  %v13597_v28 = vor.u32 %v18662_v45, %v13594_v31  ;;  %v18690_v60 = vld [vmem:[#allocation7 + $0x4ec] sm:$0xf0]  ;;  %v13117_v54 = vor.u32 %v18542_v29, %v13114_v25  ;;  %v13568_v45 = vld [vmem:[#allocation7 + $0x3d8] sm:$0xf]  ;;  %v18654_v43 = vld [vmem:[#allocation7 + $0x3d4] sm:$0xf] }
 0x193   : > { %2957 = vmatpush.bf16.msra.mxu3 %v13849_v62  ;;  %v13752_v62 = vld [vmem:[#allocation7 + $0x550] sm:$0xf] }
 0x194   : > { %2995 = vmatpush.bf16.msra.mxu2 %v13725_v40  ;;  %2901 = vmatpush.bf16.msrb.mxu0 %v13845_v8  ;;  %v18706_v40 = vld [vmem:[#allocation7 + $0x56c] sm:$0xf0]  ;;  %v18755_v8 = vld [vmem:[#allocation7 + $0x6f4] sm:$0xf0] }
 0x195   : > { %v13753_v32 = vor.u32 %v18706_v40, %v13752_v62  ;;  %v13112_v48 = vld [vmem:[#allocation7 + $0x50] sm:$0xf]  ;;  %v13082_v62 = vld [vmem:[#allocation7 + $0x30] sm:$0xf0]  ;;  %v13856_v40 = vld [vmem:[#allocation7 + $0x618] sm:$0xf] }
 0x196   : > { %13992 = vmatmul.msk.bf16.vlgmr.msra.gmra.mxu3 %vm2681_vm4, %v20723_v55  ;;  %2873 = vmatpush.bf16.msra.mxu1 %v13333_v44  ;;  %v18554_v44 = vld [vmem:[#allocation7 + $0xac] sm:$0xf0] }
 0x197   : > { %2964 = vmatpush.bf16.msrb.mxu3 %v13309_v23  ;;  %13985 = vmatmul.msk.bf16.vlgmr.msrb.gmra.mxu0 %vm2681_vm4, %v20723_v55  ;;  %v18558_v23 = vld [vmem:[#allocation7 + $0xd4] sm:$0xf]  ;;  %v13145_v15 = vor.u32 %v18554_v44, %v13144_v53  ;;  %v18546_v16 = vld [vmem:[#allocation7 + $0x6c] sm:$0xf0] }
 0x198   : > { %2908 = vmatpush.bf16.msra.mxu0 %v13305_v27  ;;  %2996 = vmatpush.bf16.msra.mxu2 %v13693_v14  ;;  %v13176_v27 = vld [vmem:[#allocation7 + $0xd0] sm:$0xf]  ;;  %v13181_v34 = vor.u32 %v18558_v23, %v13178_v20  ;;  %v13953_v14 = vor.u32 %v18755_v8, %v13952_v13  ;;  %v13113_v31 = vor.u32 %v18546_v16, %v13112_v48  ;;  %v18659_v23 = vld [vmem:[#allocation7 + $0x3f4] sm:$0xf0]  ;;  %v18591_v20 = vld [vmem:[#allocation7 + $0x1dc] sm:$0xf] }
 0x199   : > { %13982 = vmatmul.msk.bf16.vlgmr.msra.gmra.mxu1 %vm20636_vm3, %v20645_v51  ;;  %v13177_v30 = vor.u32 %v18562_v56, %v13176_v27  ;;  %v13314_v13 = vld [vmem:[#allocation7 + $0x1f8] sm:$0xf0]  ;;  %v13624_v56 = vld [vmem:[#allocation7 + $0x450] sm:$0xf] }
 0x19a   : > { %2936 = vmatpush.bf16.msrb.mxu1 %v13817_v6  ;;  %v13921_v6 = vor.u32 %v18747_v52, %v13920_v58  ;;  %v13317_v9 = vor.u32 %v18591_v20, %v13314_v13  ;;  %v18651_v52 = vld [vmem:[#allocation7 + $0x3b4] sm:$0xf0]  ;;  %v13592_v44 = vld [vmem:[#allocation7 + $0x410] sm:$0xf]  ;;  %v18575_v48 = vld [vmem:[#allocation7 + $0x15c] sm:$0xf] }
 0x19b   : > { %2965 = vmatpush.bf16.msrb.mxu3 %v13277_v24  ;;  %v13146_v24 = vld [vmem:[#allocation7 + $0xb0] sm:$0xf0]  ;;  %v13250_v16 = vld [vmem:[#allocation7 + $0x178] sm:$0xf0] }
 0x19c   : > { %2909 = vmatpush.bf16.msra.mxu0 %v13273_v57  ;;  %2997 = vmatpush.bf16.msra.mxu2 %v13661_v21  ;;  %v13149_v57 = vor.u32 %v18550_v41, %v13146_v24  ;;  %v13688_v21 = vld [vmem:[#allocation7 + $0x4d0] sm:$0xf]  ;;  %v13562_v41 = vld [vmem:[#allocation7 + $0x3f0] sm:$0xf0]  ;;  %v13536_v24 = vld [vmem:[#allocation7 + $0x398] sm:$0xf] }
 0x19d   : > { %v13689_v19 = vor.u32 %v18690_v60, %v13688_v21  ;;  %v18646_v21 = vld [vmem:[#allocation7 + $0x394] sm:$0xf]  ;;  %v13537_v29 = vor.u32 %v18651_v52, %v13536_v24  ;;  %v18567_v20 = vld [vmem:[#allocation7 + $0x11c] sm:$0xf] }
 0x19e   : > { %2937 = vmatpush.bf16.msrb.mxu1 %v13785_v50  ;;  %v13530_v60 = vld [vmem:[#allocation7 + $0x3b0] sm:$0xf0]  ;;  %v13218_v13 = vld [vmem:[#allocation7 + $0x138] sm:$0xf0] }
 0x19f   : > { %2966 = vmatpush.bf16.msrb.mxu3 %v13245_v12  ;;  %v13888_v12 = vld [vmem:[#allocation7 + $0x658] sm:$0xf]  ;;  %v13186_v24 = vld [vmem:[#allocation7 + $0xf8] sm:$0xf0] }
 0x1a0   : > { %2910 = vmatpush.bf16.msra.mxu0 %v13241_v42  ;;  %2998 = vmatpush.bf16.msra.mxu2 %v13629_v61  ;;  %v13656_v42 = vld [vmem:[#allocation7 + $0x490] sm:$0xf]  ;;  %v13889_v50 = vor.u32 %v18739_v1, %v13888_v12  ;;  %v18750_v12 = vld [vmem:[#allocation7 + $0x6d4] sm:$0xf] }
 0x1a1   : > { %v18682_v61 = vld [vmem:[#allocation7 + $0x4ac] sm:$0xf0]  ;;  %v13946_v1 = vld [vmem:[#allocation7 + $0x6f0] sm:$0xf0] }
 0x1a2   : > { %2938 = vmatpush.bf16.msrb.mxu1 %v13753_v32  ;;  %v13657_v8 = vor.u32 %v18682_v61, %v13656_v42  ;;  %v18538_v32 = vld [vmem:[#allocation7 + $0x2c] sm:$0xf0]  ;;  %v18638_v61 = vld [vmem:[#allocation7 + $0x354] sm:$0xf] }
 0x1a3   : > { %2967 = vmatpush.bf16.msrb.mxu3 %v13213_v35  ;;  %v18731_v35 = vld [vmem:[#allocation7 + $0x634] sm:$0xf0] }
 0x1a4   : > { %2911 = vmatpush.bf16.msra.mxu0 %v13209_v33  ;;  %2999 = vmatpush.bf16.msra.mxu2 %v13597_v28  ;;  %v13080_v33 = vld [vmem:[#allocation7 + $0x10] sm:$0xf]  ;;  %v13085_v28 = vor.u32 %v18534_v2, %v13082_v62  ;;  %v13857_v27 = vor.u32 %v18731_v35, %v13856_v40  ;;  %v13498_v2 = vld [vmem:[#allocation7 + $0x370] sm:$0xf0]  ;;  %v13253_v40 = vor.u32 %v18575_v48, %v13250_v16 }
 0x1a5   : > { %v13081_v58 = vor.u32 %v18538_v32, %v13080_v33  ;;  %v18742_v35 = vld [vmem:[#allocation7 + $0x694] sm:$0xf] }
 0x1a6   : > { %2939 = vmatpush.bf16.msrb.mxu1 %v13721_v5  ;;  %v13282_v5 = vld [vmem:[#allocation7 + $0x1b8] sm:$0xf0]  ;;  %v18630_v32 = vld [vmem:[#allocation7 + $0x314] sm:$0xf] }
 0x1a7   : > { %2968 = vmatpush.bf16.msrb.mxu3 %v13181_v34  ;;  %13998 = vmatmul.msk.bf16.vlgmr.msra.gmra.mxu2 %vm20636_vm3, %v20713_v3  ;;  %v18674_v34 = vld [vmem:[#allocation7 + $0x46c] sm:$0xf0] }
 0x1a8   : > { %3066 = vmatpush.bf16.msrb.mxu2 %v13953_v14  ;;  %2912 = vmatpush.bf16.msra.mxu0 %v13177_v30  ;;  %v13569_v14 = vor.u32 %v18659_v23, %v13568_v45  ;;  %v18583_v30 = vld [vmem:[#allocation7 + $0x19c] sm:$0xf]  ;;  %v13625_v53 = vor.u32 %v18674_v34, %v13624_v56  ;;  %v13914_v45 = vld [vmem:[#allocation7 + $0x6b0] sm:$0xf0]  ;;  %v18635_v23 = vld [vmem:[#allocation7 + $0x334] sm:$0xf0]  ;;  %v13221_v56 = vor.u32 %v18567_v20, %v13218_v13 }
 0x1a9   : > { %v13285_v25 = vor.u32 %v18583_v30, %v13282_v5  ;;  %v13917_v33 = vor.u32 %v18742_v35, %v13914_v45  ;;  %v18734_v34 = vld [vmem:[#allocation7 + $0x654] sm:$0xf]  ;;  %v18543_v35 = vld [vmem:[#allocation7 + $0x5c] sm:$0xf] }
 0x1aa   : > { %2940 = vmatpush.bf16.msrb.mxu1 %v13689_v19  ;;  %v18643_v19 = vld [vmem:[#allocation7 + $0x374] sm:$0xf0]  ;;  %v18622_v30 = vld [vmem:[#allocation7 + $0x2d4] sm:$0xf]  ;;  %v13122_v45 = vld [vmem:[#allocation7 + $0x78] sm:$0xf0] }
 0x1ab   : > { %2969 = vmatpush.bf16.msrb.mxu3 %v13149_v57  ;;  %v13565_v57 = vor.u32 %v18654_v43, %v13562_v41  ;;  %v18627_v43 = vld [vmem:[#allocation7 + $0x2f4] sm:$0xf0]  ;;  %v18559_v41 = vld [vmem:[#allocation7 + $0xdc] sm:$0xf]  ;;  %v13434_v5 = vld [vmem:[#allocation7 + $0x2f0] sm:$0xf0] }
 0x1ac   : > { %3067 = vmatpush.bf16.msrb.mxu2 %v13921_v6  ;;  %2913 = vmatpush.bf16.msra.mxu0 %v13145_v15  ;;  %v18666_v6 = vld [vmem:[#allocation7 + $0x42c] sm:$0xf0]  ;;  %v13504_v15 = vld [vmem:[#allocation7 + $0x358] sm:$0xf] }
 0x1ad   : > { %v13593_v42 = vor.u32 %v18666_v6, %v13592_v44  ;;  %v13505_v62 = vor.u32 %v18643_v19, %v13504_v15  ;;  %v13189_v44 = vor.u32 %v18559_v41, %v13186_v24  ;;  %v13850_v6 = vld [vmem:[#allocation7 + $0x630] sm:$0xf0]  ;;  %v13437_v15 = vor.u32 %v18622_v30, %v13434_v5  ;;  %v14496_v24 = vld [vmem:[#allocation7 + $0xac0] sm:$0xf] }
 0x1ae   : > { %2941 = vmatpush.bf16.msrb.mxu1 %v13657_v8  ;;  %v13501_v8 = vor.u32 %v18638_v61, %v13498_v2  ;;  %v18587_v2 = vld [vmem:[#allocation7 + $0x1b4] sm:$0xf0]  ;;  %v18598_v5 = vld [vmem:[#allocation7 + $0x214] sm:$0xf] }
 0x1af   : > { %2970 = vmatpush.bf16.msrb.mxu3 %v13117_v54  ;;  %v13533_v54 = vor.u32 %v18646_v21, %v13530_v60  ;;  %v13312_v21 = vld [vmem:[#allocation7 + $0x1d8] sm:$0xf] }
 0x1b0   : > { %3068 = vmatpush.bf16.msrb.mxu2 %v13889_v50  ;;  %2914 = vmatpush.bf16.msra.mxu0 %v13113_v31  ;;  %v13949_v50 = vor.u32 %v18750_v12, %v13946_v1  ;;  %v13472_v31 = vld [vmem:[#allocation7 + $0x318] sm:$0xf]  ;;  %v18551_v12 = vld [vmem:[#allocation7 + $0x9c] sm:$0xf] }
 0x1b1   : > { %v18595_v60 = vld [vmem:[#allocation7 + $0x1f4] sm:$0xf0]  ;;  %v13154_v1 = vld [vmem:[#allocation7 + $0xb8] sm:$0xf0] }
 0x1b2   : > { %2942 = vmatpush.bf16.msrb.mxu1 %v13625_v53  ;;  %v13313_v48 = vor.u32 %v18595_v60, %v13312_v21  ;;  %v13157_v61 = vor.u32 %v18551_v12, %v13154_v1  ;;  %v18571_v21 = vld [vmem:[#allocation7 + $0x134] sm:$0xf0]  ;;  %v18711_v12 = vld [vmem:[#allocation7 + $0x59c] sm:$0xf] }
 0x1b3   : > { %2971 = vmatpush.bf16.msrb.mxu3 %v13085_v28  ;;  %v13466_v28 = vld [vmem:[#allocation7 + $0x330] sm:$0xf0]  ;;  %v13824_v60 = vld [vmem:[#allocation7 + $0x5d8] sm:$0xf]  ;;  %v13794_v1 = vld [vmem:[#allocation7 + $0x5b8] sm:$0xf0] }
 0x1b4   : > { %3069 = vmatpush.bf16.msrb.mxu2 %v13857_v27  ;;  %2915 = vmatpush.bf16.msra.mxu0 %v13081_v58  ;;  %v13473_v27 = vor.u32 %v18635_v23, %v13472_v31  ;;  %v13469_v58 = vor.u32 %v18630_v32, %v13466_v28  ;;  %v18606_v23 = vld [vmem:[#allocation7 + $0x254] sm:$0xf]  ;;  %v18579_v32 = vld [vmem:[#allocation7 + $0x174] sm:$0xf0]  ;;  %v13125_v28 = vor.u32 %v18543_v35, %v13122_v45 }
 0x1b6   : > { %13994 = vmatmul.msk.bf16.vlgmr.msrb.gmra.mxu3 %vm20636_vm3, %v20642_v49  ;;  %2943 = vmatpush.bf16.msrb.mxu1 %v13593_v42  ;;  %v18614_v42 = vld [vmem:[#allocation7 + $0x294] sm:$0xf] }
 0x1b7   : > { %3034 = vmatpush.bf16.msra.mxu3 %v13569_v14  ;;  %13987 = vmatmul.msk.bf16.vlgmr.msra.gmra.mxu0 %vm20636_vm3, %v20642_v49  ;;  %v13882_v14 = vld [vmem:[#allocation7 + $0x670] sm:$0xf0] }
 0x1b8   : > { %3076 = vmatpush.bf16.msra.mxu2 %v13317_v9  ;;  %2978 = vmatpush.bf16.msrb.mxu0 %v13565_v57  ;;  %v13440_v9 = vld [vmem:[#allocation7 + $0x2d8] sm:$0xf]  ;;  %v13885_v52 = vor.u32 %v18734_v34, %v13882_v14  ;;  %v18726_v57 = vld [vmem:[#allocation7 + $0x614] sm:$0xf]  ;;  %v18535_v34 = vld [vmem:[#allocation7 + $0x1c] sm:$0xf] }
 0x1b9   : > { %14006 = vmatmul.msk.bf16.vlgmr.msrb.gmra.mxu2 %vm2681_vm4, %v20723_v55  ;;  %13991 = vmatmul.msk.bf16.vlgmr.msrb.gmra.mxu1 %vm20636_vm3, %v20713_v3  ;;  %v13441_v53 = vor.u32 %v18627_v43, %v13440_v9  ;;  %v13853_v19 = vor.u32 %v18726_v57, %v13850_v6  ;;  %v13090_v14 = vld [vmem:[#allocation7 + $0x38] sm:$0xf0]  ;;  %v13216_v6 = vld [vmem:[#allocation7 + $0x118] sm:$0xf] }
 0x1ba   : > { %3010 = vmatpush.bf16.msra.mxu1 %v13949_v50  ;;  %v13280_v50 = vld [vmem:[#allocation7 + $0x198] sm:$0xf]  ;;  %v18719_v9 = vld [vmem:[#allocation7 + $0x5dc] sm:$0xf] }
 0x1bb   : > { %3035 = vmatpush.bf16.msra.mxu3 %v13537_v29  ;;  %v13408_v29 = vld [vmem:[#allocation7 + $0x298] sm:$0xf]  ;;  %v13281_v20 = vor.u32 %v18587_v2, %v13280_v50  ;;  %v13826_v43 = vld [vmem:[#allocation7 + $0x5f8] sm:$0xf0] }
 0x1bc   : > { %3077 = vmatpush.bf16.msra.mxu2 %v13285_v25  ;;  %2979 = vmatpush.bf16.msrb.mxu0 %v13533_v54  ;;  %v18619_v25 = vld [vmem:[#allocation7 + $0x2b4] sm:$0xf0]  ;;  %v13402_v54 = vld [vmem:[#allocation7 + $0x2b0] sm:$0xf0]  ;;  %v13829_v57 = vor.u32 %v18719_v9, %v13826_v43  ;;  %v18695_v43 = vld [vmem:[#allocation7 + $0x51c] sm:$0xf] }
 0x1bd   : > { %v13409_v16 = vor.u32 %v18619_v25, %v13408_v29  ;;  %v13405_v31 = vor.u32 %v18614_v42, %v13402_v54  ;;  %v18723_v25 = vld [vmem:[#allocation7 + $0x5f4] sm:$0xf0] }
 0x1be   : > { %3011 = vmatpush.bf16.msra.mxu1 %v13917_v33  ;;  %v13248_v33 = vld [vmem:[#allocation7 + $0x158] sm:$0xf]  ;;  %v13825_v50 = vor.u32 %v18723_v25, %v13824_v60  ;;  %v13698_v25 = vld [vmem:[#allocation7 + $0x4f8] sm:$0xf0] }
 0x1bf   : > { %3036 = vmatpush.bf16.msra.mxu3 %v13505_v62  ;;  %v13376_v62 = vld [vmem:[#allocation7 + $0x258] sm:$0xf] }
 0x1c0   : > { %3078 = vmatpush.bf16.msra.mxu2 %v13253_v40  ;;  %2980 = vmatpush.bf16.msrb.mxu0 %v13501_v8  ;;  %v18611_v40 = vld [vmem:[#allocation7 + $0x274] sm:$0xf0]  ;;  %v13370_v8 = vld [vmem:[#allocation7 + $0x270] sm:$0xf0] }
 0x1c1   : > { %v13377_v13 = vor.u32 %v18611_v40, %v13376_v62  ;;  %v13373_v41 = vor.u32 %v18606_v23, %v13370_v8  ;;  %v13184_v2 = vld [vmem:[#allocation7 + $0xd8] sm:$0xf]  ;;  %v18703_v23 = vld [vmem:[#allocation7 + $0x55c] sm:$0xf]  ;;  %v18864_v8 = vld [vmem:[#allocation7 + $0xa5c] sm:$0xf0] }
 0x1c2   : > { %3012 = vmatpush.bf16.msra.mxu1 %v13885_v52  ;;  %v13249_v52 = vor.u32 %v18579_v32, %v13248_v33  ;;  %v18563_v62 = vld [vmem:[#allocation7 + $0xf4] sm:$0xf0] }
 0x1c3   : > { %3037 = vmatpush.bf16.msra.mxu3 %v13473_v27  ;;  %v13344_v27 = vld [vmem:[#allocation7 + $0x218] sm:$0xf]  ;;  %v2693_v42 = vpop.f32.mrf.mxu1  ;;  %v13185_v33 = vor.u32 %v18563_v62, %v13184_v2  ;;  %v18655_v62 = vld [vmem:[#allocation7 + $0x3dc] sm:$0xf] }
 0x1c4   : > { %3079 = vmatpush.bf16.msra.mxu2 %v13221_v56  ;;  %2981 = vmatpush.bf16.msrb.mxu0 %v13469_v58  ;;  %v18603_v56 = vld [vmem:[#allocation7 + $0x234] sm:$0xf0]  ;;  %v18880_v58 = vld [vmem:[#allocation7 + $0xadc] sm:$0xf0] }
 0x1c5   : > { %v13345_v30 = vor.u32 %v18603_v56, %v13344_v27  ;;  %v14497_v29 = vor.u32 %v18880_v58, %v14496_v24  ;;  %v13792_v40 = vld [vmem:[#allocation7 + $0x598] sm:$0xf]  ;;  %v14400_v24 = vld [vmem:[#allocation7 + $0xa00] sm:$0xf] }
 0x1c6   : > { %3013 = vmatpush.bf16.msra.mxu1 %v13853_v19  ;;  %v14464_v19 = vld [vmem:[#allocation7 + $0xa80] sm:$0xf]  ;;  %v13152_v27 = vld [vmem:[#allocation7 + $0x98] sm:$0xf] }
 0x1c7   : > { %3038 = vmatpush.bf16.msra.mxu3 %v13441_v53  ;;  %v13338_v53 = vld [vmem:[#allocation7 + $0x230] sm:$0xf0]  ;;  %v18555_v56 = vld [vmem:[#allocation7 + $0xb4] sm:$0xf0]  ;;  %v18856_v58 = vld [vmem:[#allocation7 + $0xa1c] sm:$0xf0] }
 0x1c8   : > { %3080 = vmatpush.bf16.msra.mxu2 %v13189_v44  ;;  %2982 = vmatpush.bf16.msrb.mxu0 %v13437_v15  ;;  %v13093_v44 = vor.u32 %v18535_v34, %v13090_v14  ;;  %v13341_v15 = vor.u32 %v18598_v5, %v13338_v53  ;;  %v13760_v34 = vld [vmem:[#allocation7 + $0x558] sm:$0xf] }
 0x1c9   : > { %13999 = vmatmul.msk.bf16.vlgmr.msra.gmra.mxu1 %vm2681_vm4, %v20723_v55  ;;  %v2707_v54 = vpop.f32.mrf.mxu3  ;;  %v18707_v9 = vld [vmem:[#allocation7 + $0x574] sm:$0xf0] }
 0x1ca   : > { %3020 = vmatpush.bf16.msrb.mxu1 %v13313_v48  ;;  %v18872_v48 = vld [vmem:[#allocation7 + $0xa9c] sm:$0xf0]  ;;  %v20785_v35 = vadd.f32 %v2707_v54, %v2693_v42  ;;  %v13761_v5 = vor.u32 %v18707_v9, %v13760_v34  ;;  %v18699_v60 = vld [vmem:[#allocation7 + $0x534] sm:$0xf0]  ;;  %v18647_v9 = vld [vmem:[#allocation7 + $0x39c] sm:$0xf] }
 0x1cb   : > { %3039 = vmatpush.bf16.msra.mxu3 %v13409_v16  ;;  %v13217_v16 = vor.u32 %v18571_v21, %v13216_v6  ;;  %v14465_v45 = vor.u32 %v18872_v48, %v14464_v19  ;;  %v13728_v6 = vld [vmem:[#allocation7 + $0x518] sm:$0xf]  ;;  %v14401_v21 = vor.u32 %v18856_v58, %v14400_v24  ;;  %v2749_v48 = vpop.f32.mrf.mxu2  ;;  %v13634_v24 = vld [vmem:[#allocation7 + $0x478] sm:$0xf0]  ;;  %v14304_v58 = vld [vmem:[#allocation7 + $0x940] sm:$0xf] }
 0x1cc   : > { %3081 = vmatpush.bf16.msra.mxu2 %v13157_v61  ;;  %2983 = vmatpush.bf16.msrb.mxu0 %v13405_v31  ;;  %v13797_v61 = vor.u32 %v18711_v12, %v13794_v1  ;;  %v18715_v31 = vld [vmem:[#allocation7 + $0x5b4] sm:$0xf0]  ;;  %v14368_v12 = vld [vmem:[#allocation7 + $0x9c0] sm:$0xf] }
 0x1cd   : > { %v13793_v32 = vor.u32 %v18715_v31, %v13792_v40  ;;  %v18848_v1 = vld [vmem:[#allocation7 + $0x9dc] sm:$0xf0]  ;;  %v13088_v19 = vld [vmem:[#allocation7 + $0x18] sm:$0xf]  ;;  %v13570_v40 = vld [vmem:[#allocation7 + $0x3f8] sm:$0xf0] }
 0x1ce   : > { %3021 = vmatpush.bf16.msrb.mxu1 %v13281_v20  ;;  %v13762_v20 = vld [vmem:[#allocation7 + $0x578] sm:$0xf0]  ;;  %v18539_v54 = vld [vmem:[#allocation7 + $0x34] sm:$0xf0]  ;;  %v14369_v2 = vor.u32 %v18848_v1, %v14368_v12 }
 0x1cf   : > { %3040 = vmatpush.bf16.msra.mxu3 %v13377_v13  ;;  %v14432_v13 = vld [vmem:[#allocation7 + $0xa40] sm:$0xf]  ;;  %v13666_v31 = vld [vmem:[#allocation7 + $0x4b8] sm:$0xf0] }
 0x1d0   : > { %3082 = vmatpush.bf16.msra.mxu2 %v13125_v28  ;;  %2984 = vmatpush.bf16.msrb.mxu0 %v13373_v41  ;;  %v13765_v28 = vor.u32 %v18703_v23, %v13762_v20  ;;  %v14433_v14 = vor.u32 %v18864_v8, %v14432_v13  ;;  %v13730_v41 = vld [vmem:[#allocation7 + $0x538] sm:$0xf0]  ;;  %v14336_v23 = vld [vmem:[#allocation7 + $0x980] sm:$0xf]  ;;  %v13089_v13 = vor.u32 %v18539_v54, %v13088_v19  ;;  %v18940_v54 = vld [vmem:[#allocation7 + $0xcc4] sm:$0xf] }
 0x1d1   : > { %v13733_v53 = vor.u32 %v18695_v43, %v13730_v41  ;;  %v18840_v20 = vld [vmem:[#allocation7 + $0x99c] sm:$0xf0]  ;;  %v13538_v43 = vld [vmem:[#allocation7 + $0x3b8] sm:$0xf0] }
 0x1d2   : > { %3022 = vmatpush.bf16.msrb.mxu1 %v13249_v52  ;;  %v13153_v52 = vor.u32 %v18555_v56, %v13152_v27  ;;  %v18683_v27 = vld [vmem:[#allocation7 + $0x4b4] sm:$0xf0]  ;;  %v18671_v41 = vld [vmem:[#allocation7 + $0x45c] sm:$0xf]  ;;  %v14272_v19 = vld [vmem:[#allocation7 + $0x900] sm:$0xf] }
 0x1d3   : > { %3041 = vmatpush.bf16.msra.mxu3 %v13345_v30  ;;  %v20796_v30 = vpop.f32.mrf.mxu3  ;;  %v18663_v12 = vld [vmem:[#allocation7 + $0x41c] sm:$0xf] }
 0x1d4   : > { %3083 = vmatpush.bf16.msra.mxu2 %v13093_v44  ;;  %2985 = vmatpush.bf16.msrb.mxu0 %v13341_v15  ;;  %v13120_v44 = vld [vmem:[#allocation7 + $0x58] sm:$0xf]  ;;  %v13602_v1 = vld [vmem:[#allocation7 + $0x438] sm:$0xf0] }
 0x1d6   : > { %14003 = vmatmul.msk.bf16.vlgmr.msra.gmra.mxu3 %vm20636_vm3, %v20645_v51  ;;  %3023 = vmatpush.bf16.msrb.mxu1 %v13217_v16  ;;  %v13729_v16 = vor.u32 %v18699_v60, %v13728_v6  ;;  %v18675_v6 = vld [vmem:[#allocation7 + $0x474] sm:$0xf0]  ;;  %v13637_v60 = vor.u32 %v18671_v41, %v13634_v24  ;;  %v18932_v24 = vld [vmem:[#allocation7 + $0xc84] sm:$0xf] }
 0x1d7   : > { %3104 = vmatpush.bf16.msrb.mxu3 %v13829_v57  ;;  %14008 = vmatmul.msk.bf16.vlgmr.msra.gmra.mxu2 %vm20636_vm3, %v20642_v49  ;;  %v18547_v57 = vld [vmem:[#allocation7 + $0x74] sm:$0xf0] }
 0x1d8   : > { %4566 = vmatpush.bf16.msrb.mxu2 %v14497_v29  ;;  %3048 = vmatpush.bf16.msra.mxu0 %v13825_v50  ;;  %v18687_v29 = vld [vmem:[#allocation7 + $0x4dc] sm:$0xf]  ;;  %v13121_v15 = vor.u32 %v18547_v57, %v13120_v44  ;;  %v13696_v50 = vld [vmem:[#allocation7 + $0x4d8] sm:$0xf]  ;;  %v13541_v44 = vor.u32 %v18647_v9, %v13538_v43  ;;  %v18968_v9 = vld [vmem:[#allocation7 + $0xd9c] sm:$0xf0] }
 0x1d9   : > { %13996 = vmatmul.msk.bf16.vlgmr.msrb.gmra.mxu0 %vm20636_vm3, %v20645_v51  ;;  %v13701_v42 = vor.u32 %v18687_v29, %v13698_v25  ;;  %v13632_v57 = vld [vmem:[#allocation7 + $0x458] sm:$0xf]  ;;  %v13506_v25 = vld [vmem:[#allocation7 + $0x378] sm:$0xf0] }
 0x1da   : > { %3024 = vmatpush.bf16.msrb.mxu1 %v13185_v33 }
 0x1db   : > { %3105 = vmatpush.bf16.msrb.mxu3 %v13797_v61  ;;  %v18691_v61 = vld [vmem:[#allocation7 + $0x4f4] sm:$0xf0]  ;;  %v2763_v8 = vpop.f32.mrf.mxu3 }
 0x1dc   : > { %4567 = vmatpush.bf16.msrb.mxu2 %v14465_v45  ;;  %3049 = vmatpush.bf16.msra.mxu0 %v13793_v32  ;;  %v18679_v45 = vld [vmem:[#allocation7 + $0x49c] sm:$0xf]  ;;  %v13697_v33 = vor.u32 %v18691_v61, %v13696_v50  ;;  %v13573_v32 = vor.u32 %v18655_v62, %v13570_v40  ;;  %v20798_v56 = vadd.f32 %v2763_v8, %v2749_v48  ;;  %v18824_v48 = vld [vmem:[#allocation7 + $0x91c] sm:$0xf0]  ;;  %v14754_v50 = vld [vmem:[#allocation7 + $0xce0] sm:$0xf0] }
 0x1dd   : > { %v13669_v34 = vor.u32 %v18679_v45, %v13666_v31  ;;  %v3175_v40 = vrot.slane %v3173_v22, 7  ;;  %v13605_v45 = vor.u32 %v18663_v12, %v13602_v1  ;;  %v14273_v31 = vor.u32 %v18824_v48, %v14272_v19  ;;  %v18960_v12 = vld [vmem:[#allocation7 + $0xd5c] sm:$0xf0] }
 0x1de   : > { %3025 = vmatpush.bf16.msrb.mxu1 %v13153_v52  ;;  %v18832_v52 = vld [vmem:[#allocation7 + $0x95c] sm:$0xf0]  ;;  %v14757_v8 = vor.u32 %v18940_v54, %v14754_v50 }
 0x1df   : > { %3106 = vmatpush.bf16.msrb.mxu3 %v13765_v28  ;;  %v13664_v28 = vld [vmem:[#allocation7 + $0x498] sm:$0xf]  ;;  %v14305_v29 = vor.u32 %v18832_v52, %v14304_v58  ;;  %v3178_v41 = vor.u32 %v3176_v39, %v3175_v40  ;;  %v14722_v58 = vld [vmem:[#allocation7 + $0xca0] sm:$0xf0]  ;;  %v18743_v39 = vld [vmem:[#allocation7 + $0x69c] sm:$0xf] }
 0x1e0   : > { %4568 = vmatpush.bf16.msrb.mxu2 %v14433_v14  ;;  %3050 = vmatpush.bf16.msra.mxu0 %v13761_v5  ;;  %v14337_v14 = vor.u32 %v18840_v20, %v14336_v23  ;;  %v20800_v5 = vpop.f32.mrf.mxu1  ;;  %v18667_v23 = vld [vmem:[#allocation7 + $0x434] sm:$0xf0] }
 0x1e1   : > { %v20827_v19 = vsel %vm20818_vm6, 0, %v3178_v41  ;;  %v13378_v41 = vld [vmem:[#allocation7 + $0x278] sm:$0xf0] }
 0x1e2   : > { %3026 = vmatpush.bf16.msrb.mxu1 %v13121_v15  ;;  %v20802_v15 = vpop.f32.mrf.mxu2 }
 0x1e3   : > { %3107 = vmatpush.bf16.msrb.mxu3 %v13733_v53  ;;  %v13665_v53 = vor.u32 %v18683_v27, %v13664_v28  ;;  %21793 = vst [vmem:[#allocation19_spill] sm:$0xff] %v20802_v15  ;;  %v20807_v61 = vpop.f32.mrf.mxu3  ;;  %v2721_v20 = vpop.f32.mrf.mxu0  ;;  %v18751_v28 = vld [vmem:[#allocation7 + $0x6dc] sm:$0xf] }
 0x1e4   : > { %4569 = vmatpush.bf16.msrb.mxu2 %v14401_v21  ;;  %3051 = vmatpush.bf16.msra.mxu0 %v13729_v16  ;;  %v18639_v21 = vld [vmem:[#allocation7 + $0x35c] sm:$0xf]  ;;  %v14880_v16 = vld [vmem:[#allocation7 + $0xdc0] sm:$0xf]  ;;  %21794 = vst [vmem:[#allocation20_spill] sm:$0xff] %v20807_v61  ;;  %v2722_v27 = vadd.f32 %v2721_v20, %v20785_v35 }
 0x1e5   : > { %v13509_v62 = vor.u32 %v18639_v21, %v13506_v25  ;;  %v13442_v21 = vld [vmem:[#allocation7 + $0x2f8] sm:$0xf0]  ;;  %v14816_v25 = vld [vmem:[#allocation7 + $0xd40] sm:$0xf]  ;;  %v14186_v35 = vld [vmem:[#allocation7 + $0x868] sm:$0xf0] }
 0x1e6   : > { %3027 = vmatpush.bf16.msrb.mxu1 %v13089_v13  ;;  %v18975_v61 = vld [vmem:[#allocation7 + $0xddc] sm:$0xf] }
 0x1e7   : > { %3108 = vmatpush.bf16.msrb.mxu3 %v13701_v42  ;;  %v18976_v42 = vld [vmem:[#allocation7 + $0xddc] sm:$0xf0] }
 0x1e8   : > { %4570 = vmatpush.bf16.msrb.mxu2 %v14369_v2  ;;  %3052 = vmatpush.bf16.msra.mxu0 %v13697_v33  ;;  %v13633_v2 = vor.u32 %v18675_v6, %v13632_v57  ;;  %v14881_v13 = vor.u32 %v18976_v42, %v14880_v16  ;;  %v18631_v33 = vld [vmem:[#allocation7 + $0x31c] sm:$0xf]  ;;  %v2735_v22 = vpop.f32.mrf.mxu1  ;;  %v18924_v16 = vld [vmem:[#allocation7 + $0xc44] sm:$0xf] }
 0x1e9   : > { %14001 = vmatmul.msk.bf16.vlgmr.msrb.gmra.mxu1 %vm20636_vm3, %v20642_v49  ;;  %v13600_v49 = vld [vmem:[#allocation7 + $0x418] sm:$0xf]  ;;  %v20814_v52 = vadd.f32 %v2735_v22, %v2722_v27  ;;  %v18623_v6 = vld [vmem:[#allocation7 + $0x2dc] sm:$0xf]  ;;  %v14690_v42 = vld [vmem:[#allocation7 + $0xc60] sm:$0xf0] }
 0x1ea   : > { %3090 = vmatpush.bf16.msra.mxu1 %v13573_v32  ;;  %v13474_v32 = vld [vmem:[#allocation7 + $0x338] sm:$0xf0]  ;;  %v13601_v43 = vor.u32 %v18667_v23, %v13600_v49  ;;  %v2805_v1 = vpop.f32.mrf.mxu2  ;;  %v13445_v50 = vor.u32 %v18623_v6, %v13442_v21  ;;  %v14693_v20 = vor.u32 %v18924_v16, %v14690_v42  ;;  %v18812_v27 = vld [vmem:[#allocation7 + $0x8c4] sm:$0xf]  ;;  %v18816_v6 = vld [vmem:[#allocation7 + $0x8dc] sm:$0xf0] }
 0x1eb   : > { %3109 = vmatpush.bf16.msrb.mxu3 %v13669_v34  ;;  %v13954_v34 = vld [vmem:[#allocation7 + $0x6f8] sm:$0xf0]  ;;  %v2819_v48 = vpop.f32.mrf.mxu3  ;;  %v18908_v21 = vld [vmem:[#allocation7 + $0xbc4] sm:$0xf] }
 0x1ec   : > { %4571 = vmatpush.bf16.msrb.mxu2 %v14337_v14  ;;  %3053 = vmatpush.bf16.msra.mxu0 %v13665_v53  ;;  %v14848_v14 = vld [vmem:[#allocation7 + $0xd80] sm:$0xf]  ;;  %v13477_v53 = vor.u32 %v18631_v33, %v13474_v32  ;;  %v20830_v54 = vadd.f32 %v2819_v48, %v2805_v1  ;;  %v18735_v49 = vld [vmem:[#allocation7 + $0x65c] sm:$0xf]  ;;  %v18916_v33 = vld [vmem:[#allocation7 + $0xc04] sm:$0xf] }
 0x1ed   : > { %v14849_v57 = vor.u32 %v18968_v9, %v14848_v14  ;;  %v13890_v23 = vld [vmem:[#allocation7 + $0x678] sm:$0xf0] }
 0x1ee   : > { %3091 = vmatpush.bf16.msra.mxu1 %v13541_v44  ;;  %v13957_v44 = vor.u32 %v18751_v28, %v13954_v34  ;;  %v14658_v28 = vld [vmem:[#allocation7 + $0xc20] sm:$0xf0]  ;;  %v13893_v9 = vor.u32 %v18735_v49, %v13890_v23  ;;  %v18599_v48 = vld [vmem:[#allocation7 + $0x21c] sm:$0xf]  ;;  %v18808_v23 = vld [vmem:[#allocation7 + $0x89c] sm:$0xf0] }
 0x1ef   : > { %3110 = vmatpush.bf16.msrb.mxu3 %v13637_v60  ;;  %v14725_v60 = vor.u32 %v18932_v24, %v14722_v58  ;;  %v14242_v34 = vld [vmem:[#allocation7 + $0x8e0] sm:$0xf0]  ;;  %v14661_v24 = vor.u32 %v18916_v33, %v14658_v28  ;;  %v13346_v16 = vld [vmem:[#allocation7 + $0x238] sm:$0xf0] }
 0x1f0   : > { %4572 = vmatpush.bf16.msrb.mxu2 %v14305_v29  ;;  %3054 = vmatpush.bf16.msra.mxu0 %v13633_v2  ;;  %v13922_v29 = vld [vmem:[#allocation7 + $0x6b8] sm:$0xf0]  ;;  %v20837_v32 = vpop.f32.mrf.mxu1  ;;  %v14245_v58 = vor.u32 %v18812_v27, %v14242_v34  ;;  %v13349_v33 = vor.u32 %v18599_v48, %v13346_v16  ;;  %v18796_v28 = vld [vmem:[#allocation7 + $0x844] sm:$0xf] }
 0x1f1   : > { %v18615_v2 = vld [vmem:[#allocation7 + $0x29c] sm:$0xf]  ;;  %v13925_v40 = vor.u32 %v18743_v39, %v13922_v29  ;;  %21797 = vst [vmem:[#allocation21_spill] sm:$0xff] %v20837_v32  ;;  %v14626_v39 = vld [vmem:[#allocation7 + $0xbe0] sm:$0xf0] }
 0x1f2   : > { %3092 = vmatpush.bf16.msra.mxu1 %v13509_v62  ;;  %v20832_v62 = vpop.f32.mrf.mxu0  ;;  %v18804_v29 = vld [vmem:[#allocation7 + $0x884] sm:$0xf]  ;;  %v15752_v32 = vld [vmem:[#allocation7 + $0x1480] sm:$0xf] }
 0x1f3   : > { %3111 = vmatpush.bf16.msrb.mxu3 %v13605_v45  ;;  %v14817_v45 = vor.u32 %v18960_v12, %v14816_v25  ;;  %v14210_v25 = vld [vmem:[#allocation7 + $0x8a0] sm:$0xf0] }
 0x1f4   : > { %4573 = vmatpush.bf16.msrb.mxu2 %v14273_v31  ;;  %3055 = vmatpush.bf16.msra.mxu0 %v13601_v43  ;;  %v13410_v31 = vld [vmem:[#allocation7 + $0x2b8] sm:$0xf0]  ;;  %v14213_v49 = vor.u32 %v18804_v29, %v14210_v25 }
 0x1f5   : > { %v13413_v14 = vor.u32 %v18615_v2, %v13410_v31  ;;  %v18607_v43 = vld [vmem:[#allocation7 + $0x25c] sm:$0xf]  ;;  %v14208_v2 = vld [vmem:[#allocation7 + $0x880] sm:$0xf] }
 0x1f6   : > { %14012 = vmatmul.msk.bf16.vlgmr.msrb.gmra.mxu3 %vm20636_vm3, %v20713_v3  ;;  %3093 = vmatpush.bf16.msra.mxu1 %v13477_v53  ;;  %v18727_v53 = vld [vmem:[#allocation7 + $0x61c] sm:$0xf] }
 0x1f7   : > { %4598 = vmatpush.bf16.msra.mxu3 %v14881_v13  ;;  %4574 = vmatmul.bf16.vlgmr.msrb.gmra.mxu2 %v20827_v19  ;;  %v14784_v13 = vld [vmem:[#allocation7 + $0xd00] sm:$0xf] }
 0x1f8   : > { %4636 = vmatpush.bf16.msra.mxu2 %v14757_v8  ;;  %3122 = vmatpush.bf16.msrb.mxu0 %v13957_v44  ;;  %v18952_v8 = vld [vmem:[#allocation7 + $0xd1c] sm:$0xf0]  ;;  %v13858_v44 = vld [vmem:[#allocation7 + $0x638] sm:$0xf0]  ;;  %v2777_v31 = vpop.f32.mrf.mxu1 }
 0x1f9   : > { %14005 = vmatmul.msk.bf16.vlgmr.msra.gmra.mxu0 %vm20636_vm3, %v20713_v3  ;;  %v14785_v22 = vor.u32 %v18952_v8, %v14784_v13  ;;  %v3189_v3 = vrot.slane %v3187_v0, 7  ;;  %v13861_v1 = vor.u32 %v18727_v53, %v13858_v44  ;;  %v14594_v13 = vld [vmem:[#allocation7 + $0xba0] sm:$0xf0]  ;;  %v2778_v8 = vadd.f32 %v2777_v31, %v20798_v56 }
 0x1fa   : > { %3094 = vmatpush.bf16.msra.mxu1 %v13445_v50  ;;  %v2791_v12 = vpop.f32.mrf.mxu0  ;;  %v14629_v50 = vor.u32 %v18908_v21, %v14626_v39  ;;  %v14562_v53 = vld [vmem:[#allocation7 + $0xb60] sm:$0xf0]  ;;  %v14144_v39 = vld [vmem:[#allocation7 + $0x800] sm:$0xf] }
 0x1fb   : > { %4599 = vmatpush.bf16.msra.mxu3 %v14849_v57  ;;  %v14240_v57 = vld [vmem:[#allocation7 + $0x8c0] sm:$0xf]  ;;  %v3192_v0 = vor.u32 %v3190_v59, %v3189_v3  ;;  %v14178_v59 = vld [vmem:[#allocation7 + $0x860] sm:$0xf0] }
 0x1fc   : > { %4637 = vmatpush.bf16.msra.mxu2 %v14725_v60  ;;  %3123 = vmatpush.bf16.msrb.mxu0 %v13925_v40  ;;  %v13381_v60 = vor.u32 %v18607_v43, %v13378_v41  ;;  %v14241_v42 = vor.u32 %v18816_v6, %v14240_v57  ;;  %v14752_v40 = vld [vmem:[#allocation7 + $0xcc0] sm:$0xf]  ;;  %v14181_v56 = vor.u32 %v18796_v28, %v14178_v59  ;;  %v18788_v44 = vld [vmem:[#allocation7 + $0x804] sm:$0xf] }
 0x1fd   : > { %v20846_v27 = vsel %vm20818_vm6, 0, %v3192_v0  ;;  %v14176_v43 = vld [vmem:[#allocation7 + $0x840] sm:$0xf]  ;;  %v14146_v57 = vld [vmem:[#allocation7 + $0x820] sm:$0xf0] }
 0x1fe   : > { %3095 = vmatpush.bf16.msra.mxu1 %v13413_v14  ;;  %v20848_v14 = vadd.f32 %v2791_v12, %v2778_v8  ;;  %v14720_v41 = vld [vmem:[#allocation7 + $0xc80] sm:$0xf]  ;;  %v14149_v16 = vor.u32 %v18788_v44, %v14146_v57  ;;  %v14082_v59 = vld [vmem:[#allocation7 + $0x7a0] sm:$0xf0] }
 0x1ff   : > { %4600 = vmatpush.bf16.msra.mxu3 %v14817_v45  ;;  %v18944_v45 = vld [vmem:[#allocation7 + $0xcdc] sm:$0xf0] }
 0x200   : > { %4638 = vmatpush.bf16.msra.mxu2 %v14693_v20  ;;  %3124 = vmatpush.bf16.msrb.mxu0 %v13893_v9  ;;  %v18900_v20 = vld [vmem:[#allocation7 + $0xb84] sm:$0xf]  ;;  %v14753_v34 = vor.u32 %v18944_v45, %v14752_v40  ;;  %v14209_v9 = vor.u32 %v18808_v23, %v14208_v2  ;;  %v18936_v3 = vld [vmem:[#allocation7 + $0xc9c] sm:$0xf0]  ;;  %v20858_v48 = vpop.f32.mrf.mxu1  ;;  %v14888_v40 = vld [vmem:[#allocation7 + $0xdc8] sm:$0xf] }
 0x201   : > { %v14721_v21 = vor.u32 %v18936_v3, %v14720_v41  ;;  %v18792_v12 = vld [vmem:[#allocation7 + $0x81c] sm:$0xf0]  ;;  %21799 = vst [vmem:[#allocation23_spill] sm:$0xff] %v20858_v48  ;;  %v18780_v2 = vld [vmem:[#allocation7 + $0x7c4] sm:$0xf] }
 0x202   : > { %3096 = vmatpush.bf16.msra.mxu1 %v13381_v60  ;;  %v20852_v6 = vpop.f32.mrf.mxu0  ;;  %v3182_v60 = vrot.slane %v3180_v36, 7  ;;  %v18928_v0 = vld [vmem:[#allocation7 + $0xc5c] sm:$0xf0]  ;;  %v14114_v36 = vld [vmem:[#allocation7 + $0x7e0] sm:$0xf0] }
 0x203   : > { %4601 = vmatpush.bf16.msra.mxu3 %v14785_v22  ;;  %v14597_v22 = vor.u32 %v18900_v20, %v14594_v13  ;;  %21798 = vst [vmem:[#allocation22_spill] sm:$0xff] %v20852_v6  ;;  %v18977_v45 = vld [vmem:[#allocation7 + $0xde4] sm:$0xf0]  ;;  %v14656_v20 = vld [vmem:[#allocation7 + $0xc00] sm:$0xf]  ;;  %v14117_v8 = vor.u32 %v18780_v2, %v14114_v36 }
 0x204   : > { %4639 = vmatpush.bf16.msra.mxu2 %v14661_v24  ;;  %3125 = vmatpush.bf16.msrb.mxu0 %v13861_v1  ;;  %v18800_v24 = vld [vmem:[#allocation7 + $0x85c] sm:$0xf0]  ;;  %v3185_v23 = vor.u32 %v3183_v47, %v3182_v60  ;;  %v14050_v60 = vld [vmem:[#allocation7 + $0x760] sm:$0xf0]  ;;  %v18970_v6 = vld [vmem:[#allocation7 + $0xdac] sm:$0xf0] }
 0x205   : > { %v14177_v29 = vor.u32 %v18800_v24, %v14176_v43  ;;  %v14688_v1 = vld [vmem:[#allocation7 + $0xc40] sm:$0xf] }
 0x206   : > { %14910 = vmatmul.msk.bf16.vlgmr.msra.gmra.mxu3 %vm2681_vm4, %v20846_v27  ;;  %3097 = vmatpush.bf16.msra.mxu1 %v13349_v33  ;;  %v14689_v31 = vor.u32 %v18928_v0, %v14688_v1  ;;  %v18920_v13 = vld [vmem:[#allocation7 + $0xc1c] sm:$0xf0]  ;;  %v14889_v33 = vor.u32 %v18977_v45, %v14888_v40  ;;  %v20867_v41 = vsel %vm20818_vm6, 0, %v3185_v23  ;;  %v3168_v0 = vrot.slane %v3166_v38, 7  ;;  %v18756_v45 = vld [vmem:[#allocation7 + $0x704] sm:$0xf] }
 0x207   : > { %4608 = vmatpush.bf16.msrb.mxu3 %v14245_v58  ;;  %v18892_v58 = vld [vmem:[#allocation7 + $0xb44] sm:$0xf]  ;;  %v14112_v28 = vld [vmem:[#allocation7 + $0x7c0] sm:$0xf]  ;;  %v14504_v23 = vld [vmem:[#allocation7 + $0xac8] sm:$0xf] }
 0x208   : > { %4552 = vmatpush.bf16.msra.mxu0 %v14241_v42  ;;  %4640 = vmatpush.bf16.msra.mxu2 %v14629_v50  ;;  %v14565_v25 = vor.u32 %v18892_v58, %v14562_v53  ;;  %v18884_v42 = vld [vmem:[#allocation7 + $0xb04] sm:$0xf]  ;;  %v14113_v47 = vor.u32 %v18784_v63, %v14112_v28  ;;  %v14624_v3 = vld [vmem:[#allocation7 + $0xbc0] sm:$0xf]  ;;  %v2847_v58 = vpop.f32.mrf.mxu1  ;;  %v18881_v38 = vld [vmem:[#allocation7 + $0xae4] sm:$0xf0] }
 0x209   : > { %14013 = vmatmul.msk.bf16.vlgmr.msrb.gmra.mxu0 %vm2681_vm4, %v20723_v55  ;;  %v14530_v50 = vld [vmem:[#allocation7 + $0xb20] sm:$0xf0]  ;;  %14010 = vmatmul.msk.bf16.vlgmr.msra.gmra.mxu1 %vm20636_vm3, %v20645_v51  ;;  %v14080_v57 = vld [vmem:[#allocation7 + $0x780] sm:$0xf] }
 0x20a   : > { %4580 = vmatpush.bf16.msrb.mxu1 %v14753_v34  ;;  %v14533_v55 = vor.u32 %v18884_v42, %v14530_v50  ;;  %v18772_v51 = vld [vmem:[#allocation7 + $0x784] sm:$0xf]  ;;  %v14856_v34 = vld [vmem:[#allocation7 + $0xd88] sm:$0xf]  ;;  %v2833_v43 = vpop.f32.mrf.mxu0  ;;  %v14592_v42 = vld [vmem:[#allocation7 + $0xb80] sm:$0xf] }
 0x20b   : > { %4609 = vmatpush.bf16.msrb.mxu3 %v14213_v49  ;;  %v14145_v49 = vor.u32 %v18792_v12, %v14144_v39  ;;  %v2834_v24 = vadd.f32 %v2833_v43, %v20830_v54  ;;  %v14085_v53 = vor.u32 %v18772_v51, %v14082_v59  ;;  %v18764_v39 = vld [vmem:[#allocation7 + $0x744] sm:$0xf]  ;;  %v18904_v50 = vld [vmem:[#allocation7 + $0xb9c] sm:$0xf0]  ;;  %v3171_v59 = vor.u32 %v3169_v4, %v3168_v0  ;;  %v18873_v4 = vld [vmem:[#allocation7 + $0xaa4] sm:$0xf0] }
 0x20c   : > { %4553 = vmatpush.bf16.msra.mxu0 %v14209_v9  ;;  %4641 = vmatpush.bf16.msra.mxu2 %v14597_v22  ;;  %v18969_v9 = vld [vmem:[#allocation7 + $0xda4] sm:$0xf0]  ;;  %v14657_v22 = vor.u32 %v18920_v13, %v14656_v20  ;;  %v14053_v2 = vor.u32 %v18764_v39, %v14050_v60  ;;  %v18768_v40 = vld [vmem:[#allocation7 + $0x75c] sm:$0xf0]  ;;  %v20875_v20 = vpop.f32.mrf.mxu2  ;;  %v14593_v13 = vor.u32 %v18904_v50, %v14592_v42  ;;  %v18805_v39 = vld [vmem:[#allocation7 + $0x88c] sm:$0xf] }
 0x20d   : > { %v14857_v44 = vor.u32 %v18969_v9, %v14856_v34  ;;  %v20871_v12 = vadd.f32 %v2847_v58, %v2834_v24  ;;  %21800 = vst [vmem:[#allocation24_spill] sm:$0xff] %v20875_v20  ;;  %v14560_v63 = vld [vmem:[#allocation7 + $0xb40] sm:$0xf]  ;;  %v18876_v24 = vld [vmem:[#allocation7 + $0xac4] sm:$0xf] }
 0x20e   : > { %4581 = vmatpush.bf16.msrb.mxu1 %v14721_v21  ;;  %v18776_v21 = vld [vmem:[#allocation7 + $0x79c] sm:$0xf0]  ;;  %v14498_v58 = vld [vmem:[#allocation7 + $0xae0] sm:$0xf0]  ;;  %v14218_v60 = vld [vmem:[#allocation7 + $0x8a8] sm:$0xf0] }
 0x20f   : > { %4610 = vmatpush.bf16.msrb.mxu3 %v14181_v56  ;;  %v18912_v56 = vld [vmem:[#allocation7 + $0xbdc] sm:$0xf0]  ;;  %v14081_v54 = vor.u32 %v18776_v21, %v14080_v57  ;;  %v14501_v0 = vor.u32 %v18876_v24, %v14498_v58  ;;  %v14466_v42 = vld [vmem:[#allocation7 + $0xaa0] sm:$0xf0]  ;;  %v14154_v24 = vld [vmem:[#allocation7 + $0x828] sm:$0xf0] }
 0x210   : > { %4554 = vmatpush.bf16.msra.mxu0 %v14177_v29  ;;  %4642 = vmatpush.bf16.msra.mxu2 %v14565_v25  ;;  %v14824_v29 = vld [vmem:[#allocation7 + $0xd48] sm:$0xf]  ;;  %v14625_v1 = vor.u32 %v18912_v56, %v14624_v3  ;;  %v18896_v51 = vld [vmem:[#allocation7 + $0xb5c] sm:$0xf0]  ;;  %v20879_v34 = vpop.f32.mrf.mxu1  ;;  %v14505_v3 = vor.u32 %v18881_v38, %v14504_v23  ;;  %v14864_v20 = vld [vmem:[#allocation7 + $0xd90] sm:$0xf] }
 0x211   : > { %v18961_v25 = vld [vmem:[#allocation7 + $0xd64] sm:$0xf0]  ;;  %21801 = vst [vmem:[#allocation25_spill] sm:$0xff] %v20879_v34  ;;  %v14016_v43 = vld [vmem:[#allocation7 + $0x700] sm:$0xf]  ;;  %v14561_v21 = vor.u32 %v18896_v51, %v14560_v63 }
 0x212   : > { %4582 = vmatpush.bf16.msrb.mxu1 %v14689_v31  ;;  %v14825_v36 = vor.u32 %v18961_v25, %v14824_v29  ;;  %v14018_v31 = vld [vmem:[#allocation7 + $0x720] sm:$0xf0]  ;;  %v20883_v57 = vpop.f32.mrf.mxu0  ;;  %v20887_v25 = vsel %vm20818_vm6, 0, %v3171_v59 }
 0x213   : > { %4611 = vmatpush.bf16.msrb.mxu3 %v14149_v16  ;;  %v14048_v16 = vld [vmem:[#allocation7 + $0x740] sm:$0xf]  ;;  %v14021_v9 = vor.u32 %v18756_v45, %v14018_v31  ;;  %21803 = vst [vmem:[#allocation27_spill] sm:$0xff] %v20883_v57  ;;  %v14440_v45 = vld [vmem:[#allocation7 + $0xa48] sm:$0xf] }
 0x214   : > { %4555 = vmatpush.bf16.msra.mxu0 %v14145_v49  ;;  %4643 = vmatpush.bf16.msra.mxu2 %v14533_v55  ;;  %v14792_v49 = vld [vmem:[#allocation7 + $0xd08] sm:$0xf]  ;;  %v14049_v28 = vor.u32 %v18768_v40, %v14048_v16  ;;  %v18868_v16 = vld [vmem:[#allocation7 + $0xa84] sm:$0xf]  ;;  %v2861_v23 = vpop.f32.mrf.mxu2 }
 0x215   : > { %v18953_v55 = vld [vmem:[#allocation7 + $0xd24] sm:$0xf0]  ;;  %v14882_v40 = vld [vmem:[#allocation7 + $0xde0] sm:$0xf0]  ;;  %v14469_v38 = vor.u32 %v18868_v16, %v14466_v42 }
 0x216   : > { %4583 = vmatpush.bf16.msrb.mxu1 %v14657_v22  ;;  %v14793_v22 = vor.u32 %v18953_v55, %v14792_v49  ;;  %v18865_v31 = vld [vmem:[#allocation7 + $0xa64] sm:$0xf0]  ;;  %v18797_v49 = vld [vmem:[#allocation7 + $0x84c] sm:$0xf]  ;;  %v14818_v16 = vld [vmem:[#allocation7 + $0xd60] sm:$0xf0] }
 0x217   : > { %4612 = vmatpush.bf16.msrb.mxu3 %v14117_v8  ;;  %4644 = vmatmul.bf16.vlgmr.msra.gmra.mxu2 %v20867_v41  ;;  %v18813_v8 = vld [vmem:[#allocation7 + $0x8cc] sm:$0xf]  ;;  %v14441_v51 = vor.u32 %v18865_v31, %v14440_v45  ;;  %v14189_v59 = vor.u32 %v18797_v49, %v14186_v35  ;;  %v14376_v42 = vld [vmem:[#allocation7 + $0x9c8] sm:$0xf]  ;;  %v18844_v31 = vld [vmem:[#allocation7 + $0x9c4] sm:$0xf] }
 0x218   : > { %4710 = vmatpush.bf16.msrb.mxu2 %v14889_v33  ;;  %4556 = vmatpush.bf16.msra.mxu0 %v14113_v47  ;;  %v14250_v33 = vld [vmem:[#allocation7 + $0x8e8] sm:$0xf0]  ;;  %v18760_v47 = vld [vmem:[#allocation7 + $0x71c] sm:$0xf0]  ;;  %v14370_v49 = vld [vmem:[#allocation7 + $0x9e0] sm:$0xf0] }
 0x219   : > { %v14253_v56 = vor.u32 %v18813_v8, %v14250_v33  ;;  %v14017_v29 = vor.u32 %v18760_v47, %v14016_v43  ;;  %v18860_v33 = vld [vmem:[#allocation7 + $0xa44] sm:$0xf]  ;;  %v14408_v43 = vld [vmem:[#allocation7 + $0xa08] sm:$0xf] }
 0x21a   : > { %4584 = vmatpush.bf16.msrb.mxu1 %v14625_v1  ;;  %v14528_v1 = vld [vmem:[#allocation7 + $0xb00] sm:$0xf] }
 0x21b   : > { %4613 = vmatpush.bf16.msrb.mxu3 %v14085_v53  ;;  %v14472_v53 = vld [vmem:[#allocation7 + $0xa88] sm:$0xf] }
 0x21c   : > { %4711 = vmatpush.bf16.msrb.mxu2 %v14857_v44  ;;  %4557 = vmatpush.bf16.msra.mxu0 %v14081_v54  ;;  %v20881_v44 = vpop.f32.mrf.mxu3  ;;  %v18888_v54 = vld [vmem:[#allocation7 + $0xb1c] sm:$0xf0]  ;;  %v14473_v50 = vor.u32 %v18873_v4, %v14472_v53  ;;  %v2903_v53 = vpop.f32.mrf.mxu0 }
 0x21d   : > { %21802 = vst [vmem:[#allocation26_spill] sm:$0xff] %v20881_v44  ;;  %v14529_v55 = vor.u32 %v18888_v54, %v14528_v1  ;;  %v18956_v54 = vld [vmem:[#allocation7 + $0xd44] sm:$0xf]  ;;  %v14890_v44 = vld [vmem:[#allocation7 + $0xde8] sm:$0xf0] }
 0x21e   : > { %4585 = vmatpush.bf16.msrb.mxu1 %v14593_v13  ;;  %v2875_v13 = vpop.f32.mrf.mxu1  ;;  %v14821_v45 = vor.u32 %v18956_v54, %v14818_v16 }
 0x21f   : > { %4614 = vmatpush.bf16.msrb.mxu3 %v14053_v2  ;;  %v14221_v2 = vor.u32 %v18805_v39, %v14218_v60  ;;  %v2876_v63 = vadd.f32 %v2875_v13, %v2861_v23  ;;  %v18852_v39 = vld [vmem:[#allocation7 + $0xa04] sm:$0xf] }
 0x220   : > { %4712 = vmatpush.bf16.msrb.mxu2 %v14825_v36  ;;  %4558 = vmatpush.bf16.msra.mxu0 %v14049_v28  ;;  %v18972_v36 = vld [vmem:[#allocation7 + $0xdc4] sm:$0xf] }
 0x221   : > { %v14885_v8 = vor.u32 %v18972_v36, %v14882_v40  ;;  %v14434_v28 = vld [vmem:[#allocation7 + $0xa60] sm:$0xf0]  ;;  %v14122_v36 = vld [vmem:[#allocation7 + $0x7e8] sm:$0xf0] }
 0x222   : > { %4586 = vmatpush.bf16.msrb.mxu1 %v14561_v21  ;;  %v14437_v21 = vor.u32 %v18860_v33, %v14434_v28  ;;  %v14402_v60 = vld [vmem:[#allocation7 + $0xa20] sm:$0xf0]  ;;  %v14344_v33 = vld [vmem:[#allocation7 + $0x988] sm:$0xf] }
 0x223   : > { %4615 = vmatpush.bf16.msrb.mxu3 %v14021_v9  ;;  %v18964_v9 = vld [vmem:[#allocation7 + $0xd84] sm:$0xf]  ;;  %v14405_v40 = vor.u32 %v18852_v39, %v14402_v60  ;;  %v18841_v28 = vld [vmem:[#allocation7 + $0x9a4] sm:$0xf0]  ;;  %v14058_v39 = vld [vmem:[#allocation7 + $0x768] sm:$0xf0] }
 0x224   : > { %4713 = vmatpush.bf16.msrb.mxu2 %v14793_v22  ;;  %4559 = vmatpush.bf16.msra.mxu0 %v14017_v29  ;;  %v14850_v22 = vld [vmem:[#allocation7 + $0xda0] sm:$0xf0]  ;;  %v2889_v47 = vpop.f32.mrf.mxu3  ;;  %v20898_v54 = vpop.f32.mrf.mxu0 }
 0x225   : > { %v2890_v58 = vadd.f32 %v2889_v47, %v2876_v63  ;;  %v14853_v4 = vor.u32 %v18964_v9, %v14850_v22  ;;  %v18948_v23 = vld [vmem:[#allocation7 + $0xd04] sm:$0xf]  ;;  %v18773_v63 = vld [vmem:[#allocation7 + $0x78c] sm:$0xf] }
 0x226   : > { %4616 = vmatmul.bf16.vlgmr.msrb.gmra.mxu3 %v20887_v25  ;;  %4587 = vmatpush.bf16.msrb.mxu1 %v14529_v55  ;;  %v14786_v13 = vld [vmem:[#allocation7 + $0xd20] sm:$0xf0] }
 0x227   : > { %4678 = vmatpush.bf16.msra.mxu3 %v14505_v3  ;;  %4560 = vmatmul.bf16.vlgmr.msra.gmra.mxu0 %v20887_v25  ;;  %v18857_v3 = vld [vmem:[#allocation7 + $0xa24] sm:$0xf0]  ;;  %v20893_v29 = vadd.f32 %v2903_v53, %v2890_v58  ;;  %v14789_v9 = vor.u32 %v18948_v23, %v14786_v13  ;;  %v18836_v47 = vld [vmem:[#allocation7 + $0x984] sm:$0xf]  ;;  %v14762_v23 = vld [vmem:[#allocation7 + $0xce8] sm:$0xf0] }
 0x228   : > { %4720 = vmatpush.bf16.msra.mxu2 %v14253_v56  ;;  %4622 = vmatpush.bf16.msrb.mxu0 %v14501_v0  ;;  %v18789_v56 = vld [vmem:[#allocation7 + $0x80c] sm:$0xf]  ;;  %v14409_v1 = vor.u32 %v18857_v3, %v14408_v43  ;;  %v14345_v43 = vor.u32 %v18841_v28, %v14344_v33  ;;  %v14338_v3 = vld [vmem:[#allocation7 + $0x9a0] sm:$0xf0]  ;;  %v18809_v58 = vld [vmem:[#allocation7 + $0x8a4] sm:$0xf0]  ;;  %v20902_v28 = vpop.f32.mrf.mxu1 }
 0x229   : > { %14912 = vmatmul.msk.bf16.vlgmr.msrb.gmra.mxu2 %vm2681_vm4, %v20846_v27  ;;  %v14157_v0 = vor.u32 %v18789_v56, %v14154_v24  ;;  %4588 = vmatmul.bf16.vlgmr.msrb.gmra.mxu1 %v20867_v41  ;;  %v14216_v56 = vld [vmem:[#allocation7 + $0x888] sm:$0xf]  ;;  %v14341_v60 = vor.u32 %v18836_v47, %v14338_v3 }
 0x22a   : > { %4654 = vmatpush.bf16.msra.mxu1 %v14885_v8  ;;  %v18817_v8 = vld [vmem:[#allocation7 + $0x8e4] sm:$0xf0]  ;;  %v14217_v16 = vor.u32 %v18809_v58, %v14216_v56 }
 0x22b   : > { %4679 = vmatpush.bf16.msra.mxu3 %v14473_v50  ;;  %v18849_v50 = vld [vmem:[#allocation7 + $0x9e4] sm:$0xf0] }
 0x22c   : > { %4721 = vmatpush.bf16.msra.mxu2 %v14221_v2  ;;  %4623 = vmatpush.bf16.msrb.mxu0 %v14469_v38  ;;  %v18781_v2 = vld [vmem:[#allocation7 + $0x7cc] sm:$0xf]  ;;  %v14377_v35 = vor.u32 %v18849_v50, %v14376_v42  ;;  %v14248_v38 = vld [vmem:[#allocation7 + $0x8c8] sm:$0xf]  ;;  %v14306_v50 = vld [vmem:[#allocation7 + $0x960] sm:$0xf0]  ;;  %v20900_v33 = vpop.f32.mrf.mxu3 }
 0x22d   : > { %v14125_v55 = vor.u32 %v18781_v2, %v14122_v36  ;;  %v14249_v22 = vor.u32 %v18817_v8, %v14248_v38  ;;  %v14312_v53 = vld [vmem:[#allocation7 + $0x948] sm:$0xf]  ;;  %v14512_v38 = vld [vmem:[#allocation7 + $0xad0] sm:$0xf] }
 0x22e   : > { %4655 = vmatpush.bf16.msra.mxu1 %v14853_v4  ;;  %v18765_v4 = vld [vmem:[#allocation7 + $0x74c] sm:$0xf]  ;;  %v14184_v2 = vld [vmem:[#allocation7 + $0x848] sm:$0xf]  ;;  %v18882_v8 = vld [vmem:[#allocation7 + $0xaec] sm:$0xf0] }
 0x22f   : > { %4680 = vmatpush.bf16.msra.mxu3 %v14441_v51  ;;  %v14090_v51 = vld [vmem:[#allocation7 + $0x7a8] sm:$0xf0]  ;;  %v18801_v36 = vld [vmem:[#allocation7 + $0x864] sm:$0xf0] }
 0x230   : > { %4722 = vmatpush.bf16.msra.mxu2 %v14189_v59  ;;  %4624 = vmatpush.bf16.msrb.mxu0 %v14437_v21  ;;  %v14373_v59 = vor.u32 %v18844_v31, %v14370_v49  ;;  %v14093_v24 = vor.u32 %v18773_v63, %v14090_v51  ;;  %v18833_v21 = vld [vmem:[#allocation7 + $0x964] sm:$0xf0]  ;;  %v18757_v49 = vld [vmem:[#allocation7 + $0x70c] sm:$0xf]  ;;  %v14185_v63 = vor.u32 %v18801_v36, %v14184_v2 }
 0x231   : > { %v14313_v42 = vor.u32 %v18833_v21, %v14312_v53  ;;  %v18825_v31 = vld [vmem:[#allocation7 + $0x924] sm:$0xf0]  ;;  %v18933_v53 = vld [vmem:[#allocation7 + $0xc8c] sm:$0xf] }
 0x232   : > { %4656 = vmatpush.bf16.msra.mxu1 %v14821_v45  ;;  %v14280_v45 = vld [vmem:[#allocation7 + $0x908] sm:$0xf]  ;;  %v14730_v21 = vld [vmem:[#allocation7 + $0xca8] sm:$0xf0] }
 0x233   : > { %4681 = vmatpush.bf16.msra.mxu3 %v14409_v1  ;;  %v18828_v1 = vld [vmem:[#allocation7 + $0x944] sm:$0xf]  ;;  %v14281_v51 = vor.u32 %v18825_v31, %v14280_v45  ;;  %v14152_v47 = vld [vmem:[#allocation7 + $0x808] sm:$0xf]  ;;  %v14733_v36 = vor.u32 %v18933_v53, %v14730_v21  ;;  %v14666_v53 = vld [vmem:[#allocation7 + $0xc28] sm:$0xf0] }
 0x234   : > { %4723 = vmatpush.bf16.msra.mxu2 %v14157_v0  ;;  %4625 = vmatpush.bf16.msrb.mxu0 %v14405_v40  ;;  %v20896_v0 = vpop.f32.mrf.mxu2  ;;  %v14061_v40 = vor.u32 %v18765_v4, %v14058_v39  ;;  %v14309_v13 = vor.u32 %v18828_v1, %v14306_v50  ;;  %v18793_v3 = vld [vmem:[#allocation7 + $0x824] sm:$0xf0]  ;;  %v14480_v39 = vld [vmem:[#allocation7 + $0xa90] sm:$0xf] }
 0x235   : > { %v14760_v56 = vld [vmem:[#allocation7 + $0xcc8] sm:$0xf] }
 0x236   : > { %4657 = vmatpush.bf16.msra.mxu1 %v14789_v9  ;;  %v14274_v9 = vld [vmem:[#allocation7 + $0x920] sm:$0xf0]  ;;  %v18945_v58 = vld [vmem:[#allocation7 + $0xce4] sm:$0xf0] }
 0x237   : > { %4682 = vmatpush.bf16.msra.mxu3 %v14377_v35  ;;  %v14026_v35 = vld [vmem:[#allocation7 + $0x728] sm:$0xf0]  ;;  %v14761_v2 = vor.u32 %v18945_v58, %v14760_v56  ;;  %v18785_v45 = vld [vmem:[#allocation7 + $0x7e4] sm:$0xf0] }
 0x238   : > { %4724 = vmatpush.bf16.msra.mxu2 %v14125_v55  ;;  %4626 = vmatpush.bf16.msrb.mxu0 %v14373_v59  ;;  %v18941_v55 = vld [vmem:[#allocation7 + $0xccc] sm:$0xf]  ;;  %v18820_v59 = vld [vmem:[#allocation7 + $0x904] sm:$0xf]  ;;  %v14728_v31 = vld [vmem:[#allocation7 + $0xc88] sm:$0xf] }
 0x239   : > { %14911 = vmatmul.msk.bf16.vlgmr.msra.gmra.mxu1 %vm2681_vm4, %v20846_v27  ;;  %v14277_v4 = vor.u32 %v18820_v59, %v14274_v9  ;;  %v18917_v58 = vld [vmem:[#allocation7 + $0xc0c] sm:$0xf] }
 0x23a   : > { %4664 = vmatpush.bf16.msrb.mxu1 %v14249_v22  ;;  %v14029_v22 = vor.u32 %v18757_v49, %v14026_v35  ;;  %v18937_v35 = vld [vmem:[#allocation7 + $0xca4] sm:$0xf0] }
 0x23b   : > { %4683 = vmatpush.bf16.msra.mxu3 %v14345_v43  ;;  %v14765_v43 = vor.u32 %v18941_v55, %v14762_v23  ;;  %v18925_v55 = vld [vmem:[#allocation7 + $0xc4c] sm:$0xf]  ;;  %v14729_v59 = vor.u32 %v18937_v35, %v14728_v31  ;;  %v18850_v35 = vld [vmem:[#allocation7 + $0x9ec] sm:$0xf0] }
 0x23c   : > { %4725 = vmatpush.bf16.msra.mxu2 %v14093_v24  ;;  %4627 = vmatpush.bf16.msrb.mxu0 %v14341_v60  ;;  %v14513_v24 = vor.u32 %v18882_v8, %v14512_v38  ;;  %v18874_v60 = vld [vmem:[#allocation7 + $0xaac] sm:$0xf0]  ;;  %v2931_v1 = vpop.f32.mrf.mxu2  ;;  %v14698_v23 = vld [vmem:[#allocation7 + $0xc68] sm:$0xf0]  ;;  %v2945_v8 = vpop.f32.mrf.mxu1 }
 0x23d   : > { %v14481_v49 = vor.u32 %v18874_v60, %v14480_v39  ;;  %v18866_v38 = vld [vmem:[#allocation7 + $0xa6c] sm:$0xf0]  ;;  %v14701_v9 = vor.u32 %v18925_v55, %v14698_v23  ;;  %v14634_v31 = vld [vmem:[#allocation7 + $0xbe8] sm:$0xf0]  ;;  %v14024_v23 = vld [vmem:[#allocation7 + $0x708] sm:$0xf] }
 0x23e   : > { %4665 = vmatpush.bf16.msrb.mxu1 %v14217_v16  ;;  %v2917_v16 = vpop.f32.mrf.mxu0  ;;  %v18858_v39 = vld [vmem:[#allocation7 + $0xa2c] sm:$0xf0] }
 0x23f   : > { %4684 = vmatpush.bf16.msra.mxu3 %v14313_v42  ;;  %v14153_v42 = vor.u32 %v18793_v3, %v14152_v47  ;;  %v2932_v50 = vadd.f32 %v2931_v1, %v2917_v16  ;;  %v14696_v47 = vld [vmem:[#allocation7 + $0xc48] sm:$0xf]  ;;  %v2959_v3 = vpop.f32.mrf.mxu3  ;;  %v14669_v16 = vor.u32 %v18917_v58, %v14666_v53 }
 0x240   : > { %4726 = vmatpush.bf16.msra.mxu2 %v14061_v40  ;;  %4628 = vmatpush.bf16.msrb.mxu0 %v14309_v13  ;;  %v14120_v40 = vld [vmem:[#allocation7 + $0x7c8] sm:$0xf]  ;;  %v14448_v13 = vld [vmem:[#allocation7 + $0xa50] sm:$0xf] }
 0x241   : > { %v14449_v56 = vor.u32 %v18866_v38, %v14448_v13 }
 0x242   : > { %4666 = vmatpush.bf16.msrb.mxu1 %v14185_v63  ;;  %v14121_v63 = vor.u32 %v18785_v45, %v14120_v40  ;;  %v18921_v40 = vld [vmem:[#allocation7 + $0xc24] sm:$0xf0]  ;;  %v18909_v45 = vld [vmem:[#allocation7 + $0xbcc] sm:$0xf] }
 0x243   : > { %4685 = vmatpush.bf16.msra.mxu3 %v14281_v51  ;;  %v2946_v51 = vadd.f32 %v2945_v8, %v2932_v50  ;;  %v18769_v50 = vld [vmem:[#allocation7 + $0x764] sm:$0xf0]  ;;  %v14637_v38 = vor.u32 %v18909_v45, %v14634_v31  ;;  %v18834_v45 = vld [vmem:[#allocation7 + $0x96c] sm:$0xf0] }
 0x244   : > { %4727 = vmatpush.bf16.msra.mxu2 %v14029_v22  ;;  %4629 = vmatpush.bf16.msrb.mxu0 %v14277_v4  ;;  %v14088_v22 = vld [vmem:[#allocation7 + $0x788] sm:$0xf]  ;;  %v14416_v4 = vld [vmem:[#allocation7 + $0xa10] sm:$0xf] }
 0x245   : > { %v20909_v21 = vadd.f32 %v2959_v3, %v2946_v51  ;;  %v18761_v8 = vld [vmem:[#allocation7 + $0x724] sm:$0xf0]  ;;  %v14352_v3 = vld [vmem:[#allocation7 + $0x990] sm:$0xf] }
 0x246   : > { %4686 = vmatmul.bf16.vlgmr.msra.gmra.mxu3 %v20827_v19  ;;  %4667 = vmatpush.bf16.msrb.mxu1 %v14153_v42  ;;  %v14056_v42 = vld [vmem:[#allocation7 + $0x748] sm:$0xf] }
 0x247   : > { %4748 = vmatpush.bf16.msrb.mxu3 %v14765_v43  ;;  %4728 = vmatmul.bf16.vlgmr.msra.gmra.mxu2 %v20887_v25  ;;  %v18777_v43 = vld [vmem:[#allocation7 + $0x7a4] sm:$0xf0]  ;;  %v14057_v55 = vor.u32 %v18769_v50, %v14056_v42  ;;  %v18869_v42 = vld [vmem:[#allocation7 + $0xa8c] sm:$0xf]  ;;  %v20913_v31 = vpop.f32.mrf.mxu3 }
 0x248   : > { %4790 = vmatpush.bf16.msrb.mxu2 %v14513_v24  ;;  %4692 = vmatpush.bf16.msra.mxu0 %v14761_v2  ;;  %v18929_v24 = vld [vmem:[#allocation7 + $0xc64] sm:$0xf0]  ;;  %v14089_v60 = vor.u32 %v18777_v43, %v14088_v22  ;;  %v14506_v22 = vld [vmem:[#allocation7 + $0xae8] sm:$0xf0]  ;;  %21805 = vst [vmem:[#allocation29_spill] sm:$0xff] %v20913_v31 }
 0x249   : > { %4630 = vmatmul.bf16.vlgmr.msrb.gmra.mxu0 %v20827_v19  ;;  %v14697_v1 = vor.u32 %v18929_v24, %v14696_v47  ;;  %v14664_v2 = vld [vmem:[#allocation7 + $0xc08] sm:$0xf]  ;;  %v18901_v43 = vld [vmem:[#allocation7 + $0xb8c] sm:$0xf]  ;;  %v14025_v24 = vor.u32 %v18761_v8, %v14024_v23  ;;  %v14906_v31 = vld [vmem:[#allocation7 + $0xdf8] sm:$0xf0] }
 0x24a   : > { %4668 = vmatpush.bf16.msrb.mxu1 %v14121_v63  ;;  %v14665_v13 = vor.u32 %v18921_v40, %v14664_v2  ;;  %v14632_v63 = vld [vmem:[#allocation7 + $0xbc8] sm:$0xf]  ;;  %v14602_v47 = vld [vmem:[#allocation7 + $0xba8] sm:$0xf0]  ;;  %v14320_v40 = vld [vmem:[#allocation7 + $0x950] sm:$0xf] }
 0x24b   : > { %4749 = vmatpush.bf16.msrb.mxu3 %v14733_v36  ;;  %v14417_v36 = vor.u32 %v18858_v39, %v14416_v4  ;;  %v18913_v51 = vld [vmem:[#allocation7 + $0xbe4] sm:$0xf0]  ;;  %v14474_v50 = vld [vmem:[#allocation7 + $0xaa8] sm:$0xf0] }
 0x24c   : > { %4791 = vmatpush.bf16.msrb.mxu2 %v14481_v49  ;;  %4693 = vmatpush.bf16.msra.mxu0 %v14729_v59  ;;  %v14384_v49 = vld [vmem:[#allocation7 + $0x9d0] sm:$0xf]  ;;  %v14633_v58 = vor.u32 %v18913_v51, %v14632_v63  ;;  %v14600_v4 = vld [vmem:[#allocation7 + $0xb88] sm:$0xf]  ;;  %v18893_v2 = vld [vmem:[#allocation7 + $0xb4c] sm:$0xf]  ;;  %v14321_v63 = vor.u32 %v18834_v45, %v14320_v40 }
 0x24d   : > { %v14385_v59 = vor.u32 %v18850_v35, %v14384_v49  ;;  %v18905_v39 = vld [vmem:[#allocation7 + $0xba4] sm:$0xf0]  ;;  %v20915_v49 = vpop.f32.mrf.mxu0  ;;  %v14442_v51 = vld [vmem:[#allocation7 + $0xa68] sm:$0xf0] }
 0x24e   : > { %4669 = vmatpush.bf16.msrb.mxu1 %v14089_v60  ;;  %v20911_v60 = vpop.f32.mrf.mxu1  ;;  %21806 = vst [vmem:[#allocation30_spill] sm:$0xff] %v20915_v49  ;;  %v14601_v35 = vor.u32 %v18905_v39, %v14600_v4  ;;  %v14568_v23 = vld [vmem:[#allocation7 + $0xb48] sm:$0xf]  ;;  %v14410_v40 = vld [vmem:[#allocation7 + $0xa28] sm:$0xf0] }
 0x24f   : > { %4750 = vmatpush.bf16.msrb.mxu3 %v14701_v9  ;;  %v18877_v9 = vld [vmem:[#allocation7 + $0xacc] sm:$0xf]  ;;  %21804 = vst [vmem:[#allocation28_spill] sm:$0xff] %v20911_v60  ;;  %v2973_v34 = vpop.f32.mrf.mxu3  ;;  %v15768_v60 = vld [vmem:[#allocation7 + $0x1490] sm:$0xf] }
 0x250   : > { %4792 = vmatpush.bf16.msrb.mxu2 %v14449_v56  ;;  %4694 = vmatpush.bf16.msra.mxu0 %v14697_v1  ;;  %v18842_v56 = vld [vmem:[#allocation7 + $0x9ac] sm:$0xf0]  ;;  %v14509_v53 = vor.u32 %v18877_v9, %v14506_v22  ;;  %v14605_v1 = vor.u32 %v18901_v43, %v14602_v47  ;;  %v14538_v9 = vld [vmem:[#allocation7 + $0xb28] sm:$0xf0]  ;;  %v20917_v22 = vpop.f32.mrf.mxu2 }
 0x251   : > { %21807 = vst [vmem:[#allocation31_spill] sm:$0xff] %v20917_v22  ;;  %v14288_v43 = vld [vmem:[#allocation7 + $0x910] sm:$0xf]  ;;  %v18973_v45 = vld [vmem:[#allocation7 + $0xdcc] sm:$0xf] }
 0x252   : > { %4670 = vmatpush.bf16.msrb.mxu1 %v14057_v55  ;;  %v14477_v55 = vor.u32 %v18869_v42, %v14474_v50  ;;  %v18826_v47 = vld [vmem:[#allocation7 + $0x92c] sm:$0xf0]  ;;  %v18889_v42 = vld [vmem:[#allocation7 + $0xb24] sm:$0xf0] }
 0x253   : > { %4751 = vmatpush.bf16.msrb.mxu3 %v14669_v16  ;;  %v14353_v16 = vor.u32 %v18842_v56, %v14352_v3  ;;  %v14896_v3 = vld [vmem:[#allocation7 + $0xdd0] sm:$0xf] }
 0x254   : > { %4793 = vmatpush.bf16.msrb.mxu2 %v14417_v36  ;;  %4695 = vmatpush.bf16.msra.mxu0 %v14665_v13  ;;  %v14570_v36 = vld [vmem:[#allocation7 + $0xb68] sm:$0xf0]  ;;  %v18897_v13 = vld [vmem:[#allocation7 + $0xb64] sm:$0xf0]  ;;  %v18978_v56 = vld [vmem:[#allocation7 + $0xdec] sm:$0xf0] }
 0x255   : > { %v14573_v8 = vor.u32 %v18893_v2, %v14570_v36  ;;  %v14897_v50 = vor.u32 %v18978_v56, %v14896_v3  ;;  %v18853_v36 = vld [vmem:[#allocation7 + $0xa0c] sm:$0xf]  ;;  %v16672_v22 = vld [vmem:[#allocation7 + $0x1b90] sm:$0xf] }
 0x256   : > { %4671 = vmatpush.bf16.msrb.mxu1 %v14025_v24  ;;  %v18942_v24 = vld [vmem:[#allocation7 + $0xcd4] sm:$0xf]  ;;  %v3015_v57 = vpop.f32.mrf.mxu1  ;;  %v19418_v49 = vld [vmem:[#allocation7 + $0x1bac] sm:$0xf0] }
 0x257   : > { %4752 = vmatpush.bf16.msrb.mxu3 %v14637_v38  ;;  %v18861_v38 = vld [vmem:[#allocation7 + $0xa4c] sm:$0xf] }
 0x258   : > { %4794 = vmatpush.bf16.msrb.mxu2 %v14385_v59  ;;  %4696 = vmatpush.bf16.msra.mxu0 %v14633_v58  ;;  %v18885_v59 = vld [vmem:[#allocation7 + $0xb0c] sm:$0xf]  ;;  %v14770_v58 = vld [vmem:[#allocation7 + $0xcf0] sm:$0xf0]  ;;  %v14445_v4 = vor.u32 %v18861_v38, %v14442_v51  ;;  %v14893_v51 = vor.u32 %v18973_v45, %v14890_v44 }
 0x259   : > { %4672 = vmatmul.bf16.vlgmr.msrb.gmra.mxu1 %v20887_v25  ;;  %v14541_v39 = vor.u32 %v18885_v59, %v14538_v9  ;;  %v14773_v2 = vor.u32 %v18942_v24, %v14770_v58  ;;  %v14865_v59 = vor.u32 %v18970_v6, %v14864_v20  ;;  %v18845_v9 = vld [vmem:[#allocation7 + $0x9cc] sm:$0xf]  ;;  %v14832_v58 = vld [vmem:[#allocation7 + $0xd50] sm:$0xf]  ;;  %v14674_v45 = vld [vmem:[#allocation7 + $0xc30] sm:$0xf0] }
 0x25a   : > { %4734 = vmatpush.bf16.msra.mxu1 %v14509_v53  ;;  %v14569_v53 = vor.u32 %v18897_v13, %v14568_v23  ;;  %v18934_v23 = vld [vmem:[#allocation7 + $0xc94] sm:$0xf]  ;;  %v14858_v24 = vld [vmem:[#allocation7 + $0xda8] sm:$0xf0] }
 0x25b   : > { %4753 = vmatpush.bf16.msrb.mxu3 %v14605_v1  ;;  %v14289_v1 = vor.u32 %v18826_v47, %v14288_v43  ;;  %v14738_v13 = vld [vmem:[#allocation7 + $0xcb0] sm:$0xf0]  ;;  %v14378_v43 = vld [vmem:[#allocation7 + $0x9e8] sm:$0xf0] }
 0x25c   : > { %4795 = vmatpush.bf16.msrb.mxu2 %v14353_v16  ;;  %4697 = vmatpush.bf16.msra.mxu0 %v14601_v35  ;;  %v14536_v16 = vld [vmem:[#allocation7 + $0xb08] sm:$0xf]  ;;  %v2987_v35 = vpop.f32.mrf.mxu0  ;;  %v18965_v47 = vld [vmem:[#allocation7 + $0xd8c] sm:$0xf]  ;;  %v14741_v56 = vor.u32 %v18934_v23, %v14738_v13  ;;  %v14381_v44 = vor.u32 %v18845_v9, %v14378_v43  ;;  %v20925_v23 = vpop.f32.mrf.mxu3 }
 0x25d   : > { %v2988_v38 = vadd.f32 %v2987_v35, %v2973_v34  ;;  %v18837_v6 = vld [vmem:[#allocation7 + $0x98c] sm:$0xf]  ;;  %v14861_v20 = vor.u32 %v18965_v47, %v14858_v24  ;;  %v18814_v35 = vld [vmem:[#allocation7 + $0x8d4] sm:$0xf]  ;;  %21808 = vst [vmem:[#allocation32_spill] sm:$0xff] %v20925_v23 }
 0x25e   : > { %4735 = vmatpush.bf16.msra.mxu1 %v14477_v55  ;;  %v14537_v55 = vor.u32 %v18889_v42, %v14536_v16  ;;  %v14346_v16 = vld [vmem:[#allocation7 + $0x9a8] sm:$0xf0]  ;;  %v20927_v13 = vpop.f32.mrf.mxu1  ;;  %v18818_v24 = vld [vmem:[#allocation7 + $0x8ec] sm:$0xf0] }
 0x25f   : > { %4754 = vmatpush.bf16.msrb.mxu3 %v14573_v8  ;;  %v14413_v8 = vor.u32 %v18853_v36, %v14410_v40  ;;  %v18957_v42 = vld [vmem:[#allocation7 + $0xd4c] sm:$0xf]  ;;  %v14800_v36 = vld [vmem:[#allocation7 + $0xd10] sm:$0xf]  ;;  %21809 = vst [vmem:[#allocation33_spill] sm:$0xff] %v20927_v13 }
 0x260   : > { %4796 = vmatpush.bf16.msrb.mxu2 %v14321_v63  ;;  %4698 = vmatpush.bf16.msra.mxu0 %v14569_v53  ;;  %v3001_v63 = vpop.f32.mrf.mxu2  ;;  %v18962_v53 = vld [vmem:[#allocation7 + $0xd6c] sm:$0xf0]  ;;  %v18949_v47 = vld [vmem:[#allocation7 + $0xd0c] sm:$0xf]  ;;  %v18971_v13 = vld [vmem:[#allocation7 + $0xdb4] sm:$0xf0] }
 0x261   : > { %v3002_v3 = vadd.f32 %v3001_v63, %v2988_v38  ;;  %v18954_v40 = vld [vmem:[#allocation7 + $0xd2c] sm:$0xf0]  ;;  %v14349_v38 = vor.u32 %v18837_v6, %v14346_v16 }
 0x262   : > { %4736 = vmatpush.bf16.msra.mxu1 %v14445_v4  ;;  %v18926_v4 = vld [vmem:[#allocation7 + $0xc54] sm:$0xf]  ;;  %v14801_v63 = vor.u32 %v18954_v40, %v14800_v36  ;;  %v18946_v36 = vld [vmem:[#allocation7 + $0xcec] sm:$0xf0] }
 0x263   : > { %4755 = vmatpush.bf16.msrb.mxu3 %v14541_v39  ;;  %v14706_v39 = vld [vmem:[#allocation7 + $0xc70] sm:$0xf0]  ;;  %v20921_v34 = vadd.f32 %v3015_v57, %v3002_v3  ;;  %v14794_v3 = vld [vmem:[#allocation7 + $0xd28] sm:$0xf0] }
 0x264   : > { %4797 = vmatpush.bf16.msrb.mxu2 %v14289_v1  ;;  %4699 = vmatpush.bf16.msra.mxu0 %v14537_v55  ;;  %v14833_v1 = vor.u32 %v18962_v53, %v14832_v58  ;;  %v18918_v57 = vld [vmem:[#allocation7 + $0xc14] sm:$0xf]  ;;  %v14797_v6 = vor.u32 %v18949_v47, %v14794_v3  ;;  %v14192_v3 = vld [vmem:[#allocation7 + $0x850] sm:$0xf] }
 0x265   : > { %v14258_v55 = vld [vmem:[#allocation7 + $0x8f0] sm:$0xf0]  ;;  %v14677_v9 = vor.u32 %v18918_v57, %v14674_v45  ;;  %v18810_v57 = vld [vmem:[#allocation7 + $0x8ac] sm:$0xf0] }
 0x266   : > { %4756 = vmatmul.bf16.vlgmr.msrb.gmra.mxu3 %v20867_v41  ;;  %4737 = vmatpush.bf16.msra.mxu1 %v14413_v8  ;;  %v14261_v43 = vor.u32 %v18814_v35, %v14258_v55  ;;  %v18910_v58 = vld [vmem:[#allocation7 + $0xbd4] sm:$0xf]  ;;  %v3043_v55 = vpop.f32.mrf.mxu3 }
 0x267   : > { %4822 = vmatpush.bf16.msra.mxu3 %v14897_v50  ;;  %4798 = vmatmul.bf16.vlgmr.msrb.gmra.mxu2 %v20827_v19  ;;  %v14826_v50 = vld [vmem:[#allocation7 + $0xd68] sm:$0xf0]  ;;  %v14642_v53 = vld [vmem:[#allocation7 + $0xbf0] sm:$0xf0] }
 0x268   : > { %4860 = vmatpush.bf16.msra.mxu2 %v14773_v2  ;;  %4766 = vmatpush.bf16.msrb.mxu0 %v14893_v51  ;;  %v14709_v2 = vor.u32 %v18926_v4, %v14706_v39  ;;  %v14829_v8 = vor.u32 %v18957_v42, %v14826_v50  ;;  %v18829_v51 = vld [vmem:[#allocation7 + $0x94c] sm:$0xf]  ;;  %v18806_v39 = vld [vmem:[#allocation7 + $0x894] sm:$0xf]  ;;  %v14645_v42 = vor.u32 %v18910_v58, %v14642_v53  ;;  %v14224_v50 = vld [vmem:[#allocation7 + $0x890] sm:$0xf]  ;;  %v20931_v58 = vpop.f32.mrf.mxu2 }
 0x269   : > { %4700 = vmatmul.bf16.vlgmr.msra.gmra.mxu0 %v20867_v41  ;;  %v18902_v45 = vld [vmem:[#allocation7 + $0xb94] sm:$0xf]  ;;  %21810 = vst [vmem:[#allocation34_spill] sm:$0xff] %v20931_v58 }
 0x26a   : > { %4738 = vmatpush.bf16.msra.mxu1 %v14381_v44  ;;  %v14226_v44 = vld [vmem:[#allocation7 + $0x8b0] sm:$0xf0] }
 0x26b   : > { %4823 = vmatpush.bf16.msra.mxu3 %v14865_v59  ;;  %v14314_v59 = vld [vmem:[#allocation7 + $0x968] sm:$0xf0]  ;;  %v14229_v40 = vor.u32 %v18806_v39, %v14226_v44  ;;  %v14610_v35 = vld [vmem:[#allocation7 + $0xbb0] sm:$0xf0] }
 0x26c   : > { %4861 = vmatpush.bf16.msra.mxu2 %v14741_v56  ;;  %4767 = vmatpush.bf16.msrb.mxu0 %v14861_v20  ;;  %v14256_v56 = vld [vmem:[#allocation7 + $0x8d0] sm:$0xf]  ;;  %v14317_v4 = vor.u32 %v18829_v51, %v14314_v59  ;;  %v18821_v20 = vld [vmem:[#allocation7 + $0x90c] sm:$0xf]  ;;  %v14613_v47 = vor.u32 %v18902_v45, %v14610_v35  ;;  %v18894_v39 = vld [vmem:[#allocation7 + $0xb54] sm:$0xf] }
 0x26d   : > { %v14257_v16 = vor.u32 %v18818_v24, %v14256_v56  ;;  %v14736_v56 = vld [vmem:[#allocation7 + $0xc90] sm:$0xf]  ;;  %v14578_v44 = vld [vmem:[#allocation7 + $0xb70] sm:$0xf0] }
 0x26e   : > { %4739 = vmatpush.bf16.msra.mxu1 %v14349_v38  ;;  %v3029_v38 = vpop.f32.mrf.mxu1  ;;  %v18938_v24 = vld [vmem:[#allocation7 + $0xcac] sm:$0xf0]  ;;  %v18886_v35 = vld [vmem:[#allocation7 + $0xb14] sm:$0xf] }
 0x26f   : > { %4824 = vmatpush.bf16.msra.mxu3 %v14833_v1  ;;  %v14282_v1 = vld [vmem:[#allocation7 + $0x928] sm:$0xf0]  ;;  %v20929_v59 = vadd.f32 %v3043_v55, %v3029_v38  ;;  %v14546_v55 = vld [vmem:[#allocation7 + $0xb30] sm:$0xf0] }
 0x270   : > { %4862 = vmatpush.bf16.msra.mxu2 %v14709_v2  ;;  %4768 = vmatpush.bf16.msrb.mxu0 %v14829_v8  ;;  %v14768_v2 = vld [vmem:[#allocation7 + $0xcd0] sm:$0xf]  ;;  %v14285_v51 = vor.u32 %v18821_v20, %v14282_v1  ;;  %v18798_v8 = vld [vmem:[#allocation7 + $0x854] sm:$0xf]  ;;  %v20935_v1 = vpop.f32.mrf.mxu0  ;;  %v3071_v58 = vpop.f32.mrf.mxu2 }
 0x271   : > { %v14162_v20 = vld [vmem:[#allocation7 + $0x830] sm:$0xf0]  ;;  %21811 = vst [vmem:[#allocation35_spill] sm:$0xff] %v20935_v1 }
 0x272   : > { %4740 = vmatpush.bf16.msra.mxu1 %v14317_v4  ;;  %v18802_v4 = vld [vmem:[#allocation7 + $0x86c] sm:$0xf0]  ;;  %v18782_v38 = vld [vmem:[#allocation7 + $0x7d4] sm:$0xf] }
 0x273   : > { %4825 = vmatpush.bf16.msra.mxu3 %v14801_v63  ;;  %v14194_v63 = vld [vmem:[#allocation7 + $0x870] sm:$0xf0] }
 0x274   : > { %4863 = vmatpush.bf16.msra.mxu2 %v14677_v9  ;;  %4769 = vmatpush.bf16.msrb.mxu0 %v14797_v6  ;;  %v14769_v9 = vor.u32 %v18946_v36, %v14768_v2  ;;  %v14197_v53 = vor.u32 %v18798_v8, %v14194_v63  ;;  %v18790_v6 = vld [vmem:[#allocation7 + $0x814] sm:$0xf]  ;;  %v14581_v2 = vor.u32 %v18894_v39, %v14578_v44  ;;  %v18794_v36 = vld [vmem:[#allocation7 + $0x82c] sm:$0xf0]  ;;  %v14904_v8 = vld [vmem:[#allocation7 + $0xdd8] sm:$0xf] }
 0x275   : > { %v14165_v45 = vor.u32 %v18790_v6, %v14162_v20  ;;  %v18979_v63 = vld [vmem:[#allocation7 + $0xdf4] sm:$0xf0]  ;;  %v18786_v39 = vld [vmem:[#allocation7 + $0x7ec] sm:$0xf0]  ;;  %v18774_v44 = vld [vmem:[#allocation7 + $0x794] sm:$0xf] }
 0x276   : > { %14914 = vmatmul.msk.bf16.vlgmr.msra.gmra.mxu3 %vm2681_vm4, %v20846_v27  ;;  %4741 = vmatpush.bf16.msra.mxu1 %v14285_v51  ;;  %v14130_v51 = vld [vmem:[#allocation7 + $0x7f0] sm:$0xf0]  ;;  %v14872_v20 = vld [vmem:[#allocation7 + $0xd98] sm:$0xf] }
 0x277   : > { %4832 = vmatpush.bf16.msrb.mxu3 %v14261_v43  ;;  %v14225_v43 = vor.u32 %v18810_v57, %v14224_v50  ;;  %v14193_v50 = vor.u32 %v18802_v4, %v14192_v3  ;;  %v18930_v57 = vld [vmem:[#allocation7 + $0xc6c] sm:$0xf0]  ;;  %v14098_v6 = vld [vmem:[#allocation7 + $0x7b0] sm:$0xf0] }
 0x278   : > { %4776 = vmatpush.bf16.msra.mxu0 %v14257_v16  ;;  %4864 = vmatpush.bf16.msra.mxu2 %v14645_v42  ;;  %v14737_v16 = vor.u32 %v18938_v24, %v14736_v56  ;;  %v14160_v42 = vld [vmem:[#allocation7 + $0x810] sm:$0xf]  ;;  %v14133_v24 = vor.u32 %v18782_v38, %v14130_v51  ;;  %v3057_v48 = vpop.f32.mrf.mxu0  ;;  %v14066_v51 = vld [vmem:[#allocation7 + $0x770] sm:$0xf0] }
 0x279   : > { %14913 = vmatmul.msk.bf16.vlgmr.msrb.gmra.mxu0 %vm2681_vm4, %v20846_v27  ;;  %4742 = vmatmul.bf16.vlgmr.msra.gmra.mxu1 %v20827_v19  ;;  %v14672_v3 = vld [vmem:[#allocation7 + $0xc10] sm:$0xf] }
 0x27a   : > { %4804 = vmatpush.bf16.msrb.mxu1 %v14769_v9  ;;  %v18922_v56 = vld [vmem:[#allocation7 + $0xc2c] sm:$0xf0] }
 0x27b   : > { %4833 = vmatpush.bf16.msrb.mxu3 %v14229_v40  ;;  %v14704_v40 = vld [vmem:[#allocation7 + $0xc50] sm:$0xf] }
 0x27c   : > { %4777 = vmatpush.bf16.msra.mxu0 %v14225_v43  ;;  %4865 = vmatpush.bf16.msra.mxu2 %v14613_v47  ;;  %v14705_v9 = vor.u32 %v18930_v57, %v14704_v40  ;;  %v14161_v43 = vor.u32 %v18794_v36, %v14160_v42  ;;  %v14549_v47 = vor.u32 %v18886_v35, %v14546_v55  ;;  %v14128_v4 = vld [vmem:[#allocation7 + $0x7d0] sm:$0xf]  ;;  %v18766_v55 = vld [vmem:[#allocation7 + $0x754] sm:$0xf] }
 0x27d   : > { %v3058_v42 = vadd.f32 %v3057_v48, %v20929_v59  ;;  %v18914_v36 = vld [vmem:[#allocation7 + $0xbec] sm:$0xf0]  ;;  %v14101_v40 = vor.u32 %v18774_v44, %v14098_v6  ;;  %v14873_v57 = vor.u32 %v18971_v13, %v14872_v20  ;;  %v14069_v13 = vor.u32 %v18766_v55, %v14066_v51  ;;  %v18883_v6 = vld [vmem:[#allocation7 + $0xaf4] sm:$0xf0]  ;;  %v18815_v20 = vld [vmem:[#allocation7 + $0x8dc] sm:$0xf] }
 0x27e   : > { %4805 = vmatpush.bf16.msrb.mxu1 %v14737_v16  ;;  %v14673_v16 = vor.u32 %v18922_v56, %v14672_v3  ;;  %v18778_v35 = vld [vmem:[#allocation7 + $0x7ac] sm:$0xf0] }
 0x27f   : > { %4834 = vmatpush.bf16.msrb.mxu3 %v14197_v53  ;;  %v14905_v53 = vor.u32 %v18979_v63, %v14904_v8  ;;  %v20941_v38 = vadd.f32 %v3071_v58, %v3058_v42  ;;  %v14840_v8 = vld [vmem:[#allocation7 + $0xd58] sm:$0xf]  ;;  %v14064_v59 = vld [vmem:[#allocation7 + $0x750] sm:$0xf]  ;;  %v14034_v58 = vld [vmem:[#allocation7 + $0x730] sm:$0xf0] }
 0x280   : > { %4778 = vmatpush.bf16.msra.mxu0 %v14193_v50  ;;  %4866 = vmatpush.bf16.msra.mxu2 %v14581_v2  ;;  %v14129_v50 = vor.u32 %v18786_v39, %v14128_v4  ;;  %v14640_v2 = vld [vmem:[#allocation7 + $0xbd0] sm:$0xf]  ;;  %v18963_v63 = vld [vmem:[#allocation7 + $0xd74] sm:$0xf0] }
 0x281   : > { %v14841_v3 = vor.u32 %v18963_v63, %v14840_v8  ;;  %v18770_v56 = vld [vmem:[#allocation7 + $0x76c] sm:$0xf0]  ;;  %v18955_v4 = vld [vmem:[#allocation7 + $0xd34] sm:$0xf0]  ;;  %v18878_v63 = vld [vmem:[#allocation7 + $0xad4] sm:$0xf] }
 0x282   : > { %4806 = vmatpush.bf16.msrb.mxu1 %v14705_v9  ;;  %v14641_v9 = vor.u32 %v18914_v36, %v14640_v2  ;;  %v14520_v39 = vld [vmem:[#allocation7 + $0xad8] sm:$0xf]  ;;  %v14065_v42 = vor.u32 %v18770_v56, %v14064_v59  ;;  %v18898_v2 = vld [vmem:[#allocation7 + $0xb6c] sm:$0xf0]  ;;  %v20944_v36 = vpop.f32.mrf.mxu2 }
 0x283   : > { %4835 = vmatpush.bf16.msrb.mxu3 %v14165_v45  ;;  %v14096_v45 = vld [vmem:[#allocation7 + $0x790] sm:$0xf]  ;;  %21812 = vst [vmem:[#allocation36_spill] sm:$0xff] %v20944_v36  ;;  %v14521_v51 = vor.u32 %v18883_v6, %v14520_v39  ;;  %v18875_v56 = vld [vmem:[#allocation7 + $0xab4] sm:$0xf0] }
 0x284   : > { %4779 = vmatpush.bf16.msra.mxu0 %v14161_v43  ;;  %4867 = vmatpush.bf16.msra.mxu2 %v14549_v47  ;;  %v14097_v48 = vor.u32 %v18778_v35, %v14096_v45  ;;  %v14608_v43 = vld [vmem:[#allocation7 + $0xb90] sm:$0xf]  ;;  %v18807_v36 = vld [vmem:[#allocation7 + $0x89c] sm:$0xf] }
 0x285   : > { %v18906_v47 = vld [vmem:[#allocation7 + $0xbac] sm:$0xf0] }
 0x286   : > { %4807 = vmatpush.bf16.msrb.mxu1 %v14673_v16  ;;  %v14609_v44 = vor.u32 %v18906_v47, %v14608_v43  ;;  %v14266_v16 = vld [vmem:[#allocation7 + $0x8f8] sm:$0xf0]  ;;  %v14032_v35 = vld [vmem:[#allocation7 + $0x710] sm:$0xf]  ;;  %v14488_v43 = vld [vmem:[#allocation7 + $0xa98] sm:$0xf]  ;;  %v20948_v47 = vpop.f32.mrf.mxu3 }
 0x287   : > { %4836 = vmatpush.bf16.msrb.mxu3 %v14133_v24  ;;  %4868 = vmatmul.bf16.vlgmr.msra.gmra.mxu2 %v20867_v41  ;;  %v18758_v24 = vld [vmem:[#allocation7 + $0x714] sm:$0xf]  ;;  %v18762_v55 = vld [vmem:[#allocation7 + $0x72c] sm:$0xf0]  ;;  %v14269_v8 = vor.u32 %v18815_v20, %v14266_v16  ;;  %21814 = vst [vmem:[#allocation38_spill] sm:$0xff] %v20948_v47  ;;  %v14489_v39 = vor.u32 %v18875_v56, %v14488_v43 }
 0x288   : > { %4934 = vmatpush.bf16.msrb.mxu2 %v14905_v53  ;;  %4780 = vmatpush.bf16.msra.mxu0 %v14129_v50  ;;  %v14808_v53 = vld [vmem:[#allocation7 + $0xd18] sm:$0xf]  ;;  %v14576_v50 = vld [vmem:[#allocation7 + $0xb50] sm:$0xf]  ;;  %v18974_v20 = vld [vmem:[#allocation7 + $0xdd4] sm:$0xf] }
 0x289   : > { %v14809_v45 = vor.u32 %v18955_v4, %v14808_v53  ;;  %v14577_v59 = vor.u32 %v18898_v2, %v14576_v50  ;;  %v18870_v53 = vld [vmem:[#allocation7 + $0xa94] sm:$0xf]  ;;  %v18867_v50 = vld [vmem:[#allocation7 + $0xa74] sm:$0xf0]  ;;  %v18799_v2 = vld [vmem:[#allocation7 + $0x85c] sm:$0xf] }
 0x28a   : > { %4808 = vmatpush.bf16.msrb.mxu1 %v14641_v9  ;;  %v14514_v9 = vld [vmem:[#allocation7 + $0xaf0] sm:$0xf0] }
 0x28b   : > { %4837 = vmatpush.bf16.msrb.mxu3 %v14101_v40  ;;  %v20946_v40 = vpop.f32.mrf.mxu1  ;;  %v14482_v4 = vld [vmem:[#allocation7 + $0xab0] sm:$0xf0] }
 0x28c   : > { %4935 = vmatpush.bf16.msrb.mxu2 %v14873_v57  ;;  %4781 = vmatpush.bf16.msra.mxu0 %v14097_v48  ;;  %21813 = vst [vmem:[#allocation37_spill] sm:$0xff] %v20946_v40  ;;  %v14037_v57 = vor.u32 %v18758_v24, %v14034_v58  ;;  %v20950_v48 = vpop.f32.mrf.mxu0  ;;  %v14234_v40 = vld [vmem:[#allocation7 + $0x8b8] sm:$0xf0]  ;;  %v14517_v24 = vor.u32 %v18878_v63, %v14514_v9  ;;  %v18890_v58 = vld [vmem:[#allocation7 + $0xb2c] sm:$0xf0] }
 0x28d   : > { %21815 = vst [vmem:[#allocation39_spill] sm:$0xff] %v20950_v48  ;;  %v14237_v6 = vor.u32 %v18807_v36, %v14234_v40  ;;  %v14898_v16 = vld [vmem:[#allocation7 + $0xdf0] sm:$0xf0]  ;;  %v14202_v48 = vld [vmem:[#allocation7 + $0x878] sm:$0xf0] }
 0x28e   : > { %4809 = vmatpush.bf16.msrb.mxu1 %v14609_v44  ;;  %v14456_v44 = vld [vmem:[#allocation7 + $0xa58] sm:$0xf]  ;;  %v14205_v63 = vor.u32 %v18799_v2, %v14202_v48  ;;  %v18966_v9 = vld [vmem:[#allocation7 + $0xd94] sm:$0xf]  ;;  %v3113_v56 = vpop.f32.mrf.mxu3 }
 0x28f   : > { %4838 = vmatpush.bf16.msrb.mxu3 %v14069_v13  ;;  %v14033_v13 = vor.u32 %v18762_v55, %v14032_v35  ;;  %v14485_v35 = vor.u32 %v18870_v53, %v14482_v4  ;;  %v14901_v55 = vor.u32 %v18974_v20, %v14898_v16  ;;  %v14457_v40 = vor.u32 %v18867_v50, %v14456_v44  ;;  %v14866_v43 = vld [vmem:[#allocation7 + $0xdb0] sm:$0xf0] }
 0x290   : > { %4936 = vmatpush.bf16.msrb.mxu2 %v14841_v3  ;;  %4782 = vmatpush.bf16.msra.mxu0 %v14065_v42  ;;  %v14544_v3 = vld [vmem:[#allocation7 + $0xb10] sm:$0xf]  ;;  %v18854_v48 = vld [vmem:[#allocation7 + $0xa14] sm:$0xf] }
 0x291   : > { %v14545_v42 = vor.u32 %v18890_v58, %v14544_v3  ;;  %v18791_v3 = vld [vmem:[#allocation7 + $0x81c] sm:$0xf]  ;;  %v18958_v50 = vld [vmem:[#allocation7 + $0xd54] sm:$0xf] }
 0x292   : > { %4810 = vmatpush.bf16.msrb.mxu1 %v14577_v59  ;;  %v14424_v59 = vld [vmem:[#allocation7 + $0xa18] sm:$0xf]  ;;  %v14834_v2 = vld [vmem:[#allocation7 + $0xd70] sm:$0xf0] }
 0x293   : > { %4839 = vmatpush.bf16.msrb.mxu3 %v14037_v57  ;;  %v3085_v57 = vpop.f32.mrf.mxu2 }
 0x294   : > { %4937 = vmatpush.bf16.msrb.mxu2 %v14809_v45  ;;  %4783 = vmatpush.bf16.msra.mxu0 %v14033_v13  ;;  %v3099_v45 = vpop.f32.mrf.mxu1  ;;  %v18859_v13 = vld [vmem:[#allocation7 + $0xa34] sm:$0xf0]  ;;  %v3127_v53 = vpop.f32.mrf.mxu0 }
 0x295   : > { %v3100_v36 = vadd.f32 %v3099_v45, %v3085_v57  ;;  %v14425_v16 = vor.u32 %v18859_v13, %v14424_v59  ;;  %v14392_v57 = vld [vmem:[#allocation7 + $0x9d8] sm:$0xf] }
 0x296   : > { %4840 = vmatmul.bf16.vlgmr.msrb.gmra.mxu3 %v20887_v25  ;;  %4811 = vmatpush.bf16.msrb.mxu1 %v14545_v42  ;;  %v18851_v45 = vld [vmem:[#allocation7 + $0x9f4] sm:$0xf0]  ;;  %v18783_v42 = vld [vmem:[#allocation7 + $0x7dc] sm:$0xf] }
 0x297   : > { %4902 = vmatpush.bf16.msra.mxu3 %v14521_v51  ;;  %v18862_v51 = vld [vmem:[#allocation7 + $0xa54] sm:$0xf]  ;;  %4784 = vmatmul.bf16.vlgmr.msra.gmra.mxu0 %v20887_v25  ;;  %v3114_v58 = vadd.f32 %v3113_v56, %v3100_v36  ;;  %v14138_v36 = vld [vmem:[#allocation7 + $0x7f8] sm:$0xf0]  ;;  %v14264_v59 = vld [vmem:[#allocation7 + $0x8d8] sm:$0xf] }
 0x298   : > { %4944 = vmatpush.bf16.msra.mxu2 %v14269_v8  ;;  %4846 = vmatpush.bf16.msrb.mxu0 %v14517_v24  ;;  %v14450_v8 = vld [vmem:[#allocation7 + $0xa70] sm:$0xf0]  ;;  %v14170_v24 = vld [vmem:[#allocation7 + $0x838] sm:$0xf0]  ;;  %v18819_v56 = vld [vmem:[#allocation7 + $0x8f4] sm:$0xf0] }
 0x299   : > { %14916 = vmatmul.msk.bf16.vlgmr.msrb.gmra.mxu2 %vm2681_vm4, %v20846_v27  ;;  %v14453_v4 = vor.u32 %v18862_v51, %v14450_v8  ;;  %v20956_v20 = vadd.f32 %v3127_v53, %v3114_v58  ;;  %v14173_v44 = vor.u32 %v18791_v3, %v14170_v24  ;;  %4812 = vmatmul.bf16.vlgmr.msrb.gmra.mxu1 %v20867_v41  ;;  %v18846_v51 = vld [vmem:[#allocation7 + $0x9d4] sm:$0xf]  ;;  %v14360_v13 = vld [vmem:[#allocation7 + $0x998] sm:$0xf]  ;;  %v18775_v24 = vld [vmem:[#allocation7 + $0x79c] sm:$0xf] }
 0x29a   : > { %4878 = vmatpush.bf16.msra.mxu1 %v14901_v55  ;;  %v14837_v55 = vor.u32 %v18958_v50, %v14834_v2  ;;  %v14386_v8 = vld [vmem:[#allocation7 + $0x9f0] sm:$0xf0]  ;;  %v18843_v3 = vld [vmem:[#allocation7 + $0x9b4] sm:$0xf0]  ;;  %v14106_v58 = vld [vmem:[#allocation7 + $0x7b8] sm:$0xf0] }
 0x29b   : > { %4903 = vmatpush.bf16.msra.mxu3 %v14489_v39  ;;  %v14869_v39 = vor.u32 %v18966_v9, %v14866_v43  ;;  %v18950_v9 = vld [vmem:[#allocation7 + $0xd14] sm:$0xf]  ;;  %v14389_v53 = vor.u32 %v18846_v51, %v14386_v8  ;;  %v14109_v50 = vor.u32 %v18775_v24, %v14106_v58  ;;  %v18811_v2 = vld [vmem:[#allocation7 + $0x8b4] sm:$0xf0]  ;;  %v14042_v24 = vld [vmem:[#allocation7 + $0x738] sm:$0xf0] }
 0x29c   : > { %4945 = vmatpush.bf16.msra.mxu2 %v14237_v6  ;;  %4847 = vmatpush.bf16.msrb.mxu0 %v14485_v35  ;;  %v14418_v6 = vld [vmem:[#allocation7 + $0xa30] sm:$0xf0]  ;;  %v20961_v51 = vpop.f32.mrf.mxu0  ;;  %v18943_v58 = vld [vmem:[#allocation7 + $0xcdc] sm:$0xf] }
 0x29d   : > { %v14421_v35 = vor.u32 %v18854_v48, %v14418_v6  ;;  %v14802_v43 = vld [vmem:[#allocation7 + $0xd30] sm:$0xf0]  ;;  %v14361_v48 = vor.u32 %v18843_v3, %v14360_v13  ;;  %21817 = vst [vmem:[#allocation41_spill] sm:$0xff] %v20961_v51  ;;  %v18827_v13 = vld [vmem:[#allocation7 + $0x934] sm:$0xf0]  ;;  %v20963_v51 = vpop.f32.mrf.mxu3 }
 0x29e   : > { %4879 = vmatpush.bf16.msra.mxu1 %v14869_v39  ;;  %v14265_v39 = vor.u32 %v18819_v56, %v14264_v59  ;;  %v18838_v6 = vld [vmem:[#allocation7 + $0x994] sm:$0xf]  ;;  %v14296_v56 = vld [vmem:[#allocation7 + $0x918] sm:$0xf]  ;;  %v18759_v3 = vld [vmem:[#allocation7 + $0x71c] sm:$0xf] }
 0x29f   : > { %4904 = vmatpush.bf16.msra.mxu3 %v14457_v40  ;;  %v14393_v40 = vor.u32 %v18851_v45, %v14392_v57  ;;  %v14328_v57 = vld [vmem:[#allocation7 + $0x958] sm:$0xf]  ;;  %21818 = vst [vmem:[#allocation42_spill] sm:$0xff] %v20963_v51  ;;  %v18935_v51 = vld [vmem:[#allocation7 + $0xc9c] sm:$0xf] }
 0x2a0   : > { %4946 = vmatpush.bf16.msra.mxu2 %v14205_v63  ;;  %4848 = vmatpush.bf16.msrb.mxu0 %v14453_v4  ;;  %v14141_v63 = vor.u32 %v18783_v42, %v14138_v36  ;;  %v14805_v4 = vor.u32 %v18950_v9, %v14802_v43  ;;  %v18835_v45 = vld [vmem:[#allocation7 + $0x974] sm:$0xf0]  ;;  %v18767_v42 = vld [vmem:[#allocation7 + $0x75c] sm:$0xf] }
 0x2a1   : > { %v14074_v36 = vld [vmem:[#allocation7 + $0x778] sm:$0xf0]  ;;  %v14200_v9 = vld [vmem:[#allocation7 + $0x858] sm:$0xf] }
 0x2a2   : > { %4880 = vmatpush.bf16.msra.mxu1 %v14837_v55  ;;  %v20959_v55 = vpop.f32.mrf.mxu2  ;;  %v18803_v43 = vld [vmem:[#allocation7 + $0x874] sm:$0xf0]  ;;  %v14077_v59 = vor.u32 %v18767_v42, %v14074_v36 }
 0x2a3   : > { %4905 = vmatpush.bf16.msra.mxu3 %v14425_v16  ;;  %v14354_v16 = vld [vmem:[#allocation7 + $0x9b0] sm:$0xf0]  ;;  %21816 = vst [vmem:[#allocation40_spill] sm:$0xff] %v20959_v55  ;;  %v18795_v42 = vld [vmem:[#allocation7 + $0x834] sm:$0xf0] }
 0x2a4   : > { %4947 = vmatpush.bf16.msra.mxu2 %v14173_v44  ;;  %4849 = vmatpush.bf16.msrb.mxu0 %v14421_v35  ;;  %v14232_v44 = vld [vmem:[#allocation7 + $0x898] sm:$0xf]  ;;  %v14357_v47 = vor.u32 %v18838_v6, %v14354_v16  ;;  %v18830_v35 = vld [vmem:[#allocation7 + $0x954] sm:$0xf]  ;;  %v15400_v6 = vld [vmem:[#allocation7 + $0x11c0] sm:$0xf] }
 0x2a5   : > { %v14233_v8 = vor.u32 %v18811_v2, %v14232_v44  ;;  %v19104_v16 = vld [vmem:[#allocation7 + $0x11dc] sm:$0xf0]  ;;  %v14297_v44 = vor.u32 %v18827_v13, %v14296_v56  ;;  %v14290_v2 = vld [vmem:[#allocation7 + $0x930] sm:$0xf0]  ;;  %v14776_v36 = vld [vmem:[#allocation7 + $0xcd8] sm:$0xf] }
 0x2a6   : > { %4881 = vmatpush.bf16.msra.mxu1 %v14805_v4  ;;  %v14746_v55 = vld [vmem:[#allocation7 + $0xcb8] sm:$0xf0] }
 0x2a7   : > { %4906 = vmatpush.bf16.msra.mxu3 %v14393_v40  ;;  %v14329_v40 = vor.u32 %v18835_v45, %v14328_v57  ;;  %v14045_v57 = vor.u32 %v18759_v3, %v14042_v24 }
 0x2a8   : > { %4948 = vmatpush.bf16.msra.mxu2 %v14141_v63  ;;  %4850 = vmatpush.bf16.msrb.mxu0 %v14389_v53  ;;  %v14322_v63 = vld [vmem:[#allocation7 + $0x970] sm:$0xf0]  ;;  %v14778_v53 = vld [vmem:[#allocation7 + $0xcf8] sm:$0xf0] }
 0x2a9   : > { %v14325_v4 = vor.u32 %v18830_v35, %v14322_v63  ;;  %14915 = vmatmul.msk.bf16.vlgmr.msra.gmra.mxu1 %vm2681_vm4, %v20846_v27  ;;  %v14781_v45 = vor.u32 %v18943_v58, %v14778_v53  ;;  %v15401_v35 = vor.u32 %v19104_v16, %v15400_v6  ;;  %v18947_v63 = vld [vmem:[#allocation7 + $0xcf4] sm:$0xf0]  ;;  %v14749_v58 = vor.u32 %v18935_v51, %v14746_v55 }
 0x2aa   : > { %4888 = vmatpush.bf16.msrb.mxu1 %v14265_v39  ;;  %v20965_v39 = vpop.f32.mrf.mxu1  ;;  %v4575_v56 = vpop.f32.mrf.mxu2  ;;  %v14777_v24 = vor.u32 %v18947_v63, %v14776_v36  ;;  %v14136_v53 = vld [vmem:[#allocation7 + $0x7d8] sm:$0xf] }
 0x2ab   : > { %4907 = vmatpush.bf16.msra.mxu3 %v14361_v48  ;;  %21819 = vst [vmem:[#allocation43_spill] sm:$0xff] %v20965_v39  ;;  %v14201_v48 = vor.u32 %v18803_v43, %v14200_v9  ;;  %v19096_v9 = vld [vmem:[#allocation7 + $0x119c] sm:$0xf0]  ;;  %v18787_v6 = vld [vmem:[#allocation7 + $0x7f4] sm:$0xf0]  ;;  %v4603_v63 = vpop.f32.mrf.mxu3 }
 0x2ac   : > { %4949 = vmatpush.bf16.msra.mxu2 %v14109_v50  ;;  %4851 = vmatpush.bf16.msrb.mxu0 %v14357_v47  ;;  %v18822_v50 = vld [vmem:[#allocation7 + $0x914] sm:$0xf]  ;;  %v14168_v47 = vld [vmem:[#allocation7 + $0x818] sm:$0xf]  ;;  %v20969_v43 = vld [vmem:[#allocation8] sm:$0xff]  ;;  %v14137_v55 = vor.u32 %v18787_v6, %v14136_v53 }
 0x2ad   : > { %v14169_v13 = vor.u32 %v18795_v42, %v14168_v47  ;;  %v14744_v16 = vld [vmem:[#allocation7 + $0xc98] sm:$0xf]  ;;  %v14714_v39 = vld [vmem:[#allocation7 + $0xc78] sm:$0xf0]  ;;  %v21771_v1 = vperm.slane %v20969_v43, 0 }
 0x2ae   : > { %4889 = vmatpush.bf16.msrb.mxu1 %v14233_v8  ;;  %v14293_v8 = vor.u32 %v18822_v50, %v14290_v2  ;;  %v18939_v50 = vld [vmem:[#allocation7 + $0xcb4] sm:$0xf0]  ;;  %v18927_v2 = vld [vmem:[#allocation7 + $0xc5c] sm:$0xf] }
 0x2af   : > { %4908 = vmatpush.bf16.msra.mxu3 %v14329_v40  ;;  %v15368_v40 = vld [vmem:[#allocation7 + $0x1180] sm:$0xf]  ;;  %v14717_v47 = vor.u32 %v18927_v2, %v14714_v39  ;;  %v14104_v42 = vld [vmem:[#allocation7 + $0x798] sm:$0xf] }
 0x2b0   : > { %4950 = vmatpush.bf16.msra.mxu2 %v14077_v59  ;;  %4852 = vmatpush.bf16.msrb.mxu0 %v14325_v4  ;;  %v4561_v59 = vpop.f32.mrf.mxu0  ;;  %v15369_v4 = vor.u32 %v19096_v9, %v15368_v40  ;;  %v18779_v36 = vld [vmem:[#allocation7 + $0x7b4] sm:$0xf0]  ;;  %v18919_v9 = vld [vmem:[#allocation7 + $0xc1c] sm:$0xf] }
 0x2b1   : > { %v4576_v3 = vadd.f32 %v4575_v56, %v4561_v59  ;;  %v18931_v40 = vld [vmem:[#allocation7 + $0xc74] sm:$0xf0]  ;;  %v14682_v56 = vld [vmem:[#allocation7 + $0xc38] sm:$0xf0]  ;;  %v3149_v59 = vadd.f32 %v21771_v1, %v20814_v52  ;;  %v14105_v39 = vor.u32 %v18779_v36, %v14104_v42  ;;  %v15272_v52 = vld [vmem:[#allocation7 + $0x10c0] sm:$0xf] }
 0x2b2   : > { %4890 = vmatpush.bf16.msrb.mxu1 %v14201_v48  ;;  %v15336_v48 = vld [vmem:[#allocation7 + $0x1140] sm:$0xf]  ;;  %v14685_v6 = vor.u32 %v18919_v9, %v14682_v56  ;;  %v14648_v36 = vld [vmem:[#allocation7 + $0xbd8] sm:$0xf]  ;;  %v18879_v9 = vld [vmem:[#allocation7 + $0xadc] sm:$0xf] }
 0x2b3   : > { %4909 = vmatpush.bf16.msra.mxu3 %v14297_v44  ;;  %v19088_v44 = vld [vmem:[#allocation7 + $0x115c] sm:$0xf0]  ;;  %v18903_v56 = vld [vmem:[#allocation7 + $0xb9c] sm:$0xf]  ;;  %v20982_v23 = vpop.f32.mrf.mxu3 }
 0x2b4   : > { %4951 = vmatpush.bf16.msra.mxu2 %v14045_v57  ;;  %4853 = vmatpush.bf16.msrb.mxu0 %v14293_v8  ;;  %v4589_v57 = vpop.f32.mrf.mxu1  ;;  %v15337_v8 = vor.u32 %v19088_v44, %v15336_v48  ;;  %v18923_v48 = vld [vmem:[#allocation7 + $0xc34] sm:$0xf0]  ;;  %v18911_v44 = vld [vmem:[#allocation7 + $0xbdc] sm:$0xf]  ;;  %v19056_v1 = vld [vmem:[#allocation7 + $0x105c] sm:$0xf0] }
 0x2b5   : > { %v4590_v51 = vadd.f32 %v4589_v57, %v4576_v3  ;;  %v19080_v3 = vld [vmem:[#allocation7 + $0x111c] sm:$0xf0]  ;;  %v14650_v57 = vld [vmem:[#allocation7 + $0xbf8] sm:$0xf0]  ;;  %21821 = vst [vmem:[#allocation45_spill] sm:$0xff] %v20982_v23 }
 0x2b6   : > { %4910 = vmatmul.bf16.vlgmr.msra.gmra.mxu3 %v20827_v19  ;;  %4891 = vmatpush.bf16.msrb.mxu1 %v14169_v13 }
 0x2b7   : > { %4972 = vmatpush.bf16.msrb.mxu3 %v14781_v45  ;;  %4952 = vmatmul.bf16.vlgmr.msra.gmra.mxu2 %v20887_v25  ;;  %v14745_v45 = vor.u32 %v18939_v50, %v14744_v16  ;;  %v4604_v13 = vadd.f32 %v4603_v63, %v4590_v51  ;;  %v14072_v16 = vld [vmem:[#allocation7 + $0x758] sm:$0xf]  ;;  %v19072_v51 = vld [vmem:[#allocation7 + $0x10dc] sm:$0xf0] }
 0x2b8   : > { %6380 = vmatpush.bf16.msrb.mxu2 %v15401_v35  ;;  %4916 = vmatpush.bf16.msra.mxu0 %v14777_v24  ;;  %v14712_v35 = vld [vmem:[#allocation7 + $0xc58] sm:$0xf]  ;;  %v15304_v24 = vld [vmem:[#allocation7 + $0x1100] sm:$0xf] }
 0x2b9   : > { %4854 = vmatmul.bf16.vlgmr.msrb.gmra.mxu0 %v20827_v19  ;;  %v14713_v53 = vor.u32 %v18931_v40, %v14712_v35  ;;  %v14680_v50 = vld [vmem:[#allocation7 + $0xc18] sm:$0xf]  ;;  %v15305_v2 = vor.u32 %v19080_v3, %v15304_v24  ;;  %v15273_v40 = vor.u32 %v19072_v51, %v15272_v52  ;;  %v19064_v24 = vld [vmem:[#allocation7 + $0x109c] sm:$0xf0]  ;;  %v14586_v52 = vld [vmem:[#allocation7 + $0xb78] sm:$0xf0] }
 0x2ba   : > { %4892 = vmatpush.bf16.msrb.mxu1 %v14137_v55  ;;  %v14040_v55 = vld [vmem:[#allocation7 + $0x718] sm:$0xf]  ;;  %v14681_v42 = vor.u32 %v18923_v48, %v14680_v50  ;;  %v18871_v48 = vld [vmem:[#allocation7 + $0xa9c] sm:$0xf]  ;;  %v15208_v51 = vld [vmem:[#allocation7 + $0x1040] sm:$0xf] }
 0x2bb   : > { %4973 = vmatpush.bf16.msrb.mxu3 %v14749_v58  ;;  %v20978_v58 = vadd.f32 %v4604_v13, %v3149_v59  ;;  %v18915_v35 = vld [vmem:[#allocation7 + $0xbf4] sm:$0xf0]  ;;  %v14618_v59 = vld [vmem:[#allocation7 + $0xbb8] sm:$0xf0]  ;;  %v15240_v13 = vld [vmem:[#allocation7 + $0x1080] sm:$0xf]  ;;  %v4617_v15 = vpop.f32.mrf.mxu3 }
 0x2bc   : > { %6381 = vmatpush.bf16.msrb.mxu2 %v15369_v4  ;;  %4917 = vmatpush.bf16.msra.mxu0 %v14745_v45  ;;  %v18771_v4 = vld [vmem:[#allocation7 + $0x774] sm:$0xf0]  ;;  %v14653_v45 = vor.u32 %v18911_v44, %v14650_v57  ;;  %v14621_v50 = vor.u32 %v18903_v56, %v14618_v59  ;;  %v14490_v44 = vld [vmem:[#allocation7 + $0xab8] sm:$0xf0]  ;;  %v20986_v59 = vpop.f32.mrf.mxu2 }
 0x2bd   : > { %v14073_v63 = vor.u32 %v18771_v4, %v14072_v16  ;;  %v18907_v16 = vld [vmem:[#allocation7 + $0xbb4] sm:$0xf0]  ;;  %v20980_v4 = vpop.f32.mrf.mxu1  ;;  %v18895_v57 = vld [vmem:[#allocation7 + $0xb5c] sm:$0xf]  ;;  %21823 = vst [vmem:[#allocation47_spill] sm:$0xff] %v20986_v59 }
 0x2be   : > { %4893 = vmatpush.bf16.msrb.mxu1 %v14105_v39  ;;  %v14649_v39 = vor.u32 %v18915_v35, %v14648_v36  ;;  %21820 = vst [vmem:[#allocation44_spill] sm:$0xff] %v20980_v4  ;;  %v18863_v36 = vld [vmem:[#allocation7 + $0xa5c] sm:$0xf]  ;;  %v14589_v35 = vor.u32 %v18895_v57, %v14586_v52  ;;  %v19192_v4 = vld [vmem:[#allocation7 + $0x149c] sm:$0xf0] }
 0x2bf   : > { %4974 = vmatpush.bf16.msrb.mxu3 %v14717_v47  ;;  %v18763_v47 = vld [vmem:[#allocation7 + $0x734] sm:$0xf0]  ;;  %v14554_v56 = vld [vmem:[#allocation7 + $0xb38] sm:$0xf0]  ;;  %v19194_v59 = vld [vmem:[#allocation7 + $0x14ac] sm:$0xf0] }
 0x2c0   : > { %6382 = vmatpush.bf16.msrb.mxu2 %v15337_v8  ;;  %4918 = vmatpush.bf16.msra.mxu0 %v14713_v53  ;;  %v14522_v8 = vld [vmem:[#allocation7 + $0xaf8] sm:$0xf0]  ;;  %v14041_v3 = vor.u32 %v18763_v47, %v14040_v55  ;;  %v18899_v47 = vld [vmem:[#allocation7 + $0xb74] sm:$0xf0] }
 0x2c1   : > { %v14525_v53 = vor.u32 %v18879_v9, %v14522_v8  ;;  %v14458_v9 = vld [vmem:[#allocation7 + $0xa78] sm:$0xf0] }
 0x2c2   : > { %4894 = vmatpush.bf16.msrb.mxu1 %v14073_v63  ;;  %v20984_v63 = vpop.f32.mrf.mxu0  ;;  %v18887_v8 = vld [vmem:[#allocation7 + $0xb1c] sm:$0xf] }
 0x2c3   : > { %4975 = vmatpush.bf16.msrb.mxu3 %v14685_v6  ;;  %v14616_v6 = vld [vmem:[#allocation7 + $0xb98] sm:$0xf]  ;;  %21822 = vst [vmem:[#allocation46_spill] sm:$0xff] %v20984_v63  ;;  %v16698_v63 = vld [vmem:[#allocation7 + $0x1be8] sm:$0xf0] }
 0x2c4   : > { %6383 = vmatpush.bf16.msrb.mxu2 %v15305_v2  ;;  %4919 = vmatpush.bf16.msra.mxu0 %v14681_v42  ;;  %v15241_v2 = vor.u32 %v19064_v24, %v15240_v13  ;;  %v14617_v55 = vor.u32 %v18907_v16, %v14616_v6  ;;  %v14493_v42 = vor.u32 %v18871_v48, %v14490_v44  ;;  %v15176_v13 = vld [vmem:[#allocation7 + $0x1000] sm:$0xf]  ;;  %v15658_v6 = vld [vmem:[#allocation7 + $0x13e0] sm:$0xf0]  ;;  %v14552_v48 = vld [vmem:[#allocation7 + $0xb18] sm:$0xf] }
 0x2c5   : > { %v19048_v24 = vld [vmem:[#allocation7 + $0x101c] sm:$0xf0]  ;;  %v18891_v44 = vld [vmem:[#allocation7 + $0xb34] sm:$0xf0]  ;;  %v4659_v23 = vpop.f32.mrf.mxu1 }
 0x2c6   : > { %4895 = vmatpush.bf16.msrb.mxu1 %v14041_v3  ;;  %v15784_v3 = vld [vmem:[#allocation7 + $0x14c0] sm:$0xf] }
 0x2c7   : > { %4976 = vmatpush.bf16.msrb.mxu3 %v14653_v45  ;;  %v14584_v45 = vld [vmem:[#allocation7 + $0xb58] sm:$0xf] }
 0x2c8   : > { %6384 = vmatpush.bf16.msrb.mxu2 %v15273_v40  ;;  %4920 = vmatpush.bf16.msra.mxu0 %v14649_v39  ;;  %v15209_v40 = vor.u32 %v19056_v1, %v15208_v51  ;;  %v19200_v39 = vld [vmem:[#allocation7 + $0x14dc] sm:$0xf0]  ;;  %v14585_v16 = vor.u32 %v18899_v47, %v14584_v45  ;;  %v14557_v1 = vor.u32 %v18887_v8, %v14554_v56  ;;  %v18855_v51 = vld [vmem:[#allocation7 + $0xa1c] sm:$0xf]  ;;  %v19156_v45 = vld [vmem:[#allocation7 + $0x1384] sm:$0xf] }
 0x2c9   : > { %4896 = vmatmul.bf16.vlgmr.msrb.gmra.mxu1 %v20887_v25  ;;  %v15785_v57 = vor.u32 %v19200_v39, %v15784_v3  ;;  %v14426_v25 = vld [vmem:[#allocation7 + $0xa38] sm:$0xf0]  ;;  %v15626_v47 = vld [vmem:[#allocation7 + $0x13a0] sm:$0xf0]  ;;  %v14909_v8 = vor.u32 %v18975_v61, %v14906_v31  ;;  %v15753_v56 = vor.u32 %v19192_v4, %v15752_v32 }
 0x2ca   : > { %4958 = vmatpush.bf16.msra.mxu1 %v14525_v53  ;;  %v19164_v53 = vld [vmem:[#allocation7 + $0x13c4] sm:$0xf]  ;;  %v18967_v3 = vld [vmem:[#allocation7 + $0xd9c] sm:$0xf] }
 0x2cb   : > { %4977 = vmatpush.bf16.msrb.mxu3 %v14621_v50  ;;  %v14461_v50 = vor.u32 %v18863_v36, %v14458_v9  ;;  %v15661_v52 = vor.u32 %v19164_v53, %v15658_v6  ;;  %v21773_v36 = vperm.slane %v20969_v43, 1  ;;  %v4645_v9 = vpop.f32.mrf.mxu2  ;;  %v15629_v53 = vor.u32 %v19156_v45, %v15626_v47  ;;  %v14874_v6 = vld [vmem:[#allocation7 + $0xdb8] sm:$0xf0]  ;;  %v19036_v45 = vld [vmem:[#allocation7 + $0xfc4] sm:$0xf] }
 0x2cc   : > { %6385 = vmatpush.bf16.msrb.mxu2 %v15241_v2  ;;  %4921 = vmatpush.bf16.msra.mxu0 %v14617_v55  ;;  %v15177_v2 = vor.u32 %v19048_v24, %v15176_v13  ;;  %v4631_v55 = vpop.f32.mrf.mxu0  ;;  %v18847_v13 = vld [vmem:[#allocation7 + $0x9dc] sm:$0xf]  ;;  %v14877_v31 = vor.u32 %v18967_v3, %v14874_v6  ;;  %v15146_v47 = vld [vmem:[#allocation7 + $0xfe0] sm:$0xf0]  ;;  %v15144_v6 = vld [vmem:[#allocation7 + $0xfc0] sm:$0xf] }
 0x2cd   : > { %v14394_v24 = vld [vmem:[#allocation7 + $0x9f8] sm:$0xf0]  ;;  %v15149_v3 = vor.u32 %v19036_v45, %v15146_v47 }
 0x2ce   : > { %4959 = vmatpush.bf16.msra.mxu1 %v14493_v42  ;;  %v14553_v42 = vor.u32 %v18891_v44, %v14552_v48  ;;  %v14397_v61 = vor.u32 %v18847_v13, %v14394_v24  ;;  %v18839_v32 = vld [vmem:[#allocation7 + $0x99c] sm:$0xf] }
 0x2cf   : > { %4978 = vmatpush.bf16.msrb.mxu3 %v14589_v35  ;;  %v4632_v35 = vadd.f32 %v4631_v55, %v4617_v15  ;;  %v3150_v15 = vadd.f32 %v21773_v36, %v20848_v14  ;;  %v14362_v44 = vld [vmem:[#allocation7 + $0x9b8] sm:$0xf0]  ;;  %v15688_v14 = vld [vmem:[#allocation7 + $0x1400] sm:$0xf]  ;;  %v19140_v55 = vld [vmem:[#allocation7 + $0x1304] sm:$0xf] }
 0x2d0   : > { %6386 = vmatpush.bf16.msrb.mxu2 %v15209_v40  ;;  %4922 = vmatpush.bf16.msra.mxu0 %v14585_v16  ;;  %v14429_v40 = vor.u32 %v18855_v51, %v14426_v25  ;;  %v15720_v16 = vld [vmem:[#allocation7 + $0x1440] sm:$0xf]  ;;  %v18831_v13 = vld [vmem:[#allocation7 + $0x95c] sm:$0xf]  ;;  %v15122_v36 = vld [vmem:[#allocation7 + $0xfa8] sm:$0xf0] }
 0x2d1   : > { %v4646_v39 = vadd.f32 %v4645_v9, %v4632_v35  ;;  %v20998_v35 = vpop.f32.mrf.mxu3  ;;  %v14365_v9 = vor.u32 %v18839_v32, %v14362_v44  ;;  %v14330_v24 = vld [vmem:[#allocation7 + $0x978] sm:$0xf0] }
 0x2d2   : > { %4960 = vmatpush.bf16.msra.mxu1 %v14461_v50  ;;  %v19184_v50 = vld [vmem:[#allocation7 + $0x145c] sm:$0xf0]  ;;  %21824 = vst [vmem:[#allocation48_spill] sm:$0xff] %v20998_v35  ;;  %v18823_v32 = vld [vmem:[#allocation7 + $0x91c] sm:$0xf] }
 0x2d3   : > { %4979 = vmatpush.bf16.msrb.mxu3 %v14557_v1  ;;  %v19148_v1 = vld [vmem:[#allocation7 + $0x1344] sm:$0xf]  ;;  %v4660_v48 = vadd.f32 %v4659_v23, %v4646_v39  ;;  %v15721_v4 = vor.u32 %v19184_v50, %v15720_v16  ;;  %v19176_v23 = vld [vmem:[#allocation7 + $0x141c] sm:$0xf0]  ;;  %v18951_v39 = vld [vmem:[#allocation7 + $0xd1c] sm:$0xf] }
 0x2d4   : > { %6387 = vmatpush.bf16.msrb.mxu2 %v15177_v2  ;;  %4923 = vmatpush.bf16.msra.mxu0 %v14553_v42  ;;  %v15594_v2 = vld [vmem:[#allocation7 + $0x1360] sm:$0xf0]  ;;  %v19040_v16 = vld [vmem:[#allocation7 + $0xfdc] sm:$0xf0]  ;;  %v15314_v35 = vld [vmem:[#allocation7 + $0x1128] sm:$0xf0] }
 0x2d5   : > { %v20995_v51 = vadd.f32 %v4660_v48, %v3150_v15  ;;  %v15597_v25 = vor.u32 %v19148_v1, %v15594_v2  ;;  %v15562_v42 = vld [vmem:[#allocation7 + $0x1320] sm:$0xf0]  ;;  %v14333_v2 = vor.u32 %v18831_v13, %v14330_v24 }
 0x2d6   : > { %4980 = vmatmul.bf16.vlgmr.msrb.gmra.mxu3 %v20867_v41  ;;  %4961 = vmatpush.bf16.msra.mxu1 %v14429_v40  ;;  %v21000_v40 = vpop.f32.mrf.mxu1  ;;  %v19132_v50 = vld [vmem:[#allocation7 + $0x12c4] sm:$0xf] }
 0x2d7   : > { %6412 = vmatpush.bf16.msra.mxu3 %v15785_v57  ;;  %6388 = vmatmul.bf16.vlgmr.msrb.gmra.mxu2 %v20630_v26  ;;  %v18959_v57 = vld [vmem:[#allocation7 + $0xd5c] sm:$0xf]  ;;  %21825 = vst [vmem:[#allocation49_spill] sm:$0xff] %v21000_v40  ;;  %v15530_v1 = vld [vmem:[#allocation7 + $0x12e0] sm:$0xf0] }
 0x2d8   : > { %6450 = vmatpush.bf16.msra.mxu2 %v15661_v52  ;;  %4990 = vmatpush.bf16.msrb.mxu0 %v14909_v8  ;;  %v14842_v52 = vld [vmem:[#allocation7 + $0xd78] sm:$0xf0]  ;;  %v19028_v15 = vld [vmem:[#allocation7 + $0xf84] sm:$0xf]  ;;  %v15533_v44 = vor.u32 %v19132_v50, %v15530_v1  ;;  %v19024_v1 = vld [vmem:[#allocation7 + $0xf5c] sm:$0xf0] }
 0x2d9   : > { %4924 = vmatmul.bf16.vlgmr.msra.gmra.mxu0 %v20867_v41  ;;  %v14845_v8 = vor.u32 %v18959_v57, %v14842_v52  ;;  %v15565_v41 = vor.u32 %v19140_v55, %v15562_v42  ;;  %v15114_v48 = vld [vmem:[#allocation7 + $0xfa0] sm:$0xf0]  ;;  %v15112_v57 = vld [vmem:[#allocation7 + $0xf80] sm:$0xf]  ;;  %v4687_v45 = vpop.f32.mrf.mxu3  ;;  %v19161_v40 = vld [vmem:[#allocation7 + $0x13a4] sm:$0xf0] }
 0x2da   : > { %4962 = vmatpush.bf16.msra.mxu1 %v14397_v61  ;;  %v15656_v52 = vld [vmem:[#allocation7 + $0x13c0] sm:$0xf]  ;;  %v19124_v55 = vld [vmem:[#allocation7 + $0x1284] sm:$0xf] }
 0x2db   : > { %6413 = vmatpush.bf16.msra.mxu3 %v15753_v56  ;;  %v15689_v56 = vor.u32 %v19176_v23, %v15688_v14  ;;  %v15117_v14 = vor.u32 %v19028_v15, %v15114_v48  ;;  %v19032_v23 = vld [vmem:[#allocation7 + $0xf9c] sm:$0xf0]  ;;  %v15498_v42 = vld [vmem:[#allocation7 + $0x12a0] sm:$0xf0] }
 0x2dc   : > { %6451 = vmatpush.bf16.msra.mxu2 %v15629_v53  ;;  %4991 = vmatpush.bf16.msrb.mxu0 %v14877_v31  ;;  %v14810_v53 = vld [vmem:[#allocation7 + $0xd38] sm:$0xf0]  ;;  %v15466_v15 = vld [vmem:[#allocation7 + $0x1260] sm:$0xf0] }
 0x2dd   : > { %v14813_v61 = vor.u32 %v18951_v39, %v14810_v53  ;;  %v14298_v31 = vld [vmem:[#allocation7 + $0x938] sm:$0xf0]  ;;  %v15080_v39 = vld [vmem:[#allocation7 + $0xf40] sm:$0xf]  ;;  %v19012_v48 = vld [vmem:[#allocation7 + $0xf04] sm:$0xf] }
 0x2de   : > { %4963 = vmatpush.bf16.msra.mxu1 %v14365_v9  ;;  %v4673_v47 = vpop.f32.mrf.mxu1  ;;  %v14301_v9 = vor.u32 %v18823_v32, %v14298_v31  ;;  %v15624_v53 = vld [vmem:[#allocation7 + $0x1380] sm:$0xf]  ;;  %v21008_v32 = vpop.f32.mrf.mxu0 }
 0x2df   : > { %6414 = vmatpush.bf16.msra.mxu3 %v15721_v4  ;;  %v15145_v4 = vor.u32 %v19040_v16, %v15144_v6  ;;  %v21002_v13 = vadd.f32 %v4687_v45, %v4673_v47  ;;  %v19160_v6 = vld [vmem:[#allocation7 + $0x139c] sm:$0xf0]  ;;  %v21004_v16 = vpop.f32.mrf.mxu2  ;;  %21827 = vst [vmem:[#allocation51_spill] sm:$0xff] %v21008_v32  ;;  %v19004_v45 = vld [vmem:[#allocation7 + $0xec4] sm:$0xf] }
 0x2e0   : > { %6452 = vmatpush.bf16.msra.mxu2 %v15597_v25  ;;  %4992 = vmatpush.bf16.msrb.mxu0 %v14845_v8  ;;  %v19168_v25 = vld [vmem:[#allocation7 + $0x13dc] sm:$0xf0]  ;;  %v19020_v8 = vld [vmem:[#allocation7 + $0xf44] sm:$0xf]  ;;  %21826 = vst [vmem:[#allocation50_spill] sm:$0xff] %v21004_v16  ;;  %v15625_v31 = vor.u32 %v19160_v6, %v15624_v53 }
 0x2e1   : > { %v15657_v24 = vor.u32 %v19168_v25, %v15656_v52  ;;  %v19016_v52 = vld [vmem:[#allocation7 + $0xf1c] sm:$0xf0]  ;;  %v15018_v47 = vld [vmem:[#allocation7 + $0xee0] sm:$0xf0]  ;;  %v15538_v16 = vld [vmem:[#allocation7 + $0x12e8] sm:$0xf0] }
 0x2e2   : > { %4964 = vmatpush.bf16.msra.mxu1 %v14333_v2  ;;  %v19116_v2 = vld [vmem:[#allocation7 + $0x1244] sm:$0xf]  ;;  %v15592_v25 = vld [vmem:[#allocation7 + $0x1340] sm:$0xf]  ;;  %v15021_v53 = vor.u32 %v19004_v45, %v15018_v47 }
 0x2e3   : > { %6415 = vmatpush.bf16.msra.mxu3 %v15689_v56  ;;  %v15082_v56 = vld [vmem:[#allocation7 + $0xf60] sm:$0xf0] }
 0x2e4   : > { %6453 = vmatpush.bf16.msra.mxu2 %v15565_v41  ;;  %4993 = vmatpush.bf16.msrb.mxu0 %v14813_v61  ;;  %v15113_v41 = vor.u32 %v19032_v23, %v15112_v57  ;;  %v15085_v50 = vor.u32 %v19020_v8, %v15082_v56  ;;  %v15050_v61 = vld [vmem:[#allocation7 + $0xf20] sm:$0xf0]  ;;  %v15469_v57 = vor.u32 %v19116_v2, %v15466_v15  ;;  %v19201_v8 = vld [vmem:[#allocation7 + $0x14e4] sm:$0xf0] }
 0x2e5   : > { %v15053_v23 = vor.u32 %v19012_v48, %v15050_v61  ;;  %v18996_v2 = vld [vmem:[#allocation7 + $0xe84] sm:$0xf]  ;;  %v15760_v15 = vld [vmem:[#allocation7 + $0x1488] sm:$0xf] }
 0x2e6   : > { %15814 = vmatmul.msk.bf16.vlgmr.msra.gmra.mxu3 %vm2681_vm4, %v20710_v11  ;;  %4965 = vmatpush.bf16.msra.mxu1 %v14301_v9  ;;  %v15792_v9 = vld [vmem:[#allocation7 + $0x14c8] sm:$0xf]  ;;  %v18988_v45 = vld [vmem:[#allocation7 + $0xe44] sm:$0xf] }
 0x2e7   : > { %6422 = vmatpush.bf16.msrb.mxu3 %v15149_v3  ;;  %v15501_v3 = vor.u32 %v19124_v55, %v15498_v42  ;;  %v19108_v55 = vld [vmem:[#allocation7 + $0x1204] sm:$0xf]  ;;  %v15793_v6 = vor.u32 %v19201_v8, %v15792_v9  ;;  %v19193_v48 = vld [vmem:[#allocation7 + $0x14a4] sm:$0xf0]  ;;  %v4715_v61 = vpop.f32.mrf.mxu2 }
 0x2e8   : > { %6366 = vmatpush.bf16.msra.mxu0 %v15145_v4  ;;  %6454 = vmatpush.bf16.msra.mxu2 %v15533_v44  ;;  %v15048_v4 = vld [vmem:[#allocation7 + $0xf00] sm:$0xf]  ;;  %v15081_v44 = vor.u32 %v19024_v1, %v15080_v39  ;;  %v15434_v42 = vld [vmem:[#allocation7 + $0x1220] sm:$0xf0] }
 0x2e9   : > { %14917 = vmatmul.msk.bf16.vlgmr.msrb.gmra.mxu0 %vm2681_vm4, %v20846_v27  ;;  %4966 = vmatmul.bf16.vlgmr.msra.gmra.mxu1 %v20827_v19  ;;  %v15560_v39 = vld [vmem:[#allocation7 + $0x1300] sm:$0xf]  ;;  %v14986_v19 = vld [vmem:[#allocation7 + $0xea0] sm:$0xf0] }
 0x2ea   : > { %6394 = vmatpush.bf16.msrb.mxu1 %v15657_v24  ;;  %v21772_v24 = vperm.slane %v20969_v43, 2  ;;  %v19144_v27 = vld [vmem:[#allocation7 + $0x131c] sm:$0xf0]  ;;  %v14954_v8 = vld [vmem:[#allocation7 + $0xe60] sm:$0xf0] }
 0x2eb   : > { %6423 = vmatpush.bf16.msrb.mxu3 %v15117_v14  ;;  %v19152_v14 = vld [vmem:[#allocation7 + $0x135c] sm:$0xf0] }
 0x2ec   : > { %6367 = vmatpush.bf16.msra.mxu0 %v15113_v41  ;;  %6455 = vmatpush.bf16.msra.mxu2 %v15501_v3  ;;  %v15593_v56 = vor.u32 %v19152_v14, %v15592_v25  ;;  %v15049_v41 = vor.u32 %v19016_v52, %v15048_v4  ;;  %v15437_v3 = vor.u32 %v19108_v55, %v15434_v42  ;;  %v19008_v1 = vld [vmem:[#allocation7 + $0xedc] sm:$0xf0] }
 0x2ed   : > { %v15561_v25 = vor.u32 %v19144_v27, %v15560_v39  ;;  %v19136_v52 = vld [vmem:[#allocation7 + $0x12dc] sm:$0xf0]  ;;  %v14989_v14 = vor.u32 %v18996_v2, %v14986_v19  ;;  %v3151_v47 = vadd.f32 %v21772_v24, %v20871_v12  ;;  %v18980_v2 = vld [vmem:[#allocation7 + $0xe04] sm:$0xf]  ;;  %v19029_v24 = vld [vmem:[#allocation7 + $0xf8c] sm:$0xf] }
 0x2ee   : > { %6395 = vmatpush.bf16.msrb.mxu1 %v15625_v31  ;;  %v4701_v31 = vpop.f32.mrf.mxu0  ;;  %v14984_v55 = vld [vmem:[#allocation7 + $0xe80] sm:$0xf]  ;;  %v14922_v19 = vld [vmem:[#allocation7 + $0xe20] sm:$0xf0] }
 0x2ef   : > { %6424 = vmatpush.bf16.msrb.mxu3 %v15085_v50  ;;  %v15016_v50 = vld [vmem:[#allocation7 + $0xec0] sm:$0xf]  ;;  %v4702_v4 = vadd.f32 %v4701_v31, %v21002_v13 }
 0x2f0   : > { %6368 = vmatpush.bf16.msra.mxu0 %v15081_v44  ;;  %6456 = vmatpush.bf16.msra.mxu2 %v15469_v57  ;;  %v15017_v44 = vor.u32 %v19008_v1, %v15016_v50  ;;  %v15528_v57 = vld [vmem:[#allocation7 + $0x12c0] sm:$0xf]  ;;  %v14957_v50 = vor.u32 %v18988_v45, %v14954_v8 }
 0x2f1   : > { %v19000_v42 = vld [vmem:[#allocation7 + $0xe9c] sm:$0xf0]  ;;  %v4716_v9 = vadd.f32 %v4715_v61, %v4702_v4  ;;  %v15529_v13 = vor.u32 %v19136_v52, %v15528_v57  ;;  %v15408_v61 = vld [vmem:[#allocation7 + $0x11c8] sm:$0xf]  ;;  %v19037_v4 = vld [vmem:[#allocation7 + $0xfcc] sm:$0xf] }
 0x2f2   : > { %6396 = vmatpush.bf16.msrb.mxu1 %v15593_v56  ;;  %v15728_v56 = vld [vmem:[#allocation7 + $0x1448] sm:$0xf]  ;;  %v14985_v39 = vor.u32 %v19000_v42, %v14984_v55  ;;  %v14952_v27 = vld [vmem:[#allocation7 + $0xe40] sm:$0xf]  ;;  %v15154_v57 = vld [vmem:[#allocation7 + $0xfe8] sm:$0xf0]  ;;  %v21021_v42 = vpop.f32.mrf.mxu2 }
 0x2f3   : > { %6425 = vmatpush.bf16.msrb.mxu3 %v15053_v23  ;;  %v15761_v23 = vor.u32 %v19193_v48, %v15760_v15  ;;  %v18992_v12 = vld [vmem:[#allocation7 + $0xe5c] sm:$0xf0]  ;;  %v15696_v15 = vld [vmem:[#allocation7 + $0x1408] sm:$0xf]  ;;  %21828 = vst [vmem:[#allocation52_spill] sm:$0xff] %v21021_v42 }
 0x2f4   : > { %6369 = vmatpush.bf16.msra.mxu0 %v15049_v41  ;;  %6457 = vmatpush.bf16.msra.mxu2 %v15437_v3  ;;  %v19185_v41 = vld [vmem:[#allocation7 + $0x1464] sm:$0xf0]  ;;  %v21019_v3 = vadd.f32 %v4716_v9, %v3151_v47  ;;  %v15464_v52 = vld [vmem:[#allocation7 + $0x1240] sm:$0xf]  ;;  %v15090_v42 = vld [vmem:[#allocation7 + $0xf68] sm:$0xf0] }
 0x2f5   : > { %v15729_v1 = vor.u32 %v19185_v41, %v15728_v56  ;;  %v19177_v48 = vld [vmem:[#allocation7 + $0x1424] sm:$0xf0]  ;;  %v19120_v55 = vld [vmem:[#allocation7 + $0x125c] sm:$0xf0]  ;;  %v15157_v56 = vor.u32 %v19037_v4, %v15154_v57  ;;  %v19100_v41 = vld [vmem:[#allocation7 + $0x11c4] sm:$0xf] }
 0x2f6   : > { %6397 = vmatpush.bf16.msrb.mxu1 %v15561_v25  ;;  %v19105_v25 = vld [vmem:[#allocation7 + $0x11e4] sm:$0xf0]  ;;  %v15697_v45 = vor.u32 %v19177_v48, %v15696_v15  ;;  %v14920_v47 = vld [vmem:[#allocation7 + $0xe00] sm:$0xf]  ;;  %v19092_v15 = vld [vmem:[#allocation7 + $0x1184] sm:$0xf] }
 0x2f7   : > { %6426 = vmatpush.bf16.msrb.mxu3 %v15021_v53  ;;  %6458 = vmatmul.bf16.vlgmr.msra.gmra.mxu2 %v20708_v46  ;;  %v15496_v53 = vld [vmem:[#allocation7 + $0x1280] sm:$0xf]  ;;  %v15409_v8 = vor.u32 %v19105_v25, %v15408_v61  ;;  %v15370_v48 = vld [vmem:[#allocation7 + $0x11a0] sm:$0xf0]  ;;  %v15125_v25 = vor.u32 %v19029_v24, %v15122_v36 }
 0x2f8   : > { %6524 = vmatpush.bf16.msrb.mxu2 %v15793_v6  ;;  %6370 = vmatpush.bf16.msra.mxu0 %v15017_v44  ;;  %v19128_v6 = vld [vmem:[#allocation7 + $0x129c] sm:$0xf0]  ;;  %v14953_v44 = vor.u32 %v18992_v12, %v14952_v27  ;;  %v15465_v27 = vor.u32 %v19120_v55, %v15464_v52  ;;  %v19097_v12 = vld [vmem:[#allocation7 + $0x11a4] sm:$0xf0]  ;;  %v19196_v4 = vld [vmem:[#allocation7 + $0x14c4] sm:$0xf] }
 0x2f9   : > { %v15497_v31 = vor.u32 %v19128_v6, %v15496_v53  ;;  %v18984_v9 = vld [vmem:[#allocation7 + $0xe1c] sm:$0xf0]  ;;  %v15376_v53 = vld [vmem:[#allocation7 + $0x1188] sm:$0xf]  ;;  %v21025_v6 = vpop.f32.mrf.mxu3  ;;  %v15786_v57 = vld [vmem:[#allocation7 + $0x14e0] sm:$0xf0] }
 0x2fa   : > { %6398 = vmatpush.bf16.msrb.mxu1 %v15529_v13  ;;  %v15402_v13 = vld [vmem:[#allocation7 + $0x11e0] sm:$0xf0]  ;;  %21830 = vst [vmem:[#allocation54_spill] sm:$0xff] %v21025_v6  ;;  %v15377_v61 = vor.u32 %v19097_v12, %v15376_v53  ;;  %v19089_v52 = vld [vmem:[#allocation7 + $0x1164] sm:$0xf0] }
 0x2fb   : > { %6427 = vmatpush.bf16.msrb.mxu3 %v14989_v14  ;;  %v21023_v14 = vpop.f32.mrf.mxu1  ;;  %v19021_v55 = vld [vmem:[#allocation7 + $0xf4c] sm:$0xf]  ;;  %v15338_v36 = vld [vmem:[#allocation7 + $0x1160] sm:$0xf0]  ;;  %v15312_v12 = vld [vmem:[#allocation7 + $0x1108] sm:$0xf] }
 0x2fc   : > { %6525 = vmatpush.bf16.msrb.mxu2 %v15761_v23  ;;  %6371 = vmatpush.bf16.msra.mxu0 %v14985_v39  ;;  %21829 = vst [vmem:[#allocation53_spill] sm:$0xff] %v21023_v14  ;;  %v14925_v23 = vor.u32 %v18980_v2, %v14922_v19  ;;  %v21027_v39 = vpop.f32.mrf.mxu0  ;;  %v15405_v2 = vor.u32 %v19100_v41, %v15402_v13  ;;  %v19112_v19 = vld [vmem:[#allocation7 + $0x121c] sm:$0xf0]  ;;  %v19188_v53 = vld [vmem:[#allocation7 + $0x1484] sm:$0xf] }
 0x2fd   : > { %21831 = vst [vmem:[#allocation55_spill] sm:$0xff] %v21027_v39  ;;  %v15093_v13 = vor.u32 %v19021_v55, %v15090_v42  ;;  %v19157_v6 = vld [vmem:[#allocation7 + $0x138c] sm:$0xf] }
 0x2fe   : > { %6399 = vmatpush.bf16.msrb.mxu1 %v15497_v31  ;;  %v15344_v31 = vld [vmem:[#allocation7 + $0x1148] sm:$0xf]  ;;  %v15634_v14 = vld [vmem:[#allocation7 + $0x13a8] sm:$0xf0] }
 0x2ff   : > { %6428 = vmatpush.bf16.msrb.mxu3 %v14957_v50  ;;  %v14921_v50 = vor.u32 %v18984_v9, %v14920_v47  ;;  %v15373_v9 = vor.u32 %v19092_v15, %v15370_v48  ;;  %v15345_v41 = vor.u32 %v19089_v52, %v15344_v31 }
 0x300   : > { %6526 = vmatpush.bf16.msrb.mxu2 %v15729_v1  ;;  %6372 = vmatpush.bf16.msra.mxu0 %v14953_v44  ;;  %v15432_v1 = vld [vmem:[#allocation7 + $0x1200] sm:$0xf] }
 0x301   : > { %v15433_v44 = vor.u32 %v19112_v19, %v15432_v1  ;;  %v19081_v1 = vld [vmem:[#allocation7 + $0x1124] sm:$0xf0]  ;;  %v15058_v19 = vld [vmem:[#allocation7 + $0xf28] sm:$0xf0] }
 0x302   : > { %6400 = vmatpush.bf16.msrb.mxu1 %v15465_v27  ;;  %v15754_v27 = vld [vmem:[#allocation7 + $0x14a0] sm:$0xf0]  ;;  %v15313_v52 = vor.u32 %v19081_v1, %v15312_v12  ;;  %v15152_v12 = vld [vmem:[#allocation7 + $0xfc8] sm:$0xf] }
 0x303   : > { %6429 = vmatpush.bf16.msrb.mxu3 %v14925_v23  ;;  %v21774_v23 = vperm.slane %v20969_v43, 3  ;;  %v4743_v47 = vpop.f32.mrf.mxu1  ;;  %v19041_v1 = vld [vmem:[#allocation7 + $0xfe4] sm:$0xf0] }
 0x304   : > { %6527 = vmatpush.bf16.msrb.mxu2 %v15697_v45  ;;  %6373 = vmatpush.bf16.msra.mxu0 %v14921_v50  ;;  %v4729_v45 = vpop.f32.mrf.mxu2  ;;  %v4757_v50 = vpop.f32.mrf.mxu3 }
 0x305   : > { %v4744_v24 = vadd.f32 %v4743_v47, %v4729_v45  ;;  %v3152_v48 = vadd.f32 %v21774_v23, %v20893_v29  ;;  %v19180_v45 = vld [vmem:[#allocation7 + $0x1444] sm:$0xf]  ;;  %v15026_v29 = vld [vmem:[#allocation7 + $0xee8] sm:$0xf0] }
 0x306   : > { %6430 = vmatmul.bf16.vlgmr.msrb.gmra.mxu3 %v20628_v17  ;;  %6401 = vmatpush.bf16.msrb.mxu1 %v15433_v44  ;;  %v15722_v47 = vld [vmem:[#allocation7 + $0x1460] sm:$0xf0]  ;;  %v19073_v44 = vld [vmem:[#allocation7 + $0x10e4] sm:$0xf0] }
 0x307   : > { %6492 = vmatpush.bf16.msra.mxu3 %v15409_v8  ;;  %v15789_v8 = vor.u32 %v19196_v4, %v15786_v57  ;;  %6374 = vmatmul.bf16.vlgmr.msra.gmra.mxu0 %v20628_v17  ;;  %v4758_v15 = vadd.f32 %v4757_v50, %v4744_v24  ;;  %v19076_v4 = vld [vmem:[#allocation7 + $0x1104] sm:$0xf]  ;;  %v15280_v24 = vld [vmem:[#allocation7 + $0x10c8] sm:$0xf]  ;;  %v19005_v50 = vld [vmem:[#allocation7 + $0xecc] sm:$0xf] }
 0x308   : > { %6534 = vmatpush.bf16.msra.mxu2 %v15157_v56  ;;  %6436 = vmatpush.bf16.msrb.mxu0 %v15405_v2  ;;  %v19084_v56 = vld [vmem:[#allocation7 + $0x1144] sm:$0xf]  ;;  %v19013_v2 = vld [vmem:[#allocation7 + $0xf0c] sm:$0xf] }
 0x309   : > { %15816 = vmatmul.msk.bf16.vlgmr.msrb.gmra.mxu2 %vm2681_vm4, %v20710_v11  ;;  %v15341_v42 = vor.u32 %v19084_v56, %v15338_v36  ;;  %v15306_v57 = vld [vmem:[#allocation7 + $0x1120] sm:$0xf0]  ;;  %v15061_v55 = vor.u32 %v19013_v2, %v15058_v19  ;;  %6402 = vmatmul.bf16.vlgmr.msrb.gmra.mxu1 %v20708_v46  ;;  %v15248_v2 = vld [vmem:[#allocation7 + $0x1088] sm:$0xf] }
 0x30a   : > { %6468 = vmatpush.bf16.msra.mxu1 %v15789_v8  ;;  %v15725_v8 = vor.u32 %v19180_v45, %v15722_v47  ;;  %v19068_v56 = vld [vmem:[#allocation7 + $0x10c4] sm:$0xf]  ;;  %v19065_v19 = vld [vmem:[#allocation7 + $0x10a4] sm:$0xf0] }
 0x30b   : > { %6493 = vmatpush.bf16.msra.mxu3 %v15377_v61  ;;  %v4771_v61 = vpop.f32.mrf.mxu0  ;;  %v15274_v36 = vld [vmem:[#allocation7 + $0x10e0] sm:$0xf0]  ;;  %v19033_v45 = vld [vmem:[#allocation7 + $0xfa4] sm:$0xf0] }
 0x30c   : > { %6535 = vmatpush.bf16.msra.mxu2 %v15125_v25  ;;  %6437 = vmatpush.bf16.msrb.mxu0 %v15373_v9  ;;  %v15757_v25 = vor.u32 %v19188_v53, %v15754_v27  ;;  %v4772_v31 = vadd.f32 %v4771_v61, %v4758_v15  ;;  %v15309_v9 = vor.u32 %v19076_v4, %v15306_v57  ;;  %v19172_v53 = vld [vmem:[#allocation7 + $0x1404] sm:$0xf]  ;;  %v18997_v15 = vld [vmem:[#allocation7 + $0xe8c] sm:$0xf]  ;;  %v15216_v47 = vld [vmem:[#allocation7 + $0x1048] sm:$0xf]  ;;  %v21044_v39 = vpop.f32.mrf.mxu3 }
 0x30d   : > { %v15690_v27 = vld [vmem:[#allocation7 + $0x1420] sm:$0xf0]  ;;  %v14994_v61 = vld [vmem:[#allocation7 + $0xea8] sm:$0xf0]  ;;  %v15249_v4 = vor.u32 %v19065_v19, %v15248_v2  ;;  %v19049_v2 = vld [vmem:[#allocation7 + $0x1024] sm:$0xf0] }
 0x30e   : > { %v21038_v23 = vadd.f32 %v4772_v31, %v3152_v48  ;;  %6469 = vmatpush.bf16.msra.mxu1 %v15757_v25  ;;  %v15277_v48 = vor.u32 %v19068_v56, %v15274_v36  ;;  %v15153_v25 = vor.u32 %v19041_v1, %v15152_v12  ;;  %v19060_v57 = vld [vmem:[#allocation7 + $0x1084] sm:$0xf]  ;;  %v15184_v1 = vld [vmem:[#allocation7 + $0x1008] sm:$0xf]  ;;  %v18981_v19 = vld [vmem:[#allocation7 + $0xe0c] sm:$0xf] }
 0x30f   : > { %6494 = vmatpush.bf16.msra.mxu3 %v15345_v41  ;;  %v15281_v41 = vor.u32 %v19073_v44, %v15280_v24  ;;  %v15242_v31 = vld [vmem:[#allocation7 + $0x10a0] sm:$0xf0]  ;;  %v19057_v24 = vld [vmem:[#allocation7 + $0x1064] sm:$0xf0]  ;;  %v18989_v44 = vld [vmem:[#allocation7 + $0xe4c] sm:$0xf] }
 0x310   : > { %6536 = vmatpush.bf16.msra.mxu2 %v15093_v13  ;;  %6438 = vmatpush.bf16.msrb.mxu0 %v15341_v42  ;;  %v15029_v13 = vor.u32 %v19005_v50, %v15026_v29  ;;  %v15693_v42 = vor.u32 %v19172_v53, %v15690_v27  ;;  %v14962_v50 = vld [vmem:[#allocation7 + $0xe68] sm:$0xf0]  ;;  %v15245_v29 = vor.u32 %v19060_v57, %v15242_v31  ;;  %v15088_v53 = vld [vmem:[#allocation7 + $0xf48] sm:$0xf]  ;;  %v15416_v57 = vld [vmem:[#allocation7 + $0x11d0] sm:$0xf] }
 0x311   : > { %v19025_v27 = vld [vmem:[#allocation7 + $0xf64] sm:$0xf0]  ;;  %v14965_v12 = vor.u32 %v18989_v44, %v14962_v50  ;;  %v19106_v31 = vld [vmem:[#allocation7 + $0x11ec] sm:$0xf0] }
 0x312   : > { %6470 = vmatpush.bf16.msra.mxu1 %v15725_v8  ;;  %v21040_v8 = vpop.f32.mrf.mxu2  ;;  %v15056_v44 = vld [vmem:[#allocation7 + $0xf08] sm:$0xf] }
 0x313   : > { %6495 = vmatpush.bf16.msra.mxu3 %v15313_v52  ;;  %v15120_v52 = vld [vmem:[#allocation7 + $0xf88] sm:$0xf]  ;;  %v21042_v56 = vpop.f32.mrf.mxu0 }
 0x314   : > { %6537 = vmatpush.bf16.msra.mxu2 %v15061_v55  ;;  %6439 = vmatpush.bf16.msrb.mxu0 %v15309_v9  ;;  %v14997_v55 = vor.u32 %v18997_v15, %v14994_v61  ;;  %v19052_v9 = vld [vmem:[#allocation7 + $0x1044] sm:$0xf]  ;;  %v15121_v36 = vor.u32 %v19033_v45, %v15120_v52  ;;  %v14930_v15 = vld [vmem:[#allocation7 + $0xe28] sm:$0xf0]  ;;  %v15185_v52 = vor.u32 %v19049_v2, %v15184_v1  ;;  %v19017_v50 = vld [vmem:[#allocation7 + $0xf24] sm:$0xf0] }
 0x315   : > { %v19165_v61 = vld [vmem:[#allocation7 + $0x13cc] sm:$0xf]  ;;  %v15178_v45 = vld [vmem:[#allocation7 + $0x1020] sm:$0xf0]  ;;  %v15057_v1 = vor.u32 %v19017_v50, %v15056_v44 }
 0x316   : > { %6471 = vmatpush.bf16.msra.mxu1 %v15693_v42 }
 0x317   : > { %6496 = vmatpush.bf16.msra.mxu3 %v15281_v41  ;;  %v15217_v41 = vor.u32 %v19057_v24, %v15216_v47  ;;  %v14933_v47 = vor.u32 %v18981_v19, %v14930_v15  ;;  %v15637_v15 = vor.u32 %v19157_v6, %v15634_v14 }
 0x318   : > { %6538 = vmatpush.bf16.msra.mxu2 %v15029_v13  ;;  %6440 = vmatpush.bf16.msrb.mxu0 %v15277_v48  ;;  %v15210_v13 = vld [vmem:[#allocation7 + $0x1060] sm:$0xf0]  ;;  %v15666_v48 = vld [vmem:[#allocation7 + $0x13e8] sm:$0xf0] }
 0x319   : > { %v15213_v42 = vor.u32 %v19052_v9, %v15210_v13  ;;  %15815 = vmatmul.msk.bf16.vlgmr.msra.gmra.mxu1 %vm2681_vm4, %v20710_v11  ;;  %v15669_v24 = vor.u32 %v19165_v61, %v15666_v48  ;;  %v15417_v9 = vor.u32 %v19106_v31, %v15416_v57  ;;  %v19169_v13 = vld [vmem:[#allocation7 + $0x13e4] sm:$0xf0] }
 0x31a   : > { %6478 = vmatpush.bf16.msrb.mxu1 %v15153_v25  ;;  %v21046_v25 = vpop.f32.mrf.mxu1  ;;  %v15024_v61 = vld [vmem:[#allocation7 + $0xec8] sm:$0xf] }
 0x31b   : > { %6497 = vmatpush.bf16.msra.mxu3 %v15249_v4  ;;  %v15089_v4 = vor.u32 %v19025_v27, %v15088_v53  ;;  %v19098_v53 = vld [vmem:[#allocation7 + $0x11ac] sm:$0xf0]  ;;  %v4799_v27 = vpop.f32.mrf.mxu2  ;;  %v19009_v48 = vld [vmem:[#allocation7 + $0xee4] sm:$0xf0] }
 0x31c   : > { %6539 = vmatpush.bf16.msra.mxu2 %v14997_v55  ;;  %6441 = vmatpush.bf16.msrb.mxu0 %v15245_v29  ;;  %v19044_v55 = vld [vmem:[#allocation7 + $0x1004] sm:$0xf]  ;;  %v15664_v29 = vld [vmem:[#allocation7 + $0x13c8] sm:$0xf]  ;;  %v15025_v6 = vor.u32 %v19009_v48, %v15024_v61 }
 0x31d   : > { %v15665_v19 = vor.u32 %v19169_v13, %v15664_v29  ;;  %v15632_v57 = vld [vmem:[#allocation7 + $0x1388] sm:$0xf] }
 0x31e   : > { %6479 = vmatpush.bf16.msrb.mxu1 %v15121_v36  ;;  %v15181_v36 = vor.u32 %v19044_v55, %v15178_v45  ;;  %v15602_v55 = vld [vmem:[#allocation7 + $0x1368] sm:$0xf0]  ;;  %v21050_v45 = vld [vmem:[#allocation8] sm:$0xff]  ;;  %v15633_v44 = vor.u32 %v19161_v40, %v15632_v57  ;;  %v14992_v29 = vld [vmem:[#allocation7 + $0xe88] sm:$0xf] }
 0x31f   : > { %6498 = vmatpush.bf16.msra.mxu3 %v15217_v41  ;;  %v15384_v41 = vld [vmem:[#allocation7 + $0x1190] sm:$0xf]  ;;  %21832 = vst [vmem:[#allocation56_spill] sm:$0xff] %v21050_v45  ;;  %v15600_v13 = vld [vmem:[#allocation7 + $0x1348] sm:$0xf] }
 0x320   : > { %6540 = vmatpush.bf16.msra.mxu2 %v14965_v12  ;;  %6442 = vmatpush.bf16.msrb.mxu0 %v15213_v42  ;;  %v4785_v12 = vpop.f32.mrf.mxu0  ;;  %v15385_v31 = vor.u32 %v19098_v53, %v15384_v41  ;;  %v19149_v42 = vld [vmem:[#allocation7 + $0x134c] sm:$0xf]  ;;  %v4827_v41 = vpop.f32.mrf.mxu3  ;;  %v19153_v53 = vld [vmem:[#allocation7 + $0x1364] sm:$0xf0] }
 0x321   : > { %v4800_v2 = vadd.f32 %v4799_v27, %v4785_v12  ;;  %v15605_v50 = vor.u32 %v19149_v42, %v15602_v55  ;;  %v19141_v27 = vld [vmem:[#allocation7 + $0x130c] sm:$0xf]  ;;  %v15601_v48 = vor.u32 %v19153_v53, %v15600_v13  ;;  %v18993_v42 = vld [vmem:[#allocation7 + $0xe64] sm:$0xf0] }
 0x322   : > { %6480 = vmatpush.bf16.msrb.mxu1 %v15089_v4  ;;  %v21775_v4 = vperm.slane %v21050_v45, 4  ;;  %v4813_v14 = vpop.f32.mrf.mxu1  ;;  %v15570_v12 = vld [vmem:[#allocation7 + $0x1328] sm:$0xf0]  ;;  %v15568_v55 = vld [vmem:[#allocation7 + $0x1308] sm:$0xf] }
 0x323   : > { %6499 = vmatpush.bf16.msra.mxu3 %v15185_v52  ;;  %v15352_v52 = vld [vmem:[#allocation7 + $0x1150] sm:$0xf]  ;;  %v15573_v57 = vor.u32 %v19141_v27, %v15570_v12  ;;  %v19137_v13 = vld [vmem:[#allocation7 + $0x12e4] sm:$0xf0]  ;;  %v19101_v27 = vld [vmem:[#allocation7 + $0x11cc] sm:$0xf] }
 0x324   : > { %6541 = vmatpush.bf16.msra.mxu2 %v14933_v47  ;;  %6443 = vmatpush.bf16.msrb.mxu0 %v15181_v36  ;;  %v19090_v47 = vld [vmem:[#allocation7 + $0x116c] sm:$0xf0]  ;;  %v19125_v12 = vld [vmem:[#allocation7 + $0x128c] sm:$0xf] }
 0x325   : > { %v15353_v36 = vor.u32 %v19090_v47, %v15352_v52  ;;  %v19145_v47 = vld [vmem:[#allocation7 + $0x1324] sm:$0xf0] }
 0x326   : > { %6500 = vmatmul.bf16.vlgmr.msra.gmra.mxu3 %v20630_v26  ;;  %6481 = vmatpush.bf16.msrb.mxu1 %v15057_v1  ;;  %v3153_v1 = vadd.f32 %v21775_v4, %v20909_v21  ;;  %v15288_v21 = vld [vmem:[#allocation7 + $0x10d0] sm:$0xf] }
 0x327   : > { %6562 = vmatpush.bf16.msrb.mxu3 %v15669_v24  ;;  %6542 = vmatmul.bf16.vlgmr.msra.gmra.mxu2 %v20628_v17  ;;  %v4814_v24 = vadd.f32 %v4813_v14, %v4800_v2  ;;  %v19082_v2 = vld [vmem:[#allocation7 + $0x112c] sm:$0xf0]  ;;  %v19133_v14 = vld [vmem:[#allocation7 + $0x12cc] sm:$0xf] }
 0x328   : > { %6604 = vmatpush.bf16.msrb.mxu2 %v15417_v9  ;;  %6506 = vmatpush.bf16.msra.mxu0 %v15665_v19  ;;  %v19001_v9 = vld [vmem:[#allocation7 + $0xea4] sm:$0xf0]  ;;  %v19058_v4 = vld [vmem:[#allocation7 + $0x106c] sm:$0xf0]  ;;  %v21063_v32 = vpop.f32.mrf.mxu3 }
 0x329   : > { %6444 = vmatmul.bf16.vlgmr.msrb.gmra.mxu0 %v20630_v26  ;;  %v4828_v19 = vadd.f32 %v4827_v41, %v4814_v24  ;;  %v14993_v40 = vor.u32 %v19001_v9, %v14992_v29  ;;  %v19074_v24 = vld [vmem:[#allocation7 + $0x10ec] sm:$0xf0]  ;;  %v15569_v29 = vor.u32 %v19145_v47, %v15568_v55  ;;  %v15536_v9 = vld [vmem:[#allocation7 + $0x12c8] sm:$0xf]  ;;  %v15378_v47 = vld [vmem:[#allocation7 + $0x11a8] sm:$0xf0] }
 0x32a   : > { %6482 = vmatpush.bf16.msrb.mxu1 %v15025_v6  ;;  %v14928_v6 = vld [vmem:[#allocation7 + $0xe08] sm:$0xf]  ;;  %v15289_v53 = vor.u32 %v19074_v24, %v15288_v21  ;;  %v15474_v21 = vld [vmem:[#allocation7 + $0x1268] sm:$0xf0]  ;;  %v15224_v24 = vld [vmem:[#allocation7 + $0x1050] sm:$0xf] }
 0x32b   : > { %6563 = vmatpush.bf16.msrb.mxu3 %v15637_v15  ;;  %v15320_v15 = vld [vmem:[#allocation7 + $0x1110] sm:$0xf]  ;;  %v21059_v61 = vadd.f32 %v4828_v19, %v3153_v1  ;;  %v15506_v1 = vld [vmem:[#allocation7 + $0x12a8] sm:$0xf0]  ;;  %21834 = vst [vmem:[#allocation58_spill] sm:$0xff] %v21063_v32 }
 0x32c   : > { %6605 = vmatpush.bf16.msrb.mxu2 %v15385_v31  ;;  %6507 = vmatpush.bf16.msra.mxu0 %v15633_v44  ;;  %v14960_v31 = vld [vmem:[#allocation7 + $0xe48] sm:$0xf]  ;;  %v15321_v52 = vor.u32 %v19082_v2, %v15320_v15  ;;  %v15541_v44 = vor.u32 %v19133_v14, %v15538_v16  ;;  %v15256_v19 = vld [vmem:[#allocation7 + $0x1090] sm:$0xf]  ;;  %v21061_v16 = vpop.f32.mrf.mxu1  ;;  %v19117_v14 = vld [vmem:[#allocation7 + $0x124c] sm:$0xf] }
 0x32d   : > { %v14961_v41 = vor.u32 %v18993_v42, %v14960_v31  ;;  %v19066_v15 = vld [vmem:[#allocation7 + $0x10ac] sm:$0xf0]  ;;  %v19129_v31 = vld [vmem:[#allocation7 + $0x12a4] sm:$0xf0]  ;;  %21833 = vst [vmem:[#allocation57_spill] sm:$0xff] %v21061_v16  ;;  %v15509_v42 = vor.u32 %v19125_v12, %v15506_v1  ;;  %v21067_v1 = vpop.f32.mrf.mxu2 }
 0x32e   : > { %6483 = vmatpush.bf16.msrb.mxu1 %v14993_v40  ;;  %v15537_v40 = vor.u32 %v19137_v13, %v15536_v9  ;;  %v15257_v55 = vor.u32 %v19066_v15, %v15256_v19  ;;  %v19085_v9 = vld [vmem:[#allocation7 + $0x114c] sm:$0xf]  ;;  %v15477_v13 = vor.u32 %v19117_v14, %v15474_v21  ;;  %21836 = vst [vmem:[#allocation60_spill] sm:$0xff] %v21067_v1  ;;  %v15192_v19 = vld [vmem:[#allocation7 + $0x1010] sm:$0xf] }
 0x32f   : > { %6564 = vmatpush.bf16.msrb.mxu3 %v15605_v50  ;;  %v18985_v50 = vld [vmem:[#allocation7 + $0xe24] sm:$0xf0]  ;;  %v15442_v12 = vld [vmem:[#allocation7 + $0x1228] sm:$0xf0]  ;;  %v19050_v15 = vld [vmem:[#allocation7 + $0x102c] sm:$0xf0] }
 0x330   : > { %6606 = vmatpush.bf16.msrb.mxu2 %v15353_v36  ;;  %6508 = vmatpush.bf16.msra.mxu0 %v15601_v48  ;;  %v15410_v36 = vld [vmem:[#allocation7 + $0x11e8] sm:$0xf0]  ;;  %v14929_v2 = vor.u32 %v18985_v50, %v14928_v6  ;;  %v19121_v50 = vld [vmem:[#allocation7 + $0x1264] sm:$0xf0]  ;;  %v4841_v16 = vpop.f32.mrf.mxu3 }
 0x331   : > { %v15413_v48 = vor.u32 %v19101_v27, %v15410_v36  ;;  %v15346_v27 = vld [vmem:[#allocation7 + $0x1168] sm:$0xf0] }
 0x332   : > { %6484 = vmatpush.bf16.msrb.mxu1 %v14961_v41  ;;  %v21065_v41 = vpop.f32.mrf.mxu0  ;;  %v19109_v36 = vld [vmem:[#allocation7 + $0x120c] sm:$0xf] }
 0x333   : > { %6565 = vmatpush.bf16.msrb.mxu3 %v15573_v57  ;;  %v15504_v57 = vld [vmem:[#allocation7 + $0x1288] sm:$0xf]  ;;  %21835 = vst [vmem:[#allocation59_spill] sm:$0xff] %v21065_v41  ;;  %v19197_v32 = vld [vmem:[#allocation7 + $0x14cc] sm:$0xf] }
 0x334   : > { %6607 = vmatpush.bf16.msrb.mxu2 %v15321_v52  ;;  %6509 = vmatpush.bf16.msra.mxu0 %v15569_v29  ;;  %v19093_v52 = vld [vmem:[#allocation7 + $0x118c] sm:$0xf]  ;;  %v15505_v6 = vor.u32 %v19129_v31, %v15504_v57  ;;  %v15674_v57 = vld [vmem:[#allocation7 + $0x13f0] sm:$0xf0]  ;;  %v4883_v1 = vpop.f32.mrf.mxu1 }
 0x335   : > { %v15381_v29 = vor.u32 %v19093_v52, %v15378_v47  ;;  %v15440_v52 = vld [vmem:[#allocation7 + $0x1208] sm:$0xf]  ;;  %v15794_v41 = vld [vmem:[#allocation7 + $0x14e8] sm:$0xf0] }
 0x336   : > { %6485 = vmatpush.bf16.msrb.mxu1 %v14929_v2  ;;  %v15800_v2 = vld [vmem:[#allocation7 + $0x14d0] sm:$0xf]  ;;  %v19113_v47 = vld [vmem:[#allocation7 + $0x1224] sm:$0xf0] }
 0x337   : > { %6566 = vmatpush.bf16.msrb.mxu3 %v15541_v44  ;;  %v15472_v44 = vld [vmem:[#allocation7 + $0x1248] sm:$0xf] }
 0x338   : > { %6608 = vmatpush.bf16.msrb.mxu2 %v15289_v53  ;;  %6510 = vmatpush.bf16.msra.mxu0 %v15537_v40  ;;  %v15225_v53 = vor.u32 %v19058_v4, %v15224_v24  ;;  %v19202_v40 = vld [vmem:[#allocation7 + $0x14ec] sm:$0xf0]  ;;  %v15473_v31 = vor.u32 %v19121_v50, %v15472_v44  ;;  %v15445_v4 = vor.u32 %v19109_v36, %v15442_v12  ;;  %v19077_v24 = vld [vmem:[#allocation7 + $0x110c] sm:$0xf]  ;;  %v19158_v44 = vld [vmem:[#allocation7 + $0x1394] sm:$0xf] }
 0x339   : > { %6486 = vmatmul.bf16.vlgmr.msrb.gmra.mxu1 %v20628_v17  ;;  %v15801_v14 = vor.u32 %v19202_v40, %v15800_v2  ;;  %v15642_v50 = vld [vmem:[#allocation7 + $0x13b0] sm:$0xf0]  ;;  %v15797_v36 = vor.u32 %v19197_v32, %v15794_v41  ;;  %v15769_v12 = vor.u32 %v19194_v59, %v15768_v60  ;;  %v19189_v2 = vld [vmem:[#allocation7 + $0x148c] sm:$0xf] }
 0x33a   : > { %6548 = vmatpush.bf16.msra.mxu1 %v15413_v48  ;;  %v19166_v48 = vld [vmem:[#allocation7 + $0x13d4] sm:$0xf]  ;;  %v19061_v59 = vld [vmem:[#allocation7 + $0x108c] sm:$0xf] }
 0x33b   : > { %6567 = vmatpush.bf16.msrb.mxu3 %v15509_v42  ;;  %v15349_v42 = vor.u32 %v19085_v9, %v15346_v27  ;;  %v15677_v21 = vor.u32 %v19166_v48, %v15674_v57  ;;  %v21776_v9 = vperm.slane %v21050_v45, 5  ;;  %v4869_v27 = vpop.f32.mrf.mxu2  ;;  %v15645_v48 = vor.u32 %v19158_v44, %v15642_v50  ;;  %v15762_v57 = vld [vmem:[#allocation7 + $0x14a8] sm:$0xf0]  ;;  %v19038_v44 = vld [vmem:[#allocation7 + $0xfd4] sm:$0xf] }
 0x33c   : > { %6609 = vmatpush.bf16.msrb.mxu2 %v15257_v55  ;;  %6511 = vmatpush.bf16.msra.mxu0 %v15505_v6  ;;  %v15193_v55 = vor.u32 %v19050_v15, %v15192_v19  ;;  %v4855_v6 = vpop.f32.mrf.mxu0  ;;  %v19069_v19 = vld [vmem:[#allocation7 + $0x10cc] sm:$0xf]  ;;  %v15765_v32 = vor.u32 %v19189_v2, %v15762_v57  ;;  %v15162_v50 = vld [vmem:[#allocation7 + $0xff0] sm:$0xf0] }
 0x33d   : > { %v15282_v15 = vld [vmem:[#allocation7 + $0x10e8] sm:$0xf0] }
 0x33e   : > { %6549 = vmatpush.bf16.msra.mxu1 %v15381_v29  ;;  %v15441_v29 = vor.u32 %v19113_v47, %v15440_v52  ;;  %v15285_v60 = vor.u32 %v19069_v19, %v15282_v15  ;;  %v15250_v52 = vld [vmem:[#allocation7 + $0x10a8] sm:$0xf0] }
 0x33f   : > { %6568 = vmatpush.bf16.msrb.mxu3 %v15477_v13  ;;  %v4856_v13 = vadd.f32 %v4855_v6, %v4841_v16  ;;  %v19181_v47 = vld [vmem:[#allocation7 + $0x144c] sm:$0xf]  ;;  %v19142_v6 = vld [vmem:[#allocation7 + $0x1314] sm:$0xf] }
 0x340   : > { %6610 = vmatpush.bf16.msrb.mxu2 %v15225_v53  ;;  %6512 = vmatpush.bf16.msra.mxu0 %v15473_v31  ;;  %v15317_v53 = vor.u32 %v19077_v24, %v15314_v35  ;;  %v15736_v31 = vld [vmem:[#allocation7 + $0x1450] sm:$0xf]  ;;  %v3154_v35 = vadd.f32 %v21776_v9, %v20921_v34  ;;  %v19053_v19 = vld [vmem:[#allocation7 + $0x104c] sm:$0xf]  ;;  %v15776_v9 = vld [vmem:[#allocation7 + $0x1498] sm:$0xf] }
 0x341   : > { %v4870_v40 = vadd.f32 %v4869_v27, %v4856_v13  ;;  %v15704_v34 = vld [vmem:[#allocation7 + $0x1410] sm:$0xf]  ;;  %v21079_v13 = vpop.f32.mrf.mxu3  ;;  %v15253_v27 = vor.u32 %v19061_v59, %v15250_v52  ;;  %v15218_v15 = vld [vmem:[#allocation7 + $0x1068] sm:$0xf0] }
 0x342   : > { %6550 = vmatpush.bf16.msra.mxu1 %v15349_v42  ;;  %v19186_v42 = vld [vmem:[#allocation7 + $0x146c] sm:$0xf0]  ;;  %21837 = vst [vmem:[#allocation61_spill] sm:$0xff] %v21079_v13  ;;  %v15698_v57 = vld [vmem:[#allocation7 + $0x1428] sm:$0xf0] }
 0x343   : > { %6569 = vmatpush.bf16.msrb.mxu3 %v15445_v4  ;;  %v19150_v4 = vld [vmem:[#allocation7 + $0x1354] sm:$0xf]  ;;  %v4884_v16 = vadd.f32 %v4883_v1, %v4870_v40  ;;  %v15737_v41 = vor.u32 %v19186_v42, %v15736_v31  ;;  %v19178_v1 = vld [vmem:[#allocation7 + $0x142c] sm:$0xf0]  ;;  %v15165_v40 = vor.u32 %v19038_v44, %v15162_v50 }
 0x344   : > { %6611 = vmatpush.bf16.msrb.mxu2 %v15193_v55  ;;  %6513 = vmatpush.bf16.msra.mxu0 %v15441_v29  ;;  %v15610_v55 = vld [vmem:[#allocation7 + $0x1370] sm:$0xf0]  ;;  %v15160_v31 = vld [vmem:[#allocation7 + $0xfd0] sm:$0xf] }
 0x345   : > { %v15613_v24 = vor.u32 %v19150_v4, %v15610_v55  ;;  %v15578_v29 = vld [vmem:[#allocation7 + $0x1330] sm:$0xf0]  ;;  %v19042_v42 = vld [vmem:[#allocation7 + $0xfec] sm:$0xf0] }
 0x346   : > { %6570 = vmatmul.bf16.vlgmr.msrb.gmra.mxu3 %v20708_v46  ;;  %6551 = vmatpush.bf16.msra.mxu1 %v15317_v53  ;;  %v21081_v53 = vpop.f32.mrf.mxu1  ;;  %v15581_v2 = vor.u32 %v19142_v6, %v15578_v29  ;;  %v19134_v4 = vld [vmem:[#allocation7 + $0x12d4] sm:$0xf]  ;;  %v15161_v52 = vor.u32 %v19042_v42, %v15160_v31  ;;  %v19034_v6 = vld [vmem:[#allocation7 + $0xfac] sm:$0xf0] }
 0x347   : > { %6636 = vmatpush.bf16.msra.mxu3 %v15801_v14  ;;  %6612 = vmatmul.bf16.vlgmr.msrb.gmra.mxu2 %v20630_v26  ;;  %v15730_v14 = vld [vmem:[#allocation7 + $0x1468] sm:$0xf0]  ;;  %21838 = vst [vmem:[#allocation62_spill] sm:$0xff] %v21081_v53  ;;  %v15546_v55 = vld [vmem:[#allocation7 + $0x12f0] sm:$0xf0] }
 0x348   : > { %6674 = vmatpush.bf16.msra.mxu2 %v15677_v21  ;;  %6580 = vmatpush.bf16.msrb.mxu0 %v15797_v36  ;;  %v21076_v21 = vadd.f32 %v4884_v16, %v3154_v35  ;;  %v15733_v36 = vor.u32 %v19181_v47, %v15730_v14  ;;  %v15221_v35 = vor.u32 %v19053_v19, %v15218_v15  ;;  %v19030_v16 = vld [vmem:[#allocation7 + $0xf94] sm:$0xf]  ;;  %v15128_v14 = vld [vmem:[#allocation7 + $0xf90] sm:$0xf]  ;;  %v19195_v53 = vld [vmem:[#allocation7 + $0x14b4] sm:$0xf0] }
 0x349   : > { %6514 = vmatmul.bf16.vlgmr.msra.gmra.mxu0 %v20708_v46  ;;  %v15549_v47 = vor.u32 %v19134_v4, %v15546_v55  ;;  %v19126_v29 = vld [vmem:[#allocation7 + $0x1294] sm:$0xf]  ;;  %v4911_v50 = vpop.f32.mrf.mxu3  ;;  %v15640_v31 = vld [vmem:[#allocation7 + $0x1390] sm:$0xf]  ;;  %v21085_v4 = vpop.f32.mrf.mxu2 }
 0x34a   : > { %6552 = vmatpush.bf16.msra.mxu1 %v15285_v60  ;;  %v15130_v60 = vld [vmem:[#allocation7 + $0xfb0] sm:$0xf0]  ;;  %v19162_v42 = vld [vmem:[#allocation7 + $0x13ac] sm:$0xf0]  ;;  %21839 = vst [vmem:[#allocation63_spill] sm:$0xff] %v21085_v4 }
 0x34b   : > { %6637 = vmatpush.bf16.msra.mxu3 %v15769_v12  ;;  %v15705_v12 = vor.u32 %v19178_v1, %v15704_v34  ;;  %v19170_v34 = vld [vmem:[#allocation7 + $0x13ec] sm:$0xf0]  ;;  %v15133_v1 = vor.u32 %v19030_v16, %v15130_v60  ;;  %v15514_v44 = vld [vmem:[#allocation7 + $0x12b0] sm:$0xf0] }
 0x34c   : > { %6675 = vmatpush.bf16.msra.mxu2 %v15645_v48  ;;  %6581 = vmatpush.bf16.msrb.mxu0 %v15765_v32  ;;  %v19173_v48 = vld [vmem:[#allocation7 + $0x140c] sm:$0xf]  ;;  %v19118_v16 = vld [vmem:[#allocation7 + $0x1254] sm:$0xf] }
 0x34d   : > { %v15701_v59 = vor.u32 %v19173_v48, %v15698_v57  ;;  %v19045_v32 = vld [vmem:[#allocation7 + $0x100c] sm:$0xf]  ;;  %v15517_v48 = vor.u32 %v19126_v29, %v15514_v44  ;;  %v15096_v57 = vld [vmem:[#allocation7 + $0xf50] sm:$0xf]  ;;  %v15482_v60 = vld [vmem:[#allocation7 + $0x1270] sm:$0xf0] }
 0x34e   : > { %6553 = vmatpush.bf16.msra.mxu1 %v15253_v27  ;;  %v4897_v27 = vpop.f32.mrf.mxu1  ;;  %v19110_v44 = vld [vmem:[#allocation7 + $0x1214] sm:$0xf] }
 0x34f   : > { %6638 = vmatpush.bf16.msra.mxu3 %v15737_v41  ;;  %v15186_v41 = vld [vmem:[#allocation7 + $0x1028] sm:$0xf0]  ;;  %v21083_v15 = vadd.f32 %v4911_v50, %v4897_v27  ;;  %v15450_v50 = vld [vmem:[#allocation7 + $0x1230] sm:$0xf0] }
 0x350   : > { %6676 = vmatpush.bf16.msra.mxu2 %v15613_v24  ;;  %6582 = vmatpush.bf16.msrb.mxu0 %v15733_v36  ;;  %v15672_v24 = vld [vmem:[#allocation7 + $0x13d0] sm:$0xf]  ;;  %v15189_v19 = vor.u32 %v19045_v32, %v15186_v41  ;;  %v19022_v36 = vld [vmem:[#allocation7 + $0xf54] sm:$0xf]  ;;  %v21089_v41 = vpop.f32.mrf.mxu0 }
 0x351   : > { %v15066_v32 = vld [vmem:[#allocation7 + $0xf30] sm:$0xf0]  ;;  %21840 = vst [vmem:[#allocation64_spill] sm:$0xff] %v21089_v41  ;;  %v4939_v4 = vpop.f32.mrf.mxu2  ;;  %v19199_v41 = vld [vmem:[#allocation7 + $0x14dc] sm:$0xf] }
 0x352   : > { %6554 = vmatpush.bf16.msra.mxu1 %v15221_v35  ;;  %v19026_v35 = vld [vmem:[#allocation7 + $0xf6c] sm:$0xf0]  ;;  %v19006_v27 = vld [vmem:[#allocation7 + $0xed4] sm:$0xf] }
 0x353   : > { %6639 = vmatpush.bf16.msra.mxu3 %v15705_v12  ;;  %v15098_v12 = vld [vmem:[#allocation7 + $0xf70] sm:$0xf0] }
 0x354   : > { %6677 = vmatpush.bf16.msra.mxu2 %v15581_v2  ;;  %6583 = vmatpush.bf16.msrb.mxu0 %v15701_v59  ;;  %v15673_v2 = vor.u32 %v19170_v34, %v15672_v24  ;;  %v15101_v55 = vor.u32 %v19022_v36, %v15098_v12  ;;  %v19014_v59 = vld [vmem:[#allocation7 + $0xf14] sm:$0xf]  ;;  %v15485_v24 = vor.u32 %v19118_v16, %v15482_v60  ;;  %v19018_v34 = vld [vmem:[#allocation7 + $0xf2c] sm:$0xf0]  ;;  %v15808_v36 = vld [vmem:[#allocation7 + $0x14d8] sm:$0xf] }
 0x355   : > { %v15069_v29 = vor.u32 %v19014_v59, %v15066_v32  ;;  %v19203_v12 = vld [vmem:[#allocation7 + $0x14f4] sm:$0xf0]  ;;  %v15032_v16 = vld [vmem:[#allocation7 + $0xed0] sm:$0xf]  ;;  %v18998_v59 = vld [vmem:[#allocation7 + $0xe94] sm:$0xf] }
 0x356   : > { %15818 = vmatmul.msk.bf16.vlgmr.msra.gmra.mxu3 %vm2681_vm4, %v20710_v11  ;;  %6555 = vmatpush.bf16.msra.mxu1 %v15189_v19  ;;  %v15034_v19 = vld [vmem:[#allocation7 + $0xef0] sm:$0xf0]  ;;  %v19010_v60 = vld [vmem:[#allocation7 + $0xeec] sm:$0xf0] }
 0x357   : > { %6646 = vmatpush.bf16.msrb.mxu3 %v15165_v40  ;;  %v15129_v40 = vor.u32 %v19034_v6, %v15128_v14  ;;  %v15097_v14 = vor.u32 %v19026_v35, %v15096_v57  ;;  %v19154_v6 = vld [vmem:[#allocation7 + $0x136c] sm:$0xf0]  ;;  %v15453_v57 = vor.u32 %v19110_v44, %v15450_v50  ;;  %v15809_v35 = vor.u32 %v19203_v12, %v15808_v36  ;;  %v15002_v32 = vld [vmem:[#allocation7 + $0xeb0] sm:$0xf0] }
 0x358   : > { %6590 = vmatpush.bf16.msra.mxu0 %v15161_v52  ;;  %6678 = vmatpush.bf16.msra.mxu2 %v15549_v47  ;;  %v15641_v52 = vor.u32 %v19162_v42, %v15640_v31  ;;  %v15064_v47 = vld [vmem:[#allocation7 + $0xf10] sm:$0xf]  ;;  %v14970_v12 = vld [vmem:[#allocation7 + $0xe70] sm:$0xf0] }
 0x359   : > { %15817 = vmatmul.msk.bf16.vlgmr.msrb.gmra.mxu0 %vm2681_vm4, %v20710_v11  ;;  %6556 = vmatmul.bf16.vlgmr.msra.gmra.mxu1 %v20630_v26  ;;  %v15576_v31 = vld [vmem:[#allocation7 + $0x1310] sm:$0xf] }
 0x35a   : > { %6618 = vmatpush.bf16.msrb.mxu1 %v15673_v2  ;;  %v19146_v42 = vld [vmem:[#allocation7 + $0x132c] sm:$0xf0] }
 0x35b   : > { %6647 = vmatpush.bf16.msrb.mxu3 %v15133_v1  ;;  %v15608_v1 = vld [vmem:[#allocation7 + $0x1350] sm:$0xf] }
 0x35c   : > { %6591 = vmatpush.bf16.msra.mxu0 %v15129_v40  ;;  %6679 = vmatpush.bf16.msra.mxu2 %v15517_v48  ;;  %v15609_v2 = vor.u32 %v19154_v6, %v15608_v1  ;;  %v21777_v40 = vperm.slane %v21050_v45, 6  ;;  %v15065_v48 = vor.u32 %v19018_v34, %v15064_v47  ;;  %v15577_v1 = vor.u32 %v19146_v42, %v15576_v31  ;;  %v19138_v34 = vld [vmem:[#allocation7 + $0x12ec] sm:$0xf0] }
 0x35d   : > { %v15005_v6 = vor.u32 %v18998_v59, %v15002_v32  ;;  %v15000_v44 = vld [vmem:[#allocation7 + $0xe90] sm:$0xf]  ;;  %v19179_v59 = vld [vmem:[#allocation7 + $0x1434] sm:$0xf0] }
 0x35e   : > { %6619 = vmatpush.bf16.msrb.mxu1 %v15641_v52  ;;  %v4925_v52 = vpop.f32.mrf.mxu0  ;;  %v19002_v50 = vld [vmem:[#allocation7 + $0xeac] sm:$0xf0]  ;;  %v15424_v32 = vld [vmem:[#allocation7 + $0x11d8] sm:$0xf] }
 0x35f   : > { %6648 = vmatpush.bf16.msrb.mxu3 %v15101_v55  ;;  %v15037_v55 = vor.u32 %v19006_v27, %v15034_v19  ;;  %v4926_v47 = vadd.f32 %v4925_v52, %v21083_v15  ;;  %v18990_v27 = vld [vmem:[#allocation7 + $0xe54] sm:$0xf]  ;;  %v3155_v19 = vadd.f32 %v21777_v40, %v20941_v38  ;;  %v15001_v31 = vor.u32 %v19002_v50, %v15000_v44  ;;  %v19130_v42 = vld [vmem:[#allocation7 + $0x12ac] sm:$0xf0]  ;;  %v21102_v50 = vpop.f32.mrf.mxu2  ;;  %v19031_v40 = vld [vmem:[#allocation7 + $0xf9c] sm:$0xf] }
 0x360   : > { %6592 = vmatpush.bf16.msra.mxu0 %v15097_v14  ;;  %6680 = vmatpush.bf16.msra.mxu2 %v15485_v24  ;;  %v15033_v14 = vor.u32 %v19010_v60, %v15032_v16  ;;  %v15544_v24 = vld [vmem:[#allocation7 + $0x12d0] sm:$0xf]  ;;  %v14938_v16 = vld [vmem:[#allocation7 + $0xe30] sm:$0xf0]  ;;  %v15712_v60 = vld [vmem:[#allocation7 + $0x1418] sm:$0xf] }
 0x361   : > { %v4940_v36 = vadd.f32 %v4939_v4, %v4926_v47  ;;  %v15545_v15 = vor.u32 %v19138_v34, %v15544_v24  ;;  %v18994_v38 = vld [vmem:[#allocation7 + $0xe6c] sm:$0xf0]  ;;  %v18982_v4 = vld [vmem:[#allocation7 + $0xe14] sm:$0xf]  ;;  %v19039_v47 = vld [vmem:[#allocation7 + $0xfdc] sm:$0xf] }
 0x362   : > { %6620 = vmatpush.bf16.msrb.mxu1 %v15609_v2  ;;  %v15744_v2 = vld [vmem:[#allocation7 + $0x1458] sm:$0xf]  ;;  %v15170_v24 = vld [vmem:[#allocation7 + $0xff8] sm:$0xf0]  ;;  %v15480_v34 = vld [vmem:[#allocation7 + $0x1250] sm:$0xf] }
 0x363   : > { %6649 = vmatpush.bf16.msrb.mxu3 %v15069_v29  ;;  %v15777_v29 = vor.u32 %v19195_v53, %v15776_v9  ;;  %v14968_v9 = vld [vmem:[#allocation7 + $0xe50] sm:$0xf]  ;;  %21841 = vst [vmem:[#allocation65_spill] sm:$0xff] %v21102_v50  ;;  %v15138_v50 = vld [vmem:[#allocation7 + $0xfb8] sm:$0xf0] }
 0x364   : > { %6593 = vmatpush.bf16.msra.mxu0 %v15065_v48  ;;  %6681 = vmatpush.bf16.msra.mxu2 %v15453_v57  ;;  %v19187_v48 = vld [vmem:[#allocation7 + $0x1474] sm:$0xf0]  ;;  %v21100_v57 = vadd.f32 %v4940_v36, %v3155_v19  ;;  %v15512_v53 = vld [vmem:[#allocation7 + $0x1290] sm:$0xf] }
 0x365   : > { %v15513_v52 = vor.u32 %v19130_v42, %v15512_v53  ;;  %v19122_v44 = vld [vmem:[#allocation7 + $0x126c] sm:$0xf0]  ;;  %v15392_v53 = vld [vmem:[#allocation7 + $0x1198] sm:$0xf]  ;;  %v21106_v42 = vpop.f32.mrf.mxu3 }
 0x366   : > { %6621 = vmatpush.bf16.msrb.mxu1 %v15577_v1  ;;  %v19107_v1 = vld [vmem:[#allocation7 + $0x11f4] sm:$0xf0]  ;;  %v14936_v19 = vld [vmem:[#allocation7 + $0xe10] sm:$0xf]  ;;  %21843 = vst [vmem:[#allocation67_spill] sm:$0xff] %v21106_v42 }
 0x367   : > { %6650 = vmatpush.bf16.msrb.mxu3 %v15037_v55  ;;  %6682 = vmatmul.bf16.vlgmr.msra.gmra.mxu2 %v20708_v46  ;;  %v14973_v55 = vor.u32 %v18990_v27, %v14970_v12  ;;  %v15713_v27 = vor.u32 %v19179_v59, %v15712_v60  ;;  %v18986_v36 = vld [vmem:[#allocation7 + $0xe2c] sm:$0xf0]  ;;  %v15425_v12 = vor.u32 %v19107_v1, %v15424_v32  ;;  %v19094_v60 = vld [vmem:[#allocation7 + $0x1194] sm:$0xf] }
 0x368   : > { %6748 = vmatpush.bf16.msrb.mxu2 %v15809_v35  ;;  %6594 = vmatpush.bf16.msra.mxu0 %v15033_v14  ;;  %v15745_v35 = vor.u32 %v19187_v48, %v15744_v2  ;;  %v14969_v14 = vor.u32 %v18994_v38, %v14968_v9  ;;  %v15173_v2 = vor.u32 %v19039_v47, %v15170_v24  ;;  %v19102_v48 = vld [vmem:[#allocation7 + $0x11d4] sm:$0xf]  ;;  %v19099_v38 = vld [vmem:[#allocation7 + $0x11b4] sm:$0xf0] }
 0x369   : > { %v15481_v9 = vor.u32 %v19122_v44, %v15480_v34  ;;  %v15386_v59 = vld [vmem:[#allocation7 + $0x11b0] sm:$0xf0]  ;;  %v15393_v32 = vor.u32 %v19099_v38, %v15392_v53  ;;  %v15141_v1 = vor.u32 %v19031_v40, %v15138_v50  ;;  %v19091_v34 = vld [vmem:[#allocation7 + $0x1174] sm:$0xf0]  ;;  %v19023_v44 = vld [vmem:[#allocation7 + $0xf5c] sm:$0xf] }
 0x36a   : > { %6622 = vmatpush.bf16.msrb.mxu1 %v15545_v15  ;;  %v15418_v15 = vld [vmem:[#allocation7 + $0x11f0] sm:$0xf0]  ;;  %v15328_v38 = vld [vmem:[#allocation7 + $0x1118] sm:$0xf] }
 0x36b   : > { %6651 = vmatpush.bf16.msrb.mxu3 %v15005_v6  ;;  %v21104_v6 = vpop.f32.mrf.mxu1  ;;  %v19198_v47 = vld [vmem:[#allocation7 + $0x14d4] sm:$0xf] }
 0x36c   : > { %6749 = vmatpush.bf16.msrb.mxu2 %v15777_v29  ;;  %6595 = vmatpush.bf16.msra.mxu0 %v15001_v31  ;;  %21842 = vst [vmem:[#allocation66_spill] sm:$0xff] %v21104_v6  ;;  %v14941_v29 = vor.u32 %v18982_v4, %v14938_v16  ;;  %v21108_v31 = vpop.f32.mrf.mxu0  ;;  %v15421_v4 = vor.u32 %v19102_v48, %v15418_v15  ;;  %v19114_v16 = vld [vmem:[#allocation7 + $0x122c] sm:$0xf0]  ;;  %v15802_v24 = vld [vmem:[#allocation7 + $0x14f0] sm:$0xf0] }
 0x36d   : > { %21844 = vst [vmem:[#allocation68_spill] sm:$0xff] %v21108_v31  ;;  %v15106_v31 = vld [vmem:[#allocation7 + $0xf78] sm:$0xf0]  ;;  %v15354_v40 = vld [vmem:[#allocation7 + $0x1170] sm:$0xf0] }
 0x36e   : > { %6623 = vmatpush.bf16.msrb.mxu1 %v15513_v52  ;;  %v15360_v52 = vld [vmem:[#allocation7 + $0x1158] sm:$0xf]  ;;  %v15109_v15 = vor.u32 %v19023_v44, %v15106_v31  ;;  %v19190_v53 = vld [vmem:[#allocation7 + $0x1494] sm:$0xf]  ;;  %v15330_v6 = vld [vmem:[#allocation7 + $0x1138] sm:$0xf0] }
 0x36f   : > { %6652 = vmatpush.bf16.msrb.mxu3 %v14973_v55  ;;  %v14937_v55 = vor.u32 %v18986_v36, %v14936_v19  ;;  %v15389_v36 = vor.u32 %v19094_v60, %v15386_v59  ;;  %v15361_v48 = vor.u32 %v19091_v34, %v15360_v52 }
 0x370   : > { %6750 = vmatpush.bf16.msrb.mxu2 %v15745_v35  ;;  %6596 = vmatpush.bf16.msra.mxu0 %v14969_v14  ;;  %v15448_v35 = vld [vmem:[#allocation7 + $0x1210] sm:$0xf] }
 0x371   : > { %v15449_v14 = vor.u32 %v19114_v16, %v15448_v35  ;;  %v19083_v35 = vld [vmem:[#allocation7 + $0x1134] sm:$0xf0]  ;;  %v15074_v16 = vld [vmem:[#allocation7 + $0xf38] sm:$0xf0] }
 0x372   : > { %6624 = vmatpush.bf16.msrb.mxu1 %v15481_v9  ;;  %v15770_v9 = vld [vmem:[#allocation7 + $0x14b0] sm:$0xf0]  ;;  %v15329_v34 = vor.u32 %v19083_v35, %v15328_v38  ;;  %v15168_v38 = vld [vmem:[#allocation7 + $0xfd8] sm:$0xf] }
 0x373   : > { %6653 = vmatpush.bf16.msrb.mxu3 %v14941_v29  ;;  %v21778_v29 = vperm.slane %v21050_v45, 7  ;;  %v4967_v19 = vpop.f32.mrf.mxu1  ;;  %v19043_v35 = vld [vmem:[#allocation7 + $0xff4] sm:$0xf0] }
 0x374   : > { %6751 = vmatpush.bf16.msrb.mxu2 %v15713_v27  ;;  %6597 = vmatpush.bf16.msra.mxu0 %v14937_v55  ;;  %v4953_v27 = vpop.f32.mrf.mxu2  ;;  %v4981_v55 = vpop.f32.mrf.mxu3 }
 0x375   : > { %v4968_v50 = vadd.f32 %v4967_v19, %v4953_v27  ;;  %v3156_v59 = vadd.f32 %v21778_v29, %v20956_v20  ;;  %v19182_v27 = vld [vmem:[#allocation7 + $0x1454] sm:$0xf]  ;;  %v15042_v20 = vld [vmem:[#allocation7 + $0xef8] sm:$0xf0] }
 0x376   : > { %6654 = vmatmul.bf16.vlgmr.msrb.gmra.mxu3 %v20628_v17  ;;  %6625 = vmatpush.bf16.msrb.mxu1 %v15449_v14  ;;  %v15738_v19 = vld [vmem:[#allocation7 + $0x1470] sm:$0xf0]  ;;  %v19075_v14 = vld [vmem:[#allocation7 + $0x10f4] sm:$0xf0] }
 0x377   : > { %6716 = vmatpush.bf16.msra.mxu3 %v15425_v12  ;;  %v15805_v12 = vor.u32 %v19198_v47, %v15802_v24  ;;  %6598 = vmatmul.bf16.vlgmr.msra.gmra.mxu0 %v20628_v17  ;;  %v4982_v60 = vadd.f32 %v4981_v55, %v4968_v50  ;;  %v19078_v47 = vld [vmem:[#allocation7 + $0x1114] sm:$0xf]  ;;  %v15296_v50 = vld [vmem:[#allocation7 + $0x10d8] sm:$0xf]  ;;  %v19007_v55 = vld [vmem:[#allocation7 + $0xedc] sm:$0xf] }
 0x378   : > { %6758 = vmatpush.bf16.msra.mxu2 %v15173_v2  ;;  %6660 = vmatpush.bf16.msrb.mxu0 %v15421_v4  ;;  %v19086_v2 = vld [vmem:[#allocation7 + $0x1154] sm:$0xf]  ;;  %v19015_v4 = vld [vmem:[#allocation7 + $0xf1c] sm:$0xf] }
 0x379   : > { %15820 = vmatmul.msk.bf16.vlgmr.msrb.gmra.mxu2 %vm2681_vm4, %v20710_v11  ;;  %v15357_v31 = vor.u32 %v19086_v2, %v15354_v40  ;;  %v15322_v24 = vld [vmem:[#allocation7 + $0x1130] sm:$0xf0]  ;;  %v15077_v44 = vor.u32 %v19015_v4, %v15074_v16  ;;  %6626 = vmatmul.bf16.vlgmr.msrb.gmra.mxu1 %v20708_v46  ;;  %v15264_v4 = vld [vmem:[#allocation7 + $0x1098] sm:$0xf] }
 0x37a   : > { %6692 = vmatpush.bf16.msra.mxu1 %v15805_v12  ;;  %v15741_v12 = vor.u32 %v19182_v27, %v15738_v19  ;;  %v19070_v2 = vld [vmem:[#allocation7 + $0x10d4] sm:$0xf]  ;;  %v19067_v16 = vld [vmem:[#allocation7 + $0x10b4] sm:$0xf0] }
 0x37b   : > { %6717 = vmatpush.bf16.msra.mxu3 %v15393_v32  ;;  %v4995_v32 = vpop.f32.mrf.mxu0  ;;  %v15290_v40 = vld [vmem:[#allocation7 + $0x10f0] sm:$0xf0]  ;;  %v19035_v27 = vld [vmem:[#allocation7 + $0xfb4] sm:$0xf0] }
 0x37c   : > { %6759 = vmatpush.bf16.msra.mxu2 %v15141_v1  ;;  %6661 = vmatpush.bf16.msrb.mxu0 %v15389_v36  ;;  %v15773_v1 = vor.u32 %v19190_v53, %v15770_v9  ;;  %v4996_v52 = vadd.f32 %v4995_v32, %v4982_v60  ;;  %v15325_v36 = vor.u32 %v19078_v47, %v15322_v24  ;;  %v19174_v53 = vld [vmem:[#allocation7 + $0x1414] sm:$0xf]  ;;  %v18999_v60 = vld [vmem:[#allocation7 + $0xe9c] sm:$0xf]  ;;  %v15232_v19 = vld [vmem:[#allocation7 + $0x1058] sm:$0xf] }
 0x37d   : > { %v15706_v9 = vld [vmem:[#allocation7 + $0x1430] sm:$0xf0]  ;;  %v15010_v32 = vld [vmem:[#allocation7 + $0xeb8] sm:$0xf0]  ;;  %v15265_v47 = vor.u32 %v19067_v16, %v15264_v4  ;;  %v19051_v4 = vld [vmem:[#allocation7 + $0x1034] sm:$0xf0] }
 0x37e   : > { %v21119_v29 = vadd.f32 %v4996_v52, %v3156_v59  ;;  %6693 = vmatpush.bf16.msra.mxu1 %v15773_v1  ;;  %v15293_v59 = vor.u32 %v19070_v2, %v15290_v40  ;;  %v15169_v1 = vor.u32 %v19043_v35, %v15168_v38  ;;  %v19062_v24 = vld [vmem:[#allocation7 + $0x1094] sm:$0xf]  ;;  %v15200_v35 = vld [vmem:[#allocation7 + $0x1018] sm:$0xf]  ;;  %v18983_v16 = vld [vmem:[#allocation7 + $0xe1c] sm:$0xf] }
 0x37f   : > { %6718 = vmatpush.bf16.msra.mxu3 %v15361_v48  ;;  %v15297_v48 = vor.u32 %v19075_v14, %v15296_v50  ;;  %v15258_v52 = vld [vmem:[#allocation7 + $0x10b0] sm:$0xf0]  ;;  %v19059_v50 = vld [vmem:[#allocation7 + $0x1074] sm:$0xf0]  ;;  %v18991_v14 = vld [vmem:[#allocation7 + $0xe5c] sm:$0xf] }
 0x380   : > { %6760 = vmatpush.bf16.msra.mxu2 %v15109_v15  ;;  %6662 = vmatpush.bf16.msrb.mxu0 %v15357_v31  ;;  %v15045_v15 = vor.u32 %v19007_v55, %v15042_v20  ;;  %v15709_v31 = vor.u32 %v19174_v53, %v15706_v9  ;;  %v14978_v55 = vld [vmem:[#allocation7 + $0xe78] sm:$0xf0]  ;;  %v15261_v20 = vor.u32 %v19062_v24, %v15258_v52  ;;  %v15104_v53 = vld [vmem:[#allocation7 + $0xf58] sm:$0xf]  ;;  %v16304_v24 = vld [vmem:[#allocation7 + $0x18c0] sm:$0xf] }
 0x381   : > { %v19027_v9 = vld [vmem:[#allocation7 + $0xf74] sm:$0xf0]  ;;  %v14981_v38 = vor.u32 %v18991_v14, %v14978_v55  ;;  %v19328_v52 = vld [vmem:[#allocation7 + $0x18dc] sm:$0xf0] }
 0x382   : > { %6694 = vmatpush.bf16.msra.mxu1 %v15741_v12  ;;  %v21121_v12 = vpop.f32.mrf.mxu2  ;;  %v15072_v14 = vld [vmem:[#allocation7 + $0xf18] sm:$0xf] }
 0x383   : > { %6719 = vmatpush.bf16.msra.mxu3 %v15329_v34  ;;  %v15136_v34 = vld [vmem:[#allocation7 + $0xf98] sm:$0xf]  ;;  %21845 = vst [vmem:[#allocation69_spill] sm:$0xff] %v21121_v12  ;;  %v21123_v2 = vpop.f32.mrf.mxu0  ;;  %v15650_v12 = vld [vmem:[#allocation7 + $0x13b8] sm:$0xf0] }
 0x384   : > { %6761 = vmatpush.bf16.msra.mxu2 %v15077_v44  ;;  %6663 = vmatpush.bf16.msrb.mxu0 %v15325_v36  ;;  %v15013_v44 = vor.u32 %v18999_v60, %v15010_v32  ;;  %v19054_v36 = vld [vmem:[#allocation7 + $0x1054] sm:$0xf]  ;;  %21846 = vst [vmem:[#allocation70_spill] sm:$0xff] %v21123_v2  ;;  %v15137_v40 = vor.u32 %v19035_v27, %v15136_v34  ;;  %v14946_v60 = vld [vmem:[#allocation7 + $0xe38] sm:$0xf0]  ;;  %v21125_v2 = vpop.f32.mrf.mxu3 }
 0x385   : > { %v19167_v32 = vld [vmem:[#allocation7 + $0x13dc] sm:$0xf]  ;;  %21847 = vst [vmem:[#allocation71_spill] sm:$0xff] %v21125_v2  ;;  %v15201_v34 = vor.u32 %v19051_v4, %v15200_v35  ;;  %v15194_v27 = vld [vmem:[#allocation7 + $0x1030] sm:$0xf0] }
 0x386   : > { %6695 = vmatpush.bf16.msra.mxu1 %v15709_v31  ;;  %v19019_v55 = vld [vmem:[#allocation7 + $0xf34] sm:$0xf0]  ;;  %v19159_v2 = vld [vmem:[#allocation7 + $0x139c] sm:$0xf] }
 0x387   : > { %6720 = vmatpush.bf16.msra.mxu3 %v15297_v48  ;;  %v15233_v48 = vor.u32 %v19059_v50, %v15232_v19  ;;  %v14949_v19 = vor.u32 %v18983_v16, %v14946_v60  ;;  %v15073_v35 = vor.u32 %v19019_v55, %v15072_v14  ;;  %v15653_v60 = vor.u32 %v19159_v2, %v15650_v12  ;;  %v15008_v14 = vld [vmem:[#allocation7 + $0xe98] sm:$0xf] }
 0x388   : > { %6762 = vmatpush.bf16.msra.mxu2 %v15045_v15  ;;  %6664 = vmatpush.bf16.msrb.mxu0 %v15293_v59  ;;  %v15226_v15 = vld [vmem:[#allocation7 + $0x1070] sm:$0xf0]  ;;  %v15682_v59 = vld [vmem:[#allocation7 + $0x13f8] sm:$0xf0]  ;;  %v19003_v55 = vld [vmem:[#allocation7 + $0xeb4] sm:$0xf0] }
 0x389   : > { %v15229_v31 = vor.u32 %v19054_v36, %v15226_v15  ;;  %15819 = vmatmul.msk.bf16.vlgmr.msra.gmra.mxu1 %vm2681_vm4, %v20710_v11  ;;  %v15685_v50 = vor.u32 %v19167_v32, %v15682_v59  ;;  %v16305_v36 = vor.u32 %v19328_v52, %v16304_v24  ;;  %v19171_v15 = vld [vmem:[#allocation7 + $0x13f4] sm:$0xf0] }
 0x38a   : > { %6702 = vmatpush.bf16.msrb.mxu1 %v15169_v1  ;;  %v21127_v1 = vpop.f32.mrf.mxu1  ;;  %v15040_v32 = vld [vmem:[#allocation7 + $0xed8] sm:$0xf] }
 0x38b   : > { %6721 = vmatpush.bf16.msra.mxu3 %v15265_v47  ;;  %21848 = vst [vmem:[#allocation72_spill] sm:$0xff] %v21127_v1  ;;  %v15105_v47 = vor.u32 %v19027_v9, %v15104_v53  ;;  %v19320_v53 = vld [vmem:[#allocation7 + $0x189c] sm:$0xf0]  ;;  %v6389_v9 = vpop.f32.mrf.mxu2  ;;  %v19011_v59 = vld [vmem:[#allocation7 + $0xef4] sm:$0xf0] }
 0x38c   : > { %6763 = vmatpush.bf16.msra.mxu2 %v15013_v44  ;;  %6665 = vmatpush.bf16.msrb.mxu0 %v15261_v20  ;;  %v19046_v44 = vld [vmem:[#allocation7 + $0x1014] sm:$0xf]  ;;  %v15680_v20 = vld [vmem:[#allocation7 + $0x13d8] sm:$0xf] }
 0x38d   : > { %v15681_v16 = vor.u32 %v19171_v15, %v15680_v20  ;;  %v15648_v24 = vld [vmem:[#allocation7 + $0x1398] sm:$0xf] }
 0x38e   : > { %6703 = vmatpush.bf16.msrb.mxu1 %v15137_v40  ;;  %v15197_v40 = vor.u32 %v19046_v44, %v15194_v27  ;;  %v19163_v1 = vld [vmem:[#allocation7 + $0x13b4] sm:$0xf0]  ;;  %v15618_v44 = vld [vmem:[#allocation7 + $0x1378] sm:$0xf0] }
 0x38f   : > { %6722 = vmatpush.bf16.msra.mxu3 %v15233_v48  ;;  %v16272_v48 = vld [vmem:[#allocation7 + $0x1880] sm:$0xf]  ;;  %v15649_v2 = vor.u32 %v19163_v1, %v15648_v24  ;;  %v15616_v20 = vld [vmem:[#allocation7 + $0x1358] sm:$0xf] }
 0x390   : > { %6764 = vmatpush.bf16.msra.mxu2 %v14981_v38  ;;  %6666 = vmatpush.bf16.msrb.mxu0 %v15229_v31  ;;  %v6375_v38 = vpop.f32.mrf.mxu0  ;;  %v16273_v52 = vor.u32 %v19320_v53, %v16272_v48  ;;  %v19151_v31 = vld [vmem:[#allocation7 + $0x135c] sm:$0xf]  ;;  %v15584_v24 = vld [vmem:[#allocation7 + $0x1318] sm:$0xf] }
 0x391   : > { %v6390_v4 = vadd.f32 %v6389_v9, %v6375_v38  ;;  %v19143_v48 = vld [vmem:[#allocation7 + $0x131c] sm:$0xf]  ;;  %v16208_v38 = vld [vmem:[#allocation7 + $0x1800] sm:$0xf] }
 0x392   : > { %6704 = vmatpush.bf16.msrb.mxu1 %v15105_v47  ;;  %v16240_v47 = vld [vmem:[#allocation7 + $0x1840] sm:$0xf]  ;;  %v6403_v27 = vpop.f32.mrf.mxu1  ;;  %v15586_v53 = vld [vmem:[#allocation7 + $0x1338] sm:$0xf0] }
 0x393   : > { %6723 = vmatpush.bf16.msra.mxu3 %v15201_v34  ;;  %v19312_v34 = vld [vmem:[#allocation7 + $0x185c] sm:$0xf0]  ;;  %v6404_v12 = vadd.f32 %v6403_v27, %v6390_v4 }
 0x394   : > { %6765 = vmatpush.bf16.msra.mxu2 %v14949_v19  ;;  %6667 = vmatpush.bf16.msrb.mxu0 %v15197_v40  ;;  %v15041_v19 = vor.u32 %v19011_v59, %v15040_v32  ;;  %v16241_v15 = vor.u32 %v19312_v34, %v16240_v47  ;;  %v19155_v40 = vld [vmem:[#allocation7 + $0x1374] sm:$0xf0]  ;;  %v15554_v47 = vld [vmem:[#allocation7 + $0x12f8] sm:$0xf0]  ;;  %v16176_v34 = vld [vmem:[#allocation7 + $0x17c0] sm:$0xf] }
 0x395   : > { %v15617_v1 = vor.u32 %v19155_v40, %v15616_v20  ;;  %v14976_v32 = vld [vmem:[#allocation7 + $0xe58] sm:$0xf]  ;;  %v19296_v27 = vld [vmem:[#allocation7 + $0x17dc] sm:$0xf0]  ;;  %v19127_v40 = vld [vmem:[#allocation7 + $0x129c] sm:$0xf] }
 0x396   : > { %6724 = vmatmul.bf16.vlgmr.msra.gmra.mxu3 %v20630_v26  ;;  %6705 = vmatpush.bf16.msrb.mxu1 %v15073_v35  ;;  %v19304_v35 = vld [vmem:[#allocation7 + $0x181c] sm:$0xf0]  ;;  %v18995_v59 = vld [vmem:[#allocation7 + $0xe74] sm:$0xf0]  ;;  %v16177_v20 = vor.u32 %v19296_v27, %v16176_v34 }
 0x397   : > { %6786 = vmatpush.bf16.msrb.mxu3 %v15685_v50  ;;  %6766 = vmatmul.bf16.vlgmr.msra.gmra.mxu2 %v20628_v17  ;;  %v15621_v50 = vor.u32 %v19151_v31, %v15618_v44  ;;  %v19147_v31 = vld [vmem:[#allocation7 + $0x1334] sm:$0xf0]  ;;  %v19135_v44 = vld [vmem:[#allocation7 + $0x12dc] sm:$0xf]  ;;  %v16112_v34 = vld [vmem:[#allocation7 + $0x1740] sm:$0xf] }
 0x398   : > { %8211 = vmatpush.bf16.msrb.mxu2 %v16305_v36  ;;  %6730 = vmatpush.bf16.msra.mxu0 %v15681_v16  ;;  %v6417_v36 = vpop.f32.mrf.mxu3  ;;  %v15009_v16 = vor.u32 %v19003_v55, %v15008_v14  ;;  %v15552_v14 = vld [vmem:[#allocation7 + $0x12d8] sm:$0xf]  ;;  %v19280_v27 = vld [vmem:[#allocation7 + $0x175c] sm:$0xf0] }
 0x399   : > { %6668 = vmatmul.bf16.vlgmr.msrb.gmra.mxu0 %v20630_v26  ;;  %v6418_v9 = vadd.f32 %v6417_v36, %v6404_v12  ;;  %v14944_v12 = vld [vmem:[#allocation7 + $0xe18] sm:$0xf]  ;;  %v19103_v36 = vld [vmem:[#allocation7 + $0x11dc] sm:$0xf] }
 0x39a   : > { %6706 = vmatpush.bf16.msrb.mxu1 %v15041_v19  ;;  %v14977_v19 = vor.u32 %v18995_v59, %v14976_v32  ;;  %v19139_v55 = vld [vmem:[#allocation7 + $0x12f4] sm:$0xf0]  ;;  %v21137_v32 = vpop.f32.mrf.mxu1 }
 0x39b   : > { %6787 = vmatpush.bf16.msrb.mxu3 %v15653_v60  ;;  %v21135_v4 = vadd.f32 %v6418_v9, %v20978_v58  ;;  %v15589_v60 = vor.u32 %v19143_v48, %v15586_v53  ;;  %v15585_v58 = vor.u32 %v19147_v31, %v15584_v24  ;;  %v15522_v48 = vld [vmem:[#allocation7 + $0x12b8] sm:$0xf0]  ;;  %v16144_v53 = vld [vmem:[#allocation7 + $0x1780] sm:$0xf]  ;;  %21849 = vst [vmem:[#allocation73_spill] sm:$0xff] %v21137_v32 }
 0x39c   : > { %8212 = vmatpush.bf16.msrb.mxu2 %v16273_v52  ;;  %6731 = vmatpush.bf16.msra.mxu0 %v15649_v2  ;;  %v16209_v52 = vor.u32 %v19304_v35, %v16208_v38  ;;  %v15557_v2 = vor.u32 %v19135_v44, %v15554_v47  ;;  %v19288_v9 = vld [vmem:[#allocation7 + $0x179c] sm:$0xf0]  ;;  %v15553_v35 = vor.u32 %v19139_v55, %v15552_v14  ;;  %v15394_v31 = vld [vmem:[#allocation7 + $0x11b8] sm:$0xf0] }
 0x39d   : > { %v15525_v59 = vor.u32 %v19127_v40, %v15522_v48  ;;  %v16145_v24 = vor.u32 %v19288_v9, %v16144_v53  ;;  %v19119_v44 = vld [vmem:[#allocation7 + $0x125c] sm:$0xf]  ;;  %v21143_v48 = vpop.f32.mrf.mxu2  ;;  %v16080_v53 = vld [vmem:[#allocation7 + $0x1700] sm:$0xf] }
 0x39e   : > { %6707 = vmatpush.bf16.msrb.mxu1 %v15009_v16  ;;  %v15490_v47 = vld [vmem:[#allocation7 + $0x1278] sm:$0xf0]  ;;  %21852 = vst [vmem:[#allocation76_spill] sm:$0xff] %v21143_v48  ;;  %v19272_v9 = vld [vmem:[#allocation7 + $0x171c] sm:$0xf0] }
 0x39f   : > { %6788 = vmatpush.bf16.msrb.mxu3 %v15621_v50  ;;  %v18987_v50 = vld [vmem:[#allocation7 + $0xe34] sm:$0xf0]  ;;  %v19087_v14 = vld [vmem:[#allocation7 + $0x115c] sm:$0xf]  ;;  %v15493_v55 = vor.u32 %v19119_v44, %v15490_v47  ;;  %v19385_v48 = vld [vmem:[#allocation7 + $0x1aa4] sm:$0xf0] }
 0x3a0   : > { %8213 = vmatpush.bf16.msrb.mxu2 %v16241_v15  ;;  %6732 = vmatpush.bf16.msra.mxu0 %v15617_v1  ;;  %v15426_v15 = vld [vmem:[#allocation7 + $0x11f8] sm:$0xf0]  ;;  %v14945_v38 = vor.u32 %v18987_v50, %v14944_v12  ;;  %v15520_v1 = vld [vmem:[#allocation7 + $0x1298] sm:$0xf]  ;;  %v21139_v42 = vpop.f32.mrf.mxu3 }
 0x3a1   : > { %v15429_v16 = vor.u32 %v19103_v36, %v15426_v15  ;;  %21850 = vst [vmem:[#allocation74_spill] sm:$0xff] %v21139_v42  ;;  %v19123_v50 = vld [vmem:[#allocation7 + $0x1274] sm:$0xf0]  ;;  %v15362_v36 = vld [vmem:[#allocation7 + $0x1178] sm:$0xf0] }
 0x3a2   : > { %6708 = vmatpush.bf16.msrb.mxu1 %v14977_v19  ;;  %v21141_v19 = vpop.f32.mrf.mxu0  ;;  %v19111_v15 = vld [vmem:[#allocation7 + $0x121c] sm:$0xf]  ;;  %v19115_v44 = vld [vmem:[#allocation7 + $0x1234] sm:$0xf0]  ;;  %v6473_v45 = vpop.f32.mrf.mxu1 }
 0x3a3   : > { %6789 = vmatpush.bf16.msrb.mxu3 %v15589_v60  ;;  %v19131_v60 = vld [vmem:[#allocation7 + $0x12b4] sm:$0xf0]  ;;  %21851 = vst [vmem:[#allocation75_spill] sm:$0xff] %v21141_v19  ;;  %v15458_v40 = vld [vmem:[#allocation7 + $0x1238] sm:$0xf0] }
 0x3a4   : > { %8214 = vmatpush.bf16.msrb.mxu2 %v16209_v52  ;;  %6733 = vmatpush.bf16.msra.mxu0 %v15585_v58  ;;  %v19095_v52 = vld [vmem:[#allocation7 + $0x119c] sm:$0xf]  ;;  %v15521_v12 = vor.u32 %v19131_v60, %v15520_v1  ;;  %v16562_v1 = vld [vmem:[#allocation7 + $0x1ae0] sm:$0xf0] }
 0x3a5   : > { %v15397_v58 = vor.u32 %v19095_v52, %v15394_v31  ;;  %v16081_v52 = vor.u32 %v19272_v9, %v16080_v53  ;;  %v15456_v31 = vld [vmem:[#allocation7 + $0x1218] sm:$0xf]  ;;  %v15810_v42 = vld [vmem:[#allocation7 + $0x14f8] sm:$0xf0] }
 0x3a6   : > { %6709 = vmatpush.bf16.msrb.mxu1 %v14945_v38  ;;  %v16688_v38 = vld [vmem:[#allocation7 + $0x1bc0] sm:$0xf]  ;;  %v15813_v53 = vor.u32 %v19199_v41, %v15810_v42 }
 0x3a7   : > { %6790 = vmatpush.bf16.msrb.mxu3 %v15557_v2  ;;  %v15488_v2 = vld [vmem:[#allocation7 + $0x1258] sm:$0xf] }
 0x3a8   : > { %8215 = vmatpush.bf16.msrb.mxu2 %v16177_v20  ;;  %6734 = vmatpush.bf16.msra.mxu0 %v15553_v35  ;;  %v16113_v20 = vor.u32 %v19280_v27, %v16112_v34  ;;  %v19424_v35 = vld [vmem:[#allocation7 + $0x1bdc] sm:$0xf0]  ;;  %v15489_v60 = vor.u32 %v19123_v50, %v15488_v2  ;;  %v19079_v27 = vld [vmem:[#allocation7 + $0x111c] sm:$0xf]  ;;  %v6431_v13 = vpop.f32.mrf.mxu3  ;;  %v15457_v50 = vor.u32 %v19115_v44, %v15456_v31  ;;  %v16498_v31 = vld [vmem:[#allocation7 + $0x1a60] sm:$0xf0] }
 0x3a9   : > { %6710 = vmatmul.bf16.vlgmr.msrb.gmra.mxu1 %v20628_v17  ;;  %v16689_v47 = vor.u32 %v19424_v35, %v16688_v38  ;;  %v19071_v38 = vld [vmem:[#allocation7 + $0x10dc] sm:$0xf] }
 0x3aa   : > { %6772 = vmatpush.bf16.msra.mxu1 %v15429_v16  ;;  %v19388_v16 = vld [vmem:[#allocation7 + $0x1ac4] sm:$0xf]  ;;  %v6445_v2 = vpop.f32.mrf.mxu0  ;;  %v15298_v35 = vld [vmem:[#allocation7 + $0x10f8] sm:$0xf0] }
 0x3ab   : > { %6791 = vmatpush.bf16.msrb.mxu3 %v15525_v59  ;;  %v15365_v59 = vor.u32 %v19087_v14, %v15362_v36  ;;  %v16565_v34 = vor.u32 %v19388_v16, %v16562_v1  ;;  %v19380_v14 = vld [vmem:[#allocation7 + $0x1a84] sm:$0xf]  ;;  %v19191_v16 = vld [vmem:[#allocation7 + $0x149c] sm:$0xf]  ;;  %v15301_v42 = vor.u32 %v19071_v38, %v15298_v35  ;;  %v15994_v36 = vld [vmem:[#allocation7 + $0x1668] sm:$0xf0] }
 0x3ac   : > { %8216 = vmatpush.bf16.msrb.mxu2 %v16145_v24  ;;  %6735 = vmatpush.bf16.msra.mxu0 %v15521_v12  ;;  %v15461_v24 = vor.u32 %v19111_v15, %v15458_v40  ;;  %v16656_v12 = vld [vmem:[#allocation7 + $0x1b80] sm:$0xf]  ;;  %v15333_v15 = vor.u32 %v19079_v27, %v15330_v6  ;;  %v6459_v40 = vpop.f32.mrf.mxu2  ;;  %v21156_v6 = vsel %vm21148_vm9, %v20683_v7, 0  ;;  %v19063_v44 = vld [vmem:[#allocation7 + $0x109c] sm:$0xf] }
 0x3ad   : > { %v15266_v27 = vld [vmem:[#allocation7 + $0x10b8] sm:$0xf0] }
 0x3ae   : > { %6773 = vmatpush.bf16.msra.mxu1 %v15397_v58  ;;  %v19416_v58 = vld [vmem:[#allocation7 + $0x1b9c] sm:$0xf0]  ;;  %v19055_v35 = vld [vmem:[#allocation7 + $0x105c] sm:$0xf] }
 0x3af   : > { %6792 = vmatpush.bf16.msrb.mxu3 %v15493_v55  ;;  %v16530_v55 = vld [vmem:[#allocation7 + $0x1aa0] sm:$0xf0]  ;;  %v16657_v9 = vor.u32 %v19416_v58, %v16656_v12  ;;  %v19183_v12 = vld [vmem:[#allocation7 + $0x145c] sm:$0xf] }
 0x3b0   : > { %8217 = vmatpush.bf16.msrb.mxu2 %v16113_v20  ;;  %6736 = vmatpush.bf16.msra.mxu0 %v15489_v60  ;;  %v6446_v20 = vadd.f32 %v6445_v2, %v6431_v13  ;;  %v16533_v60 = vor.u32 %v19380_v14, %v16530_v55  ;;  %v19408_v13 = vld [vmem:[#allocation7 + $0x1b5c] sm:$0xf0]  ;;  %v15746_v58 = vld [vmem:[#allocation7 + $0x1478] sm:$0xf0]  ;;  %v19364_v14 = vld [vmem:[#allocation7 + $0x1a04] sm:$0xf] }
 0x3b1   : > { %v16466_v55 = vld [vmem:[#allocation7 + $0x1a20] sm:$0xf0] }
 0x3b2   : > { %6774 = vmatpush.bf16.msra.mxu1 %v15365_v59  ;;  %v6460_v1 = vadd.f32 %v6459_v40, %v6446_v20  ;;  %v15778_v59 = vld [vmem:[#allocation7 + $0x14b8] sm:$0xf0]  ;;  %v19260_v20 = vld [vmem:[#allocation7 + $0x16c4] sm:$0xf]  ;;  %v21163_v40 = vpop.f32.mrf.mxu3 }
 0x3b3   : > { %6793 = vmatpush.bf16.msrb.mxu3 %v15461_v24  ;;  %v16624_v24 = vld [vmem:[#allocation7 + $0x1b40] sm:$0xf]  ;;  %21855 = vst [vmem:[#allocation77_spill] sm:$0xff] %v21163_v40 }
 0x3b4   : > { %8218 = vmatpush.bf16.msrb.mxu2 %v16081_v52  ;;  %6737 = vmatpush.bf16.msra.mxu0 %v15457_v50  ;;  %v19372_v52 = vld [vmem:[#allocation7 + $0x1a44] sm:$0xf]  ;;  %v6474_v41 = vadd.f32 %v6473_v45, %v6460_v1  ;;  %v16592_v45 = vld [vmem:[#allocation7 + $0x1b00] sm:$0xf]  ;;  %v16469_v1 = vor.u32 %v19364_v14, %v16466_v55 }
 0x3b5   : > { %v16501_v7 = vor.u32 %v19372_v52, %v16498_v31  ;;  %v19400_v50 = vld [vmem:[#allocation7 + $0x1b1c] sm:$0xf0]  ;;  %v19356_v31 = vld [vmem:[#allocation7 + $0x19c4] sm:$0xf] }
 0x3b6   : > { %6794 = vmatmul.bf16.vlgmr.msrb.gmra.mxu3 %v20708_v46  ;;  %6775 = vmatpush.bf16.msra.mxu1 %v15333_v15  ;;  %v21160_v2 = vadd.f32 %v6474_v41, %v20995_v51  ;;  %v16050_v15 = vld [vmem:[#allocation7 + $0x16e0] sm:$0xf0]  ;;  %v15749_v51 = vor.u32 %v19183_v12, %v15746_v58  ;;  %v16593_v38 = vor.u32 %v19400_v50, %v16592_v45  ;;  %v19264_v52 = vld [vmem:[#allocation7 + $0x16dc] sm:$0xf0] }
 0x3b7   : > { %8243 = vmatpush.bf16.msra.mxu3 %v16689_v47  ;;  %8219 = vmatmul.bf16.vlgmr.msrb.gmra.mxu2 %v21156_v6  ;;  %v15781_v47 = vor.u32 %v19191_v16, %v15778_v59  ;;  %v15234_v16 = vld [vmem:[#allocation7 + $0x1078] sm:$0xf0]  ;;  %v16434_v41 = vld [vmem:[#allocation7 + $0x19e0] sm:$0xf0]  ;;  %v16016_v58 = vld [vmem:[#allocation7 + $0x1680] sm:$0xf] }
 0x3b8   : > { %8281 = vmatpush.bf16.msra.mxu2 %v16565_v34  ;;  %6804 = vmatpush.bf16.msrb.mxu0 %v15813_v53  ;;  %v16625_v34 = vor.u32 %v19408_v13, %v16624_v24  ;;  %v21165_v53 = vpop.f32.mrf.mxu1  ;;  %v19175_v59 = vld [vmem:[#allocation7 + $0x141c] sm:$0xf]  ;;  %v16048_v13 = vld [vmem:[#allocation7 + $0x16c0] sm:$0xf]  ;;  %v15237_v40 = vor.u32 %v19055_v35, %v15234_v16  ;;  %v16437_v12 = vor.u32 %v19356_v31, %v16434_v41  ;;  %v19348_v55 = vld [vmem:[#allocation7 + $0x1984] sm:$0xf] }
 0x3b9   : > { %6738 = vmatmul.bf16.vlgmr.msra.gmra.mxu0 %v20708_v46  ;;  %21856 = vst [vmem:[#allocation78_spill] sm:$0xff] %v21165_v53  ;;  %v15714_v24 = vld [vmem:[#allocation7 + $0x1438] sm:$0xf0]  ;;  %v19252_v53 = vld [vmem:[#allocation7 + $0x1684] sm:$0xf] }
 0x3ba   : > { %6776 = vmatpush.bf16.msra.mxu1 %v15301_v42  ;;  %v16018_v42 = vld [vmem:[#allocation7 + $0x16a0] sm:$0xf0]  ;;  %v19392_v45 = vld [vmem:[#allocation7 + $0x1adc] sm:$0xf0] }
 0x3bb   : > { %8244 = vmatpush.bf16.msra.mxu3 %v16657_v9  ;;  %v15269_v9 = vor.u32 %v19063_v44, %v15266_v27  ;;  %v15717_v44 = vor.u32 %v19175_v59, %v15714_v24  ;;  %v16049_v27 = vor.u32 %v19264_v52, %v16048_v13  ;;  %v16021_v50 = vor.u32 %v19252_v53, %v16018_v42  ;;  %v19256_v14 = vld [vmem:[#allocation7 + $0x169c] sm:$0xf0]  ;;  %v21174_v52 = vpop.f32.mrf.mxu2  ;;  %v19340_v42 = vld [vmem:[#allocation7 + $0x1944] sm:$0xf] }
 0x3bc   : > { %8282 = vmatpush.bf16.msra.mxu2 %v16533_v60  ;;  %6805 = vmatpush.bf16.msrb.mxu0 %v15781_v47  ;;  %v16053_v60 = vor.u32 %v19260_v20, %v16050_v15  ;;  %v19047_v47 = vld [vmem:[#allocation7 + $0x101c] sm:$0xf]  ;;  %v16402_v20 = vld [vmem:[#allocation7 + $0x19a0] sm:$0xf0]  ;;  %v6501_v15 = vpop.f32.mrf.mxu3  ;;  %v16017_v53 = vor.u32 %v19256_v14, %v16016_v58  ;;  %v15984_v24 = vld [vmem:[#allocation7 + $0x1640] sm:$0xf] }
 0x3bd   : > { %v16405_v59 = vor.u32 %v19348_v55, %v16402_v20  ;;  %v16528_v13 = vld [vmem:[#allocation7 + $0x1a80] sm:$0xf]  ;;  %21857 = vst [vmem:[#allocation79_spill] sm:$0xff] %v21174_v52  ;;  %v19332_v20 = vld [vmem:[#allocation7 + $0x1904] sm:$0xf] }
 0x3be   : > { %6777 = vmatpush.bf16.msra.mxu1 %v15269_v9  ;;  %v19248_v41 = vld [vmem:[#allocation7 + $0x165c] sm:$0xf0]  ;;  %v19417_v52 = vld [vmem:[#allocation7 + $0x1ba4] sm:$0xf0] }
 0x3bf   : > { %8245 = vmatpush.bf16.msra.mxu3 %v16625_v34  ;;  %v15202_v34 = vld [vmem:[#allocation7 + $0x1038] sm:$0xf0]  ;;  %v15985_v58 = vor.u32 %v19248_v41, %v15984_v24  ;;  %v19376_v14 = vld [vmem:[#allocation7 + $0x1a5c] sm:$0xf0] }
 0x3c0   : > { %8283 = vmatpush.bf16.msra.mxu2 %v16501_v7  ;;  %6806 = vmatpush.bf16.msrb.mxu0 %v15749_v51  ;;  %v16560_v7 = vld [vmem:[#allocation7 + $0x1ac0] sm:$0xf]  ;;  %v6487_v9 = vpop.f32.mrf.mxu1  ;;  %v15205_v35 = vor.u32 %v19047_v47, %v15202_v34  ;;  %v19244_v51 = vld [vmem:[#allocation7 + $0x1644] sm:$0xf]  ;;  %v21178_v34 = vpop.f32.mrf.mxu0 }
 0x3c1   : > { %v21167_v16 = vadd.f32 %v6501_v15, %v6487_v9  ;;  %v15954_v47 = vld [vmem:[#allocation7 + $0x1620] sm:$0xf0]  ;;  %21858 = vst [vmem:[#allocation80_spill] sm:$0xff] %v21178_v34  ;;  %v16464_v24 = vld [vmem:[#allocation7 + $0x1a00] sm:$0xf] }
 0x3c2   : > { %6778 = vmatpush.bf16.msra.mxu1 %v15237_v40  ;;  %v19384_v40 = vld [vmem:[#allocation7 + $0x1a9c] sm:$0xf0]  ;;  %v16338_v15 = vld [vmem:[#allocation7 + $0x1920] sm:$0xf0] }
 0x3c3   : > { %8246 = vmatpush.bf16.msra.mxu3 %v16593_v38  ;;  %v15986_v38 = vld [vmem:[#allocation7 + $0x1660] sm:$0xf0]  ;;  %v15920_v41 = vld [vmem:[#allocation7 + $0x15c0] sm:$0xf]  ;;  %v6529_v34 = vpop.f32.mrf.mxu2 }
 0x3c4   : > { %8284 = vmatpush.bf16.msra.mxu2 %v16469_v1  ;;  %6807 = vmatpush.bf16.msrb.mxu0 %v15717_v44  ;;  %v21172_v1 = vsel %vm21148_vm9, %v20737_v18, 0  ;;  %v15989_v31 = vor.u32 %v19244_v51, %v15986_v38  ;;  %v16370_v44 = vld [vmem:[#allocation7 + $0x1960] sm:$0xf0]  ;;  %v16696_v51 = vld [vmem:[#allocation7 + $0x1bc8] sm:$0xf] }
 0x3c5   : > { %v19236_v18 = vld [vmem:[#allocation7 + $0x1604] sm:$0xf]  ;;  %v19425_v38 = vld [vmem:[#allocation7 + $0x1be4] sm:$0xf0] }
 0x3c6   : > { %16718 = vmatmul.msk.bf16.vlgmr.msra.gmra.mxu3 %vm2681_vm4, %v21172_v1  ;;  %6779 = vmatpush.bf16.msra.mxu1 %v15205_v35  ;;  %v15957_v55 = vor.u32 %v19236_v18, %v15954_v47  ;;  %v19228_v9 = vld [vmem:[#allocation7 + $0x15c4] sm:$0xf]  ;;  %v16664_v47 = vld [vmem:[#allocation7 + $0x1b88] sm:$0xf] }
 0x3c7   : > { %8253 = vmatpush.bf16.msrb.mxu3 %v16053_v60  ;;  %v16561_v60 = vor.u32 %v19392_v45, %v16560_v7  ;;  %v16373_v7 = vor.u32 %v19340_v42, %v16370_v44  ;;  %v19240_v45 = vld [vmem:[#allocation7 + $0x161c] sm:$0xf0]  ;;  %v15922_v35 = vld [vmem:[#allocation7 + $0x15e0] sm:$0xf0] }
 0x3c8   : > { %8197 = vmatpush.bf16.msra.mxu0 %v16049_v27  ;;  %8285 = vmatpush.bf16.msra.mxu2 %v16437_v12  ;;  %v16529_v27 = vor.u32 %v19384_v40, %v16528_v13  ;;  %v15952_v12 = vld [vmem:[#allocation7 + $0x1600] sm:$0xf]  ;;  %v15925_v40 = vor.u32 %v19228_v9, %v15922_v35  ;;  %v19220_v44 = vld [vmem:[#allocation7 + $0x1584] sm:$0xf]  ;;  %v6515_v32 = vpop.f32.mrf.mxu0 }
 0x3c9   : > { %15821 = vmatmul.msk.bf16.vlgmr.msrb.gmra.mxu0 %vm2681_vm4, %v20710_v11  ;;  %6780 = vmatmul.bf16.vlgmr.msra.gmra.mxu1 %v20630_v26  ;;  %v19368_v13 = vld [vmem:[#allocation7 + $0x1a1c] sm:$0xf0]  ;;  %v15890_v18 = vld [vmem:[#allocation7 + $0x15a0] sm:$0xf0] }
 0x3ca   : > { %8225 = vmatpush.bf16.msrb.mxu1 %v16561_v60  ;;  %v19232_v42 = vld [vmem:[#allocation7 + $0x15dc] sm:$0xf0]  ;;  %v19212_v9 = vld [vmem:[#allocation7 + $0x1544] sm:$0xf] }
 0x3cb   : > { %8254 = vmatpush.bf16.msrb.mxu3 %v16021_v50  ;;  %v16496_v50 = vld [vmem:[#allocation7 + $0x1a40] sm:$0xf] }
 0x3cc   : > { %8198 = vmatpush.bf16.msra.mxu0 %v16017_v53  ;;  %8286 = vmatpush.bf16.msra.mxu2 %v16405_v59  ;;  %v16497_v60 = vor.u32 %v19376_v14, %v16496_v50  ;;  %v15953_v53 = vor.u32 %v19240_v45, %v15952_v12  ;;  %v16341_v59 = vor.u32 %v19332_v20, %v16338_v15  ;;  %v16432_v45 = vld [vmem:[#allocation7 + $0x19c0] sm:$0xf] }
 0x3cd   : > { %v6516_v12 = vadd.f32 %v6515_v32, %v21167_v16  ;;  %v19360_v50 = vld [vmem:[#allocation7 + $0x19dc] sm:$0xf0]  ;;  %v15893_v14 = vor.u32 %v19220_v44, %v15890_v18  ;;  %v16312_v44 = vld [vmem:[#allocation7 + $0x18c8] sm:$0xf] }
 0x3ce   : > { %8226 = vmatpush.bf16.msrb.mxu1 %v16529_v27  ;;  %v16465_v27 = vor.u32 %v19368_v13, %v16464_v24  ;;  %v15888_v20 = vld [vmem:[#allocation7 + $0x1580] sm:$0xf]  ;;  %v16433_v32 = vor.u32 %v19360_v50, %v16432_v45  ;;  %v21193_v50 = vpop.f32.mrf.mxu2 }
 0x3cf   : > { %8255 = vmatpush.bf16.msrb.mxu3 %v15989_v31  ;;  %v16697_v31 = vor.u32 %v19425_v38, %v16696_v51  ;;  %v19224_v15 = vld [vmem:[#allocation7 + $0x159c] sm:$0xf0]  ;;  %v6530_v35 = vadd.f32 %v6529_v34, %v6516_v12  ;;  %v15858_v51 = vld [vmem:[#allocation7 + $0x1560] sm:$0xf0]  ;;  %v16632_v38 = vld [vmem:[#allocation7 + $0x1b48] sm:$0xf] }
 0x3d0   : > { %8199 = vmatpush.bf16.msra.mxu0 %v15985_v58  ;;  %8287 = vmatpush.bf16.msra.mxu2 %v16373_v7  ;;  %v21187_v58 = vsel %vm21148_vm9, %v20744_v37, 0  ;;  %v15921_v7 = vor.u32 %v19232_v42, %v15920_v41  ;;  %v15889_v16 = vor.u32 %v19224_v15, %v15888_v20  ;;  %v19352_v24 = vld [vmem:[#allocation7 + $0x199c] sm:$0xf0]  ;;  %v16600_v41 = vld [vmem:[#allocation7 + $0x1b08] sm:$0xf]  ;;  %21859 = vst [vmem:[#allocation81_spill] sm:$0xff] %v21193_v50 }
 0x3d1   : > { %v21191_v37 = vadd.f32 %v6530_v35, %v21019_v3  ;;  %v19216_v34 = vld [vmem:[#allocation7 + $0x155c] sm:$0xf0]  ;;  %v19401_v42 = vld [vmem:[#allocation7 + $0x1b24] sm:$0xf0]  ;;  %v19261_v3 = vld [vmem:[#allocation7 + $0x16cc] sm:$0xf] }
 0x3d2   : > { %8227 = vmatpush.bf16.msrb.mxu1 %v16497_v60  ;;  %v19409_v60 = vld [vmem:[#allocation7 + $0x1b64] sm:$0xf0]  ;;  %v19344_v45 = vld [vmem:[#allocation7 + $0x195c] sm:$0xf0]  ;;  %v16601_v20 = vor.u32 %v19401_v42, %v16600_v41  ;;  %v16026_v50 = vld [vmem:[#allocation7 + $0x16a8] sm:$0xf0] }
 0x3d3   : > { %8256 = vmatpush.bf16.msrb.mxu3 %v15957_v55  ;;  %v16665_v55 = vor.u32 %v19417_v52, %v16664_v47  ;;  %v15861_v52 = vor.u32 %v19212_v9, %v15858_v51  ;;  %v16633_v13 = vor.u32 %v19409_v60, %v16632_v38  ;;  %v19329_v47 = vld [vmem:[#allocation7 + $0x18e4] sm:$0xf0]  ;;  %v15824_v15 = vld [vmem:[#allocation7 + $0x1500] sm:$0xf]  ;;  %v19324_v38 = vld [vmem:[#allocation7 + $0x18c4] sm:$0xf] }
 0x3d4   : > { %8200 = vmatpush.bf16.msra.mxu0 %v15953_v53  ;;  %8288 = vmatpush.bf16.msra.mxu2 %v16341_v59  ;;  %v15856_v53 = vld [vmem:[#allocation7 + $0x1540] sm:$0xf]  ;;  %v16313_v35 = vor.u32 %v19329_v47, %v16312_v44  ;;  %v16306_v60 = vld [vmem:[#allocation7 + $0x18e0] sm:$0xf0] }
 0x3d5   : > { %v16400_v59 = vld [vmem:[#allocation7 + $0x1980] sm:$0xf]  ;;  %v15857_v12 = vor.u32 %v19216_v34, %v15856_v53  ;;  %v19253_v34 = vld [vmem:[#allocation7 + $0x168c] sm:$0xf]  ;;  %v19316_v42 = vld [vmem:[#allocation7 + $0x1884] sm:$0xf] }
 0x3d6   : > { %8228 = vmatpush.bf16.msrb.mxu1 %v16465_v27  ;;  %v16401_v18 = vor.u32 %v19352_v24, %v16400_v59  ;;  %v16058_v27 = vld [vmem:[#allocation7 + $0x16e8] sm:$0xf0]  ;;  %v19208_v9 = vld [vmem:[#allocation7 + $0x151c] sm:$0xf0]  ;;  %v21197_v59 = vpop.f32.mrf.mxu3  ;;  %v19321_v24 = vld [vmem:[#allocation7 + $0x18a4] sm:$0xf0]  ;;  %v16029_v47 = vor.u32 %v19253_v34, %v16026_v50 }
 0x3d7   : > { %8257 = vmatpush.bf16.msrb.mxu3 %v15925_v40  ;;  %8289 = vmatmul.bf16.vlgmr.msra.gmra.mxu2 %v21187_v58  ;;  %v19204_v40 = vld [vmem:[#allocation7 + $0x1504] sm:$0xf]  ;;  %v16061_v51 = vor.u32 %v19261_v3, %v16058_v27  ;;  %21861 = vst [vmem:[#allocation83_spill] sm:$0xff] %v21197_v59  ;;  %v19336_v41 = vld [vmem:[#allocation7 + $0x191c] sm:$0xf0] }
 0x3d8   : > { %8355 = vmatpush.bf16.msrb.mxu2 %v16697_v31  ;;  %8201 = vmatpush.bf16.msra.mxu0 %v15921_v7  ;;  %v15826_v31 = vld [vmem:[#allocation7 + $0x1520] sm:$0xf0]  ;;  %v16368_v7 = vld [vmem:[#allocation7 + $0x1940] sm:$0xf]  ;;  %v19381_v59 = vld [vmem:[#allocation7 + $0x1a8c] sm:$0xf] }
 0x3d9   : > { %v16369_v53 = vor.u32 %v19344_v45, %v16368_v7  ;;  %v16274_v44 = vld [vmem:[#allocation7 + $0x18a0] sm:$0xf0]  ;;  %v19313_v7 = vld [vmem:[#allocation7 + $0x1864] sm:$0xf0]  ;;  %v19245_v45 = vld [vmem:[#allocation7 + $0x164c] sm:$0xf] }
 0x3da   : > { %8229 = vmatpush.bf16.msrb.mxu1 %v16433_v32  ;;  %v16280_v32 = vld [vmem:[#allocation7 + $0x1888] sm:$0xf]  ;;  %v19420_v3 = vld [vmem:[#allocation7 + $0x1bc4] sm:$0xf] }
 0x3db   : > { %8258 = vmatpush.bf16.msrb.mxu3 %v15893_v14  ;;  %v21195_v14 = vpop.f32.mrf.mxu1  ;;  %v16690_v27 = vld [vmem:[#allocation7 + $0x1be0] sm:$0xf0] }
 0x3dc   : > { %8356 = vmatpush.bf16.msrb.mxu2 %v16665_v55  ;;  %8202 = vmatpush.bf16.msra.mxu0 %v15889_v16  ;;  %21860 = vst [vmem:[#allocation82_spill] sm:$0xff] %v21195_v14  ;;  %v15829_v55 = vor.u32 %v19204_v40, %v15826_v31  ;;  %v21199_v16 = vpop.f32.mrf.mxu0  ;;  %v16336_v40 = vld [vmem:[#allocation7 + $0x1900] sm:$0xf]  ;;  %v16309_v31 = vor.u32 %v19324_v38, %v16306_v60  ;;  %v16538_v14 = vld [vmem:[#allocation7 + $0x1aa8] sm:$0xf0] }
 0x3dd   : > { %21862 = vst [vmem:[#allocation84_spill] sm:$0xff] %v21199_v16  ;;  %v15997_v60 = vor.u32 %v19245_v45, %v15994_v36  ;;  %v19404_v45 = vld [vmem:[#allocation7 + $0x1b44] sm:$0xf] }
 0x3de   : > { %8230 = vmatpush.bf16.msrb.mxu1 %v16401_v18  ;;  %v16281_v18 = vor.u32 %v19321_v24, %v16280_v32  ;;  %v19412_v32 = vld [vmem:[#allocation7 + $0x1b84] sm:$0xf]  ;;  %v16216_v24 = vld [vmem:[#allocation7 + $0x1808] sm:$0xf]  ;;  %v6571_v34 = vpop.f32.mrf.mxu3 }
 0x3df   : > { %8259 = vmatpush.bf16.msrb.mxu3 %v15861_v52  ;;  %v15825_v52 = vor.u32 %v19208_v9, %v15824_v15  ;;  %v16277_v15 = vor.u32 %v19316_v42, %v16274_v44  ;;  %v16693_v9 = vor.u32 %v19420_v3, %v16690_v27  ;;  %v16210_v3 = vld [vmem:[#allocation7 + $0x1820] sm:$0xf0] }
 0x3e0   : > { %8357 = vmatpush.bf16.msrb.mxu2 %v16633_v13  ;;  %8203 = vmatpush.bf16.msra.mxu0 %v15857_v12  ;;  %v21204_v13 = vsel %vm21148_vm9, %v20704_v10, 0  ;;  %v16248_v12 = vld [vmem:[#allocation7 + $0x1848] sm:$0xf]  ;;  %v16337_v10 = vor.u32 %v19336_v41, %v16336_v40  ;;  %v19237_v40 = vld [vmem:[#allocation7 + $0x160c] sm:$0xf] }
 0x3e1   : > { %v16249_v38 = vor.u32 %v19313_v7, %v16248_v12  ;;  %v16626_v36 = vld [vmem:[#allocation7 + $0x1b60] sm:$0xf0] }
 0x3e2   : > { %8231 = vmatpush.bf16.msrb.mxu1 %v16369_v53  ;;  %v16658_v53 = vld [vmem:[#allocation7 + $0x1ba0] sm:$0xf0] }
 0x3e3   : > { %8260 = vmatpush.bf16.msrb.mxu3 %v15829_v55  ;;  %v6543_v55 = vpop.f32.mrf.mxu2 }
 0x3e4   : > { %8358 = vmatpush.bf16.msrb.mxu2 %v16601_v20  ;;  %8204 = vmatpush.bf16.msra.mxu0 %v15825_v52  ;;  %v6557_v20 = vpop.f32.mrf.mxu1  ;;  %v19305_v52 = vld [vmem:[#allocation7 + $0x1824] sm:$0xf0]  ;;  %v6585_v42 = vpop.f32.mrf.mxu0 }
 0x3e5   : > { %v6558_v50 = vadd.f32 %v6557_v20, %v6543_v55  ;;  %v16217_v12 = vor.u32 %v19305_v52, %v16216_v24  ;;  %v16184_v55 = vld [vmem:[#allocation7 + $0x17c8] sm:$0xf]  ;;  %v16594_v24 = vld [vmem:[#allocation7 + $0x1b20] sm:$0xf0] }
 0x3e6   : > { %8261 = vmatmul.bf16.vlgmr.msrb.gmra.mxu3 %v21204_v13  ;;  %8232 = vmatpush.bf16.msrb.mxu1 %v16337_v10  ;;  %v19297_v20 = vld [vmem:[#allocation7 + $0x17e4] sm:$0xf0]  ;;  %v15930_v10 = vld [vmem:[#allocation7 + $0x15e8] sm:$0xf0]  ;;  %v21218_v16 = vpop.f32.mrf.mxu3 }
 0x3e7   : > { %8323 = vmatpush.bf16.msra.mxu3 %v16313_v35  ;;  %v19308_v35 = vld [vmem:[#allocation7 + $0x1844] sm:$0xf]  ;;  %8205 = vmatmul.bf16.vlgmr.msra.gmra.mxu0 %v21204_v13  ;;  %v6572_v41 = vadd.f32 %v6571_v34, %v6558_v50  ;;  %v19229_v50 = vld [vmem:[#allocation7 + $0x15cc] sm:$0xf]  ;;  %v16056_v34 = vld [vmem:[#allocation7 + $0x16c8] sm:$0xf] }
 0x3e8   : > { %8365 = vmatpush.bf16.msra.mxu2 %v16061_v51  ;;  %8267 = vmatpush.bf16.msrb.mxu0 %v16309_v31  ;;  %v16242_v51 = vld [vmem:[#allocation7 + $0x1860] sm:$0xf0]  ;;  %v15962_v31 = vld [vmem:[#allocation7 + $0x1628] sm:$0xf0]  ;;  %v19265_v52 = vld [vmem:[#allocation7 + $0x16e4] sm:$0xf0] }
 0x3e9   : > { %16720 = vmatmul.msk.bf16.vlgmr.msrb.gmra.mxu2 %vm2681_vm4, %v21172_v1  ;;  %v16245_v44 = vor.u32 %v19308_v35, %v16242_v51  ;;  %v6586_v27 = vadd.f32 %v6585_v42, %v6572_v41  ;;  %v15965_v7 = vor.u32 %v19237_v40, %v15962_v31  ;;  %8233 = vmatmul.bf16.vlgmr.msrb.gmra.mxu1 %v21187_v58  ;;  %v19292_v51 = vld [vmem:[#allocation7 + $0x17c4] sm:$0xf]  ;;  %v16152_v40 = vld [vmem:[#allocation7 + $0x1788] sm:$0xf]  ;;  %v19221_v41 = vld [vmem:[#allocation7 + $0x158c] sm:$0xf] }
 0x3ea   : > { %8299 = vmatpush.bf16.msra.mxu1 %v16693_v9  ;;  %v16629_v35 = vor.u32 %v19404_v45, %v16626_v36  ;;  %v19289_v31 = vld [vmem:[#allocation7 + $0x17a4] sm:$0xf0]  ;;  %v15898_v42 = vld [vmem:[#allocation7 + $0x15a8] sm:$0xf0] }
 0x3eb   : > { %8324 = vmatpush.bf16.msra.mxu3 %v16281_v18  ;;  %v16661_v18 = vor.u32 %v19412_v32, %v16658_v53  ;;  %v15933_v32 = vor.u32 %v19229_v50, %v15930_v10  ;;  %v19396_v53 = vld [vmem:[#allocation7 + $0x1b04] sm:$0xf]  ;;  %v19257_v45 = vld [vmem:[#allocation7 + $0x16a4] sm:$0xf0]  ;;  %v15866_v50 = vld [vmem:[#allocation7 + $0x1568] sm:$0xf0] }
 0x3ec   : > { %8366 = vmatpush.bf16.msra.mxu2 %v16029_v47  ;;  %8268 = vmatpush.bf16.msrb.mxu0 %v16277_v15  ;;  %v19300_v47 = vld [vmem:[#allocation7 + $0x1804] sm:$0xf]  ;;  %v21212_v15 = vadd.f32 %v6586_v27, %v21038_v23  ;;  %v16120_v36 = vld [vmem:[#allocation7 + $0x1748] sm:$0xf] }
 0x3ed   : > { %v16213_v9 = vor.u32 %v19300_v47, %v16210_v3  ;;  %v16153_v47 = vor.u32 %v19289_v31, %v16152_v40  ;;  %v19284_v3 = vld [vmem:[#allocation7 + $0x1784] sm:$0xf]  ;;  %v19273_v40 = vld [vmem:[#allocation7 + $0x1724] sm:$0xf0]  ;;  %v19205_v31 = vld [vmem:[#allocation7 + $0x150c] sm:$0xf] }
 0x3ee   : > { %8300 = vmatpush.bf16.msra.mxu1 %v16661_v18  ;;  %v16057_v18 = vor.u32 %v19265_v52, %v16056_v34  ;;  %v16146_v27 = vld [vmem:[#allocation7 + $0x17a0] sm:$0xf0]  ;;  %v16088_v52 = vld [vmem:[#allocation7 + $0x1708] sm:$0xf] }
 0x3ef   : > { %8325 = vmatpush.bf16.msra.mxu3 %v16249_v38  ;;  %v16178_v38 = vld [vmem:[#allocation7 + $0x17e0] sm:$0xf0]  ;;  %v16149_v10 = vor.u32 %v19284_v3, %v16146_v27  ;;  %v16320_v3 = vld [vmem:[#allocation7 + $0x18d0] sm:$0xf] }
 0x3f0   : > { %8367 = vmatpush.bf16.msra.mxu2 %v15997_v60  ;;  %8269 = vmatpush.bf16.msrb.mxu0 %v16245_v44  ;;  %v16185_v60 = vor.u32 %v19297_v20, %v16184_v55  ;;  %v16181_v23 = vor.u32 %v19292_v51, %v16178_v38  ;;  %v16597_v44 = vor.u32 %v19396_v53, %v16594_v24  ;;  %v19281_v55 = vld [vmem:[#allocation7 + $0x1764] sm:$0xf0]  ;;  %v19213_v20 = vld [vmem:[#allocation7 + $0x154c] sm:$0xf]  ;;  %v21216_v51 = vpop.f32.mrf.mxu0  ;;  %v19330_v27 = vld [vmem:[#allocation7 + $0x18ec] sm:$0xf0] }
 0x3f1   : > { %v15992_v53 = vld [vmem:[#allocation7 + $0x1648] sm:$0xf]  ;;  %v15869_v34 = vor.u32 %v19213_v20, %v15866_v50 }
 0x3f2   : > { %8301 = vmatpush.bf16.msra.mxu1 %v16629_v35  ;;  %v21214_v35 = vpop.f32.mrf.mxu2  ;;  %v19249_v24 = vld [vmem:[#allocation7 + $0x1664] sm:$0xf0] }
 0x3f3   : > { %8326 = vmatpush.bf16.msra.mxu3 %v16217_v12  ;;  %v16024_v12 = vld [vmem:[#allocation7 + $0x1688] sm:$0xf] }
 0x3f4   : > { %8368 = vmatpush.bf16.msra.mxu2 %v15965_v7  ;;  %8270 = vmatpush.bf16.msrb.mxu0 %v16213_v9  ;;  %v15901_v7 = vor.u32 %v19221_v41, %v15898_v42  ;;  %v19276_v9 = vld [vmem:[#allocation7 + $0x1744] sm:$0xf]  ;;  %v16025_v38 = vor.u32 %v19257_v45, %v16024_v12  ;;  %v15834_v41 = vld [vmem:[#allocation7 + $0x1528] sm:$0xf0]  ;;  %v16089_v12 = vor.u32 %v19273_v40, %v16088_v52  ;;  %v15960_v20 = vld [vmem:[#allocation7 + $0x1608] sm:$0xf] }
 0x3f5   : > { %v19389_v42 = vld [vmem:[#allocation7 + $0x1acc] sm:$0xf]  ;;  %v16082_v45 = vld [vmem:[#allocation7 + $0x1720] sm:$0xf0]  ;;  %v19241_v50 = vld [vmem:[#allocation7 + $0x1624] sm:$0xf0] }
 0x3f6   : > { %8302 = vmatpush.bf16.msra.mxu1 %v16597_v44  ;;  %v15961_v52 = vor.u32 %v19241_v50, %v15960_v20  ;;  %v15896_v20 = vld [vmem:[#allocation7 + $0x1588] sm:$0xf] }
 0x3f7   : > { %8327 = vmatpush.bf16.msra.mxu3 %v16185_v60  ;;  %v16121_v60 = vor.u32 %v19281_v55, %v16120_v36  ;;  %v15837_v36 = vor.u32 %v19205_v31, %v15834_v41  ;;  %v16541_v41 = vor.u32 %v19381_v59, %v16538_v14  ;;  %v19225_v50 = vld [vmem:[#allocation7 + $0x15a4] sm:$0xf0] }
 0x3f8   : > { %8369 = vmatpush.bf16.msra.mxu2 %v15933_v32  ;;  %8271 = vmatpush.bf16.msrb.mxu0 %v16181_v23  ;;  %v16114_v32 = vld [vmem:[#allocation7 + $0x1760] sm:$0xf0]  ;;  %v16570_v23 = vld [vmem:[#allocation7 + $0x1ae8] sm:$0xf0] }
 0x3f9   : > { %v16117_v44 = vor.u32 %v19276_v9, %v16114_v32  ;;  %16719 = vmatmul.msk.bf16.vlgmr.msra.gmra.mxu1 %vm2681_vm4, %v21172_v1  ;;  %v16573_v55 = vor.u32 %v19389_v42, %v16570_v23  ;;  %v16321_v9 = vor.u32 %v19330_v27, %v16320_v3  ;;  %v19393_v32 = vld [vmem:[#allocation7 + $0x1ae4] sm:$0xf0] }
 0x3fa   : > { %8309 = vmatpush.bf16.msrb.mxu1 %v16057_v18  ;;  %v21220_v18 = vpop.f32.mrf.mxu1  ;;  %v15928_v42 = vld [vmem:[#allocation7 + $0x15c8] sm:$0xf] }
 0x3fb   : > { %8328 = vmatpush.bf16.msra.mxu3 %v16153_v47  ;;  %v15993_v47 = vor.u32 %v19249_v24, %v15992_v53  ;;  %v19322_v53 = vld [vmem:[#allocation7 + $0x18ac] sm:$0xf0]  ;;  %v6613_v24 = vpop.f32.mrf.mxu2  ;;  %v19233_v23 = vld [vmem:[#allocation7 + $0x15e4] sm:$0xf0] }
 0x3fc   : > { %8370 = vmatpush.bf16.msra.mxu2 %v15901_v7  ;;  %8272 = vmatpush.bf16.msrb.mxu0 %v16149_v10  ;;  %v19268_v7 = vld [vmem:[#allocation7 + $0x1704] sm:$0xf]  ;;  %v16568_v10 = vld [vmem:[#allocation7 + $0x1ac8] sm:$0xf] }
 0x3fd   : > { %v16569_v31 = vor.u32 %v19393_v32, %v16568_v10  ;;  %v16536_v3 = vld [vmem:[#allocation7 + $0x1a88] sm:$0xf] }
 0x3fe   : > { %8310 = vmatpush.bf16.msrb.mxu1 %v16025_v38  ;;  %v16085_v38 = vor.u32 %v19268_v7, %v16082_v45  ;;  %v16506_v7 = vld [vmem:[#allocation7 + $0x1a68] sm:$0xf0]  ;;  %v16537_v59 = vor.u32 %v19385_v48, %v16536_v3  ;;  %v16504_v10 = vld [vmem:[#allocation7 + $0x1a48] sm:$0xf] }
 0x3ff   : > { %8329 = vmatpush.bf16.msra.mxu3 %v16121_v60  ;;  %v16288_v60 = vld [vmem:[#allocation7 + $0x1890] sm:$0xf]  ;;  %v16472_v3 = vld [vmem:[#allocation7 + $0x1a08] sm:$0xf] }
 0x400   : > { %8371 = vmatpush.bf16.msra.mxu2 %v15869_v34  ;;  %8273 = vmatpush.bf16.msrb.mxu0 %v16117_v44  ;;  %v6599_v34 = vpop.f32.mrf.mxu0  ;;  %v16289_v27 = vor.u32 %v19322_v53, %v16288_v60  ;;  %v19373_v44 = vld [vmem:[#allocation7 + $0x1a4c] sm:$0xf] }
 0x401   : > { %v6614_v40 = vadd.f32 %v6613_v24, %v6599_v34  ;;  %v19365_v60 = vld [vmem:[#allocation7 + $0x1a0c] sm:$0xf]  ;;  %v16224_v34 = vld [vmem:[#allocation7 + $0x1810] sm:$0xf] }
 0x402   : > { %8311 = vmatpush.bf16.msrb.mxu1 %v15993_v47  ;;  %v16256_v47 = vld [vmem:[#allocation7 + $0x1850] sm:$0xf]  ;;  %v6627_v45 = vpop.f32.mrf.mxu1  ;;  %v16474_v53 = vld [vmem:[#allocation7 + $0x1a28] sm:$0xf0] }
 0x403   : > { %8330 = vmatpush.bf16.msra.mxu3 %v16089_v12  ;;  %v19314_v12 = vld [vmem:[#allocation7 + $0x186c] sm:$0xf0]  ;;  %v6628_v14 = vadd.f32 %v6627_v45, %v6614_v40 }
 0x404   : > { %8372 = vmatpush.bf16.msra.mxu2 %v15837_v36  ;;  %8274 = vmatpush.bf16.msrb.mxu0 %v16085_v38  ;;  %v15929_v36 = vor.u32 %v19233_v23, %v15928_v42  ;;  %v16257_v32 = vor.u32 %v19314_v12, %v16256_v47  ;;  %v19377_v38 = vld [vmem:[#allocation7 + $0x1a64] sm:$0xf0]  ;;  %v16442_v47 = vld [vmem:[#allocation7 + $0x19e8] sm:$0xf0]  ;;  %v16192_v12 = vld [vmem:[#allocation7 + $0x17d0] sm:$0xf] }
 0x405   : > { %v16505_v48 = vor.u32 %v19377_v38, %v16504_v10  ;;  %v15864_v42 = vld [vmem:[#allocation7 + $0x1548] sm:$0xf]  ;;  %v19298_v45 = vld [vmem:[#allocation7 + $0x17ec] sm:$0xf0]  ;;  %v19349_v38 = vld [vmem:[#allocation7 + $0x198c] sm:$0xf] }
 0x406   : > { %8331 = vmatmul.bf16.vlgmr.msra.gmra.mxu3 %v21156_v6  ;;  %8312 = vmatpush.bf16.msrb.mxu1 %v15961_v52  ;;  %v19306_v52 = vld [vmem:[#allocation7 + $0x182c] sm:$0xf0]  ;;  %v19217_v23 = vld [vmem:[#allocation7 + $0x1564] sm:$0xf0]  ;;  %v16193_v10 = vor.u32 %v19298_v45, %v16192_v12 }
 0x407   : > { %8393 = vmatpush.bf16.msrb.mxu3 %v16573_v55  ;;  %8373 = vmatmul.bf16.vlgmr.msra.gmra.mxu2 %v21204_v13  ;;  %v16509_v55 = vor.u32 %v19373_v44, %v16506_v7  ;;  %v19369_v44 = vld [vmem:[#allocation7 + $0x1a24] sm:$0xf0]  ;;  %v19357_v7 = vld [vmem:[#allocation7 + $0x19cc] sm:$0xf]  ;;  %v16128_v12 = vld [vmem:[#allocation7 + $0x1750] sm:$0xf] }
 0x408   : > { %8435 = vmatpush.bf16.msrb.mxu2 %v16321_v9  ;;  %8337 = vmatpush.bf16.msra.mxu0 %v16569_v31  ;;  %v6641_v9 = vpop.f32.mrf.mxu3  ;;  %v15897_v31 = vor.u32 %v19225_v50, %v15896_v20  ;;  %v16440_v20 = vld [vmem:[#allocation7 + $0x19c8] sm:$0xf]  ;;  %v19282_v45 = vld [vmem:[#allocation7 + $0x176c] sm:$0xf0] }
 0x409   : > { %8275 = vmatmul.bf16.vlgmr.msrb.gmra.mxu0 %v21156_v6  ;;  %v6642_v24 = vadd.f32 %v6641_v9, %v6628_v14  ;;  %v15832_v14 = vld [vmem:[#allocation7 + $0x1508] sm:$0xf]  ;;  %v19325_v9 = vld [vmem:[#allocation7 + $0x18cc] sm:$0xf] }
 0x40a   : > { %8313 = vmatpush.bf16.msrb.mxu1 %v15929_v36  ;;  %v15865_v36 = vor.u32 %v19217_v23, %v15864_v42  ;;  %v19361_v50 = vld [vmem:[#allocation7 + $0x19e4] sm:$0xf0]  ;;  %v21230_v42 = vpop.f32.mrf.mxu1 }
 0x40b   : > { %8394 = vmatpush.bf16.msrb.mxu3 %v16541_v41  ;;  %v21228_v40 = vadd.f32 %v6642_v24, %v21059_v61  ;;  %v16477_v41 = vor.u32 %v19365_v60, %v16474_v53  ;;  %v16473_v61 = vor.u32 %v19369_v44, %v16472_v3  ;;  %v16410_v60 = vld [vmem:[#allocation7 + $0x19a8] sm:$0xf0]  ;;  %v16160_v53 = vld [vmem:[#allocation7 + $0x1790] sm:$0xf]  ;;  %21863 = vst [vmem:[#allocation85_spill] sm:$0xff] %v21230_v42 }
 0x40c   : > { %8436 = vmatpush.bf16.msrb.mxu2 %v16289_v27  ;;  %8338 = vmatpush.bf16.msra.mxu0 %v16537_v59  ;;  %v16225_v27 = vor.u32 %v19306_v52, %v16224_v34  ;;  %v16445_v59 = vor.u32 %v19357_v7, %v16442_v47  ;;  %v19290_v24 = vld [vmem:[#allocation7 + $0x17ac] sm:$0xf0]  ;;  %v16441_v52 = vor.u32 %v19361_v50, %v16440_v20  ;;  %v16282_v44 = vld [vmem:[#allocation7 + $0x18a8] sm:$0xf0] }
 0x40d   : > { %v16413_v23 = vor.u32 %v19349_v38, %v16410_v60  ;;  %v16161_v3 = vor.u32 %v19290_v24, %v16160_v53  ;;  %v19341_v7 = vld [vmem:[#allocation7 + $0x194c] sm:$0xf]  ;;  %v21236_v60 = vpop.f32.mrf.mxu2  ;;  %v16096_v53 = vld [vmem:[#allocation7 + $0x1710] sm:$0xf] }
 0x40e   : > { %8314 = vmatpush.bf16.msrb.mxu1 %v15897_v31  ;;  %v16378_v47 = vld [vmem:[#allocation7 + $0x1968] sm:$0xf0]  ;;  %21866 = vst [vmem:[#allocation88_spill] sm:$0xff] %v21236_v60  ;;  %v19274_v24 = vld [vmem:[#allocation7 + $0x172c] sm:$0xf0] }
 0x40f   : > { %8395 = vmatpush.bf16.msrb.mxu3 %v16509_v55  ;;  %v19209_v55 = vld [vmem:[#allocation7 + $0x1524] sm:$0xf0]  ;;  %v19309_v20 = vld [vmem:[#allocation7 + $0x184c] sm:$0xf]  ;;  %v16381_v50 = vor.u32 %v19341_v7, %v16378_v47 }
 0x410   : > { %8437 = vmatpush.bf16.msrb.mxu2 %v16257_v32  ;;  %8339 = vmatpush.bf16.msra.mxu0 %v16505_v48  ;;  %v16314_v32 = vld [vmem:[#allocation7 + $0x18e8] sm:$0xf0]  ;;  %v15833_v34 = vor.u32 %v19209_v55, %v15832_v14  ;;  %v16408_v48 = vld [vmem:[#allocation7 + $0x1988] sm:$0xf]  ;;  %v21232_v19 = vpop.f32.mrf.mxu3 }
 0x411   : > { %v16317_v31 = vor.u32 %v19325_v9, %v16314_v32  ;;  %21864 = vst [vmem:[#allocation86_spill] sm:$0xff] %v21232_v19  ;;  %v19345_v55 = vld [vmem:[#allocation7 + $0x1964] sm:$0xf0]  ;;  %v16250_v9 = vld [vmem:[#allocation7 + $0x1868] sm:$0xf0] }
 0x412   : > { %8315 = vmatpush.bf16.msrb.mxu1 %v15865_v36  ;;  %v21234_v36 = vpop.f32.mrf.mxu0  ;;  %v19333_v32 = vld [vmem:[#allocation7 + $0x190c] sm:$0xf]  ;;  %v19337_v7 = vld [vmem:[#allocation7 + $0x1924] sm:$0xf0] }
 0x413   : > { %8396 = vmatpush.bf16.msrb.mxu3 %v16477_v41  ;;  %v19353_v41 = vld [vmem:[#allocation7 + $0x19a4] sm:$0xf0]  ;;  %21865 = vst [vmem:[#allocation87_spill] sm:$0xff] %v21234_v36  ;;  %v16346_v38 = vld [vmem:[#allocation7 + $0x1928] sm:$0xf0]  ;;  %v6697_v36 = vpop.f32.mrf.mxu1 }
 0x414   : > { %8438 = vmatpush.bf16.msrb.mxu2 %v16225_v27  ;;  %8340 = vmatpush.bf16.msra.mxu0 %v16473_v61  ;;  %v19317_v27 = vld [vmem:[#allocation7 + $0x188c] sm:$0xf]  ;;  %v16409_v14 = vor.u32 %v19353_v41, %v16408_v48  ;;  %v16578_v48 = vld [vmem:[#allocation7 + $0x1af0] sm:$0xf0] }
 0x415   : > { %v16285_v61 = vor.u32 %v19317_v27, %v16282_v44  ;;  %v16097_v27 = vor.u32 %v19274_v24, %v16096_v53  ;;  %v16344_v44 = vld [vmem:[#allocation7 + $0x1908] sm:$0xf]  ;;  %v16218_v19 = vld [vmem:[#allocation7 + $0x1828] sm:$0xf0] }
 0x416   : > { %8316 = vmatpush.bf16.msrb.mxu1 %v15833_v34  ;;  %v16704_v34 = vld [vmem:[#allocation7 + $0x1bd0] sm:$0xf]  ;;  %v19421_v42 = vld [vmem:[#allocation7 + $0x1bcc] sm:$0xf] }
 0x417   : > { %8397 = vmatpush.bf16.msrb.mxu3 %v16445_v59  ;;  %v16376_v59 = vld [vmem:[#allocation7 + $0x1948] sm:$0xf]  ;;  %v16186_v53 = vld [vmem:[#allocation7 + $0x17e8] sm:$0xf0] }
 0x418   : > { %8439 = vmatpush.bf16.msrb.mxu2 %v16193_v10  ;;  %8341 = vmatpush.bf16.msra.mxu0 %v16441_v52  ;;  %v16129_v10 = vor.u32 %v19282_v45, %v16128_v12  ;;  %v19426_v52 = vld [vmem:[#allocation7 + $0x1bec] sm:$0xf0]  ;;  %v16377_v41 = vor.u32 %v19345_v55, %v16376_v59  ;;  %v19301_v45 = vld [vmem:[#allocation7 + $0x180c] sm:$0xf]  ;;  %v6655_v60 = vpop.f32.mrf.mxu3  ;;  %v19382_v59 = vld [vmem:[#allocation7 + $0x1a94] sm:$0xf] }
 0x419   : > { %8317 = vmatmul.bf16.vlgmr.msrb.gmra.mxu1 %v21204_v13  ;;  %v16705_v47 = vor.u32 %v19426_v52, %v16704_v34  ;;  %v16546_v55 = vld [vmem:[#allocation7 + $0x1ab0] sm:$0xf0]  ;;  %v19413_v24 = vld [vmem:[#allocation7 + $0x1b8c] sm:$0xf] }
 0x41a   : > { %8379 = vmatpush.bf16.msra.mxu1 %v16317_v31  ;;  %v19390_v31 = vld [vmem:[#allocation7 + $0x1ad4] sm:$0xf]  ;;  %v16549_v52 = vor.u32 %v19382_v59, %v16546_v55 }
 0x41b   : > { %8398 = vmatpush.bf16.msrb.mxu3 %v16413_v23  ;;  %v16253_v23 = vor.u32 %v19309_v20, %v16250_v9  ;;  %v16581_v12 = vor.u32 %v19390_v31, %v16578_v48  ;;  %v16701_v9 = vor.u32 %v19421_v42, %v16698_v63  ;;  %v16666_v31 = vld [vmem:[#allocation7 + $0x1ba8] sm:$0xf0]  ;;  %v16640_v48 = vld [vmem:[#allocation7 + $0x1b50] sm:$0xf]  ;;  %v16066_v59 = vld [vmem:[#allocation7 + $0x16f0] sm:$0xf0] }
 0x41c   : > { %8440 = vmatpush.bf16.msrb.mxu2 %v16161_v3  ;;  %8342 = vmatpush.bf16.msra.mxu0 %v16409_v14  ;;  %v16349_v3 = vor.u32 %v19333_v32, %v16346_v38  ;;  %v6669_v14 = vpop.f32.mrf.mxu0  ;;  %v16673_v32 = vor.u32 %v19418_v49, %v16672_v22  ;;  %v19293_v38 = vld [vmem:[#allocation7 + $0x17cc] sm:$0xf]  ;;  %v16669_v49 = vor.u32 %v19413_v24, %v16666_v31  ;;  %v19266_v31 = vld [vmem:[#allocation7 + $0x16ec] sm:$0xf0] }
 0x41d   : > { %v6670_v20 = vadd.f32 %v6669_v14, %v6655_v60  ;;  %v19285_v63 = vld [vmem:[#allocation7 + $0x178c] sm:$0xf]  ;;  %v16482_v14 = vld [vmem:[#allocation7 + $0x1a30] sm:$0xf0] }
 0x41e   : > { %8380 = vmatpush.bf16.msra.mxu1 %v16285_v61  ;;  %v16345_v61 = vor.u32 %v19337_v7, %v16344_v44  ;;  %v16154_v42 = vld [vmem:[#allocation7 + $0x17a8] sm:$0xf0] }
 0x41f   : > { %8399 = vmatpush.bf16.msrb.mxu3 %v16381_v50  ;;  %v16221_v50 = vor.u32 %v19301_v45, %v16218_v19  ;;  %v16189_v19 = vor.u32 %v19293_v38, %v16186_v53  ;;  %v16634_v44 = vld [vmem:[#allocation7 + $0x1b68] sm:$0xf0]  ;;  %v19366_v45 = vld [vmem:[#allocation7 + $0x1a14] sm:$0xf] }
 0x420   : > { %8441 = vmatpush.bf16.msrb.mxu2 %v16129_v10  ;;  %8343 = vmatpush.bf16.msra.mxu0 %v16377_v41  ;;  %v6683_v10 = vpop.f32.mrf.mxu2  ;;  %v19410_v41 = vld [vmem:[#allocation7 + $0x1b6c] sm:$0xf0]  ;;  %v21245_v55 = vpop.f32.mrf.mxu3  ;;  %v16485_v38 = vor.u32 %v19366_v45, %v16482_v14  ;;  %v19397_v24 = vld [vmem:[#allocation7 + $0x1b0c] sm:$0xf]  ;;  %v19350_v45 = vld [vmem:[#allocation7 + $0x1994] sm:$0xf] }
 0x421   : > { %v6684_v34 = vadd.f32 %v6683_v10, %v6670_v20  ;;  %v16641_v22 = vor.u32 %v19410_v41, %v16640_v48  ;;  %21867 = vst [vmem:[#allocation89_spill] sm:$0xff] %v21245_v55  ;;  %v21247_v20 = vpop.f32.mrf.mxu1  ;;  %v19358_v48 = vld [vmem:[#allocation7 + $0x19d4] sm:$0xf] }
 0x422   : > { %8381 = vmatpush.bf16.msra.mxu1 %v16253_v23  ;;  %v19374_v23 = vld [vmem:[#allocation7 + $0x1a54] sm:$0xf]  ;;  %21868 = vst [vmem:[#allocation90_spill] sm:$0xff] %v21247_v20 }
 0x423   : > { %8400 = vmatpush.bf16.msrb.mxu3 %v16349_v3  ;;  %v16514_v3 = vld [vmem:[#allocation7 + $0x1a70] sm:$0xf0]  ;;  %v6698_v60 = vadd.f32 %v6697_v36, %v6684_v34  ;;  %v16608_v36 = vld [vmem:[#allocation7 + $0x1b10] sm:$0xf]  ;;  %v16602_v34 = vld [vmem:[#allocation7 + $0x1b28] sm:$0xf0] }
 0x424   : > { %8442 = vmatpush.bf16.msrb.mxu2 %v16097_v27  ;;  %8344 = vmatpush.bf16.msra.mxu0 %v16345_v61  ;;  %v19405_v27 = vld [vmem:[#allocation7 + $0x1b4c] sm:$0xf]  ;;  %v19262_v61 = vld [vmem:[#allocation7 + $0x16d4] sm:$0xf] }
 0x425   : > { %v21242_v7 = vadd.f32 %v6698_v60, %v21076_v21  ;;  %v16637_v21 = vor.u32 %v19405_v27, %v16634_v44  ;;  %v16069_v53 = vor.u32 %v19262_v61, %v16066_v59  ;;  %v16450_v41 = vld [vmem:[#allocation7 + $0x19f0] sm:$0xf0]  ;;  %v16032_v27 = vld [vmem:[#allocation7 + $0x1690] sm:$0xf] }
 0x426   : > { %8401 = vmatmul.bf16.vlgmr.msrb.gmra.mxu3 %v21187_v58  ;;  %8382 = vmatpush.bf16.msra.mxu1 %v16221_v50  ;;  %v16157_v50 = vor.u32 %v19285_v63, %v16154_v42  ;;  %v16034_v60 = vld [vmem:[#allocation7 + $0x16b0] sm:$0xf0]  ;;  %v19269_v63 = vld [vmem:[#allocation7 + $0x170c] sm:$0xf]  ;;  %v16453_v42 = vor.u32 %v19358_v48, %v16450_v41  ;;  %v16576_v44 = vld [vmem:[#allocation7 + $0x1ad0] sm:$0xf] }
 0x427   : > { %8467 = vmatpush.bf16.msra.mxu3 %v16705_v47  ;;  %8443 = vmatmul.bf16.vlgmr.msrb.gmra.mxu2 %v21156_v6  ;;  %v16517_v47 = vor.u32 %v19374_v23, %v16514_v3  ;;  %v19254_v3 = vld [vmem:[#allocation7 + $0x1694] sm:$0xf]  ;;  %v19250_v41 = vld [vmem:[#allocation7 + $0x166c] sm:$0xf0] }
 0x428   : > { %8505 = vmatpush.bf16.msra.mxu2 %v16581_v12  ;;  %8411 = vmatpush.bf16.msrb.mxu0 %v16701_v9  ;;  %v19402_v12 = vld [vmem:[#allocation7 + $0x1b2c] sm:$0xf0]  ;;  %v19277_v9 = vld [vmem:[#allocation7 + $0x174c] sm:$0xf]  ;;  %v16418_v14 = vld [vmem:[#allocation7 + $0x19b0] sm:$0xf0]  ;;  %v6725_v61 = vpop.f32.mrf.mxu3 }
 0x429   : > { %8345 = vmatmul.bf16.vlgmr.msra.gmra.mxu0 %v21187_v58  ;;  %v16609_v10 = vor.u32 %v19402_v12, %v16608_v36  ;;  %v16037_v36 = vor.u32 %v19254_v3, %v16034_v60  ;;  %v19258_v12 = vld [vmem:[#allocation7 + $0x16ac] sm:$0xf0]  ;;  %v6711_v59 = vpop.f32.mrf.mxu1  ;;  %v16386_v3 = vld [vmem:[#allocation7 + $0x1970] sm:$0xf0] }
 0x42a   : > { %8383 = vmatpush.bf16.msra.mxu1 %v16189_v19  ;;  %v16605_v19 = vor.u32 %v19397_v24, %v16602_v34  ;;  %v16000_v24 = vld [vmem:[#allocation7 + $0x1650] sm:$0xf]  ;;  %v19238_v60 = vld [vmem:[#allocation7 + $0x1614] sm:$0xf] }
 0x42b   : > { %8468 = vmatpush.bf16.msra.mxu3 %v16673_v32  ;;  %v16122_v32 = vld [vmem:[#allocation7 + $0x1768] sm:$0xf0]  ;;  %v16544_v34 = vld [vmem:[#allocation7 + $0x1a90] sm:$0xf] }
 0x42c   : > { %8506 = vmatpush.bf16.msra.mxu2 %v16549_v52  ;;  %8412 = vmatpush.bf16.msrb.mxu0 %v16669_v49  ;;  %v16064_v52 = vld [vmem:[#allocation7 + $0x16d0] sm:$0xf]  ;;  %v16125_v23 = vor.u32 %v19277_v9, %v16122_v32  ;;  %v16090_v49 = vld [vmem:[#allocation7 + $0x1728] sm:$0xf0]  ;;  %v21249_v9 = vadd.f32 %v6725_v61, %v6711_v59  ;;  %v19230_v61 = vld [vmem:[#allocation7 + $0x15d4] sm:$0xf] }
 0x42d   : > { %v15938_v59 = vld [vmem:[#allocation7 + $0x15f0] sm:$0xf0] }
 0x42e   : > { %8384 = vmatpush.bf16.msra.mxu1 %v16157_v50  ;;  %v16093_v50 = vor.u32 %v19269_v63, %v16090_v49  ;;  %v21255_v63 = vpop.f32.mrf.mxu0 }
 0x42f   : > { %8469 = vmatpush.bf16.msra.mxu3 %v16641_v22  ;;  %v16065_v22 = vor.u32 %v19266_v31, %v16064_v52  ;;  %v19386_v52 = vld [vmem:[#allocation7 + $0x1aac] sm:$0xf0]  ;;  %v21251_v31 = vpop.f32.mrf.mxu2  ;;  %21870 = vst [vmem:[#allocation92_spill] sm:$0xff] %v21255_v63 }
 0x430   : > { %8507 = vmatpush.bf16.msra.mxu2 %v16517_v47  ;;  %8413 = vmatpush.bf16.msrb.mxu0 %v16637_v21  ;;  %v19394_v47 = vld [vmem:[#allocation7 + $0x1aec] sm:$0xf0]  ;;  %v19246_v21 = vld [vmem:[#allocation7 + $0x1654] sm:$0xf]  ;;  %21869 = vst [vmem:[#allocation91_spill] sm:$0xff] %v21251_v31  ;;  %v16545_v49 = vor.u32 %v19386_v52, %v16544_v34  ;;  %v15941_v34 = vor.u32 %v19230_v61, %v15938_v59 }
 0x431   : > { %v16577_v32 = vor.u32 %v19394_v47, %v16576_v44  ;;  %v19242_v44 = vld [vmem:[#allocation7 + $0x162c] sm:$0xf0]  ;;  %v15874_v59 = vld [vmem:[#allocation7 + $0x1570] sm:$0xf0] }
 0x432   : > { %8385 = vmatpush.bf16.msra.mxu1 %v16125_v23  ;;  %v19342_v23 = vld [vmem:[#allocation7 + $0x1954] sm:$0xf]  ;;  %v16512_v47 = vld [vmem:[#allocation7 + $0x1a50] sm:$0xf] }
 0x433   : > { %8470 = vmatpush.bf16.msra.mxu3 %v16609_v10  ;;  %v16002_v10 = vld [vmem:[#allocation7 + $0x1670] sm:$0xf0] }
 0x434   : > { %8508 = vmatpush.bf16.msra.mxu2 %v16485_v38  ;;  %8414 = vmatpush.bf16.msrb.mxu0 %v16605_v19  ;;  %v16033_v38 = vor.u32 %v19258_v12, %v16032_v27  ;;  %v16005_v48 = vor.u32 %v19246_v21, %v16002_v10  ;;  %v15970_v19 = vld [vmem:[#allocation7 + $0x1630] sm:$0xf0]  ;;  %v16389_v27 = vor.u32 %v19342_v23, %v16386_v3  ;;  %v19427_v21 = vld [vmem:[#allocation7 + $0x1bf4] sm:$0xf0] }
 0x435   : > { %v15973_v12 = vor.u32 %v19238_v60, %v15970_v19  ;;  %v19222_v23 = vld [vmem:[#allocation7 + $0x1594] sm:$0xf]  ;;  %v16680_v60 = vld [vmem:[#allocation7 + $0x1b98] sm:$0xf] }
 0x436   : > { %16722 = vmatmul.msk.bf16.vlgmr.msra.gmra.mxu3 %vm2681_vm4, %v21172_v1  ;;  %8386 = vmatpush.bf16.msra.mxu1 %v16093_v50  ;;  %v16712_v50 = vld [vmem:[#allocation7 + $0x1bd8] sm:$0xf]  ;;  %v15906_v3 = vld [vmem:[#allocation7 + $0x15b0] sm:$0xf0]  ;;  %v6739_v31 = vpop.f32.mrf.mxu0 }
 0x437   : > { %8477 = vmatpush.bf16.msrb.mxu3 %v16069_v53  ;;  %v16421_v53 = vor.u32 %v19350_v45, %v16418_v14  ;;  %v19334_v45 = vld [vmem:[#allocation7 + $0x1914] sm:$0xf]  ;;  %v16713_v52 = vor.u32 %v19427_v21, %v16712_v50  ;;  %v19419_v19 = vld [vmem:[#allocation7 + $0x1bb4] sm:$0xf0]  ;;  %v6753_v20 = vpop.f32.mrf.mxu2 }
 0x438   : > { %8421 = vmatpush.bf16.msra.mxu0 %v16065_v22  ;;  %8509 = vmatpush.bf16.msra.mxu2 %v16453_v42  ;;  %v15968_v22 = vld [vmem:[#allocation7 + $0x1610] sm:$0xf]  ;;  %v16001_v42 = vor.u32 %v19250_v41, %v16000_v24  ;;  %v16354_v14 = vld [vmem:[#allocation7 + $0x1930] sm:$0xf0]  ;;  %v16648_v50 = vld [vmem:[#allocation7 + $0x1b58] sm:$0xf] }
 0x439   : > { %16721 = vmatmul.msk.bf16.vlgmr.msrb.gmra.mxu0 %vm2681_vm4, %v21172_v1  ;;  %8387 = vmatmul.bf16.vlgmr.msra.gmra.mxu1 %v21156_v6  ;;  %v19370_v24 = vld [vmem:[#allocation7 + $0x1a2c] sm:$0xf0]  ;;  %v19411_v21 = vld [vmem:[#allocation7 + $0x1b74] sm:$0xf0] }
 0x43a   : > { %8449 = vmatpush.bf16.msrb.mxu1 %v16577_v32  ;;  %v15969_v32 = vor.u32 %v19242_v44, %v15968_v22  ;;  %v19234_v41 = vld [vmem:[#allocation7 + $0x15ec] sm:$0xf0]  ;;  %v6740_v22 = vadd.f32 %v6739_v31, %v21249_v9 }
 0x43b   : > { %8478 = vmatpush.bf16.msrb.mxu3 %v16037_v36  ;;  %v19378_v36 = vld [vmem:[#allocation7 + $0x1a6c] sm:$0xf0] }
 0x43c   : > { %8422 = vmatpush.bf16.msra.mxu0 %v16033_v38  ;;  %8510 = vmatpush.bf16.msra.mxu2 %v16421_v53  ;;  %v16513_v10 = vor.u32 %v19378_v36, %v16512_v47  ;;  %v16357_v38 = vor.u32 %v19334_v45, %v16354_v14  ;;  %v16480_v53 = vld [vmem:[#allocation7 + $0x1a10] sm:$0xf]  ;;  %v15909_v47 = vor.u32 %v19222_v23, %v15906_v3  ;;  %v19214_v14 = vld [vmem:[#allocation7 + $0x1554] sm:$0xf]  ;;  %v19403_v23 = vld [vmem:[#allocation7 + $0x1b34] sm:$0xf0] }
 0x43d   : > { %v19362_v44 = vld [vmem:[#allocation7 + $0x19ec] sm:$0xf0]  ;;  %v16681_v36 = vor.u32 %v19419_v19, %v16680_v60  ;;  %v6754_v61 = vadd.f32 %v6753_v20, %v6740_v22  ;;  %v16328_v3 = vld [vmem:[#allocation7 + $0x18d8] sm:$0xf] }
 0x43e   : > { %8450 = vmatpush.bf16.msrb.mxu1 %v16545_v49  ;;  %v16481_v49 = vor.u32 %v19370_v24, %v16480_v53  ;;  %v19226_v45 = vld [vmem:[#allocation7 + $0x15ac] sm:$0xf0]  ;;  %v15877_v24 = vor.u32 %v19214_v14, %v15874_v59  ;;  %v19331_v19 = vld [vmem:[#allocation7 + $0x18f4] sm:$0xf0] }
 0x43f   : > { %8479 = vmatpush.bf16.msrb.mxu3 %v16005_v48  ;;  %v15936_v48 = vld [vmem:[#allocation7 + $0x15d0] sm:$0xf]  ;;  %v21263_v9 = vadd.f32 %v6754_v61, %v21100_v57  ;;  %v19263_v57 = vld [vmem:[#allocation7 + $0x16dc] sm:$0xf]  ;;  %v16329_v61 = vor.u32 %v19331_v19, %v16328_v3 }
 0x440   : > { %8423 = vmatpush.bf16.msra.mxu0 %v16001_v42  ;;  %8511 = vmatpush.bf16.msra.mxu2 %v16389_v27  ;;  %v15937_v42 = vor.u32 %v19234_v41, %v15936_v48  ;;  %v16448_v27 = vld [vmem:[#allocation7 + $0x19d0] sm:$0xf]  ;;  %v15842_v48 = vld [vmem:[#allocation7 + $0x1530] sm:$0xf0]  ;;  %v16616_v41 = vld [vmem:[#allocation7 + $0x1b18] sm:$0xf] }
 0x441   : > { %v19354_v53 = vld [vmem:[#allocation7 + $0x19ac] sm:$0xf0] }
 0x442   : > { %8451 = vmatpush.bf16.msrb.mxu1 %v16513_v10  ;;  %v16449_v10 = vor.u32 %v19362_v44, %v16448_v27  ;;  %v19218_v20 = vld [vmem:[#allocation7 + $0x156c] sm:$0xf0]  ;;  %v21265_v44 = vpop.f32.mrf.mxu2 }
 0x443   : > { %8480 = vmatpush.bf16.msrb.mxu3 %v15973_v12  ;;  %v15904_v12 = vld [vmem:[#allocation7 + $0x1590] sm:$0xf]  ;;  %21871 = vst [vmem:[#allocation93_spill] sm:$0xff] %v21265_v44  ;;  %v16042_v44 = vld [vmem:[#allocation7 + $0x16b8] sm:$0xf0] }
 0x444   : > { %8424 = vmatpush.bf16.msra.mxu0 %v15969_v32  ;;  %8512 = vmatpush.bf16.msra.mxu2 %v16357_v38  ;;  %v15905_v31 = vor.u32 %v19226_v45, %v15904_v12  ;;  %v15872_v32 = vld [vmem:[#allocation7 + $0x1550] sm:$0xf]  ;;  %v16617_v12 = vor.u32 %v19403_v23, %v16616_v41  ;;  %v19318_v41 = vld [vmem:[#allocation7 + $0x1894] sm:$0xf] }
 0x445   : > { %v16416_v38 = vld [vmem:[#allocation7 + $0x1990] sm:$0xf]  ;;  %v15873_v22 = vor.u32 %v19218_v20, %v15872_v32  ;;  %v19255_v20 = vld [vmem:[#allocation7 + $0x169c] sm:$0xf]  ;;  %v16290_v23 = vld [vmem:[#allocation7 + $0x18b0] sm:$0xf0] }
 0x446   : > { %8452 = vmatpush.bf16.msrb.mxu1 %v16481_v49  ;;  %v16417_v60 = vor.u32 %v19354_v53, %v16416_v38  ;;  %v16074_v49 = vld [vmem:[#allocation7 + $0x16f8] sm:$0xf0]  ;;  %v19346_v27 = vld [vmem:[#allocation7 + $0x196c] sm:$0xf0]  ;;  %v21269_v38 = vpop.f32.mrf.mxu3  ;;  %v19323_v53 = vld [vmem:[#allocation7 + $0x18b4] sm:$0xf0]  ;;  %v16045_v19 = vor.u32 %v19255_v20, %v16042_v44 }
 0x447   : > { %8481 = vmatpush.bf16.msrb.mxu3 %v15941_v34  ;;  %8513 = vmatmul.bf16.vlgmr.msra.gmra.mxu2 %v21187_v58  ;;  %v16649_v34 = vor.u32 %v19411_v21, %v16648_v50  ;;  %v15840_v45 = vld [vmem:[#allocation7 + $0x1510] sm:$0xf]  ;;  %v16077_v59 = vor.u32 %v19263_v57, %v16074_v49  ;;  %v19326_v50 = vld [vmem:[#allocation7 + $0x18d4] sm:$0xf]  ;;  %21873 = vst [vmem:[#allocation95_spill] sm:$0xff] %v21269_v38 }
 0x448   : > { %8579 = vmatpush.bf16.msrb.mxu2 %v16713_v52  ;;  %8425 = vmatpush.bf16.msra.mxu0 %v15937_v42  ;;  %v19206_v52 = vld [vmem:[#allocation7 + $0x1514] sm:$0xf]  ;;  %v16384_v42 = vld [vmem:[#allocation7 + $0x1950] sm:$0xf] }
 0x449   : > { %v19210_v14 = vld [vmem:[#allocation7 + $0x152c] sm:$0xf0]  ;;  %v16322_v21 = vld [vmem:[#allocation7 + $0x18f0] sm:$0xf0]  ;;  %v16385_v32 = vor.u32 %v19346_v27, %v16384_v42  ;;  %v19315_v42 = vld [vmem:[#allocation7 + $0x1874] sm:$0xf0] }
 0x44a   : > { %8453 = vmatpush.bf16.msrb.mxu1 %v16449_v10  ;;  %v16296_v10 = vld [vmem:[#allocation7 + $0x1898] sm:$0xf]  ;;  %v19422_v57 = vld [vmem:[#allocation7 + $0x1bd4] sm:$0xf]  ;;  %v19247_v27 = vld [vmem:[#allocation7 + $0x165c] sm:$0xf] }
 0x44b   : > { %8482 = vmatpush.bf16.msrb.mxu3 %v15909_v47  ;;  %v21267_v47 = vpop.f32.mrf.mxu1  ;;  %v16297_v3 = vor.u32 %v19323_v53, %v16296_v10  ;;  %v16706_v49 = vld [vmem:[#allocation7 + $0x1bf0] sm:$0xf0]  ;;  %v16232_v53 = vld [vmem:[#allocation7 + $0x1818] sm:$0xf] }
 0x44c   : > { %8580 = vmatpush.bf16.msrb.mxu2 %v16681_v36  ;;  %8426 = vmatpush.bf16.msra.mxu0 %v15905_v31  ;;  %21872 = vst [vmem:[#allocation94_spill] sm:$0xff] %v21267_v47  ;;  %v15845_v36 = vor.u32 %v19206_v52, %v15842_v48  ;;  %v21271_v31 = vpop.f32.mrf.mxu0  ;;  %v16325_v52 = vor.u32 %v19326_v50, %v16322_v21  ;;  %v19338_v48 = vld [vmem:[#allocation7 + $0x192c] sm:$0xf0]  ;;  %v19414_v10 = vld [vmem:[#allocation7 + $0x1b94] sm:$0xf] }
 0x44d   : > { %21874 = vst [vmem:[#allocation96_spill] sm:$0xff] %v21271_v31  ;;  %v16010_v31 = vld [vmem:[#allocation7 + $0x1678] sm:$0xf0] }
 0x44e   : > { %8454 = vmatpush.bf16.msrb.mxu1 %v16417_v60  ;;  %v16264_v60 = vld [vmem:[#allocation7 + $0x1858] sm:$0xf]  ;;  %v16013_v21 = vor.u32 %v19247_v27, %v16010_v31  ;;  %v6795_v20 = vpop.f32.mrf.mxu3  ;;  %v19302_v31 = vld [vmem:[#allocation7 + $0x1814] sm:$0xf]  ;;  %v19423_v47 = vld [vmem:[#allocation7 + $0x1bdc] sm:$0xf] }
 0x44f   : > { %8483 = vmatpush.bf16.msrb.mxu3 %v15877_v24  ;;  %v15841_v24 = vor.u32 %v19210_v14, %v15840_v45  ;;  %v16293_v45 = vor.u32 %v19318_v41, %v16290_v23  ;;  %v16709_v14 = vor.u32 %v19422_v57, %v16706_v49  ;;  %v16265_v50 = vor.u32 %v19315_v42, %v16264_v60  ;;  %v19406_v42 = vld [vmem:[#allocation7 + $0x1b54] sm:$0xf] }
 0x450   : > { %8581 = vmatpush.bf16.msrb.mxu2 %v16649_v34  ;;  %8427 = vmatpush.bf16.msra.mxu0 %v15873_v22  ;;  %v16352_v34 = vld [vmem:[#allocation7 + $0x1910] sm:$0xf]  ;;  %v16642_v27 = vld [vmem:[#allocation7 + $0x1b70] sm:$0xf0] }
 0x451   : > { %v16353_v22 = vor.u32 %v19338_v48, %v16352_v34  ;;  %v19239_v34 = vld [vmem:[#allocation7 + $0x161c] sm:$0xf] }
 0x452   : > { %8455 = vmatpush.bf16.msrb.mxu1 %v16385_v32  ;;  %v16674_v32 = vld [vmem:[#allocation7 + $0x1bb0] sm:$0xf0] }
 0x453   : > { %8484 = vmatpush.bf16.msrb.mxu3 %v15845_v36  ;;  %v6767_v36 = vpop.f32.mrf.mxu2 }
 0x454   : > { %8582 = vmatpush.bf16.msrb.mxu2 %v16617_v12  ;;  %8428 = vmatpush.bf16.msra.mxu0 %v15841_v24  ;;  %v6781_v12 = vpop.f32.mrf.mxu1  ;;  %v19307_v24 = vld [vmem:[#allocation7 + $0x1834] sm:$0xf0]  ;;  %v6809_v41 = vpop.f32.mrf.mxu0 }
 0x455   : > { %v6782_v44 = vadd.f32 %v6781_v12, %v6767_v36  ;;  %v16233_v49 = vor.u32 %v19307_v24, %v16232_v53  ;;  %v16200_v36 = vld [vmem:[#allocation7 + $0x17d8] sm:$0xf]  ;;  %v16610_v53 = vld [vmem:[#allocation7 + $0x1b30] sm:$0xf0] }
 0x456   : > { %8485 = vmatmul.bf16.vlgmr.msrb.gmra.mxu3 %v21204_v13  ;;  %8456 = vmatpush.bf16.msrb.mxu1 %v16353_v22  ;;  %v19299_v12 = vld [vmem:[#allocation7 + $0x17f4] sm:$0xf0]  ;;  %v15946_v22 = vld [vmem:[#allocation7 + $0x15f8] sm:$0xf0] }
 0x457   : > { %8547 = vmatpush.bf16.msra.mxu3 %v16329_v61  ;;  %v19310_v61 = vld [vmem:[#allocation7 + $0x1854] sm:$0xf]  ;;  %8429 = vmatmul.bf16.vlgmr.msra.gmra.mxu0 %v21204_v13  ;;  %v6796_v48 = vadd.f32 %v6795_v20, %v6782_v44  ;;  %v19231_v44 = vld [vmem:[#allocation7 + $0x15dc] sm:$0xf]  ;;  %v16072_v20 = vld [vmem:[#allocation7 + $0x16d8] sm:$0xf] }
 0x458   : > { %8589 = vmatpush.bf16.msra.mxu2 %v16077_v59  ;;  %8491 = vmatpush.bf16.msrb.mxu0 %v16325_v52  ;;  %v16258_v59 = vld [vmem:[#allocation7 + $0x1870] sm:$0xf0]  ;;  %v15978_v52 = vld [vmem:[#allocation7 + $0x1638] sm:$0xf0]  ;;  %v19267_v24 = vld [vmem:[#allocation7 + $0x16f4] sm:$0xf0] }
 0x459   : > { %16724 = vmatmul.msk.bf16.vlgmr.msrb.gmra.mxu2 %vm2681_vm4, %v21172_v1  ;;  %v16261_v23 = vor.u32 %v19310_v61, %v16258_v59  ;;  %v6810_v57 = vadd.f32 %v6809_v41, %v6796_v48  ;;  %v15981_v60 = vor.u32 %v19239_v34, %v15978_v52  ;;  %8457 = vmatmul.bf16.vlgmr.msrb.gmra.mxu1 %v21187_v58  ;;  %v19294_v59 = vld [vmem:[#allocation7 + $0x17d4] sm:$0xf]  ;;  %v16168_v34 = vld [vmem:[#allocation7 + $0x1798] sm:$0xf]  ;;  %v19223_v48 = vld [vmem:[#allocation7 + $0x159c] sm:$0xf] }
 0x45a   : > { %8523 = vmatpush.bf16.msra.mxu1 %v16709_v14  ;;  %v16645_v61 = vor.u32 %v19406_v42, %v16642_v27  ;;  %v19291_v52 = vld [vmem:[#allocation7 + $0x17b4] sm:$0xf0]  ;;  %v15914_v41 = vld [vmem:[#allocation7 + $0x15b8] sm:$0xf0] }
 0x45b   : > { %8548 = vmatpush.bf16.msra.mxu3 %v16297_v3  ;;  %v16677_v3 = vor.u32 %v19414_v10, %v16674_v32  ;;  %v15949_v10 = vor.u32 %v19231_v44, %v15946_v22  ;;  %v19398_v32 = vld [vmem:[#allocation7 + $0x1b14] sm:$0xf]  ;;  %v19259_v42 = vld [vmem:[#allocation7 + $0x16b4] sm:$0xf0]  ;;  %v15882_v44 = vld [vmem:[#allocation7 + $0x1578] sm:$0xf0] }
 0x45c   : > { %8590 = vmatpush.bf16.msra.mxu2 %v16045_v19  ;;  %8492 = vmatpush.bf16.msrb.mxu0 %v16293_v45  ;;  %v16226_v19 = vld [vmem:[#allocation7 + $0x1830] sm:$0xf0]  ;;  %v21279_v45 = vadd.f32 %v6810_v57, %v21119_v29  ;;  %v16136_v27 = vld [vmem:[#allocation7 + $0x1758] sm:$0xf] }
 0x45d   : > { %v16229_v14 = vor.u32 %v19302_v31, %v16226_v19  ;;  %v16169_v31 = vor.u32 %v19291_v52, %v16168_v34  ;;  %v19286_v19 = vld [vmem:[#allocation7 + $0x1794] sm:$0xf]  ;;  %v19275_v34 = vld [vmem:[#allocation7 + $0x1734] sm:$0xf0]  ;;  %v19207_v52 = vld [vmem:[#allocation7 + $0x151c] sm:$0xf] }
 0x45e   : > { %8524 = vmatpush.bf16.msra.mxu1 %v16677_v3  ;;  %v16073_v3 = vor.u32 %v19267_v24, %v16072_v20  ;;  %v16162_v57 = vld [vmem:[#allocation7 + $0x17b0] sm:$0xf0]  ;;  %v16104_v24 = vld [vmem:[#allocation7 + $0x1718] sm:$0xf] }
 0x45f   : > { %8549 = vmatpush.bf16.msra.mxu3 %v16265_v50  ;;  %v16194_v50 = vld [vmem:[#allocation7 + $0x17f0] sm:$0xf0]  ;;  %v16165_v22 = vor.u32 %v19286_v19, %v16162_v57  ;;  %v17208_v19 = vld [vmem:[#allocation7 + $0x1fc0] sm:$0xf] }
 0x460   : > { %8591 = vmatpush.bf16.msra.mxu2 %v16013_v21  ;;  %8493 = vmatpush.bf16.msrb.mxu0 %v16261_v23  ;;  %v16201_v21 = vor.u32 %v19299_v12, %v16200_v36  ;;  %v16197_v29 = vor.u32 %v19294_v59, %v16194_v50  ;;  %v16613_v23 = vor.u32 %v19398_v32, %v16610_v53  ;;  %v19283_v36 = vld [vmem:[#allocation7 + $0x1774] sm:$0xf0]  ;;  %v19215_v12 = vld [vmem:[#allocation7 + $0x155c] sm:$0xf]  ;;  %v21283_v59 = vpop.f32.mrf.mxu0  ;;  %v19552_v57 = vld [vmem:[#allocation7 + $0x1fdc] sm:$0xf0] }
 0x461   : > { %21876 = vst [vmem:[#allocation98_spill] sm:$0xff] %v21283_v59  ;;  %v16008_v32 = vld [vmem:[#allocation7 + $0x1658] sm:$0xf]  ;;  %v15885_v20 = vor.u32 %v19215_v12, %v15882_v44  ;;  %v21285_v59 = vpop.f32.mrf.mxu3 }
 0x462   : > { %8525 = vmatpush.bf16.msra.mxu1 %v16645_v61  ;;  %v21281_v61 = vpop.f32.mrf.mxu2  ;;  %v19251_v53 = vld [vmem:[#allocation7 + $0x1674] sm:$0xf0]  ;;  %21877 = vst [vmem:[#allocation99_spill] sm:$0xff] %v21285_v59  ;;  %v19383_v59 = vld [vmem:[#allocation7 + $0x1a9c] sm:$0xf] }
 0x463   : > { %8550 = vmatpush.bf16.msra.mxu3 %v16233_v49  ;;  %v16040_v49 = vld [vmem:[#allocation7 + $0x1698] sm:$0xf]  ;;  %21875 = vst [vmem:[#allocation97_spill] sm:$0xff] %v21281_v61  ;;  %v16554_v61 = vld [vmem:[#allocation7 + $0x1ab8] sm:$0xf0] }
 0x464   : > { %8592 = vmatpush.bf16.msra.mxu2 %v15981_v60  ;;  %8494 = vmatpush.bf16.msrb.mxu0 %v16229_v14  ;;  %v15917_v60 = vor.u32 %v19223_v48, %v15914_v41  ;;  %v19278_v14 = vld [vmem:[#allocation7 + $0x1754] sm:$0xf]  ;;  %v16041_v50 = vor.u32 %v19259_v42, %v16040_v49  ;;  %v15850_v48 = vld [vmem:[#allocation7 + $0x1538] sm:$0xf0]  ;;  %v16105_v49 = vor.u32 %v19275_v34, %v16104_v24  ;;  %v15976_v12 = vld [vmem:[#allocation7 + $0x1618] sm:$0xf] }
 0x465   : > { %v19391_v41 = vld [vmem:[#allocation7 + $0x1adc] sm:$0xf]  ;;  %v16098_v42 = vld [vmem:[#allocation7 + $0x1730] sm:$0xf0]  ;;  %v19243_v44 = vld [vmem:[#allocation7 + $0x1634] sm:$0xf0] }
 0x466   : > { %8526 = vmatpush.bf16.msra.mxu1 %v16613_v23  ;;  %v15977_v24 = vor.u32 %v19243_v44, %v15976_v12  ;;  %v15912_v12 = vld [vmem:[#allocation7 + $0x1598] sm:$0xf] }
 0x467   : > { %8551 = vmatpush.bf16.msra.mxu3 %v16201_v21  ;;  %v16137_v21 = vor.u32 %v19283_v36, %v16136_v27  ;;  %v15853_v27 = vor.u32 %v19207_v52, %v15850_v48  ;;  %v16557_v48 = vor.u32 %v19383_v59, %v16554_v61  ;;  %v19227_v44 = vld [vmem:[#allocation7 + $0x15b4] sm:$0xf0] }
 0x468   : > { %8593 = vmatpush.bf16.msra.mxu2 %v15949_v10  ;;  %8495 = vmatpush.bf16.msrb.mxu0 %v16197_v29  ;;  %v16130_v10 = vld [vmem:[#allocation7 + $0x1770] sm:$0xf0]  ;;  %v16586_v29 = vld [vmem:[#allocation7 + $0x1af8] sm:$0xf0] }
 0x469   : > { %v16133_v23 = vor.u32 %v19278_v14, %v16130_v10  ;;  %16723 = vmatmul.msk.bf16.vlgmr.msra.gmra.mxu1 %vm2681_vm4, %v21172_v1  ;;  %v16589_v36 = vor.u32 %v19391_v41, %v16586_v29  ;;  %v17209_v14 = vor.u32 %v19552_v57, %v17208_v19  ;;  %v19395_v10 = vld [vmem:[#allocation7 + $0x1af4] sm:$0xf0] }
 0x46a   : > { %8533 = vmatpush.bf16.msrb.mxu1 %v16073_v3  ;;  %v21287_v3 = vpop.f32.mrf.mxu1  ;;  %v15944_v41 = vld [vmem:[#allocation7 + $0x15d8] sm:$0xf] }
 0x46b   : > { %8552 = vmatpush.bf16.msra.mxu3 %v16169_v31  ;;  %21878 = vst [vmem:[#allocation100_spill] sm:$0xff] %v21287_v3  ;;  %v16009_v31 = vor.u32 %v19251_v53, %v16008_v32  ;;  %v19544_v32 = vld [vmem:[#allocation7 + $0x1f9c] sm:$0xf0]  ;;  %v8220_v53 = vpop.f32.mrf.mxu2  ;;  %v19235_v29 = vld [vmem:[#allocation7 + $0x15f4] sm:$0xf0] }
 0x46c   : > { %8594 = vmatpush.bf16.msra.mxu2 %v15917_v60  ;;  %8496 = vmatpush.bf16.msrb.mxu0 %v16165_v22  ;;  %v19270_v60 = vld [vmem:[#allocation7 + $0x1714] sm:$0xf]  ;;  %v16584_v22 = vld [vmem:[#allocation7 + $0x1ad8] sm:$0xf] }
 0x46d   : > { %v16585_v52 = vor.u32 %v19395_v10, %v16584_v22  ;;  %v16552_v19 = vld [vmem:[#allocation7 + $0x1a98] sm:$0xf] }
 0x46e   : > { %8534 = vmatpush.bf16.msrb.mxu1 %v16041_v50  ;;  %v16101_v50 = vor.u32 %v19270_v60, %v16098_v42  ;;  %v19387_v3 = vld [vmem:[#allocation7 + $0x1ab4] sm:$0xf0]  ;;  %v16522_v60 = vld [vmem:[#allocation7 + $0x1a78] sm:$0xf0] }
 0x46f   : > { %8553 = vmatpush.bf16.msra.mxu3 %v16137_v21  ;;  %v17176_v21 = vld [vmem:[#allocation7 + $0x1f80] sm:$0xf]  ;;  %v16553_v59 = vor.u32 %v19387_v3, %v16552_v19  ;;  %v16520_v22 = vld [vmem:[#allocation7 + $0x1a58] sm:$0xf] }
 0x470   : > { %8595 = vmatpush.bf16.msra.mxu2 %v15885_v20  ;;  %8497 = vmatpush.bf16.msrb.mxu0 %v16133_v23  ;;  %v8206_v20 = vpop.f32.mrf.mxu0  ;;  %v17177_v57 = vor.u32 %v19544_v32, %v17176_v21  ;;  %v19375_v23 = vld [vmem:[#allocation7 + $0x1a5c] sm:$0xf]  ;;  %v16488_v19 = vld [vmem:[#allocation7 + $0x1a18] sm:$0xf] }
 0x471   : > { %v8221_v34 = vadd.f32 %v8220_v53, %v8206_v20  ;;  %v19367_v21 = vld [vmem:[#allocation7 + $0x1a1c] sm:$0xf]  ;;  %v17112_v20 = vld [vmem:[#allocation7 + $0x1f00] sm:$0xf] }
 0x472   : > { %8535 = vmatpush.bf16.msrb.mxu1 %v16009_v31  ;;  %v17144_v31 = vld [vmem:[#allocation7 + $0x1f40] sm:$0xf]  ;;  %v8234_v42 = vpop.f32.mrf.mxu1  ;;  %v16490_v32 = vld [vmem:[#allocation7 + $0x1a38] sm:$0xf0] }
 0x473   : > { %8554 = vmatpush.bf16.msra.mxu3 %v16105_v49  ;;  %v19536_v49 = vld [vmem:[#allocation7 + $0x1f5c] sm:$0xf0]  ;;  %v8235_v61 = vadd.f32 %v8234_v42, %v8221_v34 }
 0x474   : > { %8596 = vmatpush.bf16.msra.mxu2 %v15853_v27  ;;  %8498 = vmatpush.bf16.msrb.mxu0 %v16101_v50  ;;  %v15945_v27 = vor.u32 %v19235_v29, %v15944_v41  ;;  %v17145_v10 = vor.u32 %v19536_v49, %v17144_v31  ;;  %v19379_v50 = vld [vmem:[#allocation7 + $0x1a74] sm:$0xf0]  ;;  %v16458_v31 = vld [vmem:[#allocation7 + $0x19f8] sm:$0xf0]  ;;  %v17080_v49 = vld [vmem:[#allocation7 + $0x1ec0] sm:$0xf] }
 0x475   : > { %v16521_v3 = vor.u32 %v19379_v50, %v16520_v22  ;;  %v15880_v41 = vld [vmem:[#allocation7 + $0x1558] sm:$0xf]  ;;  %v19520_v42 = vld [vmem:[#allocation7 + $0x1edc] sm:$0xf0]  ;;  %v19351_v50 = vld [vmem:[#allocation7 + $0x199c] sm:$0xf] }
 0x476   : > { %8555 = vmatmul.bf16.vlgmr.msra.gmra.mxu3 %v21156_v6  ;;  %8536 = vmatpush.bf16.msrb.mxu1 %v15977_v24  ;;  %v19528_v24 = vld [vmem:[#allocation7 + $0x1f1c] sm:$0xf0]  ;;  %v19219_v29 = vld [vmem:[#allocation7 + $0x1574] sm:$0xf0]  ;;  %v17081_v22 = vor.u32 %v19520_v42, %v17080_v49 }
 0x477   : > { %8617 = vmatpush.bf16.msrb.mxu3 %v16589_v36  ;;  %8597 = vmatmul.bf16.vlgmr.msra.gmra.mxu2 %v21204_v13  ;;  %v16525_v36 = vor.u32 %v19375_v23, %v16522_v60  ;;  %v19371_v23 = vld [vmem:[#allocation7 + $0x1a34] sm:$0xf0]  ;;  %v19359_v60 = vld [vmem:[#allocation7 + $0x19dc] sm:$0xf]  ;;  %v17016_v49 = vld [vmem:[#allocation7 + $0x1e40] sm:$0xf] }
 0x478   : > { %10038 = vmatpush.bf16.msrb.mxu2 %v17209_v14  ;;  %8561 = vmatpush.bf16.msra.mxu0 %v16585_v52  ;;  %v8248_v14 = vpop.f32.mrf.mxu3  ;;  %v15913_v52 = vor.u32 %v19227_v44, %v15912_v12  ;;  %v16456_v12 = vld [vmem:[#allocation7 + $0x19d8] sm:$0xf]  ;;  %v19504_v42 = vld [vmem:[#allocation7 + $0x1e5c] sm:$0xf0] }
 0x479   : > { %8499 = vmatmul.bf16.vlgmr.msrb.gmra.mxu0 %v21156_v6  ;;  %v8249_v53 = vadd.f32 %v8248_v14, %v8235_v61  ;;  %v15848_v61 = vld [vmem:[#allocation7 + $0x1518] sm:$0xf]  ;;  %v19327_v14 = vld [vmem:[#allocation7 + $0x18dc] sm:$0xf] }
 0x47a   : > { %8537 = vmatpush.bf16.msrb.mxu1 %v15945_v27  ;;  %v15881_v27 = vor.u32 %v19219_v29, %v15880_v41  ;;  %v19363_v44 = vld [vmem:[#allocation7 + $0x19f4] sm:$0xf0]  ;;  %v21297_v41 = vpop.f32.mrf.mxu1 }
 0x47b   : > { %8618 = vmatpush.bf16.msrb.mxu3 %v16557_v48  ;;  %v21295_v34 = vadd.f32 %v8249_v53, %v21135_v4  ;;  %v16493_v48 = vor.u32 %v19367_v21, %v16490_v32  ;;  %v16489_v4 = vor.u32 %v19371_v23, %v16488_v19  ;;  %v16426_v21 = vld [vmem:[#allocation7 + $0x19b8] sm:$0xf0]  ;;  %v17048_v32 = vld [vmem:[#allocation7 + $0x1e80] sm:$0xf]  ;;  %21879 = vst [vmem:[#allocation101_spill] sm:$0xff] %v21297_v41 }
 0x47c   : > { %10039 = vmatpush.bf16.msrb.mxu2 %v17177_v57  ;;  %8562 = vmatpush.bf16.msra.mxu0 %v16553_v59  ;;  %v17113_v57 = vor.u32 %v19528_v24, %v17112_v20  ;;  %v16461_v59 = vor.u32 %v19359_v60, %v16458_v31  ;;  %v19512_v53 = vld [vmem:[#allocation7 + $0x1e9c] sm:$0xf0]  ;;  %v16457_v24 = vor.u32 %v19363_v44, %v16456_v12  ;;  %v16298_v23 = vld [vmem:[#allocation7 + $0x18b8] sm:$0xf0] }
 0x47d   : > { %v16429_v29 = vor.u32 %v19351_v50, %v16426_v21  ;;  %v17049_v19 = vor.u32 %v19512_v53, %v17048_v32  ;;  %v19343_v60 = vld [vmem:[#allocation7 + $0x195c] sm:$0xf]  ;;  %v21303_v21 = vpop.f32.mrf.mxu2  ;;  %v16984_v32 = vld [vmem:[#allocation7 + $0x1e00] sm:$0xf] }
 0x47e   : > { %8538 = vmatpush.bf16.msrb.mxu1 %v15913_v52  ;;  %v16394_v31 = vld [vmem:[#allocation7 + $0x1978] sm:$0xf0]  ;;  %21881 = vst [vmem:[#allocation103_spill] sm:$0xff] %v21303_v21  ;;  %v19496_v53 = vld [vmem:[#allocation7 + $0x1e1c] sm:$0xf0] }
 0x47f   : > { %8619 = vmatpush.bf16.msrb.mxu3 %v16525_v36  ;;  %v19211_v36 = vld [vmem:[#allocation7 + $0x1534] sm:$0xf0]  ;;  %v19311_v12 = vld [vmem:[#allocation7 + $0x185c] sm:$0xf]  ;;  %v16397_v44 = vor.u32 %v19343_v60, %v16394_v31  ;;  %v17560_v41 = vld [vmem:[#allocation7 + $0x2280] sm:$0xf] }
 0x480   : > { %10040 = vmatpush.bf16.msrb.mxu2 %v17145_v10  ;;  %8563 = vmatpush.bf16.msra.mxu0 %v16521_v3  ;;  %v16330_v10 = vld [vmem:[#allocation7 + $0x18f8] sm:$0xf0]  ;;  %v15849_v20 = vor.u32 %v19211_v36, %v15848_v61  ;;  %v16424_v3 = vld [vmem:[#allocation7 + $0x1998] sm:$0xf]  ;;  %v21299_v38 = vpop.f32.mrf.mxu3  ;;  %v19640_v21 = vld [vmem:[#allocation7 + $0x229c] sm:$0xf0] }
 0x481   : > { %v16333_v52 = vor.u32 %v19327_v14, %v16330_v10  ;;  %21880 = vst [vmem:[#allocation102_spill] sm:$0xff] %v21299_v38  ;;  %v19347_v36 = vld [vmem:[#allocation7 + $0x1974] sm:$0xf0]  ;;  %v16266_v14 = vld [vmem:[#allocation7 + $0x1878] sm:$0xf0] }
 0x482   : > { %8539 = vmatpush.bf16.msrb.mxu1 %v15881_v27  ;;  %v21301_v27 = vpop.f32.mrf.mxu0  ;;  %v19335_v10 = vld [vmem:[#allocation7 + $0x191c] sm:$0xf]  ;;  %v19339_v60 = vld [vmem:[#allocation7 + $0x1934] sm:$0xf0]  ;;  %v8304_v55 = vpop.f32.mrf.mxu1 }
 0x483   : > { %8620 = vmatpush.bf16.msrb.mxu3 %v16493_v48  ;;  %v19355_v48 = vld [vmem:[#allocation7 + $0x19b4] sm:$0xf0]  ;;  %v16362_v50 = vld [vmem:[#allocation7 + $0x1938] sm:$0xf0] }
 0x484   : > { %10041 = vmatpush.bf16.msrb.mxu2 %v17113_v57  ;;  %8564 = vmatpush.bf16.msra.mxu0 %v16489_v4  ;;  %v19319_v57 = vld [vmem:[#allocation7 + $0x189c] sm:$0xf]  ;;  %v16425_v61 = vor.u32 %v19355_v48, %v16424_v3  ;;  %v17466_v3 = vld [vmem:[#allocation7 + $0x21e0] sm:$0xf0] }
 0x485   : > { %v16301_v4 = vor.u32 %v19319_v57, %v16298_v23  ;;  %v16985_v57 = vor.u32 %v19496_v53, %v16984_v32  ;;  %v16360_v23 = vld [vmem:[#allocation7 + $0x1918] sm:$0xf]  ;;  %v16714_v38 = vld [vmem:[#allocation7 + $0x1bf8] sm:$0xf0] }
 0x486   : > { %8540 = vmatpush.bf16.msrb.mxu1 %v15849_v20  ;;  %v17592_v20 = vld [vmem:[#allocation7 + $0x22c0] sm:$0xf]  ;;  %v19295_v32 = vld [vmem:[#allocation7 + $0x17dc] sm:$0xf] }
 0x487   : > { %8621 = vmatpush.bf16.msrb.mxu3 %v16461_v59  ;;  %v16392_v59 = vld [vmem:[#allocation7 + $0x1958] sm:$0xf]  ;;  %v16202_v53 = vld [vmem:[#allocation7 + $0x17f8] sm:$0xf0] }
 0x488   : > { %10042 = vmatpush.bf16.msrb.mxu2 %v17081_v22  ;;  %8565 = vmatpush.bf16.msra.mxu0 %v16457_v24  ;;  %v17017_v22 = vor.u32 %v19504_v42, %v17016_v49  ;;  %v19648_v24 = vld [vmem:[#allocation7 + $0x22dc] sm:$0xf0]  ;;  %v16393_v48 = vor.u32 %v19347_v36, %v16392_v59  ;;  %v19303_v42 = vld [vmem:[#allocation7 + $0x181c] sm:$0xf]  ;;  %v8262_v63 = vpop.f32.mrf.mxu3  ;;  %v19604_v59 = vld [vmem:[#allocation7 + $0x2184] sm:$0xf] }
 0x489   : > { %8541 = vmatmul.bf16.vlgmr.msrb.gmra.mxu1 %v21204_v13  ;;  %v17593_v31 = vor.u32 %v19648_v24, %v17592_v20  ;;  %v16234_v13 = vld [vmem:[#allocation7 + $0x1838] sm:$0xf0]  ;;  %v17434_v36 = vld [vmem:[#allocation7 + $0x21a0] sm:$0xf0] }
 0x48a   : > { %8603 = vmatpush.bf16.msra.mxu1 %v16333_v52  ;;  %v19612_v52 = vld [vmem:[#allocation7 + $0x21c4] sm:$0xf]  ;;  %v19415_v20 = vld [vmem:[#allocation7 + $0x1b9c] sm:$0xf] }
 0x48b   : > { %8622 = vmatpush.bf16.msrb.mxu3 %v16429_v29  ;;  %v16269_v29 = vor.u32 %v19311_v12, %v16266_v14  ;;  %v17469_v49 = vor.u32 %v19612_v52, %v17466_v3  ;;  %v8290_v14 = vpop.f32.mrf.mxu2  ;;  %v17437_v52 = vor.u32 %v19604_v59, %v17434_v36  ;;  %v16682_v3 = vld [vmem:[#allocation7 + $0x1bb8] sm:$0xf0]  ;;  %v16954_v59 = vld [vmem:[#allocation7 + $0x1de0] sm:$0xf0] }
 0x48c   : > { %10043 = vmatpush.bf16.msrb.mxu2 %v17049_v19  ;;  %8566 = vmatpush.bf16.msra.mxu0 %v16425_v61  ;;  %v16365_v19 = vor.u32 %v19335_v10, %v16362_v50  ;;  %v8276_v61 = vpop.f32.mrf.mxu0  ;;  %v16717_v10 = vor.u32 %v19423_v47, %v16714_v38  ;;  %v17561_v50 = vor.u32 %v19640_v21, %v17560_v41  ;;  %v19287_v38 = vld [vmem:[#allocation7 + $0x179c] sm:$0xf] }
 0x48d   : > { %v8277_v12 = vadd.f32 %v8276_v61, %v8262_v63  ;;  %v17402_v63 = vld [vmem:[#allocation7 + $0x2160] sm:$0xf0]  ;;  %v16205_v47 = vor.u32 %v19295_v32, %v16202_v53  ;;  %v16685_v41 = vor.u32 %v19415_v20, %v16682_v3  ;;  %v19399_v53 = vld [vmem:[#allocation7 + $0x1b1c] sm:$0xf] }
 0x48e   : > { %8604 = vmatpush.bf16.msra.mxu1 %v16301_v4  ;;  %v16361_v4 = vor.u32 %v19339_v60, %v16360_v23  ;;  %v19407_v23 = vld [vmem:[#allocation7 + $0x1b5c] sm:$0xf]  ;;  %v17370_v61 = vld [vmem:[#allocation7 + $0x2120] sm:$0xf0] }
 0x48f   : > { %8623 = vmatpush.bf16.msrb.mxu3 %v16397_v44  ;;  %v21307_v44 = vrot.slane %v20630_v26, 1  ;;  %v8291_v24 = vadd.f32 %v8290_v14, %v8277_v12  ;;  %v19596_v26 = vld [vmem:[#allocation7 + $0x2144] sm:$0xf]  ;;  %v16650_v60 = vld [vmem:[#allocation7 + $0x1b78] sm:$0xf0]  ;;  %v21318_v12 = vpop.f32.mrf.mxu1 }
 0x490   : > { %10044 = vmatpush.bf16.msrb.mxu2 %v17017_v22  ;;  %8567 = vmatpush.bf16.msra.mxu0 %v16393_v48  ;;  %v16237_v22 = vor.u32 %v19303_v42, %v16234_v13  ;;  %v17528_v48 = vld [vmem:[#allocation7 + $0x2240] sm:$0xf]  ;;  %v19588_v13 = vld [vmem:[#allocation7 + $0x2104] sm:$0xf]  ;;  %v21316_v36 = vpop.f32.mrf.mxu3  ;;  %21883 = vst [vmem:[#allocation105_spill] sm:$0xff] %v21318_v12 }
 0x491   : > { %v19624_v42 = vld [vmem:[#allocation7 + $0x221c] sm:$0xf0]  ;;  %21882 = vst [vmem:[#allocation104_spill] sm:$0xff] %v21316_v36  ;;  %v16618_v20 = vld [vmem:[#allocation7 + $0x1b38] sm:$0xf0] }
 0x492   : > { %8605 = vmatpush.bf16.msra.mxu1 %v16269_v29  ;;  %v19632_v29 = vld [vmem:[#allocation7 + $0x225c] sm:$0xf0]  ;;  %v19580_v3 = vld [vmem:[#allocation7 + $0x20c4] sm:$0xf]  ;;  %v19609_v12 = vld [vmem:[#allocation7 + $0x21a4] sm:$0xf0] }
 0x493   : > { %8624 = vmatpush.bf16.msrb.mxu3 %v16365_v19  ;;  %v8305_v19 = vadd.f32 %v8304_v55, %v8291_v24  ;;  %v17529_v21 = vor.u32 %v19632_v29, %v17528_v48  ;;  %v17405_v55 = vor.u32 %v19596_v26, %v17402_v63  ;;  %v16952_v24 = vld [vmem:[#allocation7 + $0x1dc0] sm:$0xf]  ;;  %v17338_v48 = vld [vmem:[#allocation7 + $0x20e0] sm:$0xf0]  ;;  %v19645_v36 = vld [vmem:[#allocation7 + $0x22cc] sm:$0xf] }
 0x494   : > { %10045 = vmatpush.bf16.msrb.mxu2 %v16985_v57  ;;  %8568 = vmatpush.bf16.msra.mxu0 %v16361_v4  ;;  %v16170_v57 = vld [vmem:[#allocation7 + $0x17b8] sm:$0xf0]  ;;  %v19484_v4 = vld [vmem:[#allocation7 + $0x1dc4] sm:$0xf] }
 0x495   : > { %v16957_v32 = vor.u32 %v19484_v4, %v16954_v59  ;;  %v19476_v26 = vld [vmem:[#allocation7 + $0x1d84] sm:$0xf] }
 0x496   : > { %8625 = vmatmul.bf16.vlgmr.msrb.gmra.mxu3 %v21187_v58  ;;  %8606 = vmatpush.bf16.msra.mxu1 %v16237_v22  ;;  %v16173_v22 = vor.u32 %v19287_v38, %v16170_v57  ;;  %v16922_v63 = vld [vmem:[#allocation7 + $0x1da0] sm:$0xf0]  ;;  %v19271_v38 = vld [vmem:[#allocation7 + $0x171c] sm:$0xf]  ;;  %v17341_v57 = vor.u32 %v19580_v3, %v17338_v48  ;;  %v19472_v48 = vld [vmem:[#allocation7 + $0x1d5c] sm:$0xf0] }
 0x497   : > { %10070 = vmatpush.bf16.msra.mxu3 %v17593_v31  ;;  %17623 = vmatmul.msk.bf16.vlgmr.msrb.gmra.mxu2 %vm8665_vm10, %v21307_v44  ;;  %v21313_v31 = vadd.f32 %v8305_v19, %v21160_v2  ;;  %v16653_v2 = vor.u32 %v19407_v23, %v16650_v60  ;;  %v16621_v19 = vor.u32 %v19399_v53, %v16618_v20  ;;  %v16920_v23 = vld [vmem:[#allocation7 + $0x1d80] sm:$0xf]  ;;  %v8318_v59 = vpop.f32.mrf.mxu1 }
 0x498   : > { %10108 = vmatpush.bf16.msra.mxu2 %v17469_v49  ;;  %8635 = vmatpush.bf16.msrb.mxu0 %v16717_v10  ;;  %v17496_v49 = vld [vmem:[#allocation7 + $0x2200] sm:$0xf]  ;;  %v19279_v10 = vld [vmem:[#allocation7 + $0x175c] sm:$0xf]  ;;  %v8332_v4 = vpop.f32.mrf.mxu3 }
 0x499   : > { %8569 = vmatmul.bf16.vlgmr.msra.gmra.mxu0 %v21187_v58  ;;  %v17497_v14 = vor.u32 %v19624_v42, %v17496_v49  ;;  %v17373_v58 = vor.u32 %v19588_v13, %v17370_v61  ;;  %v17464_v60 = vld [vmem:[#allocation7 + $0x21c0] sm:$0xf]  ;;  %v16925_v49 = vor.u32 %v19476_v26, %v16922_v63  ;;  %v19572_v13 = vld [vmem:[#allocation7 + $0x2084] sm:$0xf] }
 0x49a   : > { %8607 = vmatpush.bf16.msra.mxu1 %v16205_v47  ;;  %v8664_v47 = vrot.slane %v20710_v11, 1  ;;  %v19480_v42 = vld [vmem:[#allocation7 + $0x1d9c] sm:$0xf0]  ;;  %v17306_v61 = vld [vmem:[#allocation7 + $0x20a0] sm:$0xf0]  ;;  %v21321_v11 = vadd.f32 %v8332_v4, %v8318_v59 }
 0x49b   : > { %10071 = vmatpush.bf16.msra.mxu3 %v17561_v50  ;;  %v16138_v50 = vld [vmem:[#allocation7 + $0x1778] sm:$0xf0]  ;;  %v16888_v53 = vld [vmem:[#allocation7 + $0x1d40] sm:$0xf]  ;;  %v17274_v26 = vld [vmem:[#allocation7 + $0x2060] sm:$0xf0] }
 0x49c   : > { %10109 = vmatpush.bf16.msra.mxu2 %v17437_v52  ;;  %8636 = vmatpush.bf16.msrb.mxu0 %v16685_v41  ;;  %v19488_v52 = vld [vmem:[#allocation7 + $0x1ddc] sm:$0xf0]  ;;  %v16141_v29 = vor.u32 %v19279_v10, %v16138_v50  ;;  %v16106_v41 = vld [vmem:[#allocation7 + $0x1738] sm:$0xf0]  ;;  %v21324_v10 = vsel %vm8665_vm10, %v8664_v47, 0  ;;  %v21330_v47 = vpop.f32.mrf.mxu0 }
 0x49d   : > { %v17432_v20 = vld [vmem:[#allocation7 + $0x2180] sm:$0xf]  ;;  %v19460_v63 = vld [vmem:[#allocation7 + $0x1d04] sm:$0xf]  ;;  %21885 = vst [vmem:[#allocation107_spill] sm:$0xff] %v21330_v47 }
 0x49e   : > { %8608 = vmatpush.bf16.msra.mxu1 %v16173_v22  ;;  %v16109_v22 = vor.u32 %v19271_v38, %v16106_v41  ;;  %v16856_v41 = vld [vmem:[#allocation7 + $0x1d00] sm:$0xf]  ;;  %v16826_v4 = vld [vmem:[#allocation7 + $0x1ce0] sm:$0xf0]  ;;  %v17600_v59 = vld [vmem:[#allocation7 + $0x22c8] sm:$0xf] }
 0x49f   : > { %10072 = vmatpush.bf16.msra.mxu3 %v17529_v21  ;;  %v16953_v21 = vor.u32 %v19488_v52, %v16952_v24  ;;  %v19608_v24 = vld [vmem:[#allocation7 + $0x219c] sm:$0xf0]  ;;  %v21326_v52 = vpop.f32.mrf.mxu2  ;;  %v17122_v47 = vld [vmem:[#allocation7 + $0x1f28] sm:$0xf0] }
 0x4a0   : > { %10110 = vmatpush.bf16.msra.mxu2 %v17405_v55  ;;  %8637 = vmatpush.bf16.msrb.mxu0 %v16653_v2  ;;  %v19616_v55 = vld [vmem:[#allocation7 + $0x21dc] sm:$0xf0]  ;;  %v19468_v2 = vld [vmem:[#allocation7 + $0x1d44] sm:$0xf]  ;;  %21884 = vst [vmem:[#allocation106_spill] sm:$0xff] %v21326_v52  ;;  %v17433_v38 = vor.u32 %v19608_v24, %v17432_v20 }
 0x4a1   : > { %v17465_v50 = vor.u32 %v19616_v55, %v17464_v60  ;;  %v17400_v60 = vld [vmem:[#allocation7 + $0x2140] sm:$0xf] }
 0x4a2   : > { %8609 = vmatpush.bf16.msra.mxu1 %v16141_v29  ;;  %v19564_v29 = vld [vmem:[#allocation7 + $0x2044] sm:$0xf]  ;;  %v19600_v55 = vld [vmem:[#allocation7 + $0x215c] sm:$0xf0] }
 0x4a3   : > { %10073 = vmatpush.bf16.msra.mxu3 %v17497_v14  ;;  %v16890_v14 = vld [vmem:[#allocation7 + $0x1d60] sm:$0xf0]  ;;  %v16824_v20 = vld [vmem:[#allocation7 + $0x1cc0] sm:$0xf] }
 0x4a4   : > { %10111 = vmatpush.bf16.msra.mxu2 %v17373_v58  ;;  %8638 = vmatpush.bf16.msrb.mxu0 %v16621_v19  ;;  %v16921_v58 = vor.u32 %v19480_v42, %v16920_v23  ;;  %v16893_v3 = vor.u32 %v19468_v2, %v16890_v14  ;;  %v16858_v19 = vld [vmem:[#allocation7 + $0x1d20] sm:$0xf0]  ;;  %v19464_v23 = vld [vmem:[#allocation7 + $0x1d1c] sm:$0xf0]  ;;  %v17401_v2 = vor.u32 %v19600_v55, %v17400_v60 }
 0x4a5   : > { %v19556_v42 = vld [vmem:[#allocation7 + $0x2004] sm:$0xf]  ;;  %v16857_v14 = vor.u32 %v19464_v23, %v16856_v41  ;;  %v19456_v24 = vld [vmem:[#allocation7 + $0x1cdc] sm:$0xf0]  ;;  %v21337_v41 = vrot.slane %v20708_v46, 1 }
 0x4a6   : > { %17625 = vmatmul.msk.bf16.vlgmr.msra.gmra.mxu3 %vm2681_vm4, %v21324_v10  ;;  %8610 = vmatpush.bf16.msra.mxu1 %v16109_v22  ;;  %v19649_v22 = vld [vmem:[#allocation7 + $0x22e4] sm:$0xf0]  ;;  %v19584_v23 = vld [vmem:[#allocation7 + $0x20dc] sm:$0xf0] }
 0x4a7   : > { %10080 = vmatpush.bf16.msrb.mxu3 %v16957_v32  ;;  %v17309_v32 = vor.u32 %v19572_v13, %v17306_v61  ;;  %v17242_v13 = vld [vmem:[#allocation7 + $0x2020] sm:$0xf0] }
 0x4a8   : > { %10024 = vmatpush.bf16.msra.mxu0 %v16953_v21  ;;  %10112 = vmatpush.bf16.msra.mxu2 %v17341_v57  ;;  %v16889_v21 = vor.u32 %v19472_v48, %v16888_v53  ;;  %v17277_v57 = vor.u32 %v19564_v29, %v17274_v26  ;;  %v19452_v61 = vld [vmem:[#allocation7 + $0x1cc4] sm:$0xf]  ;;  %v17601_v53 = vor.u32 %v19649_v22, %v17600_v59  ;;  %v17568_v29 = vld [vmem:[#allocation7 + $0x2288] sm:$0xf]  ;;  %v8360_v26 = vpop.f32.mrf.mxu2 }
 0x4a9   : > { %16725 = vmatmul.msk.bf16.vlgmr.msrb.gmra.mxu0 %vm2681_vm4, %v21172_v1  ;;  %8611 = vmatmul.bf16.vlgmr.msra.gmra.mxu1 %v21156_v6  ;;  %v16829_v1 = vor.u32 %v19452_v61, %v16826_v4  ;;  %v16794_v48 = vld [vmem:[#allocation7 + $0x1ca0] sm:$0xf0]  ;;  %v19641_v6 = vld [vmem:[#allocation7 + $0x22a4] sm:$0xf0] }
 0x4aa   : > { %10052 = vmatpush.bf16.msrb.mxu1 %v17465_v50  ;;  %v17245_v50 = vor.u32 %v19556_v42, %v17242_v13  ;;  %v17569_v55 = vor.u32 %v19641_v6, %v17568_v29  ;;  %v19448_v42 = vld [vmem:[#allocation7 + $0x1c9c] sm:$0xf0]  ;;  %v19436_v13 = vld [vmem:[#allocation7 + $0x1c44] sm:$0xf]  ;;  %v17536_v59 = vld [vmem:[#allocation7 + $0x2248] sm:$0xf] }
 0x4ab   : > { %10081 = vmatpush.bf16.msrb.mxu3 %v16925_v49  ;;  %v16861_v49 = vor.u32 %v19460_v63, %v16858_v19  ;;  %v8346_v63 = vpop.f32.mrf.mxu0  ;;  %v16762_v4 = vld [vmem:[#allocation7 + $0x1c60] sm:$0xf0]  ;;  %v19633_v22 = vld [vmem:[#allocation7 + $0x2264] sm:$0xf0] }
 0x4ac   : > { %10025 = vmatpush.bf16.msra.mxu0 %v16921_v58  ;;  %10113 = vmatpush.bf16.msra.mxu2 %v17309_v32  ;;  %v17368_v58 = vld [vmem:[#allocation7 + $0x2100] sm:$0xf]  ;;  %v17216_v29 = vld [vmem:[#allocation7 + $0x1fc8] sm:$0xf] }
 0x4ad   : > { %v19592_v32 = vld [vmem:[#allocation7 + $0x211c] sm:$0xf0] }
 0x4ae   : > { %10053 = vmatpush.bf16.msrb.mxu1 %v17433_v38  ;;  %v17369_v19 = vor.u32 %v19592_v32, %v17368_v58  ;;  %v8347_v38 = vadd.f32 %v8346_v63, %v21321_v11  ;;  %v19576_v58 = vld [vmem:[#allocation7 + $0x209c] sm:$0xf0]  ;;  %v16765_v32 = vor.u32 %v19436_v13, %v16762_v4  ;;  %v16962_v63 = vld [vmem:[#allocation7 + $0x1de8] sm:$0xf0]  ;;  %v19548_v4 = vld [vmem:[#allocation7 + $0x1fc4] sm:$0xf] }
 0x4af   : > { %10082 = vmatpush.bf16.msrb.mxu3 %v16893_v3  ;;  %v19444_v3 = vld [vmem:[#allocation7 + $0x1c84] sm:$0xf] }
 0x4b0   : > { %10026 = vmatpush.bf16.msra.mxu0 %v16889_v21  ;;  %10114 = vmatpush.bf16.msra.mxu2 %v17277_v57  ;;  %v16825_v21 = vor.u32 %v19456_v24, %v16824_v20  ;;  %v17336_v57 = vld [vmem:[#allocation7 + $0x20c0] sm:$0xf]  ;;  %v16797_v60 = vor.u32 %v19444_v3, %v16794_v48  ;;  %v8361_v61 = vadd.f32 %v8360_v26, %v8347_v38  ;;  %v19428_v20 = vld [vmem:[#allocation7 + $0x1c04] sm:$0xf]  ;;  %v17504_v3 = vld [vmem:[#allocation7 + $0x2208] sm:$0xf] }
 0x4b1   : > { %v17337_v46 = vor.u32 %v19584_v23, %v17336_v57  ;;  %v16730_v24 = vld [vmem:[#allocation7 + $0x1c20] sm:$0xf0]  ;;  %v19625_v48 = vld [vmem:[#allocation7 + $0x2224] sm:$0xf0]  ;;  %v17272_v38 = vld [vmem:[#allocation7 + $0x2040] sm:$0xf]  ;;  %v21344_v57 = vpop.f32.mrf.mxu2  ;;  %v21346_v23 = vpop.f32.mrf.mxu1 }
 0x4b2   : > { %10054 = vmatpush.bf16.msrb.mxu1 %v17401_v2  ;;  %v21342_v11 = vadd.f32 %v8361_v61, %v21191_v37  ;;  %v19553_v26 = vld [vmem:[#allocation7 + $0x1fe4] sm:$0xf0]  ;;  %v19485_v37 = vld [vmem:[#allocation7 + $0x1dcc] sm:$0xf]  ;;  %21886 = vst [vmem:[#allocation108_spill] sm:$0xff] %v21344_v57 }
 0x4b3   : > { %10083 = vmatpush.bf16.msrb.mxu3 %v16861_v49  ;;  %v16792_v49 = vld [vmem:[#allocation7 + $0x1c80] sm:$0xf]  ;;  %21887 = vst [vmem:[#allocation109_spill] sm:$0xff] %v21346_v23  ;;  %v17217_v13 = vor.u32 %v19553_v26, %v17216_v29  ;;  %v16965_v61 = vor.u32 %v19485_v37, %v16962_v63  ;;  %v17178_v29 = vld [vmem:[#allocation7 + $0x1fa0] sm:$0xf0] }
 0x4b4   : > { %10027 = vmatpush.bf16.msra.mxu0 %v16857_v14  ;;  %10115 = vmatpush.bf16.msra.mxu2 %v17245_v50  ;;  %v16793_v2 = vor.u32 %v19448_v42, %v16792_v49  ;;  %v16760_v14 = vld [vmem:[#allocation7 + $0x1c40] sm:$0xf]  ;;  %v19644_v37 = vld [vmem:[#allocation7 + $0x22c4] sm:$0xf]  ;;  %v16802_v57 = vld [vmem:[#allocation7 + $0x1ca8] sm:$0xf0] }
 0x4b5   : > { %v17304_v50 = vld [vmem:[#allocation7 + $0x2080] sm:$0xf]  ;;  %v17594_v63 = vld [vmem:[#allocation7 + $0x22e0] sm:$0xf0]  ;;  %v17442_v23 = vld [vmem:[#allocation7 + $0x21a8] sm:$0xf0] }
 0x4b6   : > { %10055 = vmatpush.bf16.msrb.mxu1 %v17369_v19  ;;  %v17305_v6 = vor.u32 %v19576_v58, %v17304_v50  ;;  %v16728_v49 = vld [vmem:[#allocation7 + $0x1c00] sm:$0xf]  ;;  %v19545_v50 = vld [vmem:[#allocation7 + $0x1fa4] sm:$0xf0]  ;;  %v19477_v58 = vld [vmem:[#allocation7 + $0x1d8c] sm:$0xf] }
 0x4b7   : > { %10084 = vmatpush.bf16.msrb.mxu3 %v16829_v1  ;;  %17628 = vmatmul.msk.bf16.vlgmr.msra.gmra.mxu2 %vm8665_vm10, %v21337_v41  ;;  %v17537_v1 = vor.u32 %v19633_v22, %v17536_v59  ;;  %v19432_v42 = vld [vmem:[#allocation7 + $0x1c1c] sm:$0xf0]  ;;  %v17210_v59 = vld [vmem:[#allocation7 + $0x1fe0] sm:$0xf0]  ;;  %v17184_v22 = vld [vmem:[#allocation7 + $0x1f88] sm:$0xf] }
 0x4b8   : > { %10182 = vmatpush.bf16.msrb.mxu2 %v17601_v53  ;;  %10028 = vmatpush.bf16.msra.mxu0 %v16825_v21  ;;  %v19440_v53 = vld [vmem:[#allocation7 + $0x1c5c] sm:$0xf0]  ;;  %v17185_v26 = vor.u32 %v19545_v50, %v17184_v22  ;;  %v19636_v50 = vld [vmem:[#allocation7 + $0x2284] sm:$0xf] }
 0x4b9   : > { %v16761_v19 = vor.u32 %v19440_v53, %v16760_v14  ;;  %v19568_v21 = vld [vmem:[#allocation7 + $0x205c] sm:$0xf0]  ;;  %v16930_v53 = vld [vmem:[#allocation7 + $0x1da8] sm:$0xf0] }
 0x4ba   : > { %10056 = vmatpush.bf16.msrb.mxu1 %v17337_v46  ;;  %v21348_v46 = vpop.f32.mrf.mxu3  ;;  %v17273_v14 = vor.u32 %v19568_v21, %v17272_v38  ;;  %v17152_v38 = vld [vmem:[#allocation7 + $0x1f48] sm:$0xf]  ;;  %v19469_v21 = vld [vmem:[#allocation7 + $0x1d4c] sm:$0xf] }
 0x4bb   : > { %10085 = vmatpush.bf16.msrb.mxu3 %v16797_v60  ;;  %v16733_v60 = vor.u32 %v19428_v20, %v16730_v24  ;;  %21888 = vst [vmem:[#allocation110_spill] sm:$0xff] %v21348_v46  ;;  %v17240_v20 = vld [vmem:[#allocation7 + $0x2000] sm:$0xf]  ;;  %v17213_v24 = vor.u32 %v19548_v4, %v17210_v59  ;;  %v17146_v4 = vld [vmem:[#allocation7 + $0x1f60] sm:$0xf0] }
 0x4bc   : > { %10183 = vmatpush.bf16.msrb.mxu2 %v17569_v55  ;;  %10029 = vmatpush.bf16.msra.mxu0 %v16793_v2  ;;  %v17505_v55 = vor.u32 %v19625_v48, %v17504_v3  ;;  %v21350_v2 = vpop.f32.mrf.mxu0  ;;  %v19560_v3 = vld [vmem:[#allocation7 + $0x201c] sm:$0xf0]  ;;  %v19540_v48 = vld [vmem:[#allocation7 + $0x1f84] sm:$0xf]  ;;  %v19605_v46 = vld [vmem:[#allocation7 + $0x218c] sm:$0xf] }
 0x4bd   : > { %21889 = vst [vmem:[#allocation111_spill] sm:$0xff] %v21350_v2 }
 0x4be   : > { %10057 = vmatpush.bf16.msrb.mxu1 %v17305_v6  ;;  %v16933_v6 = vor.u32 %v19477_v58, %v16930_v53  ;;  %v17562_v58 = vld [vmem:[#allocation7 + $0x22a0] sm:$0xf0]  ;;  %v17120_v53 = vld [vmem:[#allocation7 + $0x1f08] sm:$0xf] }
 0x4bf   : > { %10086 = vmatpush.bf16.msrb.mxu3 %v16765_v32  ;;  %v16729_v32 = vor.u32 %v19432_v42, %v16728_v49  ;;  %v16898_v49 = vld [vmem:[#allocation7 + $0x1d68] sm:$0xf0]  ;;  %v17181_v42 = vor.u32 %v19540_v48, %v17178_v29 }
 0x4c0   : > { %10184 = vmatpush.bf16.msrb.mxu2 %v17537_v1  ;;  %10030 = vmatpush.bf16.msra.mxu0 %v16761_v19  ;;  %v21353_v1 = vrot.slane %v20628_v17, 1  ;;  %v19537_v19 = vld [vmem:[#allocation7 + $0x1f64] sm:$0xf0]  ;;  %v17241_v17 = vor.u32 %v19560_v3, %v17240_v20  ;;  %v16866_v3 = vld [vmem:[#allocation7 + $0x1d28] sm:$0xf0] }
 0x4c1   : > { %v17153_v22 = vor.u32 %v19537_v19, %v17152_v38  ;;  %v19529_v20 = vld [vmem:[#allocation7 + $0x1f24] sm:$0xf0] }
 0x4c2   : > { %10058 = vmatpush.bf16.msrb.mxu1 %v17273_v14  ;;  %v16901_v14 = vor.u32 %v19469_v21, %v16898_v49  ;;  %v17121_v19 = vor.u32 %v19529_v20, %v17120_v53  ;;  %v19628_v49 = vld [vmem:[#allocation7 + $0x2244] sm:$0xf]  ;;  %v16960_v20 = vld [vmem:[#allocation7 + $0x1dc8] sm:$0xf] }
 0x4c3   : > { %10087 = vmatpush.bf16.msrb.mxu3 %v16733_v60  ;;  %v8374_v60 = vpop.f32.mrf.mxu2  ;;  %v17498_v53 = vld [vmem:[#allocation7 + $0x2220] sm:$0xf0] }
 0x4c4   : > { %10185 = vmatpush.bf16.msrb.mxu2 %v17505_v55  ;;  %10031 = vmatpush.bf16.msra.mxu0 %v16729_v32  ;;  %v8388_v55 = vpop.f32.mrf.mxu1  ;;  %v8402_v32 = vpop.f32.mrf.mxu3 }
 0x4c5   : > { %v8389_v59 = vadd.f32 %v8388_v55, %v8374_v60  ;;  %v8416_v29 = vpop.f32.mrf.mxu0  ;;  %v17530_v60 = vld [vmem:[#allocation7 + $0x2260] sm:$0xf0]  ;;  %v17088_v55 = vld [vmem:[#allocation7 + $0x1ec8] sm:$0xf] }
 0x4c6   : > { %17626 = vmatmul.msk.bf16.vlgmr.msrb.gmra.mxu3 %vm8665_vm10, %v21353_v1  ;;  %10059 = vmatpush.bf16.msrb.mxu1 %v17241_v17  ;;  %v19453_v17 = vld [vmem:[#allocation7 + $0x1ccc] sm:$0xf] }
 0x4c7   : > { %10150 = vmatpush.bf16.msra.mxu3 %v17217_v13  ;;  %v17597_v13 = vor.u32 %v19644_v37, %v17594_v63  ;;  %17622 = vmatmul.msk.bf16.vlgmr.msra.gmra.mxu0 %vm8665_vm10, %v21353_v1  ;;  %v8403_v48 = vadd.f32 %v8402_v32, %v8389_v59  ;;  %v19524_v37 = vld [vmem:[#allocation7 + $0x1f04] sm:$0xf]  ;;  %v19521_v59 = vld [vmem:[#allocation7 + $0x1ee4] sm:$0xf0]  ;;  %v16834_v32 = vld [vmem:[#allocation7 + $0x1ce8] sm:$0xf0] }
 0x4c8   : > { %10192 = vmatpush.bf16.msra.mxu2 %v16965_v61  ;;  %10094 = vmatpush.bf16.msrb.mxu0 %v17213_v24  ;;  %v19532_v61 = vld [vmem:[#allocation7 + $0x1f44] sm:$0xf]  ;;  %v19461_v24 = vld [vmem:[#allocation7 + $0x1d0c] sm:$0xf] }
 0x4c9   : > { %17633 = vmatmul.msk.bf16.vlgmr.msrb.gmra.mxu2 %vm2681_vm4, %v21324_v10  ;;  %v17114_v63 = vld [vmem:[#allocation7 + $0x1f20] sm:$0xf0]  ;;  %v8417_v38 = vadd.f32 %v8416_v29, %v8403_v48  ;;  %v16869_v21 = vor.u32 %v19461_v24, %v16866_v3  ;;  %17624 = vmatmul.msk.bf16.vlgmr.msrb.gmra.mxu1 %vm8665_vm10, %v21337_v41  ;;  %v19489_v24 = vld [vmem:[#allocation7 + $0x1de4] sm:$0xf0]  ;;  %v19445_v29 = vld [vmem:[#allocation7 + $0x1c8c] sm:$0xf] }
 0x4ca   : > { %10126 = vmatpush.bf16.msra.mxu1 %v17597_v13  ;;  %v17117_v13 = vor.u32 %v19524_v37, %v17114_v63  ;;  %v17056_v3 = vld [vmem:[#allocation7 + $0x1e88] sm:$0xf]  ;;  %v19508_v63 = vld [vmem:[#allocation7 + $0x1e84] sm:$0xf] }
 0x4cb   : > { %10151 = vmatpush.bf16.msra.mxu3 %v17185_v26  ;;  %v17149_v26 = vor.u32 %v19532_v61, %v17146_v4  ;;  %v17533_v61 = vor.u32 %v19628_v49, %v17530_v60  ;;  %v19516_v4 = vld [vmem:[#allocation7 + $0x1ec4] sm:$0xf]  ;;  %v19513_v48 = vld [vmem:[#allocation7 + $0x1ea4] sm:$0xf0] }
 0x4cc   : > { %10193 = vmatpush.bf16.msra.mxu2 %v16933_v6  ;;  %10095 = vmatpush.bf16.msrb.mxu0 %v17181_v42  ;;  %v17565_v6 = vor.u32 %v19636_v50, %v17562_v58  ;;  %v21364_v42 = vadd.f32 %v8417_v38, %v21212_v15  ;;  %v16837_v50 = vor.u32 %v19453_v17, %v16834_v32  ;;  %v19620_v58 = vld [vmem:[#allocation7 + $0x2204] sm:$0xf]  ;;  %v19481_v49 = vld [vmem:[#allocation7 + $0x1da4] sm:$0xf0]  ;;  %v16770_v17 = vld [vmem:[#allocation7 + $0x1c68] sm:$0xf0]  ;;  %v21370_v2 = vpop.f32.mrf.mxu3 }
 0x4cd   : > { %v17057_v37 = vor.u32 %v19513_v48, %v17056_v3  ;;  %v17050_v38 = vld [vmem:[#allocation7 + $0x1ea0] sm:$0xf0]  ;;  %v17024_v60 = vld [vmem:[#allocation7 + $0x1e48] sm:$0xf]  ;;  %v19429_v3 = vld [vmem:[#allocation7 + $0x1c0c] sm:$0xf] }
 0x4ce   : > { %10127 = vmatpush.bf16.msra.mxu1 %v17565_v6  ;;  %v16961_v6 = vor.u32 %v19489_v24, %v16960_v20  ;;  %v17053_v32 = vor.u32 %v19508_v63, %v17050_v38  ;;  %v16992_v20 = vld [vmem:[#allocation7 + $0x1e08] sm:$0xf]  ;;  %v16738_v48 = vld [vmem:[#allocation7 + $0x1c28] sm:$0xf0]  ;;  %v17224_v63 = vld [vmem:[#allocation7 + $0x1fd0] sm:$0xf] }
 0x4cf   : > { %10152 = vmatpush.bf16.msra.mxu3 %v17153_v22  ;;  %v17082_v22 = vld [vmem:[#allocation7 + $0x1ee0] sm:$0xf0]  ;;  %v19497_v24 = vld [vmem:[#allocation7 + $0x1e24] sm:$0xf0]  ;;  %v19554_v38 = vld [vmem:[#allocation7 + $0x1fec] sm:$0xf0] }
 0x4d0   : > { %10194 = vmatpush.bf16.msra.mxu2 %v16901_v14  ;;  %10096 = vmatpush.bf16.msrb.mxu0 %v17149_v26  ;;  %v17089_v14 = vor.u32 %v19521_v59, %v17088_v55  ;;  %v17085_v15 = vor.u32 %v19516_v4, %v17082_v22  ;;  %v17501_v26 = vor.u32 %v19620_v58, %v17498_v53  ;;  %v19505_v55 = vld [vmem:[#allocation7 + $0x1e64] sm:$0xf0]  ;;  %v19437_v59 = vld [vmem:[#allocation7 + $0x1c4c] sm:$0xf]  ;;  %v21368_v4 = vpop.f32.mrf.mxu0 }
 0x4d1   : > { %v16896_v58 = vld [vmem:[#allocation7 + $0x1d48] sm:$0xf]  ;;  %v16773_v53 = vor.u32 %v19437_v59, %v16770_v17 }
 0x4d2   : > { %10128 = vmatpush.bf16.msra.mxu1 %v17533_v61  ;;  %v21366_v61 = vpop.f32.mrf.mxu2  ;;  %v16864_v59 = vld [vmem:[#allocation7 + $0x1d08] sm:$0xf] }
 0x4d3   : > { %10153 = vmatpush.bf16.msra.mxu3 %v17121_v19  ;;  %v16928_v19 = vld [vmem:[#allocation7 + $0x1d88] sm:$0xf] }
 0x4d4   : > { %10195 = vmatpush.bf16.msra.mxu2 %v16869_v21  ;;  %10097 = vmatpush.bf16.msrb.mxu0 %v17117_v13  ;;  %v16805_v21 = vor.u32 %v19445_v29, %v16802_v57  ;;  %v19500_v13 = vld [vmem:[#allocation7 + $0x1e44] sm:$0xf]  ;;  %v16929_v22 = vor.u32 %v19481_v49, %v16928_v19  ;;  %v19473_v57 = vld [vmem:[#allocation7 + $0x1d64] sm:$0xf0]  ;;  %v19613_v29 = vld [vmem:[#allocation7 + $0x21cc] sm:$0xf]  ;;  %v16993_v19 = vor.u32 %v19497_v24, %v16992_v20 }
 0x4d5   : > { %v16986_v49 = vld [vmem:[#allocation7 + $0x1e20] sm:$0xf0]  ;;  %v19465_v17 = vld [vmem:[#allocation7 + $0x1d24] sm:$0xf0] }
 0x4d6   : > { %10129 = vmatpush.bf16.msra.mxu1 %v17501_v26  ;;  %v16865_v20 = vor.u32 %v19465_v17, %v16864_v59  ;;  %v16800_v59 = vld [vmem:[#allocation7 + $0x1c88] sm:$0xf] }
 0x4d7   : > { %10154 = vmatpush.bf16.msra.mxu3 %v17089_v14  ;;  %v17025_v14 = vor.u32 %v19505_v55, %v17024_v60  ;;  %v16741_v60 = vor.u32 %v19429_v3, %v16738_v48  ;;  %v17445_v48 = vor.u32 %v19605_v46, %v17442_v23  ;;  %v19449_v17 = vld [vmem:[#allocation7 + $0x1ca4] sm:$0xf0] }
 0x4d8   : > { %10196 = vmatpush.bf16.msra.mxu2 %v16837_v50  ;;  %10098 = vmatpush.bf16.msrb.mxu0 %v17085_v15  ;;  %v17018_v50 = vld [vmem:[#allocation7 + $0x1e60] sm:$0xf0]  ;;  %v17474_v15 = vld [vmem:[#allocation7 + $0x21e8] sm:$0xf0] }
 0x4d9   : > { %v17021_v26 = vor.u32 %v19500_v13, %v17018_v50  ;;  %17629 = vmatmul.msk.bf16.vlgmr.msra.gmra.mxu1 %vm2681_vm4, %v21324_v10  ;;  %v17477_v55 = vor.u32 %v19613_v29, %v17474_v15  ;;  %v17225_v13 = vor.u32 %v19554_v38, %v17224_v63  ;;  %v19617_v50 = vld [vmem:[#allocation7 + $0x21e4] sm:$0xf0] }
 0x4da   : > { %10136 = vmatpush.bf16.msrb.mxu1 %v16961_v6  ;;  %v21372_v6 = vpop.f32.mrf.mxu1  ;;  %v16832_v29 = vld [vmem:[#allocation7 + $0x1cc8] sm:$0xf] }
 0x4db   : > { %10155 = vmatpush.bf16.msra.mxu3 %v17057_v37  ;;  %v16897_v37 = vor.u32 %v19473_v57, %v16896_v58  ;;  %v19546_v58 = vld [vmem:[#allocation7 + $0x1fac] sm:$0xf0]  ;;  %v8444_v57 = vpop.f32.mrf.mxu2  ;;  %v19457_v15 = vld [vmem:[#allocation7 + $0x1ce4] sm:$0xf0] }
 0x4dc   : > { %10197 = vmatpush.bf16.msra.mxu2 %v16805_v21  ;;  %10099 = vmatpush.bf16.msrb.mxu0 %v17053_v32  ;;  %v19492_v21 = vld [vmem:[#allocation7 + $0x1e04] sm:$0xf]  ;;  %v17472_v32 = vld [vmem:[#allocation7 + $0x21c8] sm:$0xf]  ;;  %v16833_v23 = vor.u32 %v19457_v15, %v16832_v29 }
 0x4dd   : > { %v17473_v3 = vor.u32 %v19617_v50, %v17472_v32  ;;  %v17440_v63 = vld [vmem:[#allocation7 + $0x2188] sm:$0xf] }
 0x4de   : > { %10137 = vmatpush.bf16.msrb.mxu1 %v16929_v22  ;;  %v16989_v22 = vor.u32 %v19492_v21, %v16986_v49  ;;  %v17410_v21 = vld [vmem:[#allocation7 + $0x2168] sm:$0xf0]  ;;  %v17408_v32 = vld [vmem:[#allocation7 + $0x2148] sm:$0xf] }
 0x4df   : > { %10156 = vmatpush.bf16.msra.mxu3 %v17025_v14  ;;  %v17192_v14 = vld [vmem:[#allocation7 + $0x1f90] sm:$0xf]  ;;  %v16768_v29 = vld [vmem:[#allocation7 + $0x1c48] sm:$0xf] }
 0x4e0   : > { %10198 = vmatpush.bf16.msra.mxu2 %v16773_v53  ;;  %10100 = vmatpush.bf16.msrb.mxu0 %v17021_v26  ;;  %v8430_v53 = vpop.f32.mrf.mxu0  ;;  %v17193_v38 = vor.u32 %v19546_v58, %v17192_v14  ;;  %v19597_v26 = vld [vmem:[#allocation7 + $0x214c] sm:$0xf]  ;;  %v19441_v15 = vld [vmem:[#allocation7 + $0x1c64] sm:$0xf0] }
 0x4e1   : > { %v8445_v24 = vadd.f32 %v8444_v57, %v8430_v53  ;;  %v19589_v14 = vld [vmem:[#allocation7 + $0x210c] sm:$0xf]  ;;  %v17128_v53 = vld [vmem:[#allocation7 + $0x1f10] sm:$0xf] }
 0x4e2   : > { %10138 = vmatpush.bf16.msrb.mxu1 %v16897_v37  ;;  %v17160_v37 = vld [vmem:[#allocation7 + $0x1f50] sm:$0xf]  ;;  %v8458_v49 = vpop.f32.mrf.mxu1  ;;  %v17378_v58 = vld [vmem:[#allocation7 + $0x2128] sm:$0xf0] }
 0x4e3   : > { %10157 = vmatpush.bf16.msra.mxu3 %v16993_v19  ;;  %v19538_v19 = vld [vmem:[#allocation7 + $0x1f6c] sm:$0xf0]  ;;  %v8459_v46 = vadd.f32 %v8458_v49, %v8445_v24 }
 0x4e4   : > { %10199 = vmatpush.bf16.msra.mxu2 %v16741_v60  ;;  %10101 = vmatpush.bf16.msrb.mxu0 %v16989_v22  ;;  %v17441_v60 = vor.u32 %v19609_v12, %v17440_v63  ;;  %v17161_v50 = vor.u32 %v19538_v19, %v17160_v37  ;;  %v19601_v22 = vld [vmem:[#allocation7 + $0x2164] sm:$0xf0]  ;;  %v17346_v37 = vld [vmem:[#allocation7 + $0x20e8] sm:$0xf0]  ;;  %v17096_v19 = vld [vmem:[#allocation7 + $0x1ed0] sm:$0xf] }
 0x4e5   : > { %v17409_v24 = vor.u32 %v19601_v22, %v17408_v32  ;;  %v17376_v63 = vld [vmem:[#allocation7 + $0x2108] sm:$0xf]  ;;  %v19522_v49 = vld [vmem:[#allocation7 + $0x1eec] sm:$0xf0]  ;;  %v19573_v22 = vld [vmem:[#allocation7 + $0x208c] sm:$0xf] }
 0x4e6   : > { %17631 = vmatmul.msk.bf16.vlgmr.msra.gmra.mxu3 %vm8665_vm10, %v21307_v44  ;;  %10139 = vmatpush.bf16.msrb.mxu1 %v16865_v20  ;;  %v19530_v20 = vld [vmem:[#allocation7 + $0x1f2c] sm:$0xf0]  ;;  %v17097_v32 = vor.u32 %v19522_v49, %v17096_v19 }
 0x4e7   : > { %10220 = vmatpush.bf16.msrb.mxu3 %v17477_v55  ;;  %17634 = vmatmul.msk.bf16.vlgmr.msra.gmra.mxu2 %vm8665_vm10, %v21353_v1  ;;  %v17413_v55 = vor.u32 %v19597_v26, %v17410_v21  ;;  %v19593_v26 = vld [vmem:[#allocation7 + $0x2124] sm:$0xf0]  ;;  %v19581_v21 = vld [vmem:[#allocation7 + $0x20cc] sm:$0xf]  ;;  %v17032_v19 = vld [vmem:[#allocation7 + $0x1e50] sm:$0xf] }
 0x4e8   : > { %10262 = vmatpush.bf16.msrb.mxu2 %v17225_v13  ;;  %10164 = vmatpush.bf16.msra.mxu0 %v17473_v3  ;;  %v8472_v13 = vpop.f32.mrf.mxu3  ;;  %v16801_v3 = vor.u32 %v19449_v17, %v16800_v59  ;;  %v17344_v59 = vld [vmem:[#allocation7 + $0x20c8] sm:$0xf]  ;;  %v19506_v49 = vld [vmem:[#allocation7 + $0x1e6c] sm:$0xf0] }
 0x4e9   : > { %17627 = vmatmul.msk.bf16.vlgmr.msrb.gmra.mxu0 %vm8665_vm10, %v21307_v44  ;;  %v8473_v57 = vadd.f32 %v8472_v13, %v8459_v46  ;;  %v16736_v46 = vld [vmem:[#allocation7 + $0x1c08] sm:$0xf]  ;;  %v19549_v13 = vld [vmem:[#allocation7 + $0x1fcc] sm:$0xf] }
 0x4ea   : > { %10140 = vmatpush.bf16.msrb.mxu1 %v16833_v23  ;;  %v16769_v23 = vor.u32 %v19441_v15, %v16768_v29  ;;  %v19585_v17 = vld [vmem:[#allocation7 + $0x20e4] sm:$0xf0]  ;;  %v21385_v29 = vpop.f32.mrf.mxu1 }
 0x4eb   : > { %10221 = vmatpush.bf16.msrb.mxu3 %v17445_v48  ;;  %v21383_v12 = vadd.f32 %v8473_v57, %v21228_v40  ;;  %v17381_v48 = vor.u32 %v19589_v14, %v17378_v58  ;;  %v17377_v40 = vor.u32 %v19593_v26, %v17376_v63  ;;  %v17314_v14 = vld [vmem:[#allocation7 + $0x20a8] sm:$0xf0]  ;;  %v17064_v58 = vld [vmem:[#allocation7 + $0x1e90] sm:$0xf]  ;;  %21891 = vst [vmem:[#allocation113_spill] sm:$0xff] %v21385_v29 }
 0x4ec   : > { %10263 = vmatpush.bf16.msrb.mxu2 %v17193_v38  ;;  %10165 = vmatpush.bf16.msra.mxu0 %v17441_v60  ;;  %v17129_v38 = vor.u32 %v19530_v20, %v17128_v53  ;;  %v17349_v60 = vor.u32 %v19581_v21, %v17346_v37  ;;  %v19514_v57 = vld [vmem:[#allocation7 + $0x1eac] sm:$0xf0]  ;;  %v17345_v20 = vor.u32 %v19585_v17, %v17344_v59  ;;  %v17186_v26 = vld [vmem:[#allocation7 + $0x1fa8] sm:$0xf0] }
 0x4ed   : > { %21890 = vst [vmem:[#allocation112_spill] sm:$0xff] %v21383_v12  ;;  %v17317_v15 = vor.u32 %v19573_v22, %v17314_v14  ;;  %v17065_v63 = vor.u32 %v19514_v57, %v17064_v58  ;;  %v19565_v21 = vld [vmem:[#allocation7 + $0x204c] sm:$0xf]  ;;  %v21391_v14 = vpop.f32.mrf.mxu2  ;;  %v17000_v58 = vld [vmem:[#allocation7 + $0x1e10] sm:$0xf] }
 0x4ee   : > { %10141 = vmatpush.bf16.msrb.mxu1 %v16801_v3  ;;  %v17282_v37 = vld [vmem:[#allocation7 + $0x2068] sm:$0xf0]  ;;  %21894 = vst [vmem:[#allocation116_spill] sm:$0xff] %v21391_v14  ;;  %v19498_v57 = vld [vmem:[#allocation7 + $0x1e2c] sm:$0xf0] }
 0x4ef   : > { %10222 = vmatpush.bf16.msrb.mxu3 %v17413_v55  ;;  %v19433_v55 = vld [vmem:[#allocation7 + $0x1c24] sm:$0xf0]  ;;  %v19533_v59 = vld [vmem:[#allocation7 + $0x1f4c] sm:$0xf]  ;;  %v17285_v17 = vor.u32 %v19565_v21, %v17282_v37  ;;  %v17576_v14 = vld [vmem:[#allocation7 + $0x2290] sm:$0xf] }
 0x4f0   : > { %10264 = vmatpush.bf16.msrb.mxu2 %v17161_v50  ;;  %10166 = vmatpush.bf16.msra.mxu0 %v17409_v24  ;;  %v17218_v50 = vld [vmem:[#allocation7 + $0x1fe8] sm:$0xf0]  ;;  %v16737_v53 = vor.u32 %v19433_v55, %v16736_v46  ;;  %v17312_v24 = vld [vmem:[#allocation7 + $0x2088] sm:$0xf]  ;;  %v21387_v52 = vpop.f32.mrf.mxu3 }
 0x4f1   : > { %v17221_v3 = vor.u32 %v19549_v13, %v17218_v50  ;;  %21892 = vst [vmem:[#allocation114_spill] sm:$0xff] %v21387_v52  ;;  %v19569_v55 = vld [vmem:[#allocation7 + $0x2064] sm:$0xf0]  ;;  %v17154_v13 = vld [vmem:[#allocation7 + $0x1f68] sm:$0xf0] }
 0x4f2   : > { %10142 = vmatpush.bf16.msrb.mxu1 %v16769_v23  ;;  %v21389_v23 = vpop.f32.mrf.mxu0  ;;  %v19557_v50 = vld [vmem:[#allocation7 + $0x200c] sm:$0xf]  ;;  %v19561_v21 = vld [vmem:[#allocation7 + $0x2024] sm:$0xf0]  ;;  %v8528_v12 = vpop.f32.mrf.mxu1 }
 0x4f3   : > { %10223 = vmatpush.bf16.msrb.mxu3 %v17381_v48  ;;  %v19577_v48 = vld [vmem:[#allocation7 + $0x20a4] sm:$0xf0]  ;;  %21893 = vst [vmem:[#allocation115_spill] sm:$0xff] %v21389_v23  ;;  %v17250_v22 = vld [vmem:[#allocation7 + $0x2028] sm:$0xf0] }
 0x4f4   : > { %10265 = vmatpush.bf16.msrb.mxu2 %v17129_v38  ;;  %10167 = vmatpush.bf16.msra.mxu0 %v17377_v40  ;;  %v19541_v38 = vld [vmem:[#allocation7 + $0x1f8c] sm:$0xf]  ;;  %v17313_v46 = vor.u32 %v19577_v48, %v17312_v24  ;;  %v17482_v24 = vld [vmem:[#allocation7 + $0x21f0] sm:$0xf0]  ;;  %v19642_v23 = vld [vmem:[#allocation7 + $0x22ac] sm:$0xf0] }
 0x4f5   : > { %v17189_v40 = vor.u32 %v19541_v38, %v17186_v26  ;;  %v17001_v38 = vor.u32 %v19498_v57, %v17000_v58  ;;  %v17248_v26 = vld [vmem:[#allocation7 + $0x2008] sm:$0xf]  ;;  %v17602_v29 = vld [vmem:[#allocation7 + $0x22e8] sm:$0xf0] }
 0x4f6   : > { %10143 = vmatpush.bf16.msrb.mxu1 %v16737_v53  ;;  %v17608_v53 = vld [vmem:[#allocation7 + $0x22d0] sm:$0xf]  ;;  %v17090_v58 = vld [vmem:[#allocation7 + $0x1ee8] sm:$0xf0] }
 0x4f7   : > { %10224 = vmatpush.bf16.msrb.mxu3 %v17349_v60  ;;  %v17280_v60 = vld [vmem:[#allocation7 + $0x2048] sm:$0xf]  ;;  %v19637_v57 = vld [vmem:[#allocation7 + $0x228c] sm:$0xf] }
 0x4f8   : > { %10266 = vmatpush.bf16.msrb.mxu2 %v17097_v32  ;;  %10168 = vmatpush.bf16.msra.mxu0 %v17345_v20  ;;  %v17033_v32 = vor.u32 %v19506_v49, %v17032_v19  ;;  %v19650_v20 = vld [vmem:[#allocation7 + $0x22ec] sm:$0xf0]  ;;  %v17281_v48 = vor.u32 %v19569_v55, %v17280_v60  ;;  %v19525_v49 = vld [vmem:[#allocation7 + $0x1f0c] sm:$0xf]  ;;  %v8486_v52 = vpop.f32.mrf.mxu3  ;;  %v19606_v60 = vld [vmem:[#allocation7 + $0x2194] sm:$0xf] }
 0x4f9   : > { %17630 = vmatmul.msk.bf16.vlgmr.msrb.gmra.mxu1 %vm8665_vm10, %v21353_v1  ;;  %v17609_v37 = vor.u32 %v19650_v20, %v17608_v53  ;;  %v17450_v55 = vld [vmem:[#allocation7 + $0x21b0] sm:$0xf0] }
 0x4fa   : > { %10206 = vmatpush.bf16.msra.mxu1 %v17221_v3  ;;  %v19614_v3 = vld [vmem:[#allocation7 + $0x21d4] sm:$0xf]  ;;  %v17453_v20 = vor.u32 %v19606_v60, %v17450_v55 }
 0x4fb   : > { %10225 = vmatpush.bf16.msrb.mxu3 %v17317_v15  ;;  %v17157_v15 = vor.u32 %v19533_v59, %v17154_v13  ;;  %v17485_v19 = vor.u32 %v19614_v3, %v17482_v24  ;;  %v17605_v13 = vor.u32 %v19645_v36, %v17602_v29  ;;  %v17570_v3 = vld [vmem:[#allocation7 + $0x22a8] sm:$0xf0]  ;;  %v17544_v24 = vld [vmem:[#allocation7 + $0x2250] sm:$0xf]  ;;  %v16970_v60 = vld [vmem:[#allocation7 + $0x1df0] sm:$0xf0] }
 0x4fc   : > { %10267 = vmatpush.bf16.msrb.mxu2 %v17065_v63  ;;  %10169 = vmatpush.bf16.msra.mxu0 %v17313_v46  ;;  %v17253_v63 = vor.u32 %v19557_v50, %v17250_v22  ;;  %v8500_v46 = vpop.f32.mrf.mxu0  ;;  %v17577_v50 = vor.u32 %v19642_v23, %v17576_v14  ;;  %v19517_v22 = vld [vmem:[#allocation7 + $0x1ecc] sm:$0xf]  ;;  %v17573_v23 = vor.u32 %v19637_v57, %v17570_v3  ;;  %v19490_v3 = vld [vmem:[#allocation7 + $0x1dec] sm:$0xf0] }
 0x4fd   : > { %v8501_v59 = vadd.f32 %v8500_v46, %v8486_v52  ;;  %v17418_v52 = vld [vmem:[#allocation7 + $0x2170] sm:$0xf0]  ;;  %v17093_v36 = vor.u32 %v19517_v22, %v17090_v58  ;;  %v19509_v29 = vld [vmem:[#allocation7 + $0x1e8c] sm:$0xf] }
 0x4fe   : > { %10207 = vmatpush.bf16.msra.mxu1 %v17189_v40  ;;  %v17249_v40 = vor.u32 %v19561_v21, %v17248_v26  ;;  %v17538_v26 = vld [vmem:[#allocation7 + $0x2268] sm:$0xf0]  ;;  %v17386_v46 = vld [vmem:[#allocation7 + $0x2130] sm:$0xf0] }
 0x4ff   : > { %10226 = vmatpush.bf16.msrb.mxu3 %v17285_v17  ;;  %v17125_v17 = vor.u32 %v19525_v49, %v17122_v47  ;;  %v19590_v49 = vld [vmem:[#allocation7 + $0x2114] sm:$0xf]  ;;  %v19621_v57 = vld [vmem:[#allocation7 + $0x220c] sm:$0xf] }
 0x500   : > { %10268 = vmatpush.bf16.msrb.mxu2 %v17033_v32  ;;  %10170 = vmatpush.bf16.msra.mxu0 %v17281_v48  ;;  %v8514_v32 = vpop.f32.mrf.mxu2  ;;  %v19634_v48 = vld [vmem:[#allocation7 + $0x226c] sm:$0xf0]  ;;  %v21404_v55 = vpop.f32.mrf.mxu3  ;;  %v17389_v22 = vor.u32 %v19590_v49, %v17386_v46  ;;  %v19574_v49 = vld [vmem:[#allocation7 + $0x2094] sm:$0xf] }
 0x501   : > { %v8515_v53 = vadd.f32 %v8514_v32, %v8501_v59  ;;  %v17545_v14 = vor.u32 %v19634_v48, %v17544_v24  ;;  %v21406_v59 = vpop.f32.mrf.mxu1  ;;  %v19582_v24 = vld [vmem:[#allocation7 + $0x20d4] sm:$0xf] }
 0x502   : > { %10208 = vmatpush.bf16.msra.mxu1 %v17157_v15  ;;  %v19598_v15 = vld [vmem:[#allocation7 + $0x2154] sm:$0xf]  ;;  %21896 = vst [vmem:[#allocation118_spill] sm:$0xff] %v21406_v59 }
 0x503   : > { %10227 = vmatpush.bf16.msrb.mxu3 %v17253_v63  ;;  %v8529_v47 = vadd.f32 %v8528_v12, %v8515_v53  ;;  %v17058_v63 = vld [vmem:[#allocation7 + $0x1ea8] sm:$0xf0]  ;;  %v17421_v12 = vor.u32 %v19598_v15, %v17418_v52  ;;  %v17354_v48 = vld [vmem:[#allocation7 + $0x20f0] sm:$0xf0] }
 0x504   : > { %10269 = vmatpush.bf16.msrb.mxu2 %v17001_v38  ;;  %10171 = vmatpush.bf16.msra.mxu0 %v17249_v40  ;;  %v19629_v38 = vld [vmem:[#allocation7 + $0x224c] sm:$0xf]  ;;  %v19486_v40 = vld [vmem:[#allocation7 + $0x1dd4] sm:$0xf] }
 0x505   : > { %v21400_v21 = vadd.f32 %v8529_v47, %v21242_v7  ;;  %v17541_v7 = vor.u32 %v19629_v38, %v17538_v26  ;;  %v16973_v58 = vor.u32 %v19486_v40, %v16970_v60  ;;  %v17506_v53 = vld [vmem:[#allocation7 + $0x2228] sm:$0xf0]  ;;  %v19478_v52 = vld [vmem:[#allocation7 + $0x1d94] sm:$0xf]  ;;  %v16936_v38 = vld [vmem:[#allocation7 + $0x1d90] sm:$0xf] }
 0x506   : > { %17636 = vmatmul.msk.bf16.vlgmr.msrb.gmra.mxu3 %vm8665_vm10, %v21337_v41  ;;  %10209 = vmatpush.bf16.msra.mxu1 %v17125_v17  ;;  %v17061_v17 = vor.u32 %v19509_v29, %v17058_v63  ;;  %v16938_v47 = vld [vmem:[#allocation7 + $0x1db0] sm:$0xf0]  ;;  %v19493_v29 = vld [vmem:[#allocation7 + $0x1e0c] sm:$0xf]  ;;  %v17357_v63 = vor.u32 %v19582_v24, %v17354_v48  ;;  %v17480_v26 = vld [vmem:[#allocation7 + $0x21d0] sm:$0xf] }
 0x507   : > { %10294 = vmatpush.bf16.msra.mxu3 %v17609_v37  ;;  %17639 = vmatmul.msk.bf16.vlgmr.msrb.gmra.mxu2 %vm8665_vm10, %v21307_v44  ;;  %21895 = vst [vmem:[#allocation117_spill] sm:$0xff] %v21400_v21  ;;  %v17512_v37 = vld [vmem:[#allocation7 + $0x2210] sm:$0xf]  ;;  %v17322_v46 = vld [vmem:[#allocation7 + $0x20b0] sm:$0xf0] }
 0x508   : > { %10332 = vmatpush.bf16.msra.mxu2 %v17485_v19  ;;  %10238 = vmatpush.bf16.msrb.mxu0 %v17605_v13  ;;  %v19626_v19 = vld [vmem:[#allocation7 + $0x222c] sm:$0xf0]  ;;  %v19501_v13 = vld [vmem:[#allocation7 + $0x1e4c] sm:$0xf]  ;;  %v8556_v40 = vpop.f32.mrf.mxu3 }
 0x509   : > { %17632 = vmatmul.msk.bf16.vlgmr.msra.gmra.mxu0 %vm8665_vm10, %v21337_v41  ;;  %v17513_v32 = vor.u32 %v19626_v19, %v17512_v37  ;;  %v16941_v37 = vor.u32 %v19478_v52, %v16938_v47  ;;  %v19482_v19 = vld [vmem:[#allocation7 + $0x1dac] sm:$0xf0]  ;;  %v8542_v60 = vpop.f32.mrf.mxu1  ;;  %v17290_v52 = vld [vmem:[#allocation7 + $0x2070] sm:$0xf0] }
 0x50a   : > { %10210 = vmatpush.bf16.msra.mxu1 %v17093_v36  ;;  %v17509_v36 = vor.u32 %v19621_v57, %v17506_v53  ;;  %v16904_v57 = vld [vmem:[#allocation7 + $0x1d50] sm:$0xf]  ;;  %v19462_v47 = vld [vmem:[#allocation7 + $0x1d14] sm:$0xf] }
 0x50b   : > { %10295 = vmatpush.bf16.msra.mxu3 %v17577_v50  ;;  %v17026_v50 = vld [vmem:[#allocation7 + $0x1e68] sm:$0xf0]  ;;  %v17448_v53 = vld [vmem:[#allocation7 + $0x2190] sm:$0xf] }
 0x50c   : > { %10333 = vmatpush.bf16.msra.mxu2 %v17453_v20  ;;  %10239 = vmatpush.bf16.msrb.mxu0 %v17573_v23  ;;  %v16968_v20 = vld [vmem:[#allocation7 + $0x1dd0] sm:$0xf]  ;;  %v17029_v15 = vor.u32 %v19501_v13, %v17026_v50  ;;  %v16994_v23 = vld [vmem:[#allocation7 + $0x1e28] sm:$0xf0]  ;;  %v21408_v13 = vadd.f32 %v8556_v40, %v8542_v60  ;;  %v19454_v40 = vld [vmem:[#allocation7 + $0x1cd4] sm:$0xf] }
 0x50d   : > { %v19474_v48 = vld [vmem:[#allocation7 + $0x1d6c] sm:$0xf0]  ;;  %v16842_v60 = vld [vmem:[#allocation7 + $0x1cf0] sm:$0xf0] }
 0x50e   : > { %10211 = vmatpush.bf16.msra.mxu1 %v17061_v17  ;;  %v16997_v17 = vor.u32 %v19493_v29, %v16994_v23  ;;  %v21414_v29 = vpop.f32.mrf.mxu0 }
 0x50f   : > { %10296 = vmatpush.bf16.msra.mxu3 %v17545_v14  ;;  %v16969_v14 = vor.u32 %v19490_v3, %v16968_v20  ;;  %v19610_v20 = vld [vmem:[#allocation7 + $0x21ac] sm:$0xf0]  ;;  %v21410_v3 = vpop.f32.mrf.mxu2 }
 0x510   : > { %10334 = vmatpush.bf16.msra.mxu2 %v17421_v12  ;;  %10240 = vmatpush.bf16.msrb.mxu0 %v17541_v7  ;;  %v19618_v12 = vld [vmem:[#allocation7 + $0x21ec] sm:$0xf0]  ;;  %v19470_v7 = vld [vmem:[#allocation7 + $0x1d54] sm:$0xf]  ;;  %v17449_v23 = vor.u32 %v19610_v20, %v17448_v53  ;;  %v16845_v53 = vor.u32 %v19454_v40, %v16842_v60 }
 0x511   : > { %v17481_v50 = vor.u32 %v19618_v12, %v17480_v26  ;;  %v19466_v26 = vld [vmem:[#allocation7 + $0x1d2c] sm:$0xf0]  ;;  %v16778_v60 = vld [vmem:[#allocation7 + $0x1c70] sm:$0xf0] }
 0x512   : > { %10212 = vmatpush.bf16.msra.mxu1 %v17029_v15  ;;  %v19566_v15 = vld [vmem:[#allocation7 + $0x2054] sm:$0xf]  ;;  %v17416_v12 = vld [vmem:[#allocation7 + $0x2150] sm:$0xf] }
 0x513   : > { %10297 = vmatpush.bf16.msra.mxu3 %v17513_v32  ;;  %v16906_v32 = vld [vmem:[#allocation7 + $0x1d70] sm:$0xf0] }
 0x514   : > { %10335 = vmatpush.bf16.msra.mxu2 %v17389_v22  ;;  %10241 = vmatpush.bf16.msrb.mxu0 %v17509_v36  ;;  %v16937_v22 = vor.u32 %v19482_v19, %v16936_v38  ;;  %v16909_v24 = vor.u32 %v19470_v7, %v16906_v32  ;;  %v16874_v36 = vld [vmem:[#allocation7 + $0x1d30] sm:$0xf0]  ;;  %v17293_v38 = vor.u32 %v19566_v15, %v17290_v52  ;;  %v19651_v7 = vld [vmem:[#allocation7 + $0x22f4] sm:$0xf0] }
 0x515   : > { %v16877_v19 = vor.u32 %v19462_v47, %v16874_v36  ;;  %v19446_v15 = vld [vmem:[#allocation7 + $0x1c94] sm:$0xf]  ;;  %v17584_v47 = vld [vmem:[#allocation7 + $0x2298] sm:$0xf] }
 0x516   : > { %17641 = vmatmul.msk.bf16.vlgmr.msra.gmra.mxu3 %vm2681_vm4, %v21324_v10  ;;  %10213 = vmatpush.bf16.msra.mxu1 %v16997_v17  ;;  %v17616_v17 = vld [vmem:[#allocation7 + $0x22d8] sm:$0xf]  ;;  %v16810_v52 = vld [vmem:[#allocation7 + $0x1cb0] sm:$0xf0]  ;;  %v8570_v21 = vpop.f32.mrf.mxu0 }
 0x517   : > { %10304 = vmatpush.bf16.msrb.mxu3 %v16973_v58  ;;  %v17325_v58 = vor.u32 %v19574_v49, %v17322_v46  ;;  %v19558_v49 = vld [vmem:[#allocation7 + $0x2014] sm:$0xf]  ;;  %v17617_v20 = vor.u32 %v19651_v7, %v17616_v17  ;;  %v19643_v36 = vld [vmem:[#allocation7 + $0x22b4] sm:$0xf0]  ;;  %v8584_v59 = vpop.f32.mrf.mxu2 }
 0x518   : > { %10248 = vmatpush.bf16.msra.mxu0 %v16969_v14  ;;  %10336 = vmatpush.bf16.msra.mxu2 %v17357_v63  ;;  %v16872_v14 = vld [vmem:[#allocation7 + $0x1d10] sm:$0xf]  ;;  %v16905_v63 = vor.u32 %v19474_v48, %v16904_v57  ;;  %v17258_v46 = vld [vmem:[#allocation7 + $0x2030] sm:$0xf0]  ;;  %v17552_v17 = vld [vmem:[#allocation7 + $0x2258] sm:$0xf] }
 0x519   : > { %17637 = vmatmul.msk.bf16.vlgmr.msrb.gmra.mxu0 %vm2681_vm4, %v21324_v10  ;;  %17635 = vmatmul.msk.bf16.vlgmr.msra.gmra.mxu1 %vm8665_vm10, %v21307_v44  ;;  %v19594_v57 = vld [vmem:[#allocation7 + $0x212c] sm:$0xf0]  ;;  %v19635_v7 = vld [vmem:[#allocation7 + $0x2274] sm:$0xf0] }
 0x51a   : > { %10276 = vmatpush.bf16.msrb.mxu1 %v17481_v50  ;;  %v16873_v50 = vor.u32 %v19466_v26, %v16872_v14  ;;  %v19458_v48 = vld [vmem:[#allocation7 + $0x1cec] sm:$0xf0]  ;;  %v8571_v14 = vadd.f32 %v8570_v21, %v21408_v13 }
 0x51b   : > { %10305 = vmatpush.bf16.msrb.mxu3 %v16941_v37  ;;  %v19602_v37 = vld [vmem:[#allocation7 + $0x216c] sm:$0xf0] }
 0x51c   : > { %10249 = vmatpush.bf16.msra.mxu0 %v16937_v22  ;;  %10337 = vmatpush.bf16.msra.mxu2 %v17325_v58  ;;  %v17417_v32 = vor.u32 %v19602_v37, %v17416_v12  ;;  %v17261_v22 = vor.u32 %v19558_v49, %v17258_v46  ;;  %v17384_v58 = vld [vmem:[#allocation7 + $0x2110] sm:$0xf]  ;;  %v16813_v12 = vor.u32 %v19446_v15, %v16810_v52  ;;  %v19438_v46 = vld [vmem:[#allocation7 + $0x1c54] sm:$0xf]  ;;  %v19627_v15 = vld [vmem:[#allocation7 + $0x2234] sm:$0xf0] }
 0x51d   : > { %v19586_v26 = vld [vmem:[#allocation7 + $0x20ec] sm:$0xf0]  ;;  %v17585_v37 = vor.u32 %v19643_v36, %v17584_v47  ;;  %v8585_v40 = vadd.f32 %v8584_v59, %v8571_v14  ;;  %v17553_v59 = vor.u32 %v19635_v7, %v17552_v17  ;;  %v17232_v52 = vld [vmem:[#allocation7 + $0x1fd8] sm:$0xf]  ;;  %v19550_v17 = vld [vmem:[#allocation7 + $0x1fd4] sm:$0xf] }
 0x51e   : > { %10277 = vmatpush.bf16.msrb.mxu1 %v17449_v23  ;;  %v17385_v23 = vor.u32 %v19594_v57, %v17384_v58  ;;  %v19450_v49 = vld [vmem:[#allocation7 + $0x1cac] sm:$0xf0]  ;;  %v16781_v57 = vor.u32 %v19438_v46, %v16778_v60  ;;  %v19555_v36 = vld [vmem:[#allocation7 + $0x1ff4] sm:$0xf0]  ;;  %v17226_v7 = vld [vmem:[#allocation7 + $0x1ff0] sm:$0xf0] }
 0x51f   : > { %10306 = vmatpush.bf16.msrb.mxu3 %v16909_v24  ;;  %v16840_v24 = vld [vmem:[#allocation7 + $0x1cd0] sm:$0xf]  ;;  %v21424_v21 = vadd.f32 %v8585_v40, %v21263_v9  ;;  %v19487_v9 = vld [vmem:[#allocation7 + $0x1ddc] sm:$0xf]  ;;  %v17233_v40 = vor.u32 %v19555_v36, %v17232_v52 }
 0x520   : > { %10250 = vmatpush.bf16.msra.mxu0 %v16905_v63  ;;  %10338 = vmatpush.bf16.msra.mxu2 %v17293_v38  ;;  %v16841_v63 = vor.u32 %v19458_v48, %v16840_v24  ;;  %v17352_v38 = vld [vmem:[#allocation7 + $0x20d0] sm:$0xf]  ;;  %v16746_v24 = vld [vmem:[#allocation7 + $0x1c30] sm:$0xf0]  ;;  %v17520_v48 = vld [vmem:[#allocation7 + $0x2218] sm:$0xf] }
 0x521   : > { %21897 = vst [vmem:[#allocation119_spill] sm:$0xff] %v21424_v21  ;;  %v19578_v58 = vld [vmem:[#allocation7 + $0x20ac] sm:$0xf0]  ;;  %v16914_v21 = vld [vmem:[#allocation7 + $0x1d78] sm:$0xf0] }
 0x522   : > { %10278 = vmatpush.bf16.msrb.mxu1 %v17417_v32  ;;  %v17353_v32 = vor.u32 %v19586_v26, %v17352_v38  ;;  %v19570_v38 = vld [vmem:[#allocation7 + $0x206c] sm:$0xf0]  ;;  %v21426_v26 = vpop.f32.mrf.mxu2 }
 0x523   : > { %10307 = vmatpush.bf16.msrb.mxu3 %v16877_v19  ;;  %v16808_v19 = vld [vmem:[#allocation7 + $0x1c90] sm:$0xf]  ;;  %21898 = vst [vmem:[#allocation120_spill] sm:$0xff] %v21426_v26  ;;  %v16946_v26 = vld [vmem:[#allocation7 + $0x1db8] sm:$0xf0] }
 0x524   : > { %10251 = vmatpush.bf16.msra.mxu0 %v16873_v50  ;;  %10339 = vmatpush.bf16.msra.mxu2 %v17261_v22  ;;  %v16809_v13 = vor.u32 %v19450_v49, %v16808_v19  ;;  %v16776_v50 = vld [vmem:[#allocation7 + $0x1c50] sm:$0xf]  ;;  %v17521_v19 = vor.u32 %v19627_v15, %v17520_v48  ;;  %v19542_v48 = vld [vmem:[#allocation7 + $0x1f94] sm:$0xf] }
 0x525   : > { %v17320_v22 = vld [vmem:[#allocation7 + $0x2090] sm:$0xf]  ;;  %v17194_v15 = vld [vmem:[#allocation7 + $0x1fb0] sm:$0xf0] }
 0x526   : > { %10279 = vmatpush.bf16.msrb.mxu1 %v17385_v23  ;;  %v17321_v47 = vor.u32 %v19578_v58, %v17320_v22  ;;  %v16978_v23 = vld [vmem:[#allocation7 + $0x1df8] sm:$0xf0]  ;;  %v16744_v49 = vld [vmem:[#allocation7 + $0x1c10] sm:$0xf]  ;;  %v21430_v22 = vpop.f32.mrf.mxu3  ;;  %v19547_v58 = vld [vmem:[#allocation7 + $0x1fb4] sm:$0xf0] }
 0x527   : > { %10308 = vmatpush.bf16.msrb.mxu3 %v16845_v53  ;;  %17644 = vmatmul.msk.bf16.vlgmr.msra.gmra.mxu2 %vm8665_vm10, %v21337_v41  ;;  %v19442_v53 = vld [vmem:[#allocation7 + $0x1c6c] sm:$0xf0]  ;;  %v16981_v60 = vor.u32 %v19487_v9, %v16978_v23  ;;  %v19646_v9 = vld [vmem:[#allocation7 + $0x22d4] sm:$0xf] }
 0x528   : > { %10406 = vmatpush.bf16.msrb.mxu2 %v17617_v20  ;;  %10252 = vmatpush.bf16.msra.mxu0 %v16841_v63  ;;  %v19430_v20 = vld [vmem:[#allocation7 + $0x1c14] sm:$0xf]  ;;  %v16777_v14 = vor.u32 %v19442_v53, %v16776_v50  ;;  %v17288_v63 = vld [vmem:[#allocation7 + $0x2050] sm:$0xf]  ;;  %v19479_v53 = vld [vmem:[#allocation7 + $0x1d9c] sm:$0xf] }
 0x529   : > { %v19434_v46 = vld [vmem:[#allocation7 + $0x1c2c] sm:$0xf0]  ;;  %v17289_v50 = vor.u32 %v19570_v38, %v17288_v63  ;;  %v16949_v36 = vor.u32 %v19479_v53, %v16946_v26  ;;  %v17610_v23 = vld [vmem:[#allocation7 + $0x22f0] sm:$0xf0]  ;;  %v19539_v63 = vld [vmem:[#allocation7 + $0x1f74] sm:$0xf0] }
 0x52a   : > { %10280 = vmatpush.bf16.msrb.mxu1 %v17353_v32  ;;  %v17200_v32 = vld [vmem:[#allocation7 + $0x1f98] sm:$0xf]  ;;  %v19471_v38 = vld [vmem:[#allocation7 + $0x1d5c] sm:$0xf] }
 0x52b   : > { %10309 = vmatpush.bf16.msrb.mxu3 %v16813_v12  ;;  %v21428_v12 = vpop.f32.mrf.mxu1  ;;  %v17201_v52 = vor.u32 %v19547_v58, %v17200_v32  ;;  %v19638_v32 = vld [vmem:[#allocation7 + $0x2294] sm:$0xf]  ;;  %v17136_v58 = vld [vmem:[#allocation7 + $0x1f18] sm:$0xf] }
 0x52c   : > { %10407 = vmatpush.bf16.msrb.mxu2 %v17585_v37  ;;  %10253 = vmatpush.bf16.msra.mxu0 %v16809_v13  ;;  %v16749_v37 = vor.u32 %v19430_v20, %v16746_v24  ;;  %v21432_v13 = vpop.f32.mrf.mxu0  ;;  %v17229_v20 = vor.u32 %v19550_v17, %v17226_v7  ;;  %v19562_v24 = vld [vmem:[#allocation7 + $0x202c] sm:$0xf0]  ;;  %v16917_v7 = vor.u32 %v19471_v38, %v16914_v21  ;;  %v17546_v38 = vld [vmem:[#allocation7 + $0x2270] sm:$0xf0] }
 0x52e   : > { %10281 = vmatpush.bf16.msrb.mxu1 %v17321_v47  ;;  %v17168_v47 = vld [vmem:[#allocation7 + $0x1f58] sm:$0xf]  ;;  %v8626_v53 = vpop.f32.mrf.mxu3 }
 0x52f   : > { %10310 = vmatpush.bf16.msrb.mxu3 %v16781_v57  ;;  %v16745_v57 = vor.u32 %v19434_v46, %v16744_v49  ;;  %v17197_v49 = vor.u32 %v19542_v48, %v17194_v15  ;;  %v17613_v46 = vor.u32 %v19646_v9, %v17610_v23  ;;  %v17169_v17 = vor.u32 %v19539_v63, %v17168_v47  ;;  %v19630_v63 = vld [vmem:[#allocation7 + $0x2254] sm:$0xf] }
 0x530   : > { %10408 = vmatpush.bf16.msrb.mxu2 %v17553_v59  ;;  %10254 = vmatpush.bf16.msra.mxu0 %v16777_v14  ;;  %v17256_v59 = vld [vmem:[#allocation7 + $0x2010] sm:$0xf] }
 0x531   : > { %v17257_v14 = vor.u32 %v19562_v24, %v17256_v59  ;;  %v19463_v59 = vld [vmem:[#allocation7 + $0x1d1c] sm:$0xf] }
 0x532   : > { %10282 = vmatpush.bf16.msrb.mxu1 %v17289_v50  ;;  %v17578_v50 = vld [vmem:[#allocation7 + $0x22b0] sm:$0xf0] }
 0x533   : > { %10311 = vmatpush.bf16.msrb.mxu3 %v16749_v37  ;;  %v8598_v37 = vpop.f32.mrf.mxu2  ;;  %v17581_v21 = vor.u32 %v19638_v32, %v17578_v50  ;;  %v19622_v50 = vld [vmem:[#allocation7 + $0x2214] sm:$0xf] }
 0x534   : > { %10409 = vmatpush.bf16.msrb.mxu2 %v17521_v19  ;;  %10255 = vmatpush.bf16.msra.mxu0 %v16745_v57  ;;  %v8612_v19 = vpop.f32.mrf.mxu1  ;;  %v19531_v57 = vld [vmem:[#allocation7 + $0x1f34] sm:$0xf0]  ;;  %v8640_v48 = vpop.f32.mrf.mxu0 }
 0x535   : > { %v8613_v26 = vadd.f32 %v8612_v19, %v8598_v37  ;;  %v17137_v23 = vor.u32 %v19531_v57, %v17136_v58  ;;  %v17104_v37 = vld [vmem:[#allocation7 + $0x1ed8] sm:$0xf]  ;;  %v17514_v58 = vld [vmem:[#allocation7 + $0x2230] sm:$0xf0] }
 0x536   : > { %17642 = vmatmul.msk.bf16.vlgmr.msrb.gmra.mxu3 %vm8665_vm10, %v21353_v1  ;;  %10283 = vmatpush.bf16.msrb.mxu1 %v17257_v14  ;;  %v19523_v19 = vld [vmem:[#allocation7 + $0x1ef4] sm:$0xf0]  ;;  %v19455_v14 = vld [vmem:[#allocation7 + $0x1cdc] sm:$0xf] }
 0x537   : > { %10374 = vmatpush.bf16.msra.mxu3 %v17233_v40  ;;  %v19534_v40 = vld [vmem:[#allocation7 + $0x1f54] sm:$0xf]  ;;  %17638 = vmatmul.msk.bf16.vlgmr.msra.gmra.mxu0 %vm8665_vm10, %v21353_v1  ;;  %v8627_v24 = vadd.f32 %v8626_v53, %v8613_v26  ;;  %v16850_v26 = vld [vmem:[#allocation7 + $0x1cf8] sm:$0xf0]  ;;  %v16976_v53 = vld [vmem:[#allocation7 + $0x1dd8] sm:$0xf] }
 0x538   : > { %10416 = vmatpush.bf16.msra.mxu2 %v16981_v60  ;;  %10318 = vmatpush.bf16.msrb.mxu0 %v17229_v20  ;;  %v17162_v60 = vld [vmem:[#allocation7 + $0x1f70] sm:$0xf0]  ;;  %v16882_v20 = vld [vmem:[#allocation7 + $0x1d38] sm:$0xf0]  ;;  %v16853_v32 = vor.u32 %v19455_v14, %v16850_v26  ;;  %v19491_v57 = vld [vmem:[#allocation7 + $0x1df4] sm:$0xf0] }
 0x539   : > { %17649 = vmatmul.msk.bf16.vlgmr.msrb.gmra.mxu2 %vm2681_vm4, %v21324_v10  ;;  %v17165_v15 = vor.u32 %v19534_v40, %v17162_v60  ;;  %v8641_v9 = vadd.f32 %v8640_v48, %v8627_v24  ;;  %v16885_v47 = vor.u32 %v19463_v59, %v16882_v20  ;;  %17640 = vmatmul.msk.bf16.vlgmr.msrb.gmra.mxu1 %vm8665_vm10, %v21337_v41  ;;  %v19518_v60 = vld [vmem:[#allocation7 + $0x1ed4] sm:$0xf]  ;;  %v17072_v59 = vld [vmem:[#allocation7 + $0x1e98] sm:$0xf]  ;;  %v19447_v24 = vld [vmem:[#allocation7 + $0x1c9c] sm:$0xf] }
 0x53a   : > { %10350 = vmatpush.bf16.msra.mxu1 %v17613_v46  ;;  %v17549_v40 = vor.u32 %v19630_v63, %v17546_v38  ;;  %v19515_v20 = vld [vmem:[#allocation7 + $0x1eb4] sm:$0xf0]  ;;  %v16818_v48 = vld [vmem:[#allocation7 + $0x1cb8] sm:$0xf0] }
 0x53b   : > { %10375 = vmatpush.bf16.msra.mxu3 %v17201_v52  ;;  %v19526_v52 = vld [vmem:[#allocation7 + $0x1f14] sm:$0xf]  ;;  %v19483_v63 = vld [vmem:[#allocation7 + $0x1db4] sm:$0xf0]  ;;  %v16786_v14 = vld [vmem:[#allocation7 + $0x1c78] sm:$0xf0] }
 0x53c   : > { %10417 = vmatpush.bf16.msra.mxu2 %v16949_v36  ;;  %10319 = vmatpush.bf16.msrb.mxu0 %v17197_v49  ;;  %v17130_v36 = vld [vmem:[#allocation7 + $0x1f30] sm:$0xf0]  ;;  %v21443_v49 = vadd.f32 %v8641_v9, %v21279_v45  ;;  %v17040_v38 = vld [vmem:[#allocation7 + $0x1e58] sm:$0xf] }
 0x53d   : > { %v17133_v46 = vor.u32 %v19526_v52, %v17130_v36  ;;  %v17073_v52 = vor.u32 %v19515_v20, %v17072_v59  ;;  %v19510_v36 = vld [vmem:[#allocation7 + $0x1e94] sm:$0xf]  ;;  %v19499_v59 = vld [vmem:[#allocation7 + $0x1e34] sm:$0xf0]  ;;  %v19431_v20 = vld [vmem:[#allocation7 + $0x1c1c] sm:$0xf] }
 0x53e   : > { %21899 = vst [vmem:[#allocation121_spill] sm:$0xff] %v21443_v49  ;;  %10351 = vmatpush.bf16.msra.mxu1 %v17581_v21  ;;  %v16977_v21 = vor.u32 %v19491_v57, %v16976_v53  ;;  %v17066_v9 = vld [vmem:[#allocation7 + $0x1eb0] sm:$0xf0]  ;;  %v17008_v57 = vld [vmem:[#allocation7 + $0x1e18] sm:$0xf] }
 0x53f   : > { %10376 = vmatpush.bf16.msra.mxu3 %v17169_v17  ;;  %v17098_v17 = vld [vmem:[#allocation7 + $0x1ef0] sm:$0xf0]  ;;  %v17069_v26 = vor.u32 %v19510_v36, %v17066_v9  ;;  %v21449_v36 = vpop.f32.mrf.mxu3  ;;  %v21451_v9 = vpop.f32.mrf.mxu1  ;;  %v17426_v49 = vld [vmem:[#allocation7 + $0x2178] sm:$0xf0] }
 0x540   : > { %10418 = vmatpush.bf16.msra.mxu2 %v16917_v7  ;;  %10320 = vmatpush.bf16.msrb.mxu0 %v17165_v15  ;;  %v17105_v7 = vor.u32 %v19523_v19, %v17104_v37  ;;  %v17101_v45 = vor.u32 %v19518_v60, %v17098_v17  ;;  %v17517_v15 = vor.u32 %v19622_v50, %v17514_v58  ;;  %v19507_v37 = vld [vmem:[#allocation7 + $0x1e74] sm:$0xf0]  ;;  %v19439_v19 = vld [vmem:[#allocation7 + $0x1c5c] sm:$0xf]  ;;  %v21447_v60 = vpop.f32.mrf.mxu0 }
 0x541   : > { %21900 = vst [vmem:[#allocation122_spill] sm:$0xff] %v21447_v60  ;;  %v16912_v50 = vld [vmem:[#allocation7 + $0x1d58] sm:$0xf]  ;;  %v16789_v53 = vor.u32 %v19439_v19, %v16786_v14 }
 0x542   : > { %10352 = vmatpush.bf16.msra.mxu1 %v17549_v40  ;;  %v21445_v40 = vpop.f32.mrf.mxu2  ;;  %v19475_v58 = vld [vmem:[#allocation7 + $0x1d74] sm:$0xf0] }
 0x543   : > { %10377 = vmatpush.bf16.msra.mxu3 %v17137_v23  ;;  %v16944_v23 = vld [vmem:[#allocation7 + $0x1d98] sm:$0xf] }
 0x544   : > { %10419 = vmatpush.bf16.msra.mxu2 %v16885_v47  ;;  %10321 = vmatpush.bf16.msrb.mxu0 %v17133_v46  ;;  %v16821_v47 = vor.u32 %v19447_v24, %v16818_v48  ;;  %v19502_v46 = vld [vmem:[#allocation7 + $0x1e54] sm:$0xf]  ;;  %v16945_v17 = vor.u32 %v19483_v63, %v16944_v23  ;;  %v16754_v24 = vld [vmem:[#allocation7 + $0x1c38] sm:$0xf0]  ;;  %v19467_v19 = vld [vmem:[#allocation7 + $0x1d34] sm:$0xf0] }
 0x545   : > { %v19615_v48 = vld [vmem:[#allocation7 + $0x21dc] sm:$0xf]  ;;  %v19494_v23 = vld [vmem:[#allocation7 + $0x1e14] sm:$0xf]  ;;  %v17488_v14 = vld [vmem:[#allocation7 + $0x21d8] sm:$0xf] }
 0x546   : > { %10353 = vmatpush.bf16.msra.mxu1 %v17517_v15  ;;  %v17002_v63 = vld [vmem:[#allocation7 + $0x1e30] sm:$0xf0] }
 0x547   : > { %10378 = vmatpush.bf16.msra.mxu3 %v17105_v7  ;;  %v17041_v7 = vor.u32 %v19507_v37, %v17040_v38  ;;  %v16880_v37 = vld [vmem:[#allocation7 + $0x1d18] sm:$0xf]  ;;  %v17005_v60 = vor.u32 %v19494_v23, %v17002_v63 }
 0x548   : > { %10420 = vmatpush.bf16.msra.mxu2 %v16853_v32  ;;  %10322 = vmatpush.bf16.msrb.mxu0 %v17101_v45  ;;  %v17034_v32 = vld [vmem:[#allocation7 + $0x1e70] sm:$0xf0]  ;;  %v17490_v45 = vld [vmem:[#allocation7 + $0x21f8] sm:$0xf0] }
 0x549   : > { %v17037_v15 = vor.u32 %v19502_v46, %v17034_v32  ;;  %17645 = vmatmul.msk.bf16.vlgmr.msra.gmra.mxu1 %vm2681_vm4, %v21324_v10  ;;  %v17493_v38 = vor.u32 %v19615_v48, %v17490_v45  ;;  %v19607_v46 = vld [vmem:[#allocation7 + $0x219c] sm:$0xf]  ;;  %v19611_v48 = vld [vmem:[#allocation7 + $0x21b4] sm:$0xf0] }
 0x54a   : > { %10360 = vmatpush.bf16.msrb.mxu1 %v16977_v21  ;;  %v16913_v21 = vor.u32 %v19475_v58, %v16912_v50  ;;  %v17458_v32 = vld [vmem:[#allocation7 + $0x21b8] sm:$0xf0]  ;;  %v16881_v50 = vor.u32 %v19467_v19, %v16880_v37  ;;  %v17424_v37 = vld [vmem:[#allocation7 + $0x2158] sm:$0xf]  ;;  %v10075_v19 = vpop.f32.mrf.mxu3 }
 0x54b   : > { %10379 = vmatpush.bf16.msra.mxu3 %v17073_v52  ;;  %v17009_v52 = vor.u32 %v19499_v59, %v17008_v57  ;;  %v17461_v57 = vor.u32 %v19607_v46, %v17458_v32  ;;  %v16848_v59 = vld [vmem:[#allocation7 + $0x1cd8] sm:$0xf]  ;;  %v19599_v45 = vld [vmem:[#allocation7 + $0x215c] sm:$0xf] }
 0x54c   : > { %10421 = vmatpush.bf16.msra.mxu2 %v16821_v47  ;;  %10323 = vmatpush.bf16.msrb.mxu0 %v17069_v26  ;;  %v16757_v47 = vor.u32 %v19431_v20, %v16754_v24  ;;  %v19619_v26 = vld [vmem:[#allocation7 + $0x21f4] sm:$0xf0]  ;;  %v17429_v63 = vor.u32 %v19599_v45, %v17426_v49 }
 0x54d   : > { %v19459_v20 = vld [vmem:[#allocation7 + $0x1cf4] sm:$0xf0] }
 0x54e   : > { %10361 = vmatpush.bf16.msrb.mxu1 %v16945_v17  ;;  %v10047_v17 = vpop.f32.mrf.mxu2  ;;  %v17456_v24 = vld [vmem:[#allocation7 + $0x2198] sm:$0xf] }
 0x54f   : > { %10380 = vmatpush.bf16.msra.mxu3 %v17041_v7  ;;  %v10033_v7 = vpop.f32.mrf.mxu0  ;;  %v17457_v23 = vor.u32 %v19611_v48, %v17456_v24 }
 0x550   : > { %10422 = vmatpush.bf16.msra.mxu2 %v16789_v53  ;;  %10324 = vmatpush.bf16.msrb.mxu0 %v17037_v15  ;;  %v10048_v58 = vadd.f32 %v10047_v17, %v10033_v7  ;;  %v17489_v53 = vor.u32 %v19619_v26, %v17488_v14  ;;  %v10061_v15 = vpop.f32.mrf.mxu1  ;;  %v19591_v14 = vld [vmem:[#allocation7 + $0x211c] sm:$0xf] }
 0x551   : > { %v17394_v26 = vld [vmem:[#allocation7 + $0x2138] sm:$0xf0] }
 0x552   : > { %10362 = vmatpush.bf16.msrb.mxu1 %v16913_v21  ;;  %v16849_v21 = vor.u32 %v19459_v20, %v16848_v59  ;;  %v17397_v49 = vor.u32 %v19591_v14, %v17394_v26  ;;  %v19583_v59 = vld [vmem:[#allocation7 + $0x20dc] sm:$0xf]  ;;  %v17328_v14 = vld [vmem:[#allocation7 + $0x2098] sm:$0xf] }
 0x553   : > { %10381 = vmatpush.bf16.msra.mxu3 %v17009_v52  ;;  %v10062_v52 = vadd.f32 %v10061_v15, %v10048_v58  ;;  %v19443_v58 = vld [vmem:[#allocation7 + $0x1c74] sm:$0xf0]  ;;  %v17362_v20 = vld [vmem:[#allocation7 + $0x20f8] sm:$0xf0] }
 0x554   : > { %10423 = vmatpush.bf16.msra.mxu2 %v16757_v47  ;;  %10325 = vmatpush.bf16.msrb.mxu0 %v17005_v60  ;;  %v16816_v47 = vld [vmem:[#allocation7 + $0x1c98] sm:$0xf]  ;;  %v17365_v45 = vor.u32 %v19583_v59, %v17362_v20 }
 0x555   : > { %v19603_v60 = vld [vmem:[#allocation7 + $0x2174] sm:$0xf0]  ;;  %v10076_v46 = vadd.f32 %v10075_v19, %v10062_v52 }
 0x556   : > { %17647 = vmatmul.msk.bf16.vlgmr.msra.gmra.mxu3 %vm8665_vm10, %v21307_v44  ;;  %10363 = vmatpush.bf16.msrb.mxu1 %v16881_v50  ;;  %v17425_v7 = vor.u32 %v19603_v60, %v17424_v37  ;;  %v16784_v50 = vld [vmem:[#allocation7 + $0x1c58] sm:$0xf] }
 0x557   : > { %10444 = vmatpush.bf16.msrb.mxu3 %v17493_v38  ;;  %17650 = vmatmul.msk.bf16.vlgmr.msra.gmra.mxu2 %vm8665_vm10, %v21353_v1  ;;  %v19451_v38 = vld [vmem:[#allocation7 + $0x1cb4] sm:$0xf0]  ;;  %v21462_v17 = vadd.f32 %v10076_v46, %v21295_v34  ;;  %v16785_v24 = vor.u32 %v19443_v58, %v16784_v50  ;;  %v19567_v50 = vld [vmem:[#allocation7 + $0x205c] sm:$0xf] }
 0x558   : > { %10388 = vmatpush.bf16.msra.mxu0 %v17489_v53  ;;  %v16817_v32 = vor.u32 %v19451_v38, %v16816_v47  ;;  %v17392_v53 = vld [vmem:[#allocation7 + $0x2118] sm:$0xf]  ;;  %v19575_v47 = vld [vmem:[#allocation7 + $0x209c] sm:$0xf]  ;;  %v21464_v26 = vpop.f32.mrf.mxu1 }
 0x559   : > { %17643 = vmatmul.msk.bf16.vlgmr.msrb.gmra.mxu0 %vm8665_vm10, %v21307_v44  ;;  %v16752_v15 = vld [vmem:[#allocation7 + $0x1c18] sm:$0xf]  ;;  %v17330_v38 = vld [vmem:[#allocation7 + $0x20b8] sm:$0xf0] }
 0x55a   : > { %10364 = vmatpush.bf16.msrb.mxu1 %v16849_v21  ;;  %v19435_v21 = vld [vmem:[#allocation7 + $0x1c34] sm:$0xf0]  ;;  %v17333_v46 = vor.u32 %v19575_v47, %v17330_v38  ;;  %v17298_v58 = vld [vmem:[#allocation7 + $0x2078] sm:$0xf0] }
 0x55b   : > { %10445 = vmatpush.bf16.msrb.mxu3 %v17461_v57  ;;  %v19595_v57 = vld [vmem:[#allocation7 + $0x2134] sm:$0xf0]  ;;  %v16753_v37 = vor.u32 %v19435_v21, %v16752_v15  ;;  %v19535_v15 = vld [vmem:[#allocation7 + $0x1f5c] sm:$0xf] }
 0x55c   : > { %10389 = vmatpush.bf16.msra.mxu0 %v17457_v23  ;;  %v17393_v48 = vor.u32 %v19595_v57, %v17392_v53  ;;  %v17360_v34 = vld [vmem:[#allocation7 + $0x20d8] sm:$0xf]  ;;  %v19551_v23 = vld [vmem:[#allocation7 + $0x1fdc] sm:$0xf]  ;;  %v21466_v53 = vpop.f32.mrf.mxu3  ;;  %v21468_v57 = vpop.f32.mrf.mxu0 }
 0x55d   : > { %v19587_v52 = vld [vmem:[#allocation7 + $0x20f4] sm:$0xf0]  ;;  %v17170_v21 = vld [vmem:[#allocation7 + $0x1f78] sm:$0xf0] }
 0x55e   : > { %10365 = vmatpush.bf16.msrb.mxu1 %v16817_v32  ;;  %v17361_v19 = vor.u32 %v19587_v52, %v17360_v34  ;;  %v19579_v32 = vld [vmem:[#allocation7 + $0x20b4] sm:$0xf0]  ;;  %v21470_v34 = vpop.f32.mrf.mxu2  ;;  %v19559_v52 = vld [vmem:[#allocation7 + $0x201c] sm:$0xf]  ;;  %v17173_v47 = vor.u32 %v19535_v15, %v17170_v21 }
 0x55f   : > { %10446 = vmatpush.bf16.msrb.mxu3 %v17429_v63  ;;  %v17234_v63 = vld [vmem:[#allocation7 + $0x1ff8] sm:$0xf0]  ;;  %v17329_v59 = vor.u32 %v19579_v32, %v17328_v14 }
 0x560   : > { %10390 = vmatpush.bf16.msra.mxu0 %v17425_v7  ;;  %v17237_v60 = vor.u32 %v19551_v23, %v17234_v63  ;;  %v19543_v7 = vld [vmem:[#allocation7 + $0x1f9c] sm:$0xf] }
 0x561   : > { %v17266_v23 = vld [vmem:[#allocation7 + $0x2038] sm:$0xf0] }
 0x562   : > { %10366 = vmatpush.bf16.msrb.mxu1 %v16785_v24  ;;  %v17296_v24 = vld [vmem:[#allocation7 + $0x2058] sm:$0xf]  ;;  %v17269_v38 = vor.u32 %v19559_v52, %v17266_v23  ;;  %v17138_v14 = vld [vmem:[#allocation7 + $0x1f38] sm:$0xf0] }
 0x563   : > { %10447 = vmatpush.bf16.msrb.mxu3 %v17397_v49  ;;  %v17202_v49 = vld [vmem:[#allocation7 + $0x1fb8] sm:$0xf0] }
 0x564   : > { %10391 = vmatpush.bf16.msra.mxu0 %v17393_v48  ;;  %v17205_v20 = vor.u32 %v19543_v7, %v17202_v49  ;;  %v17301_v48 = vor.u32 %v19567_v50, %v17298_v58  ;;  %v17618_v32 = vld [vmem:[#allocation7 + $0x22f8] sm:$0xf0]  ;;  %v10089_v7 = vpop.f32.mrf.mxu3  ;;  %v10131_v49 = vpop.f32.mrf.mxu1 }
 0x565   : > { %v19639_v15 = vld [vmem:[#allocation7 + $0x229c] sm:$0xf] }
 0x566   : > { %10367 = vmatpush.bf16.msrb.mxu1 %v16753_v37  ;;  %v17264_v37 = vld [vmem:[#allocation7 + $0x2018] sm:$0xf]  ;;  %v10103_v50 = vpop.f32.mrf.mxu0  ;;  %v17586_v21 = vld [vmem:[#allocation7 + $0x22b8] sm:$0xf0] }
 0x567   : > { %10448 = vmatpush.bf16.msrb.mxu3 %v17365_v45  ;;  %v19571_v45 = vld [vmem:[#allocation7 + $0x2074] sm:$0xf0]  ;;  %v10104_v58 = vadd.f32 %v10103_v50, %v10089_v7  ;;  %v19503_v50 = vld [vmem:[#allocation7 + $0x1e5c] sm:$0xf] }
 0x568   : > { %10392 = vmatpush.bf16.msra.mxu0 %v17361_v19  ;;  %v17297_v63 = vor.u32 %v19571_v45, %v17296_v24  ;;  %v19563_v19 = vld [vmem:[#allocation7 + $0x2034] sm:$0xf0]  ;;  %v19519_v24 = vld [vmem:[#allocation7 + $0x1edc] sm:$0xf]  ;;  %v10117_v45 = vpop.f32.mrf.mxu2 }
 0x569   : > { %17646 = vmatmul.msk.bf16.vlgmr.msrb.gmra.mxu1 %vm8665_vm10, %v21353_v1  ;;  %v17265_v1 = vor.u32 %v19563_v19, %v17264_v37  ;;  %v10118_v52 = vadd.f32 %v10117_v45, %v10104_v58  ;;  %v19511_v37 = vld [vmem:[#allocation7 + $0x1e9c] sm:$0xf] }
 0x56a   : > { %10430 = vmatpush.bf16.msra.mxu1 %v17237_v60  ;;  %v19527_v60 = vld [vmem:[#allocation7 + $0x1f1c] sm:$0xf] }
 0x56b   : > { %10449 = vmatpush.bf16.msrb.mxu3 %v17333_v46  ;;  %v19647_v46 = vld [vmem:[#allocation7 + $0x22dc] sm:$0xf]  ;;  %v10132_v23 = vadd.f32 %v10131_v49, %v10118_v52 }
 0x56c   : > { %10393 = vmatpush.bf16.msra.mxu0 %v17329_v59  ;;  %v17141_v59 = vor.u32 %v19527_v60, %v17138_v14  ;;  %v19631_v19 = vld [vmem:[#allocation7 + $0x225c] sm:$0xf] }
 0x56d   : > { %v17554_v60 = vld [vmem:[#allocation7 + $0x2278] sm:$0xf0]  ;;  %v21477_v14 = vadd.f32 %v10132_v23, %v21313_v31 }
 0x56e   : > { %10431 = vmatpush.bf16.msra.mxu1 %v17205_v20  ;;  %v17621_v20 = vor.u32 %v19647_v46, %v17618_v32  ;;  %v21481_v46 = vpop.f32.mrf.mxu3  ;;  %v21483_v32 = vpop.f32.mrf.mxu1  ;;  %v17557_v49 = vor.u32 %v19631_v19, %v17554_v60  ;;  %v19623_v58 = vld [vmem:[#allocation7 + $0x221c] sm:$0xf] }
 0x56f   : > { %10450 = vmatpush.bf16.msrb.mxu3 %v17301_v48  ;;  %v17106_v48 = vld [vmem:[#allocation7 + $0x1ef8] sm:$0xf0]  ;;  %v21487_v23 = vpop.f32.mrf.mxu0 }
 0x570   : > { %10394 = vmatpush.bf16.msra.mxu0 %v17297_v63  ;;  %v17109_v63 = vor.u32 %v19519_v24, %v17106_v48  ;;  %v19495_v24 = vld [vmem:[#allocation7 + $0x1e1c] sm:$0xf] }
 0x571   : > { %v17010_v45 = vld [vmem:[#allocation7 + $0x1e38] sm:$0xf0] }
 0x572   : > { %10432 = vmatpush.bf16.msra.mxu1 %v17173_v47  ;;  %v17589_v47 = vor.u32 %v19639_v15, %v17586_v21  ;;  %v17013_v15 = vor.u32 %v19495_v24, %v17010_v45  ;;  %v21485_v21 = vpop.f32.mrf.mxu2 }
 0x573   : > { %10451 = vmatpush.bf16.msrb.mxu3 %v17269_v38  ;;  %v17074_v38 = vld [vmem:[#allocation7 + $0x1eb8] sm:$0xf0] }
 0x574   : > { %10395 = vmatpush.bf16.msra.mxu0 %v17265_v1  ;;  %v17077_v7 = vor.u32 %v19511_v37, %v17074_v38  ;;  %v17042_v1 = vld [vmem:[#allocation7 + $0x1e78] sm:$0xf0] }
 0x576   : > { %17652 = vmatmul.msk.bf16.vlgmr.msrb.gmra.mxu3 %vm8665_vm10, %v21337_v41  ;;  %10433 = vmatpush.bf16.msra.mxu1 %v17141_v59  ;;  %v17522_v59 = vld [vmem:[#allocation7 + $0x2238] sm:$0xf0]  ;;  %v10159_v48 = vpop.f32.mrf.mxu3 }
 0x577   : > { %17648 = vmatmul.msk.bf16.vlgmr.msra.gmra.mxu0 %vm8665_vm10, %v21337_v41  ;;  %v17525_v31 = vor.u32 %v19623_v58, %v17522_v59  ;;  %v10145_v41 = vpop.f32.mrf.mxu1 }
 0x578   : > { %10462 = vmatpush.bf16.msrb.mxu0 %v17621_v20  ;;  %v17045_v20 = vor.u32 %v19503_v50, %v17042_v1  ;;  %v10160_v52 = vadd.f32 %v10159_v48, %v10145_v41  ;;  %v19656_v50 = vld [vmem:[#allocation10 + $0x20] sm:$0xff]  ;;  %v6560_v48 = vadd.f32 %v21220_v18, %v21214_v35  ;;  %v19653_v41 = vld [vmem:[#allocation10 + $0x8] sm:$0xff] }
 0x57a   : > { %10434 = vmatpush.bf16.msra.mxu1 %v17109_v63  ;;  %v19659_v63 = vld [vmem:[#allocation10 + $0x38] sm:$0xff]  ;;  %v10187_v37 = vpop.f32.mrf.mxu2 }
 0x57c   : > { %10463 = vmatpush.bf16.msrb.mxu0 %v17589_v47  ;;  %v19658_v47 = vld [vmem:[#allocation10 + $0x30] sm:$0xff] }
 0x57e   : > { %10435 = vmatpush.bf16.msra.mxu1 %v17077_v7  ;;  %v19657_v7 = vld [vmem:[#allocation10 + $0x28] sm:$0xff] }
 0x57f   : > { %v21500_v58 = vpop.f32.mrf.mxu1 }
 0x580   : > { %10464 = vmatpush.bf16.msrb.mxu0 %v17557_v49 }
 0x582   : > { %10436 = vmatpush.bf16.msra.mxu1 %v17045_v20  ;;  %v21496_v1 = vpop.f32.mrf.mxu2  ;;  %v2878_v20 = vadd.f32 %v20902_v28, %v20896_v0  ;;  %v8391_v0 = vadd.f32 %v21372_v6, %v21366_v61 }
 0x584   : > { %10465 = vmatpush.bf16.msrb.mxu0 %v17525_v31  ;;  %v19654_v31 = vld [vmem:[#allocation10 + $0x10] sm:$0xff]  ;;  %v2892_v45 = vadd.f32 %v20900_v33, %v2878_v20  ;;  %v8405_v35 = vadd.f32 %v21370_v2, %v8391_v0  ;;  %v19652_v2 = vld [vmem:[#allocation10] sm:$0xff] }
 0x585   : > { %v21902_v0 = vld [vmem:[#allocation30_spill] sm:$0xff] }
 0x586   : > { %10437 = vmatpush.bf16.msra.mxu1 %v17013_v15  ;;  %v10173_v38 = vpop.f32.mrf.mxu0 }
 0x587   : > { %17653 = vmatmul.msk.bf16.vlgmr.msrb.gmra.mxu0 %vm2681_vm4, %v21324_v10  ;;  %v10174_v19 = vadd.f32 %v10173_v38, %v10160_v52  ;;  %v21498_v10 = vpop.f32.mrf.mxu3  ;;  %v21901_v38 = vperm.slane %v20969_v43, 3 }
 0x588   : > { %10760 = vmatpush.bf16.msra.mxu0 %v19659_v63 }
 0x589   : > { %17651 = vmatmul.msk.bf16.vlgmr.msra.gmra.mxu1 %vm8665_vm10, %v21307_v44  ;;  %v10188_v60 = vadd.f32 %v10187_v37, %v10174_v19  ;;  %v19655_v44 = vld [vmem:[#allocation10 + $0x18] sm:$0xff]  ;;  %v2906_v37 = vadd.f32 %v20898_v54, %v2892_v45 }
 0x58a   : > { %v10201_v24 = vpop.f32.mrf.mxu2 }
 0x58b   : > { %v21494_v49 = vadd.f32 %v10188_v60, %v21342_v11  ;;  %v4746_v11 = vadd.f32 %v21046_v25, %v21040_v8  ;;  %v6574_v8 = vadd.f32 %v21218_v16, %v6560_v48  ;;  %v3160_v19 = vadd.f32 %v21901_v38, %v2906_v37  ;;  %v19694_v48 = vld [vmem:[#allocation10 + $0x150] sm:$0xff]  ;;  %v21904_v37 = vld [vmem:[#allocation46_spill] sm:$0xff] }
 0x58c   : > { %10761 = vmatpush.bf16.msra.mxu0 %v19658_v47  ;;  %v8419_v16 = vadd.f32 %v21368_v4, %v8405_v35  ;;  %v19665_v4 = vld [vmem:[#allocation10 + $0x68] sm:$0xff]  ;;  %v19692_v35 = vld [vmem:[#allocation10 + $0x140] sm:$0xff] }
 0x58d   : > { %v4760_v63 = vadd.f32 %v21044_v39, %v4746_v11  ;;  %v6588_v39 = vadd.f32 %v21216_v51, %v6574_v8  ;;  %v19695_v11 = vld [vmem:[#allocation10 + $0x158] sm:$0xff]  ;;  %v19666_v51 = vld [vmem:[#allocation10 + $0x70] sm:$0xff]  ;;  %v21905_v8 = vld [vmem:[#allocation47_spill] sm:$0xff] }
 0x58e   : > { %v21502_v59 = vpop.f32.mrf.mxu0 }
 0x58f   : > { %v10229_v15 = vpop.f32.mrf.mxu3  ;;  %v4774_v33 = vadd.f32 %v21042_v56, %v4760_v63 }
 0x590   : > { %10762 = vmatpush.bf16.msra.mxu0 %v19657_v7 }
 0x591   : > { %v5011_v54 = vadd.f32 %v4774_v33, %v3160_v19  ;;  %v21907_v19 = vld [vmem:[#allocation44_spill] sm:$0xff] }
 0x592   : > { %v10203_v6 = vpop.f32.mrf.mxu2 }
 0x594   : > { %10763 = vmatpush.bf16.msra.mxu0 %v19656_v50 }
 0x596   : > { %v10215_v52 = vpop.f32.mrf.mxu1  ;;  %v10243_v47 = vpop.f32.mrf.mxu0 }
 0x597   : > { %v10216_v28 = vadd.f32 %v10215_v52, %v10201_v24  ;;  %v10231_v50 = vpop.f32.mrf.mxu3  ;;  %v19664_v52 = vld [vmem:[#allocation10 + $0x60] sm:$0xff] }
 0x598   : > { %10764 = vmatpush.bf16.msra.mxu0 %v19655_v44  ;;  %v6825_v44 = vadd.f32 %v6588_v39, %v5011_v54  ;;  %v21911_v54 = vld [vmem:[#allocation76_spill] sm:$0xff] }
 0x599   : > { %v10230_v25 = vadd.f32 %v10229_v15, %v10216_v28  ;;  %v2710_v15 = vadd.f32 %v20796_v30, %v20800_v5  ;;  %v21903_v28 = vld [vmem:[#allocation31_spill] sm:$0xff] }
 0x59a   : > { %v8656_v24 = vadd.f32 %v8419_v16, %v6825_v44  ;;  %v10271_v33 = vpop.f32.mrf.mxu2  ;;  %v21910_v5 = vld [vmem:[#allocation75_spill] sm:$0xff] }
 0x59b   : > { %v10244_v18 = vadd.f32 %v10243_v47, %v10230_v25  ;;  %v2724_v63 = vadd.f32 %v20832_v62, %v2710_v15  ;;  %v2934_v47 = vadd.f32 %v21903_v28, %v21902_v0  ;;  %v4578_v25 = vadd.f32 %v21905_v8, %v21904_v37  ;;  %v21918_v15 = vld [vmem:[#allocation29_spill] sm:$0xff] }
 0x59c   : > { %10765 = vmatpush.bf16.msra.mxu0 %v19654_v31  ;;  %v19667_v31 = vld [vmem:[#allocation10 + $0x78] sm:$0xff]  ;;  %v6392_v16 = vadd.f32 %v21911_v54, %v21910_v5 }
 0x59d   : > { %v21522_v61 = vadd.f32 %v10244_v18, %v21364_v42  ;;  %10773 = vmatpush.bf16.msrb.mxu2 %v19667_v31  ;;  %v21906_v18 = vld [vmem:[#allocation28_spill] sm:$0xff]  ;;  %v4592_v39 = vadd.f32 %v21907_v19, %v4578_v25  ;;  %v21919_v28 = vld [vmem:[#allocation45_spill] sm:$0xff]  ;;  %v21922_v19 = vld [vmem:[#allocation115_spill] sm:$0xff] }
 0x59e   : > { %v10217_v60 = vpop.f32.mrf.mxu1  ;;  %v10245_v20 = vpop.f32.mrf.mxu0  ;;  %v2948_v38 = vadd.f32 %v21906_v18, %v2934_v47  ;;  %v21920_v47 = vld [vmem:[#allocation85_spill] sm:$0xff]  ;;  %v21925_v5 = vld [vmem:[#allocation58_spill] sm:$0xff] }
 0x59f   : > { %v10218_v7 = vadd.f32 %v10217_v60, %v10203_v6  ;;  %v21908_v6 = vld [vmem:[#allocation59_spill] sm:$0xff]  ;;  %v21909_v60 = vld [vmem:[#allocation60_spill] sm:$0xff]  ;;  %v21921_v25 = vld [vmem:[#allocation101_spill] sm:$0xff] }
 0x5a0   : > { %10766 = vmatpush.bf16.msra.mxu0 %v19653_v41  ;;  %v19693_v41 = vld [vmem:[#allocation10 + $0x148] sm:$0xff]  ;;  %v4802_v30 = vadd.f32 %v21909_v60, %v21908_v6  ;;  %v2962_v0 = vadd.f32 %v21918_v15, %v2948_v38  ;;  %v21926_v54 = vld [vmem:[#allocation74_spill] sm:$0xff] }
 0x5a1   : > { %v10232_v56 = vadd.f32 %v10231_v50, %v10218_v7  ;;  %10774 = vmatpush.bf16.msrb.mxu2 %v19666_v51  ;;  %v19663_v7 = vld [vmem:[#allocation10 + $0x58] sm:$0xff]  ;;  %v21923_v6 = vld [vmem:[#allocation116_spill] sm:$0xff] }
 0x5a2   : > { %v21912_v50 = vld [vmem:[#allocation21_spill] sm:$0xff]  ;;  %v8447_v60 = vadd.f32 %v21923_v6, %v21922_v19 }
 0x5a3   : > { %v10246_v45 = vadd.f32 %v10245_v20, %v10232_v56  ;;  %v2738_v44 = vadd.f32 %v21912_v50, %v2724_v63  ;;  %v21913_v56 = vld [vmem:[#allocation57_spill] sm:$0xff]  ;;  %v10299_v63 = vpop.f32.mrf.mxu3 }
 0x5a4   : > { %10767 = vmatpush.bf16.msra.mxu0 %v19652_v2  ;;  %v4816_v20 = vadd.f32 %v21913_v56, %v4802_v30  ;;  %v21914_v2 = vld [vmem:[#allocation73_spill] sm:$0xff] }
 0x5a5   : > { %v21525_v42 = vadd.f32 %v10246_v45, %v8656_v24  ;;  %10775 = vmatpush.bf16.msrb.mxu2 %v19665_v4  ;;  %v6406_v31 = vadd.f32 %v21914_v2, %v6392_v16  ;;  %v21916_v24 = vld [vmem:[#allocation88_spill] sm:$0xff]  ;;  %v19691_v51 = vld [vmem:[#allocation10 + $0x138] sm:$0xff] }
 0x5a6   : > { %v21927_v50 = vld [vmem:[#allocation113_spill] sm:$0xff] }
 0x5a7   : > { %v6420_v16 = vadd.f32 %v21926_v54, %v6406_v31  ;;  %v8461_v56 = vadd.f32 %v21927_v50, %v8447_v60  ;;  %v19660_v54 = vld [vmem:[#allocation10 + $0x40] sm:$0xff]  ;;  %v19731_v50 = vld [vmem:[#allocation10 + $0x278] sm:$0xff] }
 0x5a8   : > { %11065 = vmatpush.bf16.msrb.mxu0 %v19695_v11  ;;  %v21915_v11 = vld [vmem:[#allocation87_spill] sm:$0xff] }
 0x5a9   : > { %10776 = vmatpush.bf16.msrb.mxu2 %v19664_v52  ;;  %v6616_v45 = vadd.f32 %v21916_v24, %v21915_v11  ;;  %v4606_v52 = vadd.f32 %v21919_v28, %v4592_v39  ;;  %v4830_v39 = vadd.f32 %v21925_v5, %v4816_v20  ;;  %v21928_v24 = vld [vmem:[#allocation56_spill] sm:$0xff] }
 0x5aa   : > { %v21932_v20 = vld [vmem:[#allocation112_spill] sm:$0xff] }
 0x5ab   : > { %v6630_v37 = vadd.f32 %v21920_v47, %v6616_v45  ;;  %v21929_v45 = vperm.slane %v21928_v24, 4 }
 0x5ac   : > { %11066 = vmatpush.bf16.msrb.mxu0 %v19694_v48  ;;  %v21917_v48 = vld [vmem:[#allocation103_spill] sm:$0xff] }
 0x5ad   : > { %v8223_v4 = vadd.f32 %v21917_v48, %v21301_v27  ;;  %10777 = vmatpush.bf16.msrb.mxu2 %v19663_v7  ;;  %v19662_v27 = vld [vmem:[#allocation10 + $0x50] sm:$0xff]  ;;  %v10273_v7 = vpop.f32.mrf.mxu2 }
 0x5af   : > { %v8237_v18 = vadd.f32 %v21921_v25, %v8223_v4  ;;  %v21930_v4 = vld [vmem:[#allocation86_spill] sm:$0xff] }
 0x5b0   : > { %11067 = vmatpush.bf16.msrb.mxu0 %v19693_v41 }
 0x5b1   : > { %10778 = vmatpush.bf16.msrb.mxu2 %v19662_v27 }
 0x5b4   : > { %v10257_v62 = vpop.f32.mrf.mxu0  ;;  %11068 = vmatpush.bf16.msrb.mxu0 %v19692_v35  ;;  %v10050_v35 = vadd.f32 %v21470_v34, %v21468_v57  ;;  %v3161_v57 = vadd.f32 %v21929_v45, %v2962_v0 }
 0x5b5   : > { %v10272_v41 = vadd.f32 %v10271_v33, %v10257_v62  ;;  %v21924_v33 = vperm.slane %v20969_v43, 0  ;;  %v19690_v62 = vld [vmem:[#allocation10 + $0x130] sm:$0xff] }
 0x5b6   : > { %v10285_v8 = vpop.f32.mrf.mxu1  ;;  %v10064_v2 = vadd.f32 %v21464_v26, %v10050_v35  ;;  %v19661_v35 = vld [vmem:[#allocation10 + $0x48] sm:$0xff] }
 0x5b7   : > { %v10286_v30 = vadd.f32 %v10285_v8, %v10272_v41  ;;  %v3157_v38 = vadd.f32 %v21924_v33, %v2738_v44  ;;  %v6644_v41 = vadd.f32 %v21930_v4, %v6630_v37  ;;  %v21931_v44 = vld [vmem:[#allocation102_spill] sm:$0xff]  ;;  %10779 = vmatpush.bf16.msrb.mxu2 %v19661_v35  ;;  %v21935_v4 = vld [vmem:[#allocation20_spill] sm:$0xff] }
 0x5b8   : > { %11069 = vmatpush.bf16.msrb.mxu0 %v19691_v51  ;;  %v8251_v15 = vadd.f32 %v21931_v44, %v8237_v18  ;;  %v5012_v51 = vadd.f32 %v4830_v39, %v3161_v57  ;;  %v21933_v8 = vld [vmem:[#allocation114_spill] sm:$0xff]  ;;  %v10078_v0 = vadd.f32 %v21466_v53, %v10064_v2  ;;  %v10301_v18 = vpop.f32.mrf.mxu3  ;;  %v19674_v57 = vld [vmem:[#allocation10 + $0xb0] sm:$0xff] }
 0x5b9   : > { %v10300_v11 = vadd.f32 %v10299_v63, %v10286_v30  ;;  %v5008_v34 = vadd.f32 %v4606_v52, %v3157_v38  ;;  %v8475_v26 = vadd.f32 %v21933_v8, %v8461_v56  ;;  %v10488_v63 = vmax.f32 %v21462_v17, 0.0  ;;  %v19689_v30 = vld [vmem:[#allocation10 + $0x128] sm:$0xff]  ;;  %v19675_v33 = vld [vmem:[#allocation10 + $0xb8] sm:$0xff]  ;;  %v19688_v17 = vld [vmem:[#allocation10 + $0x120] sm:$0xff] }
 0x5ba   : > { %v6826_v19 = vadd.f32 %v6644_v41, %v5012_v51  ;;  %10786 = vmatpush.bf16.msrb.mxu1 %v19675_v33  ;;  %v21936_v44 = vld [vmem:[#allocation32_spill] sm:$0xff]  ;;  %v21940_v8 = vld [vmem:[#allocation23_spill] sm:$0xff]  ;;  %v19679_v35 = vld [vmem:[#allocation10 + $0xd8] sm:$0xff] }
 0x5bb   : > { %v10476_v28 = vadd.f32 %v10300_v11, %v21932_v20  ;;  %v6822_v47 = vadd.f32 %v6420_v16, %v5008_v34  ;;  %10780 = vmatpush.bf16.msrb.mxu2 %v19660_v54  ;;  %v19702_v34 = vld [vmem:[#allocation10 + $0x190] sm:$0xff]  ;;  %10803 = vmatpush.bf16.msra.mxu3 %v19679_v35  ;;  %v21959_v35 = vld [vmem:[#allocation62_spill] sm:$0xff] }
 0x5bc   : > { %v10259_v48 = vpop.f32.mrf.mxu0  ;;  %11070 = vmatpush.bf16.msrb.mxu0 %v19690_v62  ;;  %v8657_v27 = vadd.f32 %v8475_v26, %v6826_v19  ;;  %v19703_v62 = vld [vmem:[#allocation10 + $0x198] sm:$0xff]  ;;  %v21944_v19 = vld [vmem:[#allocation80_spill] sm:$0xff] }
 0x5bd   : > { %v10274_v31 = vadd.f32 %v10273_v7, %v10259_v48  ;;  %v10492_v52 = vmax.f32 %v10476_v28, 0.0  ;;  %v8653_v6 = vadd.f32 %v8251_v15, %v6822_v47  ;;  %v19730_v7 = vld [vmem:[#allocation10 + $0x270] sm:$0xff]  ;;  %v21934_v48 = vld [vmem:[#allocation19_spill] sm:$0xff] }
 0x5be   : > { %v10287_v25 = vpop.f32.mrf.mxu1  ;;  %v2766_v41 = vadd.f32 %v21935_v4, %v21934_v48  ;;  %v21937_v15 = vld [vmem:[#allocation35_spill] sm:$0xff]  ;;  %v21938_v28 = vld [vmem:[#allocation48_spill] sm:$0xff]  ;;  %10787 = vmatpush.bf16.msrb.mxu1 %v19674_v57 }
 0x5bf   : > { %v10504_v37 = vmax.f32 %v10488_v63, %v10492_v52  ;;  %v10288_v60 = vadd.f32 %v10287_v25, %v10274_v31  ;;  %v10480_v38 = vadd.f32 %v10078_v0, %v8653_v6  ;;  %11078 = vmatpush.bf16.msra.mxu2 %v19703_v62  ;;  %v2990_v20 = vadd.f32 %v21937_v15, %v21936_v44  ;;  %v21939_v31 = vld [vmem:[#allocation51_spill] sm:$0xff]  ;;  %v21941_v63 = vld [vmem:[#allocation61_spill] sm:$0xff]  ;;  %v21942_v0 = vld [vmem:[#allocation64_spill] sm:$0xff]  ;;  %v10341_v44 = vpop.f32.mrf.mxu2 }
 0x5c0   : > { %11071 = vmatpush.bf16.msrb.mxu0 %v19689_v30  ;;  %v4634_v51 = vadd.f32 %v21939_v31, %v21938_v28  ;;  %v19673_v47 = vld [vmem:[#allocation10 + $0xa8] sm:$0xff]  ;;  %v2780_v26 = vadd.f32 %v21940_v8, %v2766_v41  ;;  %v4858_v52 = vadd.f32 %v21942_v0, %v21941_v63  ;;  %v21943_v25 = vld [vmem:[#allocation77_spill] sm:$0xff]  ;;  %v21945_v30 = vld [vmem:[#allocation34_spill] sm:$0xff]  ;;  %v8503_v41 = vadd.f32 %v21414_v29, %v21404_v55 }
 0x5c1   : > { %v10517_v5 = vrot.slane %v10504_v37, 1  ;;  %v10302_v39 = vadd.f32 %v10301_v18, %v10288_v60  ;;  %v10496_v56 = vmax.f32 %v10480_v38, 0.0  ;;  %v6448_v6 = vadd.f32 %v21944_v19, %v21943_v25  ;;  %v10313_v60 = vpop.f32.mrf.mxu3  ;;  %v19729_v18 = vld [vmem:[#allocation10 + $0x268] sm:$0xff]  ;;  %v21957_v25 = vld [vmem:[#allocation106_spill] sm:$0xff] }
 0x5c2   : > { %v3004_v33 = vadd.f32 %v21945_v30, %v2990_v20  ;;  %10788 = vmatpush.bf16.msrb.mxu1 %v19673_v47  ;;  %v21953_v48 = vld [vmem:[#allocation79_spill] sm:$0xff]  ;;  %v10106_v28 = vadd.f32 %v21487_v23, %v21481_v46  ;;  %v21954_v47 = vld [vmem:[#allocation33_spill] sm:$0xff]  ;;  %v21958_v29 = vperm.slane %v20969_v43, 1  ;;  %v21960_v23 = vld [vmem:[#allocation78_spill] sm:$0xff] }
 0x5c3   : > { %v10525_v16 = vmax.f32 %v10504_v37, %v10517_v5  ;;  %v10484_v53 = vadd.f32 %v10302_v39, %v8657_v27  ;;  %11079 = vmatpush.bf16.msra.mxu2 %v19702_v34  ;;  %v19701_v37 = vld [vmem:[#allocation10 + $0x188] sm:$0xff]  ;;  %v21946_v27 = vld [vmem:[#allocation50_spill] sm:$0xff]  ;;  %v21947_v5 = vld [vmem:[#allocation89_spill] sm:$0xff]  ;;  %v6462_v4 = vadd.f32 %v21953_v48, %v6448_v6 }
 0x5c4   : > { %11072 = vmatpush.bf16.msrb.mxu0 %v19688_v17  ;;  %v4648_v38 = vadd.f32 %v21946_v27, %v4634_v51  ;;  %v21948_v39 = vld [vmem:[#allocation92_spill] sm:$0xff]  ;;  %v21952_v34 = vld [vmem:[#allocation63_spill] sm:$0xff]  ;;  %v3018_v8 = vadd.f32 %v21954_v47, %v3004_v33  ;;  %v19671_v55 = vld [vmem:[#allocation10 + $0x98] sm:$0xff]  ;;  %v10120_v33 = vadd.f32 %v21485_v21, %v10106_v28 }
 0x5c5   : > { %v21569_v2 = vpack.c.bf16 %v10525_v16, %v10525_v16  ;;  %v10500_v11 = vmax.f32 %v10484_v53, 0.0  ;;  %v6672_v54 = vadd.f32 %v21948_v39, %v21947_v5  ;;  %v21949_v17 = vld [vmem:[#allocation104_spill] sm:$0xff]  ;;  %v21950_v16 = vld [vmem:[#allocation107_spill] sm:$0xff]  ;;  %v19699_v30 = vld [vmem:[#allocation10 + $0x178] sm:$0xff]  ;;  %v21961_v5 = vperm.slane %v21928_v24, 5 }
 0x5c6   : > { %v8279_v53 = vadd.f32 %v21950_v16, %v21949_v17  ;;  %v10355_v62 = vpop.f32.mrf.mxu1  ;;  %v19700_v20 = vld [vmem:[#allocation10 + $0x180] sm:$0xff] }
 0x5c7   : > { %v21571_v45 = vmax.f32 %v10496_v56, %v10500_v11  ;;  %10768 = vmatmul.bf16.vlgmr.msra.gmra.mxu0 %v21569_v2  ;;  %v19678_v56 = vld [vmem:[#allocation10 + $0xd0] sm:$0xff]  ;;  %v21951_v11 = vld [vmem:[#allocation22_spill] sm:$0xff]  ;;  %11080 = vmatpush.bf16.msra.mxu2 %v19701_v37  ;;  %v21956_v0 = vld [vmem:[#allocation91_spill] sm:$0xff]  ;;  %v3162_v39 = vadd.f32 %v21961_v5, %v3018_v8 }
 0x5c8   : > { %11366 = vmatpush.bf16.msra.mxu0 %v19731_v50  ;;  %v19672_v50 = vld [vmem:[#allocation10 + $0xa0] sm:$0xff]  ;;  %v2794_v57 = vadd.f32 %v21951_v11, %v2780_v26  ;;  %v21955_v26 = vld [vmem:[#allocation49_spill] sm:$0xff]  ;;  %v8293_v19 = vadd.f32 %v21957_v25, %v8279_v53  ;;  %10804 = vmatpush.bf16.msra.mxu3 %v19678_v56 }
 0x5c9   : > { %v19728_v51 = vld [vmem:[#allocation10 + $0x260] sm:$0xff]  ;;  %v4662_v63 = vadd.f32 %v21955_v26, %v4648_v38  ;;  %10789 = vmatpush.bf16.msrb.mxu1 %v19672_v50  ;;  %v19727_v38 = vld [vmem:[#allocation10 + $0x258] sm:$0xff]  ;;  %v10315_v56 = vpop.f32.mrf.mxu3 }
 0x5ca   : > { %v3158_v37 = vadd.f32 %v21958_v29, %v2794_v57  ;;  %v21962_v17 = vld [vmem:[#allocation90_spill] sm:$0xff]  ;;  %v21963_v53 = vld [vmem:[#allocation105_spill] sm:$0xff] }
 0x5cb   : > { %11081 = vmatpush.bf16.msra.mxu2 %v19700_v20  ;;  %v8307_v50 = vadd.f32 %v21963_v53, %v8293_v19  ;;  %v21964_v11 = vld [vmem:[#allocation117_spill] sm:$0xff]  ;;  %v21965_v48 = vld [vmem:[#allocation118_spill] sm:$0xff] }
 0x5cc   : > { %11367 = vmatpush.bf16.msra.mxu0 %v19730_v7  ;;  %v4872_v7 = vadd.f32 %v21952_v34, %v4858_v52  ;;  %v6686_v52 = vadd.f32 %v21956_v0, %v6672_v54  ;;  %v5009_v54 = vadd.f32 %v4662_v63, %v3158_v37  ;;  %v19669_v0 = vld [vmem:[#allocation10 + $0x88] sm:$0xff]  ;;  %v19724_v5 = vld [vmem:[#allocation10 + $0x240] sm:$0xff]  ;;  %v19687_v53 = vld [vmem:[#allocation10 + $0x118] sm:$0xff] }
 0x5cd   : > { %10790 = vmatpush.bf16.msrb.mxu1 %v19671_v55  ;;  %v19677_v55 = vld [vmem:[#allocation10 + $0xc8] sm:$0xff] }
 0x5ce   : > { %v4886_v46 = vadd.f32 %v21959_v35, %v4872_v7  ;;  %v6700_v16 = vadd.f32 %v21962_v17, %v6686_v52  ;;  %10805 = vmatpush.bf16.msra.mxu3 %v19677_v55  ;;  %v19733_v55 = vld [vmem:[#allocation10 + $0x288] sm:$0xff] }
 0x5cf   : > { %11082 = vmatpush.bf16.msra.mxu2 %v19699_v30 }
 0x5d0   : > { %11368 = vmatpush.bf16.msra.mxu0 %v19729_v18  ;;  %v8517_v18 = vadd.f32 %v21410_v3, %v8503_v41  ;;  %v19670_v3 = vld [vmem:[#allocation10 + $0x90] sm:$0xff]  ;;  %v5013_v34 = vadd.f32 %v4886_v46, %v3162_v39  ;;  %v10489_v41 = vmax.f32 %v21477_v14, 0.0  ;;  %v19697_v14 = vld [vmem:[#allocation10 + $0x168] sm:$0xff]  ;;  %v19668_v46 = vld [vmem:[#allocation10 + $0x80] sm:$0xff] }
 0x5d1   : > { %10791 = vmatpush.bf16.msrb.mxu1 %v19670_v3  ;;  %v19735_v39 = vld [vmem:[#allocation10 + $0x298] sm:$0xff]  ;;  %v19734_v3 = vld [vmem:[#allocation10 + $0x290] sm:$0xff] }
 0x5d2   : > { %v8531_v21 = vadd.f32 %v21965_v48, %v8517_v18  ;;  %v6827_v47 = vadd.f32 %v6700_v16, %v5013_v34  ;;  %v19763_v16 = vld [vmem:[#allocation10 + $0x378] sm:$0xff]  ;;  %v21968_v34 = vld [vmem:[#allocation27_spill] sm:$0xff] }
 0x5d3   : > { %v21969_v48 = vld [vmem:[#allocation37_spill] sm:$0xff] }
 0x5d4   : > { %11369 = vmatpush.bf16.msra.mxu0 %v19728_v51  ;;  %v10343_v51 = vpop.f32.mrf.mxu2  ;;  %v8658_v52 = vadd.f32 %v8531_v21, %v6827_v47  ;;  %v21970_v21 = vld [vmem:[#allocation38_spill] sm:$0xff] }
 0x5d5   : > { %10792 = vmatpush.bf16.msrb.mxu1 %v19669_v0  ;;  %v21975_v0 = vld [vmem:[#allocation66_spill] sm:$0xff] }
 0x5d6   : > { %v10327_v15 = vpop.f32.mrf.mxu0 }
 0x5d7   : > { %v10328_v31 = vadd.f32 %v10327_v15, %v10313_v60  ;;  %v6476_v60 = vadd.f32 %v21960_v23, %v6462_v4  ;;  %v19698_v4 = vld [vmem:[#allocation10 + $0x170] sm:$0xff]  ;;  %v10357_v15 = vpop.f32.mrf.mxu1  ;;  %v19707_v23 = vld [vmem:[#allocation10 + $0x1b8] sm:$0xff] }
 0x5d8   : > { %11370 = vmatpush.bf16.msra.mxu0 %v19727_v38  ;;  %11083 = vmatpush.bf16.msra.mxu2 %v19698_v4  ;;  %v19676_v38 = vld [vmem:[#allocation10 + $0xc0] sm:$0xff]  ;;  %v19762_v4 = vld [vmem:[#allocation10 + $0x370] sm:$0xff] }
 0x5d9   : > { %v10342_v6 = vadd.f32 %v10341_v44, %v10328_v31  ;;  %v6823_v7 = vadd.f32 %v6476_v60, %v5009_v54  ;;  %v10134_v44 = vadd.f32 %v21483_v32, %v10120_v33  ;;  %v19726_v31 = vld [vmem:[#allocation10 + $0x250] sm:$0xff]  ;;  %v19725_v32 = vld [vmem:[#allocation10 + $0x248] sm:$0xff]  ;;  %v10383_v37 = vpop.f32.mrf.mxu3  ;;  %v19696_v60 = vld [vmem:[#allocation10 + $0x160] sm:$0xff]  ;;  %10793 = vmatpush.bf16.msrb.mxu1 %v19668_v46  ;;  %10806 = vmatpush.bf16.msra.mxu3 %v19676_v38 }
 0x5da   : > { %v21981_v38 = vld [vmem:[#allocation84_spill] sm:$0xff] }
 0x5db   : > { %v10356_v27 = vadd.f32 %v10355_v62, %v10342_v6  ;;  %v8654_v8 = vadd.f32 %v8307_v50, %v6823_v7  ;;  %v21966_v50 = vld [vmem:[#allocation24_spill] sm:$0xff] }
 0x5dc   : > { %11371 = vmatpush.bf16.msra.mxu0 %v19726_v31  ;;  %11084 = vmatpush.bf16.msra.mxu2 %v19697_v14  ;;  %v21973_v31 = vld [vmem:[#allocation39_spill] sm:$0xff]  ;;  %v10411_v46 = vpop.f32.mrf.mxu2 }
 0x5dd   : > { %v10477_v57 = vadd.f32 %v10356_v27, %v21964_v11  ;;  %v10481_v25 = vadd.f32 %v10134_v44, %v8654_v8  ;;  %11095 = vmatpush.bf16.msra.mxu1 %v19707_v23  ;;  %11052 = vmatpush.bf16.msrb.mxu3 %v19687_v53  ;;  %v21971_v44 = vld [vmem:[#allocation53_spill] sm:$0xff]  ;;  %v19761_v23 = vld [vmem:[#allocation10 + $0x368] sm:$0xff] }
 0x5de   : > { %v10329_v62 = vpop.f32.mrf.mxu0  ;;  %v21984_v53 = vld [vmem:[#allocation109_spill] sm:$0xff] }
 0x5df   : > { %v10493_v20 = vmax.f32 %v10477_v57, 0.0  ;;  %v10330_v28 = vadd.f32 %v10329_v62, %v10315_v56  ;;  %v10497_v18 = vmax.f32 %v10481_v25, 0.0  ;;  %v21967_v56 = vld [vmem:[#allocation26_spill] sm:$0xff]  ;;  %v19706_v57 = vld [vmem:[#allocation10 + $0x1b0] sm:$0xff]  ;;  %v3046_v62 = vadd.f32 %v21970_v21, %v21969_v48 }
 0x5e0   : > { %11372 = vmatpush.bf16.msra.mxu0 %v19725_v32  ;;  %11085 = vmatpush.bf16.msra.mxu2 %v19696_v60  ;;  %v2822_v11 = vadd.f32 %v21967_v56, %v21966_v50  ;;  %v19685_v60 = vld [vmem:[#allocation10 + $0x108] sm:$0xff]  ;;  %v21985_v50 = vld [vmem:[#allocation110_spill] sm:$0xff] }
 0x5e1   : > { %v10505_v26 = vmax.f32 %v10489_v41, %v10493_v20  ;;  %v10344_v63 = vadd.f32 %v10343_v51, %v10330_v28  ;;  %v19686_v41 = vld [vmem:[#allocation10 + $0x110] sm:$0xff]  ;;  %11096 = vmatpush.bf16.msra.mxu1 %v19706_v57  ;;  %v19705_v28 = vld [vmem:[#allocation10 + $0x1a8] sm:$0xff]  ;;  %v3060_v51 = vadd.f32 %v21973_v31, %v3046_v62  ;;  %v10385_v47 = vpop.f32.mrf.mxu3  ;;  %v8335_v56 = vadd.f32 %v21985_v50, %v21984_v53 }
 0x5e2   : > { %v2836_v7 = vadd.f32 %v21968_v34, %v2822_v11  ;;  %11053 = vmatpush.bf16.msrb.mxu3 %v19686_v41  ;;  %v19704_v11 = vld [vmem:[#allocation10 + $0x1a0] sm:$0xff]  ;;  %v21988_v21 = vld [vmem:[#allocation96_spill] sm:$0xff] }
 0x5e3   : > { %v10518_v19 = vrot.slane %v10505_v26, 1  ;;  %v10358_v6 = vadd.f32 %v10357_v15, %v10344_v63  ;;  %v21972_v15 = vld [vmem:[#allocation54_spill] sm:$0xff]  ;;  %v21998_v50 = vld [vmem:[#allocation40_spill] sm:$0xff] }
 0x5e4   : > { %11373 = vmatpush.bf16.msra.mxu0 %v19724_v5  ;;  %v4690_v20 = vadd.f32 %v21972_v15, %v21971_v44  ;;  %v8559_v15 = vadd.f32 %v21430_v22, %v21428_v12 }
 0x5e5   : > { %v10526_v29 = vmax.f32 %v10505_v26, %v10518_v19  ;;  %v10485_v35 = vadd.f32 %v10358_v6, %v8658_v52  ;;  %v21974_v26 = vld [vmem:[#allocation55_spill] sm:$0xff]  ;;  %v21977_v19 = vld [vmem:[#allocation82_spill] sm:$0xff]  ;;  %11097 = vmatpush.bf16.msra.mxu1 %v19705_v28  ;;  %v21991_v28 = vld [vmem:[#allocation65_spill] sm:$0xff] }
 0x5e6   : > { %v10369_v27 = vpop.f32.mrf.mxu1  ;;  %v4704_v63 = vadd.f32 %v21974_v26, %v4690_v20  ;;  %v21976_v52 = vld [vmem:[#allocation67_spill] sm:$0xff]  ;;  %v10162_v20 = vadd.f32 %v21498_v10, %v21500_v58  ;;  %11054 = vmatpush.bf16.msrb.mxu3 %v19685_v60  ;;  %v21993_v10 = vperm.slane %v21928_v24, 6  ;;  %v21997_v60 = vld [vmem:[#allocation120_spill] sm:$0xff] }
 0x5e7   : > { %v21616_v30 = vpack.c.bf16 %v10526_v29, %v10526_v29  ;;  %v10501_v33 = vmax.f32 %v10485_v35, 0.0  ;;  %v4914_v25 = vadd.f32 %v21976_v52, %v21975_v0  ;;  %v21978_v6 = vld [vmem:[#allocation83_spill] sm:$0xff]  ;;  %v21979_v29 = vld [vmem:[#allocation25_spill] sm:$0xff]  ;;  %v10384_v57 = vadd.f32 %v10383_v37, %v10369_v27 }
 0x5e8   : > { %v6504_v14 = vadd.f32 %v21978_v6, %v21977_v19  ;;  %v2850_v35 = vadd.f32 %v21979_v29, %v2836_v7  ;;  %v21987_v7 = vld [vmem:[#allocation52_spill] sm:$0xff]  ;;  %v21990_v37 = vperm.slane %v20969_v43, 2  ;;  %v19732_v26 = vld [vmem:[#allocation10 + $0x280] sm:$0xff]  ;;  %v8573_v0 = vadd.f32 %v21432_v13, %v8559_v15  ;;  %v21994_v43 = vld [vmem:[#allocation93_spill] sm:$0xff] }
 0x5e9   : > { %v21618_v54 = vmax.f32 %v10497_v18, %v10501_v33  ;;  %10781 = vmatmul.bf16.vlgmr.msrb.gmra.mxu2 %v21616_v30  ;;  %v10875_v17 = vrot.slane %v21616_v30, 1  ;;  %v21980_v18 = vld [vmem:[#allocation68_spill] sm:$0xff]  ;;  %v4718_v48 = vadd.f32 %v21987_v7, %v4704_v63  ;;  %11098 = vmatpush.bf16.msra.mxu1 %v19704_v11  ;;  %v19760_v63 = vld [vmem:[#allocation10 + $0x360] sm:$0xff]  ;;  %v10176_v12 = vadd.f32 %v21502_v59, %v10162_v20 }
 0x5ea   : > { %11383 = vmatpush.bf16.msrb.mxu2 %v19735_v39  ;;  %v4928_v33 = vadd.f32 %v21980_v18, %v4914_v25  ;;  %v6518_v5 = vadd.f32 %v21981_v38, %v6504_v14  ;;  %v21982_v39 = vld [vmem:[#allocation94_spill] sm:$0xff]  ;;  %v3159_v27 = vadd.f32 %v21990_v37, %v2850_v35  ;;  %v21995_v6 = vld [vmem:[#allocation108_spill] sm:$0xff]  ;;  %v8587_v59 = vadd.f32 %v21997_v60, %v8573_v0 }
 0x5eb   : > { %11073 = vmatmul.bf16.vlgmr.msrb.gmra.mxu0 %v10875_v17  ;;  %v21983_v17 = vld [vmem:[#allocation95_spill] sm:$0xff]  ;;  %v19683_v35 = vld [vmem:[#allocation10 + $0xf8] sm:$0xff]  ;;  %v10190_v18 = vadd.f32 %v21496_v1, %v10176_v12  ;;  %v19742_v60 = vld [vmem:[#allocation10 + $0x2d0] sm:$0xff] }
 0x5ec   : > { %11671 = vmatpush.bf16.msrb.mxu0 %v19763_v16  ;;  %v6728_v16 = vadd.f32 %v21983_v17, %v21982_v39  ;;  %v19684_v52 = vld [vmem:[#allocation10 + $0x100] sm:$0xff]  ;;  %v5010_v25 = vadd.f32 %v4718_v48, %v3159_v27  ;;  %v19682_v48 = vld [vmem:[#allocation10 + $0xf0] sm:$0xff] }
 0x5ed   : > { %11055 = vmatpush.bf16.msrb.mxu3 %v19684_v52  ;;  %v22002_v15 = vld [vmem:[#allocation42_spill] sm:$0xff] }
 0x5ee   : > { %v10371_v8 = vpop.f32.mrf.mxu1  ;;  %11384 = vmatpush.bf16.msrb.mxu2 %v19734_v3  ;;  %v21986_v3 = vld [vmem:[#allocation36_spill] sm:$0xff]  ;;  %v6742_v62 = vadd.f32 %v21988_v21, %v6728_v16  ;;  %v22000_v21 = vld [vmem:[#allocation69_spill] sm:$0xff] }
 0x5ef   : > { %v10386_v32 = vadd.f32 %v10385_v47, %v10371_v8  ;;  %v3074_v34 = vadd.f32 %v21986_v3, %v3060_v51  ;;  %v4942_v51 = vadd.f32 %v21991_v28, %v4928_v33  ;;  %v21992_v47 = vld [vmem:[#allocation81_spill] sm:$0xff]  ;;  %v10413_v33 = vpop.f32.mrf.mxu2 }
 0x5f0   : > { %11672 = vmatpush.bf16.msrb.mxu0 %v19762_v4  ;;  %v21989_v4 = vld [vmem:[#allocation111_spill] sm:$0xff]  ;;  %v6532_v8 = vadd.f32 %v21992_v47, %v6518_v5  ;;  %v6756_v19 = vadd.f32 %v21994_v43, %v6742_v62  ;;  %v22003_v28 = vld [vmem:[#allocation97_spill] sm:$0xff] }
 0x5f1   : > { %v8349_v41 = vadd.f32 %v21989_v4, %v8335_v56  ;;  %v3163_v58 = vadd.f32 %v21993_v10, %v3074_v34  ;;  %11056 = vmatpush.bf16.msrb.mxu3 %v19683_v35  ;;  %v21999_v56 = vld [vmem:[#allocation43_spill] sm:$0xff] }
 0x5f2   : > { %11385 = vmatpush.bf16.msrb.mxu2 %v19733_v55  ;;  %v21996_v55 = vld [vmem:[#allocation119_spill] sm:$0xff]  ;;  %v6824_v13 = vadd.f32 %v6532_v8, %v5010_v25  ;;  %v3102_v11 = vadd.f32 %v21999_v56, %v21998_v50  ;;  %v19743_v8 = vld [vmem:[#allocation10 + $0x2d8] sm:$0xff]  ;;  %v8615_v25 = vadd.f32 %v21451_v9, %v21445_v40 }
 0x5f3   : > { %v8363_v14 = vadd.f32 %v21995_v6, %v8349_v41  ;;  %v19715_v41 = vld [vmem:[#allocation10 + $0x1f8] sm:$0xff]  ;;  %v19680_v6 = vld [vmem:[#allocation10 + $0xe0] sm:$0xff]  ;;  %v19741_v50 = vld [vmem:[#allocation10 + $0x2c8] sm:$0xff] }
 0x5f4   : > { %v10397_v44 = vpop.f32.mrf.mxu0  ;;  %11673 = vmatpush.bf16.msrb.mxu0 %v19761_v23  ;;  %v5014_v23 = vadd.f32 %v4942_v51, %v3163_v58  ;;  %v3116_v20 = vadd.f32 %v22002_v15, %v3102_v11  ;;  %v22004_v51 = vld [vmem:[#allocation100_spill] sm:$0xff]  ;;  %v22007_v35 = vld [vmem:[#allocation99_spill] sm:$0xff]  ;;  %v8629_v40 = vadd.f32 %v21449_v36, %v8615_v25 }
 0x5f5   : > { %v10398_v31 = vadd.f32 %v10397_v44, %v10384_v57  ;;  %v8655_v17 = vadd.f32 %v8363_v14, %v6824_v13  ;;  %11057 = vmatpush.bf16.msrb.mxu3 %v19682_v48  ;;  %v19681_v44 = vld [vmem:[#allocation10 + $0xe8] sm:$0xff]  ;;  %v6784_v47 = vadd.f32 %v22004_v51, %v22003_v28  ;;  %v22006_v14 = vld [vmem:[#allocation41_spill] sm:$0xff] }
 0x5f6   : > { %11386 = vmatpush.bf16.msrb.mxu2 %v19732_v26  ;;  %v6828_v39 = vadd.f32 %v6756_v19, %v5014_v23  ;;  %v19771_v26 = vld [vmem:[#allocation10 + $0x3b8] sm:$0xff]  ;;  %v19714_v19 = vld [vmem:[#allocation10 + $0x1f0] sm:$0xff]  ;;  %v19769_v56 = vld [vmem:[#allocation10 + $0x3a8] sm:$0xff] }
 0x5f7   : > { %v10412_v22 = vadd.f32 %v10411_v46, %v10398_v31  ;;  %v10490_v46 = vmax.f32 %v21494_v49, 0.0  ;;  %v10482_v3 = vadd.f32 %v10190_v18, %v8655_v17  ;;  %v22001_v49 = vld [vmem:[#allocation72_spill] sm:$0xff]  ;;  %v10425_v31 = vpop.f32.mrf.mxu2  ;;  %v6798_v23 = vadd.f32 %v22007_v35, %v6784_v47  ;;  %v19739_v51 = vld [vmem:[#allocation10 + $0x2b8] sm:$0xff]  ;;  %v19708_v35 = vld [vmem:[#allocation10 + $0x1c0] sm:$0xff] }
 0x5f8   : > { %11674 = vmatpush.bf16.msrb.mxu0 %v19760_v63  ;;  %v8659_v57 = vadd.f32 %v8587_v59, %v6828_v39  ;;  %v4970_v62 = vadd.f32 %v22001_v49, %v22000_v21  ;;  %v22005_v63 = vld [vmem:[#allocation71_spill] sm:$0xff]  ;;  %v19770_v59 = vld [vmem:[#allocation10 + $0x3b0] sm:$0xff]  ;;  %v22010_v39 = vld [vmem:[#allocation98_spill] sm:$0xff] }
 0x5f9   : > { %v10478_v29 = vadd.f32 %v10412_v22, %v21996_v55  ;;  %v10453_v12 = vpop.f32.mrf.mxu3  ;;  %11058 = vmatpush.bf16.msrb.mxu3 %v19681_v44  ;;  %v3130_v55 = vadd.f32 %v22006_v14, %v3116_v20  ;;  %v6812_v17 = vadd.f32 %v22010_v39, %v6798_v23  ;;  %v19768_v44 = vld [vmem:[#allocation10 + $0x3a0] sm:$0xff]  ;;  %v19767_v47 = vld [vmem:[#allocation10 + $0x398] sm:$0xff]  ;;  %v19737_v14 = vld [vmem:[#allocation10 + $0x2a8] sm:$0xff] }
 0x5fa   : > { %v4984_v0 = vadd.f32 %v22005_v63, %v4970_v62  ;;  %v19751_v23 = vld [vmem:[#allocation10 + $0x318] sm:$0xff]  ;;  %v19806_v39 = vld [vmem:[#allocation10 + $0x4d0] sm:$0xff] }
 0x5fb   : > { %v10494_v38 = vmax.f32 %v10478_v29, 0.0 }
 0x5fc   : > { %v10399_v5 = vpop.f32.mrf.mxu0 }
 0x5fd   : > { %v10506_v16 = vmax.f32 %v10490_v46, %v10494_v38  ;;  %v10400_v53 = vadd.f32 %v10399_v5, %v10386_v32  ;;  %v10498_v32 = vmax.f32 %v10482_v3, 0.0  ;;  %v22008_v46 = vld [vmem:[#allocation70_spill] sm:$0xff]  ;;  %11059 = vmatpush.bf16.msrb.mxu3 %v19680_v6  ;;  %v22009_v38 = vperm.slane %v21928_v24, 7  ;;  %v19722_v6 = vld [vmem:[#allocation10 + $0x230] sm:$0xff] }
 0x5fe   : > { %v4998_v18 = vadd.f32 %v22008_v46, %v4984_v0  ;;  %v19712_v24 = vld [vmem:[#allocation10 + $0x1e0] sm:$0xff]  ;;  %v19723_v0 = vld [vmem:[#allocation10 + $0x238] sm:$0xff]  ;;  %v11685_v46 = vrot.slane %v21571_v45, 1 }
 0x5ff   : > { %v10519_v34 = vrot.slane %v10506_v16, 1  ;;  %v10414_v7 = vadd.f32 %v10413_v33, %v10400_v53  ;;  %v19713_v33 = vld [vmem:[#allocation10 + $0x1e8] sm:$0xff]  ;;  %v3164_v5 = vadd.f32 %v22009_v38, %v3130_v55 }
 0x600   : > { %v19765_v55 = vld [vmem:[#allocation10 + $0x388] sm:$0xff]  ;;  %v11693_v38 = vmax.f32 %v21571_v45, %v11685_v46  ;;  %v19718_v45 = vld [vmem:[#allocation10 + $0x210] sm:$0xff]  ;;  %v19752_v46 = vld [vmem:[#allocation10 + $0x320] sm:$0xff] }
 0x601   : > { %v10527_v1 = vmax.f32 %v10506_v16, %v10519_v34  ;;  %v10486_v4 = vadd.f32 %v10414_v7, %v8659_v57  ;;  %v22011_v16 = vld [vmem:[#allocation121_spill] sm:$0xff]  ;;  %v5015_v11 = vadd.f32 %v4998_v18, %v3164_v5  ;;  %v10427_v57 = vpop.f32.mrf.mxu2  ;;  %v22012_v34 = vld [vmem:[#allocation122_spill] sm:$0xff]  ;;  %v10491_v7 = vmax.f32 %v21522_v61, 0.0  ;;  %v10455_v49 = vpop.f32.mrf.mxu3 }
 0x602   : > { %v8643_v36 = vadd.f32 %v22012_v34, %v8629_v40  ;;  %v19720_v18 = vld [vmem:[#allocation10 + $0x220] sm:$0xff]  ;;  %v19807_v40 = vld [vmem:[#allocation10 + $0x4d8] sm:$0xff] }
 0x603   : > { %v21669_v37 = vpack.c.bf16 %v10527_v1, %v10527_v1  ;;  %v10502_v27 = vmax.f32 %v10486_v4, 0.0  ;;  %v6829_v62 = vadd.f32 %v6812_v17, %v5015_v11  ;;  %v19719_v5 = vld [vmem:[#allocation10 + $0x218] sm:$0xff]  ;;  %v10874_v17 = vrot.slane %v21569_v2, 1  ;;  %v19776_v34 = vld [vmem:[#allocation10 + $0x3e0] sm:$0xff] }
 0x604   : > { %v10467_v29 = vpop.f32.mrf.mxu0  ;;  %v21703_v11 = vpack.c.bf16 %v11693_v38, %v11693_v38 }
 0x605   : > { %v21674_v22 = vmax.f32 %v10498_v32, %v10502_v27  ;;  %10794 = vmatmul.bf16.vlgmr.msrb.gmra.mxu1 %v21669_v37  ;;  %v10876_v10 = vrot.slane %v21669_v37, 1  ;;  %v11164_v58 = vrot.slane %v21669_v37, 2  ;;  %v8660_v20 = vadd.f32 %v8643_v36, %v6829_v62  ;;  %v19711_v27 = vld [vmem:[#allocation10 + $0x1d8] sm:$0xff]  ;;  %v19717_v36 = vld [vmem:[#allocation10 + $0x208] sm:$0xff]  ;;  %v19746_v62 = vld [vmem:[#allocation10 + $0x2f0] sm:$0xff] }
 0x606   : > { %v10439_v52 = vpop.f32.mrf.mxu1  ;;  %11340 = vmatpush.bf16.msrb.mxu1 %v19715_v41  ;;  %v19740_v41 = vld [vmem:[#allocation10 + $0x2c0] sm:$0xff] }
 0x607   : > { %v10440_v43 = vadd.f32 %v10439_v52, %v10425_v31  ;;  %11086 = vmatmul.bf16.vlgmr.msra.gmra.mxu2 %v10876_v10  ;;  %11374 = vmatmul.bf16.vlgmr.msra.gmra.mxu0 %v11164_v58  ;;  %v11687_v38 = vrot.slane %v21674_v22, 1 }
 0x608   : > { %11628 = vmatpush.bf16.msra.mxu2 %v19743_v8  ;;  %11929 = vmatpush.bf16.msra.mxu0 %v19771_v26  ;;  %v10499_v8 = vmax.f32 %v21525_v42, 0.0  ;;  %v19709_v42 = vld [vmem:[#allocation10 + $0x1c8] sm:$0xff] }
 0x609   : > { %v10454_v13 = vadd.f32 %v10453_v12, %v10440_v43  ;;  %v19710_v12 = vld [vmem:[#allocation10 + $0x1d0] sm:$0xff] }
 0x60a   : > { %11341 = vmatpush.bf16.msrb.mxu1 %v19714_v19  ;;  %v19738_v43 = vld [vmem:[#allocation10 + $0x2b0] sm:$0xff] }
 0x60b   : > { %v10468_v9 = vadd.f32 %v10467_v29, %v10454_v13  ;;  %v19766_v19 = vld [vmem:[#allocation10 + $0x390] sm:$0xff]  ;;  %v19721_v29 = vld [vmem:[#allocation10 + $0x228] sm:$0xff]  ;;  %v19736_v13 = vld [vmem:[#allocation10 + $0x2a0] sm:$0xff] }
 0x60c   : > { %11629 = vmatpush.bf16.msra.mxu2 %v19742_v60  ;;  %11930 = vmatpush.bf16.msra.mxu0 %v19770_v59  ;;  %v10469_v15 = vpop.f32.mrf.mxu0  ;;  %v19764_v60 = vld [vmem:[#allocation10 + $0x380] sm:$0xff]  ;;  %v19779_v59 = vld [vmem:[#allocation10 + $0x3f8] sm:$0xff] }
 0x60d   : > { %v10479_v53 = vadd.f32 %v10468_v9, %v22011_v16  ;;  %v19750_v9 = vld [vmem:[#allocation10 + $0x310] sm:$0xff]  ;;  %v19749_v16 = vld [vmem:[#allocation10 + $0x308] sm:$0xff] }
 0x60e   : > { %v10441_v3 = vpop.f32.mrf.mxu1  ;;  %11342 = vmatpush.bf16.msrb.mxu1 %v19713_v33  ;;  %v19778_v33 = vld [vmem:[#allocation10 + $0x3f0] sm:$0xff] }
 0x60f   : > { %v10495_v48 = vmax.f32 %v10479_v53, 0.0  ;;  %v10442_v21 = vadd.f32 %v10441_v3, %v10427_v57  ;;  %v11162_v53 = vrot.slane %v21569_v2, 2  ;;  %v19805_v57 = vld [vmem:[#allocation10 + $0x4c8] sm:$0xff]  ;;  %v19748_v3 = vld [vmem:[#allocation10 + $0x300] sm:$0xff] }
 0x610   : > { %11630 = vmatpush.bf16.msra.mxu2 %v19741_v50  ;;  %11931 = vmatpush.bf16.msra.mxu0 %v19769_v56  ;;  %v11450_v50 = vrot.slane %v21569_v2, 3  ;;  %v19777_v56 = vld [vmem:[#allocation10 + $0x3e8] sm:$0xff]  ;;  %v19747_v2 = vld [vmem:[#allocation10 + $0x2f8] sm:$0xff] }
 0x611   : > { %v10507_v1 = vmax.f32 %v10491_v7, %v10495_v48  ;;  %v10456_v4 = vadd.f32 %v10455_v49, %v10442_v21  ;;  %v19804_v7 = vld [vmem:[#allocation10 + $0x4c0] sm:$0xff]  ;;  %v19775_v48 = vld [vmem:[#allocation10 + $0x3d8] sm:$0xff] }
 0x612   : > { %11343 = vmatpush.bf16.msrb.mxu1 %v19712_v24  ;;  %v19716_v21 = vld [vmem:[#allocation10 + $0x200] sm:$0xff]  ;;  %v19803_v24 = vld [vmem:[#allocation10 + $0x4b8] sm:$0xff] }
 0x613   : > { %v10520_v32 = vrot.slane %v10507_v1, 1  ;;  %v10470_v31 = vadd.f32 %v10469_v15, %v10456_v4  ;;  %v19759_v49 = vld [vmem:[#allocation10 + $0x358] sm:$0xff]  ;;  %v19802_v4 = vld [vmem:[#allocation10 + $0x4b0] sm:$0xff] }
 0x614   : > { %11631 = vmatpush.bf16.msra.mxu2 %v19740_v41  ;;  %11932 = vmatpush.bf16.msra.mxu0 %v19768_v44  ;;  %v11686_v41 = vrot.slane %v21618_v54, 1  ;;  %v11163_v44 = vrot.slane %v21616_v30, 2  ;;  %v19758_v15 = vld [vmem:[#allocation10 + $0x350] sm:$0xff] }
 0x615   : > { %v10528_v28 = vmax.f32 %v10507_v1, %v10520_v32  ;;  %v10487_v61 = vadd.f32 %v10470_v31, %v8660_v20  ;;  %v19774_v1 = vld [vmem:[#allocation10 + $0x3d0] sm:$0xff]  ;;  %v19745_v20 = vld [vmem:[#allocation10 + $0x2e8] sm:$0xff] }
 0x616   : > { %11344 = vmatpush.bf16.msrb.mxu1 %v19711_v27  ;;  %v19773_v32 = vld [vmem:[#allocation10 + $0x3c8] sm:$0xff]  ;;  %v11694_v27 = vmax.f32 %v21618_v54, %v11686_v41  ;;  %v11451_v54 = vrot.slane %v21616_v30, 3  ;;  %v19754_v30 = vld [vmem:[#allocation10 + $0x330] sm:$0xff] }
 0x617   : > { %v10532_v26 = vpack.c.bf16 %v10528_v28, %v10528_v28  ;;  %v10503_v63 = vmax.f32 %v10487_v61, 0.0  ;;  %v19801_v31 = vld [vmem:[#allocation10 + $0x4a8] sm:$0xff]  ;;  %v19744_v61 = vld [vmem:[#allocation10 + $0x2e0] sm:$0xff]  ;;  %v19798_v41 = vld [vmem:[#allocation10 + $0x490] sm:$0xff] }
 0x618   : > { %11632 = vmatpush.bf16.msra.mxu2 %v19739_v51  ;;  %11933 = vmatpush.bf16.msra.mxu0 %v19767_v47  ;;  %v19757_v28 = vld [vmem:[#allocation10 + $0x348] sm:$0xff]  ;;  %v19787_v51 = vld [vmem:[#allocation10 + $0x438] sm:$0xff]  ;;  %v19772_v47 = vld [vmem:[#allocation10 + $0x3c0] sm:$0xff] }
 0x619   : > { %v21692_v52 = vmax.f32 %v10499_v8, %v10503_v63  ;;  %v10877_v10 = vrot.slane %v10532_v26, 1  ;;  %v11165_v58 = vrot.slane %v10532_v26, 2  ;;  %v11453_v25 = vrot.slane %v10532_v26, 3  ;;  %17766 = vmatmul.msk.bf16.vlgmr.msra.gmra.mxu3 %vm2681_vm4, %v10532_v26  ;;  %v19800_v8 = vld [vmem:[#allocation10 + $0x4a0] sm:$0xff]  ;;  %v19815_v26 = vld [vmem:[#allocation10 + $0x518] sm:$0xff] }
 0x61a   : > { %11353 = vmatpush.bf16.msra.mxu3 %v19723_v0  ;;  %11345 = vmatpush.bf16.msrb.mxu1 %v19710_v12  ;;  %v21709_v63 = vpack.c.bf16 %v11694_v27, %v11694_v27  ;;  %v19756_v0 = vld [vmem:[#allocation10 + $0x340] sm:$0xff]  ;;  %v19843_v12 = vld [vmem:[#allocation10 + $0x5f8] sm:$0xff] }
 0x61b   : > { %17879 = vmatmul.msk.bf16.vlgmr.msra.gmra.mxu1 %vm2681_vm4, %v10877_v10  ;;  %17992 = vmatmul.msk.bf16.vlgmr.msrb.gmra.mxu2 %vm2681_vm4, %v11165_v58  ;;  %v19786_v10 = vld [vmem:[#allocation10 + $0x430] sm:$0xff]  ;;  %v19827_v27 = vld [vmem:[#allocation10 + $0x578] sm:$0xff] }
 0x61c   : > { %18105 = vmatmul.msk.bf16.vlgmr.msrb.gmra.mxu0 %vm2681_vm4, %v11453_v25  ;;  %11633 = vmatpush.bf16.msra.mxu2 %v19738_v43  ;;  %v19814_v58 = vld [vmem:[#allocation10 + $0x510] sm:$0xff]  ;;  %v12044_v25 = vrot.slane %v21709_v63, 1  ;;  %v19755_v43 = vld [vmem:[#allocation10 + $0x338] sm:$0xff] }
 0x61d   : > { %11934 = vmatpush.bf16.msra.mxu0 %v19766_v19  ;;  %v19842_v19 = vld [vmem:[#allocation10 + $0x5f0] sm:$0xff] }
 0x61e   : > { %11354 = vmatpush.bf16.msra.mxu3 %v19722_v6  ;;  %11346 = vmatpush.bf16.msrb.mxu1 %v19709_v42  ;;  %v19785_v6 = vld [vmem:[#allocation10 + $0x428] sm:$0xff] }
 0x61f   : > { %v19813_v42 = vld [vmem:[#allocation10 + $0x508] sm:$0xff] }
 0x620   : > { %11634 = vmatpush.bf16.msra.mxu2 %v19737_v14  ;;  %v19841_v14 = vld [vmem:[#allocation10 + $0x5e8] sm:$0xff] }
 0x621   : > { %11935 = vmatpush.bf16.msra.mxu0 %v19765_v55  ;;  %v19784_v55 = vld [vmem:[#allocation10 + $0x420] sm:$0xff] }
 0x622   : > { %11355 = vmatpush.bf16.msra.mxu3 %v19721_v29  ;;  %11347 = vmatpush.bf16.msrb.mxu1 %v19708_v35  ;;  %v19812_v29 = vld [vmem:[#allocation10 + $0x500] sm:$0xff] }
 0x624   : > { %11635 = vmatpush.bf16.msra.mxu2 %v19736_v13  ;;  %v19840_v13 = vld [vmem:[#allocation10 + $0x5e0] sm:$0xff] }
 0x625   : > { %11936 = vmatpush.bf16.msra.mxu0 %v19764_v60  ;;  %v19783_v60 = vld [vmem:[#allocation10 + $0x418] sm:$0xff] }
 0x626   : > { %11641 = vmatpush.bf16.msra.mxu1 %v19751_v23  ;;  %11356 = vmatpush.bf16.msra.mxu3 %v19720_v18  ;;  %v19753_v23 = vld [vmem:[#allocation10 + $0x328] sm:$0xff]  ;;  %v19839_v18 = vld [vmem:[#allocation10 + $0x5d8] sm:$0xff] }
 0x628   : > { %11942 = vmatpush.bf16.msrb.mxu2 %v19779_v59  ;;  %v19811_v59 = vld [vmem:[#allocation10 + $0x4f8] sm:$0xff] }
 0x629   : > { %12234 = vmatpush.bf16.msrb.mxu0 %v19807_v40  ;;  %11060 = vmatmul.bf16.vlgmr.msrb.gmra.mxu3 %v10874_v17  ;;  %v19791_v40 = vld [vmem:[#allocation10 + $0x458] sm:$0xff]  ;;  %v19838_v17 = vld [vmem:[#allocation10 + $0x5d0] sm:$0xff] }
 0x62a   : > { %11642 = vmatpush.bf16.msra.mxu1 %v19750_v9  ;;  %11357 = vmatpush.bf16.msra.mxu3 %v19719_v5  ;;  %v19782_v9 = vld [vmem:[#allocation10 + $0x410] sm:$0xff] }
 0x62b   : > { %11348 = vmatmul.bf16.vlgmr.msrb.gmra.mxu1 %v11162_v53  ;;  %11636 = vmatmul.bf16.vlgmr.msra.gmra.mxu2 %v11450_v50  ;;  %v19781_v53 = vld [vmem:[#allocation10 + $0x408] sm:$0xff] }
 0x62c   : > { %11943 = vmatpush.bf16.msrb.mxu2 %v19778_v33  ;;  %11937 = vmatmul.bf16.vlgmr.msra.gmra.mxu0 %v21703_v11  ;;  %v19810_v33 = vld [vmem:[#allocation10 + $0x4f0] sm:$0xff]  ;;  %v19809_v50 = vld [vmem:[#allocation10 + $0x4e8] sm:$0xff] }
 0x62d   : > { %12235 = vmatpush.bf16.msrb.mxu0 %v19806_v39  ;;  %v11452_v39 = vrot.slane %v21669_v37, 3  ;;  %v19847_v37 = vld [vmem:[#allocation10 + $0x618] sm:$0xff] }
 0x62e   : > { %11643 = vmatpush.bf16.msra.mxu1 %v19749_v16  ;;  %11358 = vmatpush.bf16.msra.mxu3 %v19718_v45  ;;  %v19790_v16 = vld [vmem:[#allocation10 + $0x450] sm:$0xff]  ;;  %v19837_v45 = vld [vmem:[#allocation10 + $0x5c8] sm:$0xff] }
 0x630   : > { %11944 = vmatpush.bf16.msrb.mxu2 %v19777_v56  ;;  %v11695_v56 = vmax.f32 %v21674_v22, %v11687_v38  ;;  %v19799_v22 = vld [vmem:[#allocation10 + $0x498] sm:$0xff] }
 0x631   : > { %12236 = vmatpush.bf16.msrb.mxu0 %v19805_v57  ;;  %v19789_v57 = vld [vmem:[#allocation10 + $0x448] sm:$0xff]  ;;  %v19831_v38 = vld [vmem:[#allocation10 + $0x598] sm:$0xff] }
 0x632   : > { %11644 = vmatpush.bf16.msra.mxu1 %v19748_v3  ;;  %11359 = vmatpush.bf16.msra.mxu3 %v19717_v36  ;;  %v19780_v3 = vld [vmem:[#allocation10 + $0x400] sm:$0xff] }
 0x633   : > { %v19808_v36 = vld [vmem:[#allocation10 + $0x4e0] sm:$0xff] }
 0x634   : > { %11945 = vmatpush.bf16.msrb.mxu2 %v19776_v34  ;;  %v19819_v34 = vld [vmem:[#allocation10 + $0x538] sm:$0xff] }
 0x635   : > { %12237 = vmatpush.bf16.msrb.mxu0 %v19804_v7  ;;  %v11699_v7 = vpack.c.bf16 %v11695_v56, %v11695_v56 }
 0x636   : > { %11645 = vmatpush.bf16.msra.mxu1 %v19747_v2  ;;  %11360 = vmatpush.bf16.msra.mxu3 %v19716_v21  ;;  %v19836_v2 = vld [vmem:[#allocation10 + $0x5c0] sm:$0xff] }
 0x637   : > { %v19788_v21 = vld [vmem:[#allocation10 + $0x440] sm:$0xff] }
 0x638   : > { %11946 = vmatpush.bf16.msrb.mxu2 %v19775_v48  ;;  %v11688_v48 = vrot.slane %v21692_v52, 1 }
 0x639   : > { %12238 = vmatpush.bf16.msrb.mxu0 %v19803_v24  ;;  %11361 = vmatmul.bf16.vlgmr.msra.gmra.mxu3 %v11163_v44  ;;  %v19818_v24 = vld [vmem:[#allocation10 + $0x530] sm:$0xff]  ;;  %v19817_v44 = vld [vmem:[#allocation10 + $0x528] sm:$0xff] }
 0x63a   : > { %11654 = vmatpush.bf16.msrb.mxu3 %v19759_v49  ;;  %11646 = vmatpush.bf16.msra.mxu1 %v19746_v62  ;;  %v12045_v49 = vrot.slane %v11699_v7, 1  ;;  %v19846_v62 = vld [vmem:[#allocation10 + $0x610] sm:$0xff] }
 0x63c   : > { %11947 = vmatpush.bf16.msrb.mxu2 %v19774_v1  ;;  %v11696_v1 = vmax.f32 %v21692_v52, %v11688_v48  ;;  %v19844_v52 = vld [vmem:[#allocation10 + $0x600] sm:$0xff] }
 0x63d   : > { %12239 = vmatpush.bf16.msrb.mxu0 %v19802_v4  ;;  %v12333_v4 = vrot.slane %v11699_v7, 2 }
 0x63e   : > { %11655 = vmatpush.bf16.msrb.mxu3 %v19758_v15  ;;  %11647 = vmatpush.bf16.msra.mxu1 %v19745_v20  ;;  %v19845_v15 = vld [vmem:[#allocation10 + $0x608] sm:$0xff]  ;;  %v11700_v20 = vpack.c.bf16 %v11696_v1, %v11696_v1 }
 0x640   : > { %11948 = vmatpush.bf16.msrb.mxu2 %v19773_v32  ;;  %v19797_v32 = vld [vmem:[#allocation10 + $0x488] sm:$0xff] }
 0x641   : > { %12240 = vmatpush.bf16.msrb.mxu0 %v19801_v31  ;;  %v19816_v31 = vld [vmem:[#allocation10 + $0x520] sm:$0xff] }
 0x642   : > { %11656 = vmatpush.bf16.msrb.mxu3 %v19757_v28  ;;  %11648 = vmatpush.bf16.msra.mxu1 %v19744_v61  ;;  %v19796_v61 = vld [vmem:[#allocation10 + $0x480] sm:$0xff] }
 0x644   : > { %11949 = vmatpush.bf16.msrb.mxu2 %v19772_v47  ;;  %v21714_v35 = vpop.f32.mrf.mxu0 }
 0x645   : > { %12241 = vmatpush.bf16.msrb.mxu0 %v19800_v8  ;;  %11649 = vmatmul.bf16.vlgmr.msra.gmra.mxu1 %v11451_v54  ;;  %v19825_v54 = vld [vmem:[#allocation10 + $0x568] sm:$0xff] }
 0x646   : > { %11955 = vmatpush.bf16.msrb.mxu1 %v19787_v51  ;;  %11657 = vmatpush.bf16.msrb.mxu3 %v19756_v0  ;;  %v19826_v51 = vld [vmem:[#allocation10 + $0x570] sm:$0xff]  ;;  %v19795_v0 = vld [vmem:[#allocation10 + $0x478] sm:$0xff] }
 0x647   : > { %11950 = vmatmul.bf16.vlgmr.msrb.gmra.mxu2 %v21709_v63 }
 0x648   : > { %12247 = vmatpush.bf16.msra.mxu2 %v19815_v26  ;;  %12242 = vmatmul.bf16.vlgmr.msrb.gmra.mxu0 %v12044_v25  ;;  %v12046_v26 = vrot.slane %v11700_v20, 1  ;;  %v19824_v25 = vld [vmem:[#allocation10 + $0x560] sm:$0xff] }
 0x649   : > { %12535 = vmatpush.bf16.msra.mxu0 %v19843_v12  ;;  %v12334_v12 = vrot.slane %v11700_v20, 2 }
 0x64a   : > { %11956 = vmatpush.bf16.msrb.mxu1 %v19786_v10  ;;  %11658 = vmatpush.bf16.msrb.mxu3 %v19755_v43 }
 0x64c   : > { %12248 = vmatpush.bf16.msra.mxu2 %v19814_v58  ;;  %v10771_v5 = vpop.f32.mrf.mxu0  ;;  %v19794_v58 = vld [vmem:[#allocation10 + $0x470] sm:$0xff] }
 0x64d   : > { %12536 = vmatpush.bf16.msra.mxu0 %v19842_v19  ;;  %v19793_v19 = vld [vmem:[#allocation10 + $0x468] sm:$0xff] }
 0x64e   : > { %11957 = vmatpush.bf16.msrb.mxu1 %v19785_v6  ;;  %11659 = vmatpush.bf16.msrb.mxu3 %v19754_v30  ;;  %v19823_v6 = vld [vmem:[#allocation10 + $0x558] sm:$0xff] }
 0x64f   : > { %v19835_v30 = vld [vmem:[#allocation10 + $0x5b8] sm:$0xff] }
 0x650   : > { %12249 = vmatpush.bf16.msra.mxu2 %v19813_v42  ;;  %v19792_v42 = vld [vmem:[#allocation10 + $0x460] sm:$0xff] }
 0x651   : > { %12537 = vmatpush.bf16.msra.mxu0 %v19841_v14  ;;  %v19822_v14 = vld [vmem:[#allocation10 + $0x550] sm:$0xff] }
 0x652   : > { %11958 = vmatpush.bf16.msrb.mxu1 %v19784_v55  ;;  %11660 = vmatpush.bf16.msrb.mxu3 %v19753_v23  ;;  %v12043_v55 = vrot.slane %v21703_v11, 1 }
 0x654   : > { %12250 = vmatpush.bf16.msra.mxu2 %v19812_v29  ;;  %v19834_v29 = vld [vmem:[#allocation10 + $0x5b0] sm:$0xff] }
 0x655   : > { %12538 = vmatpush.bf16.msra.mxu0 %v19840_v13 }
 0x656   : > { %11959 = vmatpush.bf16.msrb.mxu1 %v19783_v60  ;;  %11661 = vmatpush.bf16.msrb.mxu3 %v19752_v46  ;;  %v19833_v60 = vld [vmem:[#allocation10 + $0x5a8] sm:$0xff] }
 0x658   : > { %12251 = vmatpush.bf16.msra.mxu2 %v19811_v59  ;;  %v19820_v59 = vld [vmem:[#allocation10 + $0x540] sm:$0xff] }
 0x659   : > { %12539 = vmatpush.bf16.msra.mxu0 %v19839_v18  ;;  %11662 = vmatmul.bf16.vlgmr.msrb.gmra.mxu3 %v11452_v39  ;;  %v19832_v18 = vld [vmem:[#allocation10 + $0x5a0] sm:$0xff]  ;;  %v19830_v39 = vld [vmem:[#allocation10 + $0x590] sm:$0xff] }
 0x65a   : > { %11972 = vmatpush.bf16.msra.mxu3 %v19791_v40  ;;  %11960 = vmatpush.bf16.msrb.mxu1 %v19782_v9  ;;  %v12331_v40 = vrot.slane %v21703_v11, 2 }
 0x65c   : > { %12252 = vmatpush.bf16.msra.mxu2 %v19810_v33 }
 0x65d   : > { %12540 = vmatpush.bf16.msra.mxu0 %v19838_v17 }
 0x65e   : > { %11973 = vmatpush.bf16.msra.mxu3 %v19790_v16  ;;  %11961 = vmatpush.bf16.msrb.mxu1 %v19781_v53  ;;  %v19829_v16 = vld [vmem:[#allocation10 + $0x588] sm:$0xff]  ;;  %v19828_v53 = vld [vmem:[#allocation10 + $0x580] sm:$0xff] }
 0x660   : > { %12253 = vmatpush.bf16.msra.mxu2 %v19809_v50 }
 0x661   : > { %12541 = vmatpush.bf16.msra.mxu0 %v19837_v45 }
 0x662   : > { %11974 = vmatpush.bf16.msra.mxu3 %v19789_v57  ;;  %11962 = vmatpush.bf16.msrb.mxu1 %v19780_v3  ;;  %v12332_v57 = vrot.slane %v21709_v63, 2 }
 0x664   : > { %12254 = vmatpush.bf16.msra.mxu2 %v19808_v36 }
 0x665   : > { %12542 = vmatpush.bf16.msra.mxu0 %v19836_v2  ;;  %11963 = vmatmul.bf16.vlgmr.msrb.gmra.mxu1 %v11699_v7 }
 0x666   : > { %12264 = vmatpush.bf16.msra.mxu1 %v19819_v34  ;;  %11975 = vmatpush.bf16.msra.mxu3 %v19788_v21 }
 0x667   : > { %12255 = vmatmul.bf16.vlgmr.msra.gmra.mxu2 %v12045_v49 }
 0x668   : > { %12552 = vmatpush.bf16.msrb.mxu2 %v19847_v37  ;;  %12543 = vmatmul.bf16.vlgmr.msra.gmra.mxu0 %v12333_v4  ;;  %v21722_v28 = vpop.f32.mrf.mxu0 }
 0x669   : > { %18218 = vmatmul.msk.bf16.vlgmr.msra.gmra.mxu3 %vm2681_vm4, %v11700_v20 }
 0x66a   : > { %12221 = vmatpush.bf16.msrb.mxu3 %v19799_v22  ;;  %12265 = vmatpush.bf16.msra.mxu1 %v19818_v24  ;;  %v10512_v24 = vld [vmem:[#allocation11] sm:$0x1] }
 0x66c   : > { %12553 = vmatpush.bf16.msrb.mxu2 %v19846_v62  ;;  %v10782_v47 = vpop.f32.mrf.mxu2 }
 0x66d   : > { %v10783_v8 = vadd.f32 %v10782_v47, %v21714_v35  ;;  %v19821_v35 = vld [vmem:[#allocation10 + $0x548] sm:$0xff] }
 0x66e   : > { %12222 = vmatpush.bf16.msrb.mxu3 %v19798_v41  ;;  %12266 = vmatpush.bf16.msra.mxu1 %v19817_v44 }
 0x670   : > { %12554 = vmatpush.bf16.msrb.mxu2 %v19845_v15  ;;  %v11076_v10 = vpop.f32.mrf.mxu0 }
 0x672   : > { %12223 = vmatpush.bf16.msrb.mxu3 %v19797_v32  ;;  %12267 = vmatpush.bf16.msra.mxu1 %v19816_v31 }
 0x674   : > { %12555 = vmatpush.bf16.msrb.mxu2 %v19844_v52  ;;  %v10784_v43 = vpop.f32.mrf.mxu2 }
 0x675   : > { %18331 = vmatmul.msk.bf16.vlgmr.msra.gmra.mxu1 %vm2681_vm4, %v12046_v26 }
 0x676   : > { %12509 = vmatpush.bf16.msrb.mxu1 %v19827_v27  ;;  %12224 = vmatpush.bf16.msrb.mxu3 %v19796_v61 }
 0x677   : > { %18444 = vmatmul.msk.bf16.vlgmr.msrb.gmra.mxu2 %vm2681_vm4, %v12334_v12 }
 0x67a   : > { %12510 = vmatpush.bf16.msrb.mxu1 %v19826_v51  ;;  %12225 = vmatpush.bf16.msrb.mxu3 %v19795_v0 }
 0x67e   : > { %12511 = vmatpush.bf16.msrb.mxu1 %v19825_v54  ;;  %12226 = vmatpush.bf16.msrb.mxu3 %v19794_v58 }
 0x682   : > { %12512 = vmatpush.bf16.msrb.mxu1 %v19824_v25  ;;  %12227 = vmatpush.bf16.msrb.mxu3 %v19793_v19  ;;  %v10795_v23 = vpop.f32.mrf.mxu1 }
 0x683   : > { %v10796_v13 = vadd.f32 %v10795_v23, %v10783_v8 }
 0x684   : > { %v11375_v46 = vpop.f32.mrf.mxu0 }
 0x686   : > { %12513 = vmatpush.bf16.msrb.mxu1 %v19823_v6  ;;  %12228 = vmatpush.bf16.msrb.mxu3 %v19792_v42 }
 0x689   : > { %12229 = vmatmul.bf16.vlgmr.msrb.gmra.mxu3 %v12043_v55 }
 0x68a   : > { %12522 = vmatpush.bf16.msra.mxu3 %v19835_v30  ;;  %12514 = vmatpush.bf16.msrb.mxu1 %v19822_v14  ;;  %v10797_v9 = vpop.f32.mrf.mxu1  ;;  %v11087_v33 = vpop.f32.mrf.mxu2 }
 0x68c   : > { %v11377_v5 = vpop.f32.mrf.mxu0 }
 0x68e   : > { %12523 = vmatpush.bf16.msra.mxu3 %v19834_v29  ;;  %12515 = vmatpush.bf16.msrb.mxu1 %v19821_v35 }
 0x692   : > { %12524 = vmatpush.bf16.msra.mxu3 %v19833_v60  ;;  %12516 = vmatpush.bf16.msrb.mxu1 %v19820_v59  ;;  %v11089_v17 = vpop.f32.mrf.mxu2 }
 0x695   : > { %12517 = vmatmul.bf16.vlgmr.msrb.gmra.mxu1 %v12331_v40 }
 0x696   : > { %12525 = vmatpush.bf16.msra.mxu3 %v19832_v18 }
 0x698   : > { %v11100_v50 = vpop.f32.mrf.mxu1 }
 0x699   : > { %v11676_v56 = vpop.f32.mrf.mxu0 }
 0x69a   : > { %12526 = vmatpush.bf16.msra.mxu3 %v19831_v38 }
 0x69c   : > { %v10808_v45 = vpop.f32.mrf.mxu3 }
 0x69d   : > { %v10809_v11 = vadd.f32 %v10808_v45, %v10796_v13 }
 0x69e   : > { %12527 = vmatpush.bf16.msra.mxu3 %v19830_v39  ;;  %v11388_v3 = vpop.f32.mrf.mxu2 }
 0x69f   : > { %v10812_v4 = vadd.f32 %v10809_v11, %v10512_v24 }
 0x6a0   : > { %v11102_v34 = vpop.f32.mrf.mxu1 }
 0x6a1   : > { %v11678_v36 = vpop.f32.mrf.mxu0 }
 0x6a2   : > { %12528 = vmatpush.bf16.msra.mxu3 %v19829_v16 }
 0x6a4   : > { %v10810_v7 = vpop.f32.mrf.mxu3 }
 0x6a6   : > { %12529 = vmatpush.bf16.msra.mxu3 %v19828_v53  ;;  %v11390_v37 = vpop.f32.mrf.mxu2 }
 0x6a8   : > { %v11349_v2 = vpop.f32.mrf.mxu1 }
 0x6a9   : > { %12530 = vmatmul.bf16.vlgmr.msra.gmra.mxu3 %v12332_v57  ;;  %v11938_v48 = vpop.f32.mrf.mxu0 }
 0x6ac   : > { %v11061_v21 = vpop.f32.mrf.mxu3 }
 0x6ad   : > { %v11075_v22 = vadd.f32 %v21722_v28, %v11061_v21 }
 0x6ae   : > { %v11637_v49 = vpop.f32.mrf.mxu2 }
 0x6af   : > { %v11088_v62 = vadd.f32 %v11087_v33, %v11075_v22 }
 0x6b0   : > { %v11351_v1 = vpop.f32.mrf.mxu1 }
 0x6b1   : > { %v11101_v41 = vadd.f32 %v11100_v50, %v11088_v62  ;;  %v11940_v44 = vpop.f32.mrf.mxu0 }
 0x6b3   : > { %v11104_v63 = vadd.f32 %v11101_v41, %v10812_v4 }
 0x6b4   : > { %v11063_v15 = vpop.f32.mrf.mxu3 }
 0x6b6   : > { %v11639_v20 = vpop.f32.mrf.mxu2 }
 0x6bc   : > { %v11362_v32 = vpop.f32.mrf.mxu3 }
 0x6bd   : > { %v11363_v31 = vadd.f32 %v11362_v32, %v11349_v2 }
 0x6bf   : > { %v11376_v27 = vadd.f32 %v11375_v46, %v11363_v31 }
 0x6c1   : > { %v11389_v61 = vadd.f32 %v11388_v3, %v11376_v27 }
 0x6c2   : > { %v11650_v52 = vpop.f32.mrf.mxu1 }
 0x6c3   : > { %v11651_v51 = vadd.f32 %v11650_v52, %v11637_v49  ;;  %v11392_v8 = vadd.f32 %v11389_v61, %v11104_v63 }
 0x6c4   : > { %v11364_v26 = vpop.f32.mrf.mxu3 }
 0x6c5   : > { %v12243_v47 = vpop.f32.mrf.mxu0 }
 0x6ca   : > { %v11951_v28 = vpop.f32.mrf.mxu2  ;;  %v11652_v0 = vpop.f32.mrf.mxu1 }
 0x6cb   : > { %v11952_v12 = vadd.f32 %v11951_v28, %v11938_v48 }
 0x6cd   : > { %v12245_v54 = vpop.f32.mrf.mxu0 }
 0x6d2   : > { %v11953_v10 = vpop.f32.mrf.mxu2 }
 0x6dc   : > { %v11663_v58 = vpop.f32.mrf.mxu3 }
 0x6dd   : > { %v11664_v25 = vadd.f32 %v11663_v58, %v11651_v51 }
 0x6df   : > { %v11677_v43 = vadd.f32 %v11676_v56, %v11664_v25 }
 0x6e1   : > { %v11680_v42 = vadd.f32 %v11677_v43, %v11392_v8 }
 0x6e2   : > { %v11964_v19 = vpop.f32.mrf.mxu1 }
 0x6e3   : > { %v11965_v6 = vadd.f32 %v11964_v19, %v11952_v12 }
 0x6e4   : > { %v11665_v14 = vpop.f32.mrf.mxu3 }
 0x6e5   : > { %v12544_v30 = vpop.f32.mrf.mxu0 }
 0x6ea   : > { %v12256_v55 = vpop.f32.mrf.mxu2  ;;  %v11966_v29 = vpop.f32.mrf.mxu1 }
 0x6ec   : > { %v11977_v23 = vpop.f32.mrf.mxu3 }
 0x6ed   : > { %v12546_v35 = vpop.f32.mrf.mxu0  ;;  %v11978_v13 = vadd.f32 %v11977_v23, %v11965_v6 }
 0x6ef   : > { %v11981_v59 = vadd.f32 %v11978_v13, %v11680_v42 }
 0x6f2   : > { %v12258_v60 = vpop.f32.mrf.mxu2  ;;  %v12269_v46 = vpop.f32.mrf.mxu1 }
 0x6f4   : > { %v11979_v18 = vpop.f32.mrf.mxu3 }
 0x6fa   : > { %v12557_v40 = vpop.f32.mrf.mxu2  ;;  %v12271_v9 = vpop.f32.mrf.mxu1 }
 0x702   : > { %v12559_v33 = vpop.f32.mrf.mxu2 }
 0x70c   : > { %v12230_v38 = vpop.f32.mrf.mxu3 }
 0x70d   : > { %v12244_v5 = vadd.f32 %v12243_v47, %v12230_v38 }
 0x70f   : > { %v12257_v39 = vadd.f32 %v12256_v55, %v12244_v5 }
 0x711   : > { %v12270_v16 = vadd.f32 %v12269_v46, %v12257_v39 }
 0x712   : > { %v12518_v17 = vpop.f32.mrf.mxu1 }
 0x713   : > { %v12273_v53 = vadd.f32 %v12270_v16, %v11981_v59 }
 0x714   : > { %v12232_v50 = vpop.f32.mrf.mxu3 }
 0x71a   : > { %v12520_v56 = vpop.f32.mrf.mxu1 }
 0x72c   : > { %v12531_v45 = vpop.f32.mrf.mxu3 }
 0x72d   : > { %v12532_v57 = vadd.f32 %v12531_v45, %v12518_v17 }
 0x72f   : > { %v12545_v11 = vadd.f32 %v12544_v30, %v12532_v57 }
 0x731   : > { %v12558_v3 = vadd.f32 %v12557_v40, %v12545_v11 }
 0x733   : > { %v12561_v34 = vadd.f32 %v12558_v3, %v12273_v53 }
 0x734   : > { %v12533_v36 = vpop.f32.mrf.mxu3 }
 0x735   : > { %v12562_v7 = vmax.f32 %v12561_v34, 0.0 }
 0x737   : > { %12563 = vst [vmem:[%s364_s14] sm:$0x1] %v12562_v7 }
 0x738   : > { %20160 = shalt.err (!%p20157_p8)
}
 0x739   : > { %19872 = dma.vmem_to_hbm [thread:$0]  (%p20301_p5), %s12576_s15, 16, %s12578_s19, %s12565_s20  }
 0x73a PF: > { %p19909_p9 = scmp.ge.s32.totalorder %s20211_s27, 2  ;;  %s12589_s4 = sand.u32 1, %s20199_s24  }
 0x73b   : > { %s12590_s13 = scalar_lea.sflag [#allocation4], %s12589_s4 }
 0x73c   : > { %p19894_p10 = pnand %p19909_p9, %p20305_p6 }
 0x73e   : > { %p19895_p11 = pneg %p19894_p10 }
 0x740   : > { %20194 = dma.done.wait (%p19895_p11), %s12590_s13, 16  }
 0x741   : > { %20196 = vsyncadd (%p19895_p11), %s12590_s13, 4294967280  ;;  %p21_p12 = scmp.ge.s32.totalorder %s20288_s30, 4   ;;  %s22013_s24 = smov %s20203_s25 }
 0x742   : > { %s22014_s25 = smov %s20207_s26  ;;  %s22015_s26 = smov %s20299_s10 }
 0x743   : > { %s22016_s27 = smov %s20288_s30  ;;  %23 = sbr.rel (!%p21_p12) target bundleno = 11 (0xb), region = 118 }
 0x748   :  { %12595 = vsyncpa [#allocation3], 1 }
 0x749   :  { %12597 = vsyncpa [#allocation3 + $0x1], 1 }
 0x74a   :  { %12598 = vsyncpa [#allocation6], 1 }
 0x74b   :  { %12599 = vsyncpa [#allocation9], 1 }
 0x74c   :  { %12600 = vsyncpa [#allocation12], 1 }
 0x74d   :  { %12601 = vsyncpa [#allocation4], 1 }
 0x74e   :  { %12603 = vsyncpa [#allocation4 + $0x1], 1 }

</bundles_post_ra>
